<compile_context>
chip_gen: v7x
topology: tpu7x:2x2x1
jax: 0.10.0
libtpu: 0.0.40
codegen_flags: <defaults>
</compile_context>

<pallas_src>
import functools

import numpy as np

import jax
import jax.numpy as jnp
from jax.experimental import pallas as pl
from jax.experimental.pallas import tpu as pltpu


def _round_up(a, m):
    return (a + m - 1) // m * m


# ----------------------------- Pallas kernel ------------------------------- #

def _cnn_mnist_kernel(x_ref, w1_ref, b1_ref, w2_ref, b2_ref,
                      wfc1_ref, bfc1_ref, wfc2_ref, bfc2_ref, mask_ref, o_ref):
    """Entire CNNMnist forward for one (small) batch, fully resident in VMEM.

    x_ref    : (B, 28, Wp)   bf16  raw input, lanes = (x, c_in) zero-padded to Wp
    w1_ref   : (5*Wp, 768)   bf16  matricized conv1 weight; rows (kh, x_in, c_in),
                                   cols (e_x, p1x, c1) so the x-pool is a lane-half max
    b1_ref   : (1, 384)      f32   conv1 bias tiled over p1x (lanes (p1x, c1))
    w2_ref   : (1920, 512)   bf16  matricized conv2 weight; rows (kh, p1x, c1),
                                   cols (e_x2, p2x, c2)
    b2_ref   : (1, 256)      f32   conv2 bias tiled over p2x (lanes (p2x, c2))
    wfc1_ref : (1024, 512)   bf16  fc1 weight, rows pre-permuted to (p2y, p2x, c2)
    wfc2_ref : (512, 128)    bf16  fc2 weight, classes zero-padded to 128 lanes
    mask_ref : (1, 128)      f32   0 for real classes, -1e30 for padding
    o_ref    : (B, 128)      f32   log_softmax output (padded lanes are junk)
    """
    f32, bf16 = jnp.float32, jnp.bfloat16
    bsz, _, wp = x_ref.shape
    n1 = w1_ref.shape[1]          # 768 = 2 * 12 * 32
    hw1 = n1 // 2                 # 384 = 12 * 32   lanes (p1x, c1)
    n2 = w2_ref.shape[1]          # 512 = 2 * 4 * 64
    hw2 = n2 // 2                 # 256 = 4 * 64    lanes (p2x, c2)

    x = x_ref[...]                                                   # (B, 28, Wp) bf16

    # ---- conv1: one matricized GEMM over the x axis ------------------------
    lhs1 = jnp.concatenate([x[:, kh:kh + 24, :] for kh in range(5)], axis=2)
    lhs1 = lhs1.reshape(bsz * 24, 5 * wp)                            # rows (b, y1)
    y1 = jnp.dot(lhs1, w1_ref[...], preferred_element_type=f32)      # (B*24, 768)
    # 2x2 max-pool: x-halves are lane-aligned, y-pairs are row pairs.
    y1 = jnp.maximum(y1[:, :hw1], y1[:, hw1:])                       # (B*24, 384)
    y1 = jnp.max(y1.reshape(bsz, 12, 2, hw1), axis=2)                # (B, 12, 384)
    # per-channel bias commutes with max-pool; relu after pool (as in reference)
    h1 = jnp.maximum(y1 + b1_ref[...], 0.0).astype(bf16)             # (B, 12, 384)

    # ---- conv2: one matricized GEMM over the x axis ------------------------
    # LHS rows (b, i2); lane blocks kh*384 are 128-aligned -> cheap concat.
    lhs2 = jnp.concatenate([h1[:, kh:kh + 8, :] for kh in range(5)], axis=2)
    lhs2 = lhs2.reshape(bsz * 8, 5 * hw1)                            # (B*8, 1920)
    y2 = jnp.dot(lhs2, w2_ref[...], preferred_element_type=f32)      # (B*8, 512)
    y2 = jnp.maximum(y2[:, :hw2], y2[:, hw2:])                       # (B*8, 256)
    y2 = jnp.max(y2.reshape(bsz, 4, 2, hw2), axis=2)                 # (B, 4, 256)
    h2 = jnp.maximum(y2 + b2_ref[...], 0.0)                          # (B, 4, 256)

    # ---- fc1 + relu: one GEMM; NCHW flatten folded into wfc1's row permute --
    hf = jnp.dot(h2.reshape(bsz, 4 * hw2).astype(bf16), wfc1_ref[...],
                 preferred_element_type=f32) + bfc1_ref[...]
    hf = jnp.maximum(hf, 0.0)                                        # (B, 512)
    # TODO(synk): nn.Dropout / nn.Dropout2d are identity in eval mode; training-mode RNG dropout not implemented.

    # ---- fc2 + relu (the reference applies relu before log_softmax) --------
    z = jnp.dot(hf.astype(bf16), wfc2_ref[...],
                preferred_element_type=f32) + bfc2_ref[...]
    z = jnp.maximum(z, 0.0) + mask_ref[...]                          # mask padded classes
    m = jnp.max(z, axis=1, keepdims=True)
    lse = jnp.log(jnp.sum(jnp.exp(z - m), axis=1, keepdims=True)) + m
    o_ref[...] = z - lse


# ------------------------------ JAX glue ----------------------------------- #

def _pack_input(x_nchw, wp):
    """Raw input as (B, 28, Wp) bf16, lanes = (x, c_in) zero-padded to Wp."""
    b, c, h, w = x_nchw.shape
    assert h == 28 and w == 28, "CNNMnist requires 28x28 inputs (fc1 = 64*4*4)"
    xt = jnp.transpose(x_nchw, (0, 2, 3, 1)).reshape(b, 28, 28 * c)
    xt = jnp.pad(xt, ((0, 0), (0, 0), (0, wp - 28 * c)))
    return xt.astype(jnp.bfloat16)


def prepare_params(params, *, padded_classes=128):
    """One-time host-side repack of PyTorch-layout params into kernel layout."""
    f32, bf16 = jnp.float32, jnp.bfloat16

    w1 = np.asarray(params["w1"], np.float32)          # (32, C, 5, 5)
    c1o, cin = w1.shape[0], w1.shape[1]
    wp = _round_up(28 * cin, 8)
    # conv1 matricized weight: rows (kh, x_in, c_in), cols (e_x, p1x, c1out)
    w1m = np.zeros((5 * wp, 2 * 12 * c1o), np.float32)
    for kh in range(5):
        for kw in range(5):
            for x1 in range(24):
                xi = x1 + kw
                ex, px = x1 % 2, x1 // 2
                w1m[kh * wp + xi * cin: kh * wp + (xi + 1) * cin,
                    ex * 12 * c1o + px * c1o: ex * 12 * c1o + (px + 1) * c1o] = \
                    w1[:, :, kh, kw].T

    w2 = np.asarray(params["w2"], np.float32)          # (64, 32, 5, 5)
    c2o = w2.shape[0]
    # conv2 matricized weight: rows (kh, p1x, c1), cols (e_x2, p2x, c2out)
    w2m = np.zeros((5 * 12 * c1o, 2 * 4 * c2o), np.float32)
    for kh in range(5):
        for kw in range(5):
            for j2 in range(8):
                p1x = j2 + kw
                ex, px = j2 % 2, j2 // 2
                w2m[kh * 12 * c1o + p1x * c1o: kh * 12 * c1o + (p1x + 1) * c1o,
                    ex * 4 * c2o + px * c2o: ex * 4 * c2o + (px + 1) * c2o] = \
                    w2[:, :, kh, kw].T

    # fc1 rows permuted (c, h, w) -> (h, w, c) once, matching the kernel's flatten.
    wfc1 = np.asarray(params["wfc1"], np.float32)      # (64*4*4, 512), rows (c, h, w)
    hid = wfc1.shape[1]
    wfc1r = wfc1.reshape(c2o, 4, 4, hid).transpose(1, 2, 0, 3).reshape(16 * c2o, hid)

    wfc2 = np.asarray(params["wfc2"], np.float32)      # (512, num_classes)
    nc = wfc2.shape[1]
    assert nc <= padded_classes
    wfc2p = np.zeros((hid, padded_classes), np.float32)
    wfc2p[:, :nc] = wfc2
    bfc2p = np.zeros((1, padded_classes), np.float32)
    bfc2p[0, :nc] = np.asarray(params["bfc2"], np.float32)
    cmask = np.where(np.arange(padded_classes) < nc, 0.0, -1e30).astype(np.float32)

    return {
        "w1m": jnp.asarray(w1m, bf16),
        "b1t": jnp.asarray(np.tile(np.asarray(params["b1"], np.float32), 12)
                           .reshape(1, 12 * c1o), f32),
        "w2m": jnp.asarray(w2m, bf16),
        "b2t": jnp.asarray(np.tile(np.asarray(params["b2"], np.float32), 4)
                           .reshape(1, 4 * c2o), f32),
        "wfc1": jnp.asarray(wfc1r, bf16),
        "bfc1": jnp.asarray(np.asarray(params["bfc1"], np.float32).reshape(1, -1), f32),
        "wfc2": jnp.asarray(wfc2p, bf16),
        "bfc2": jnp.asarray(bfc2p, f32),
        "cmask": jnp.asarray(cmask.reshape(1, padded_classes), f32),
    }


@functools.partial(jax.jit, static_argnames=("num_classes",))
def cnn_mnist_forward(x_nchw, prep, *, num_classes):
    bsz = x_nchw.shape[0]
    wp = prep["w1m"].shape[0] // 5
    ncp = prep["wfc2"].shape[1]
    xp = _pack_input(x_nchw, wp)

    operands = (xp, prep["w1m"], prep["b1t"], prep["w2m"], prep["b2t"],
                prep["wfc1"], prep["bfc1"], prep["wfc2"], prep["bfc2"], prep["cmask"])

    flops = 2 * bsz * (24 * prep["w1m"].shape[0] * prep["w1m"].shape[1]
                       + 8 * prep["w2m"].shape[0] * prep["w2m"].shape[1]
                       + prep["wfc1"].shape[0] * prep["wfc1"].shape[1]
                       + prep["wfc2"].shape[0] * prep["wfc2"].shape[1])
    bytes_accessed = sum(int(a.size) * a.dtype.itemsize for a in operands) + bsz * ncp * 4

    full = lambda shape: pl.BlockSpec(shape, lambda i, _s=shape: (0,) * len(_s))
    out = pl.pallas_call(
        _cnn_mnist_kernel,
        out_shape=jax.ShapeDtypeStruct((bsz, ncp), jnp.float32),
        grid=(1,),
        in_specs=[full(a.shape) for a in operands],
        out_specs=full((bsz, ncp)),
        compiler_params=pltpu.CompilerParams(dimension_semantics=("arbitrary",)),
        cost_estimate=pl.CostEstimate(flops=flops,
                                      transcendentals=bsz * (ncp + 1),
                                      bytes_accessed=bytes_accessed),
    )(*operands)
    return out[:, :num_classes]


def init_params(key, num_channels, num_classes):
    ks = jax.random.split(key, 8)
    rn = lambda k, shape, s: s * jax.random.normal(k, shape, dtype=jnp.float32)
    return {
        # conv weights in PyTorch layout (Cout, Cin, KH, KW)
        "w1": rn(ks[0], (32, num_channels, 5, 5), 0.1),
        "b1": rn(ks[1], (32,), 0.1),
        "w2": rn(ks[2], (64, 32, 5, 5), 0.05),
        "b2": rn(ks[3], (64,), 0.05),
        # fc weights stored as (in, out) (= PyTorch weight.T), rows in (c, h, w) order
        "wfc1": rn(ks[4], (64 * 4 * 4, 512), 0.03),
        "bfc1": rn(ks[5], (512,), 0.03),
        "wfc2": rn(ks[6], (512, num_classes), 0.05),
        "bfc2": rn(ks[7], (num_classes,), 0.05),
    }


@jax.jit
def _reference_forward(x, params):
    """Plain-XLA reference (lax.conv / reduce_window), mirroring the kernel's
    bf16 quantization points; used only for the self-check in __main__."""
    f32 = jnp.float32
    q = lambda a: a.astype(jnp.bfloat16).astype(f32)
    hi = jax.lax.Precision.HIGHEST
    dn = ("NCHW", "OIHW", "NCHW")

    def conv_pool_relu(v, w, b):
        y = jax.lax.conv_general_dilated(q(v), q(w), (1, 1), "VALID",
                                         dimension_numbers=dn, precision=hi)
        y = y + b.reshape(1, -1, 1, 1)
        y = jax.lax.reduce_window(y, -jnp.inf, jax.lax.max,
                                  (1, 1, 2, 2), (1, 1, 2, 2), "VALID")
        return jnp.maximum(y, 0.0)

    y = conv_pool_relu(x, params["w1"], params["b1"])
    y = conv_pool_relu(y, params["w2"], params["b2"])
    y = q(y).reshape(x.shape[0], -1)
    y = jnp.maximum(jnp.dot(y, q(params["wfc1"]), precision=hi) + params["bfc1"], 0.0)
    y = jnp.maximum(jnp.dot(q(y), q(params["wfc2"]), precision=hi) + params["bfc2"], 0.0)
    return jax.nn.log_softmax(y, axis=1)


if __name__ == "__main__":
    key = jax.random.PRNGKey(0)
    kx, kp = jax.random.split(key)
    # fc1 expects 64*4*4 features, which forces the MNIST 28x28 spatial size.
    B, C, H, W = 2, 1, 28, 28
    NUM_CLASSES = 10
    x = jax.random.normal(kx, (B, C, H, W), dtype=jnp.float32)
    params = init_params(kp, num_channels=C, num_classes=NUM_CLASSES)
    prep = prepare_params(params)          # one-time weight repack into kernel layout

    out = cnn_mnist_forward(x, prep, num_classes=NUM_CLASSES)
    out = jax.block_until_ready(out)

    assert out.shape == (B, NUM_CLASSES), out.shape
    assert bool(jnp.all(jnp.isfinite(out)))
    # rows of log_softmax must exponentiate to a probability distribution
    assert bool(jnp.allclose(jnp.sum(jnp.exp(out), axis=1), 1.0, atol=1e-4))
    # match an independent XLA reference (same bf16 quantization points)
    ref = jax.block_until_ready(_reference_forward(x, params))
    assert bool(jnp.allclose(out, ref, atol=5e-3, rtol=5e-3)), (
        float(jnp.max(jnp.abs(out - ref))))
    print("KERNEL_OK")
</pallas_src>

<mosaic_0001>
module attributes {stable_mosaic.version = 11 : i64} {
  func.func @_cnn_mnist_kernel(%arg0: i32, %arg1: memref<2x28x32xbf16, #tpu.memory_space<vmem>>, %arg2: memref<160x768xbf16, #tpu.memory_space<vmem>>, %arg3: memref<1x384xf32, #tpu.memory_space<vmem>>, %arg4: memref<1920x512xbf16, #tpu.memory_space<vmem>>, %arg5: memref<1x256xf32, #tpu.memory_space<vmem>>, %arg6: memref<1024x512xbf16, #tpu.memory_space<vmem>>, %arg7: memref<1x512xf32, #tpu.memory_space<vmem>>, %arg8: memref<512x128xbf16, #tpu.memory_space<vmem>>, %arg9: memref<1x128xf32, #tpu.memory_space<vmem>>, %arg10: memref<1x128xf32, #tpu.memory_space<vmem>>, %arg11: memref<2x128xf32, #tpu.memory_space<vmem>>) attributes {dimension_semantics = [#tpu.dimension_semantics<arbitrary>], iteration_bounds = array<i64: 1>, scalar_prefetch = 0 : i64, scratch_operands = 0 : i64, tpu.core_type = #tpu.core_type<tc>, window_params = [{pipeline_mode = #tpu.pipeline_mode<synchronous>, transform_indices = @transform_0, window_bounds = array<i64: 2, 28, 32>}, {pipeline_mode = #tpu.pipeline_mode<synchronous>, transform_indices = @transform_1, window_bounds = array<i64: 160, 768>}, {pipeline_mode = #tpu.pipeline_mode<synchronous>, transform_indices = @transform_2, window_bounds = array<i64: 1, 384>}, {pipeline_mode = #tpu.pipeline_mode<synchronous>, transform_indices = @transform_3, window_bounds = array<i64: 1920, 512>}, {pipeline_mode = #tpu.pipeline_mode<synchronous>, transform_indices = @transform_4, window_bounds = array<i64: 1, 256>}, {pipeline_mode = #tpu.pipeline_mode<synchronous>, transform_indices = @transform_5, window_bounds = array<i64: 1024, 512>}, {pipeline_mode = #tpu.pipeline_mode<synchronous>, transform_indices = @transform_6, window_bounds = array<i64: 1, 512>}, {pipeline_mode = #tpu.pipeline_mode<synchronous>, transform_indices = @transform_7, window_bounds = array<i64: 512, 128>}, {pipeline_mode = #tpu.pipeline_mode<synchronous>, transform_indices = @transform_8, window_bounds = array<i64: 1, 128>}, {pipeline_mode = #tpu.pipeline_mode<synchronous>, transform_indices = @transform_9, window_bounds = array<i64: 1, 128>}, {pipeline_mode = #tpu.pipeline_mode<synchronous>, transform_indices = @transform_10, window_bounds = array<i64: 2, 128>}]} {
    %c0 = arith.constant 0 : index
    %c0_0 = arith.constant 0 : index
    %c0_1 = arith.constant 0 : index
    %0 = vector.load %arg1[%c0, %c0_0, %c0_1] : memref<2x28x32xbf16, #tpu.memory_space<vmem>>, vector<2x28x32xbf16>
    %1 = vector.extract_strided_slice %0 {offsets = [0, 0, 0], sizes = [2, 24, 32], strides = [1, 1, 1]} : vector<2x28x32xbf16> to vector<2x24x32xbf16>
    %2 = vector.extract_strided_slice %0 {offsets = [0, 1, 0], sizes = [2, 24, 32], strides = [1, 1, 1]} : vector<2x28x32xbf16> to vector<2x24x32xbf16>
    %3 = vector.extract_strided_slice %0 {offsets = [0, 2, 0], sizes = [2, 24, 32], strides = [1, 1, 1]} : vector<2x28x32xbf16> to vector<2x24x32xbf16>
    %4 = vector.extract_strided_slice %0 {offsets = [0, 3, 0], sizes = [2, 24, 32], strides = [1, 1, 1]} : vector<2x28x32xbf16> to vector<2x24x32xbf16>
    %5 = vector.extract_strided_slice %0 {offsets = [0, 4, 0], sizes = [2, 24, 32], strides = [1, 1, 1]} : vector<2x28x32xbf16> to vector<2x24x32xbf16>
    %6 = tpu.concatenate %1, %2, %3, %4, %5 in 2 : vector<2x24x32xbf16>, vector<2x24x32xbf16>, vector<2x24x32xbf16>, vector<2x24x32xbf16>, vector<2x24x32xbf16> -> vector<2x24x160xbf16>
    %7 = vector.shape_cast %6 : vector<2x24x160xbf16> to vector<48x160xbf16>
    %c0_2 = arith.constant 0 : index
    %c0_3 = arith.constant 0 : index
    %8 = vector.load %arg2[%c0_2, %c0_3] : memref<160x768xbf16, #tpu.memory_space<vmem>>, vector<160x768xbf16>
    %cst = arith.constant dense<0.000000e+00> : vector<48x768xf32>
    %9 = tpu.matmul %7, %8, %cst {dimension_numbers = #tpu.dot_dimension_numbers<[1], [0], [0], [1], [0, 0, 1, 1], [], []>} : vector<48x160xbf16>, vector<160x768xbf16>, vector<48x768xf32> -> vector<48x768xf32>
    %10 = vector.extract_strided_slice %9 {offsets = [0, 0], sizes = [48, 384], strides = [1, 1]} : vector<48x768xf32> to vector<48x384xf32>
    %11 = vector.extract_strided_slice %9 {offsets = [0, 384], sizes = [48, 384], strides = [1, 1]} : vector<48x768xf32> to vector<48x384xf32>
    %12 = arith.maximumf %10, %11 : vector<48x384xf32>
    %13 = vector.shape_cast %12 : vector<48x384xf32> to vector<2x12x2x384xf32>
    %cst_4 = arith.constant dense<0xFF800000> : vector<2x12x384xf32>
    %14 = vector.multi_reduction <maximumf>, %13, %cst_4 [2] : vector<2x12x2x384xf32> to vector<2x12x384xf32>
    %c0_5 = arith.constant 0 : index
    %c0_6 = arith.constant 0 : index
    %15 = vector.load %arg3[%c0_5, %c0_6] : memref<1x384xf32, #tpu.memory_space<vmem>>, vector<1x384xf32>
    %16 = vector.shape_cast %15 : vector<1x384xf32> to vector<1x1x384xf32>
    %17 = vector.broadcast %16 : vector<1x1x384xf32> to vector<2x12x384xf32>
    %18 = arith.addf %14, %17 : vector<2x12x384xf32>
    %cst_7 = arith.constant 0.000000e+00 : f32
    %19 = vector.broadcast %cst_7 : f32 to vector<2x12x384xf32>
    %20 = arith.maximumf %18, %19 : vector<2x12x384xf32>
    %21 = arith.truncf %20 : vector<2x12x384xf32> to vector<2x12x384xbf16>
    %22 = vector.extract_strided_slice %21 {offsets = [0, 0, 0], sizes = [2, 8, 384], strides = [1, 1, 1]} : vector<2x12x384xbf16> to vector<2x8x384xbf16>
    %23 = vector.extract_strided_slice %21 {offsets = [0, 1, 0], sizes = [2, 8, 384], strides = [1, 1, 1]} : vector<2x12x384xbf16> to vector<2x8x384xbf16>
    %24 = vector.extract_strided_slice %21 {offsets = [0, 2, 0], sizes = [2, 8, 384], strides = [1, 1, 1]} : vector<2x12x384xbf16> to vector<2x8x384xbf16>
    %25 = vector.extract_strided_slice %21 {offsets = [0, 3, 0], sizes = [2, 8, 384], strides = [1, 1, 1]} : vector<2x12x384xbf16> to vector<2x8x384xbf16>
    %26 = vector.extract_strided_slice %21 {offsets = [0, 4, 0], sizes = [2, 8, 384], strides = [1, 1, 1]} : vector<2x12x384xbf16> to vector<2x8x384xbf16>
    %27 = tpu.concatenate %22, %23, %24, %25, %26 in 2 : vector<2x8x384xbf16>, vector<2x8x384xbf16>, vector<2x8x384xbf16>, vector<2x8x384xbf16>, vector<2x8x384xbf16> -> vector<2x8x1920xbf16>
    %28 = vector.shape_cast %27 : vector<2x8x1920xbf16> to vector<16x1920xbf16>
    %c0_8 = arith.constant 0 : index
    %c0_9 = arith.constant 0 : index
    %29 = vector.load %arg4[%c0_8, %c0_9] : memref<1920x512xbf16, #tpu.memory_space<vmem>>, vector<1920x512xbf16>
    %cst_10 = arith.constant dense<0.000000e+00> : vector<16x512xf32>
    %30 = tpu.matmul %28, %29, %cst_10 {dimension_numbers = #tpu.dot_dimension_numbers<[1], [0], [0], [1], [0, 0, 1, 1], [], []>} : vector<16x1920xbf16>, vector<1920x512xbf16>, vector<16x512xf32> -> vector<16x512xf32>
    %31 = vector.extract_strided_slice %30 {offsets = [0, 0], sizes = [16, 256], strides = [1, 1]} : vector<16x512xf32> to vector<16x256xf32>
    %32 = vector.extract_strided_slice %30 {offsets = [0, 256], sizes = [16, 256], strides = [1, 1]} : vector<16x512xf32> to vector<16x256xf32>
    %33 = arith.maximumf %31, %32 : vector<16x256xf32>
    %34 = vector.shape_cast %33 : vector<16x256xf32> to vector<2x4x2x256xf32>
    %cst_11 = arith.constant dense<0xFF800000> : vector<2x4x256xf32>
    %35 = vector.multi_reduction <maximumf>, %34, %cst_11 [2] : vector<2x4x2x256xf32> to vector<2x4x256xf32>
    %c0_12 = arith.constant 0 : index
    %c0_13 = arith.constant 0 : index
    %36 = vector.load %arg5[%c0_12, %c0_13] : memref<1x256xf32, #tpu.memory_space<vmem>>, vector<1x256xf32>
    %37 = vector.shape_cast %36 : vector<1x256xf32> to vector<1x1x256xf32>
    %38 = vector.broadcast %37 : vector<1x1x256xf32> to vector<2x4x256xf32>
    %39 = arith.addf %35, %38 : vector<2x4x256xf32>
    %cst_14 = arith.constant 0.000000e+00 : f32
    %40 = vector.broadcast %cst_14 : f32 to vector<2x4x256xf32>
    %41 = arith.maximumf %39, %40 : vector<2x4x256xf32>
    %42 = vector.shape_cast %41 : vector<2x4x256xf32> to vector<2x1024xf32>
    %43 = arith.truncf %42 : vector<2x1024xf32> to vector<2x1024xbf16>
    %c0_15 = arith.constant 0 : index
    %c0_16 = arith.constant 0 : index
    %44 = vector.load %arg6[%c0_15, %c0_16] : memref<1024x512xbf16, #tpu.memory_space<vmem>>, vector<1024x512xbf16>
    %cst_17 = arith.constant dense<0.000000e+00> : vector<2x512xf32>
    %45 = tpu.matmul %43, %44, %cst_17 {dimension_numbers = #tpu.dot_dimension_numbers<[1], [0], [0], [1], [0, 0, 1, 1], [], []>} : vector<2x1024xbf16>, vector<1024x512xbf16>, vector<2x512xf32> -> vector<2x512xf32>
    %c0_18 = arith.constant 0 : index
    %c0_19 = arith.constant 0 : index
    %46 = vector.load %arg7[%c0_18, %c0_19] : memref<1x512xf32, #tpu.memory_space<vmem>>, vector<1x512xf32>
    %47 = vector.broadcast %46 : vector<1x512xf32> to vector<2x512xf32>
    %48 = arith.addf %45, %47 : vector<2x512xf32>
    %cst_20 = arith.constant 0.000000e+00 : f32
    %49 = vector.broadcast %cst_20 : f32 to vector<2x512xf32>
    %50 = arith.maximumf %48, %49 : vector<2x512xf32>
    %51 = arith.truncf %50 : vector<2x512xf32> to vector<2x512xbf16>
    %c0_21 = arith.constant 0 : index
    %c0_22 = arith.constant 0 : index
    %52 = vector.load %arg8[%c0_21, %c0_22] : memref<512x128xbf16, #tpu.memory_space<vmem>>, vector<512x128xbf16>
    %cst_23 = arith.constant dense<0.000000e+00> : vector<2x128xf32>
    %53 = tpu.matmul %51, %52, %cst_23 {dimension_numbers = #tpu.dot_dimension_numbers<[1], [0], [0], [1], [0, 0, 1, 1], [], []>} : vector<2x512xbf16>, vector<512x128xbf16>, vector<2x128xf32> -> vector<2x128xf32>
    %c0_24 = arith.constant 0 : index
    %c0_25 = arith.constant 0 : index
    %54 = vector.load %arg9[%c0_24, %c0_25] : memref<1x128xf32, #tpu.memory_space<vmem>>, vector<1x128xf32>
    %55 = vector.broadcast %54 : vector<1x128xf32> to vector<2x128xf32>
    %56 = arith.addf %53, %55 : vector<2x128xf32>
    %cst_26 = arith.constant 0.000000e+00 : f32
    %57 = vector.broadcast %cst_26 : f32 to vector<2x128xf32>
    %58 = arith.maximumf %56, %57 : vector<2x128xf32>
    %c0_27 = arith.constant 0 : index
    %c0_28 = arith.constant 0 : index
    %59 = vector.load %arg10[%c0_27, %c0_28] : memref<1x128xf32, #tpu.memory_space<vmem>>, vector<1x128xf32>
    %60 = vector.broadcast %59 : vector<1x128xf32> to vector<2x128xf32>
    %61 = arith.addf %58, %60 : vector<2x128xf32>
    %cst_29 = arith.constant dense<0xFF800000> : vector<2xf32>
    %62 = vector.multi_reduction <maximumf>, %61, %cst_29 [1] : vector<2x128xf32> to vector<2xf32>
    %63 = vector.shape_cast %62 : vector<2xf32> to vector<2x1xf32>
    %64 = vector.broadcast %63 : vector<2x1xf32> to vector<2x128xf32>
    %65 = arith.subf %61, %64 : vector<2x128xf32>
    %66 = math.exp %65 : vector<2x128xf32>
    %cst_30 = arith.constant dense<0.000000e+00> : vector<2xf32>
    %67 = vector.multi_reduction <add>, %66, %cst_30 [1] : vector<2x128xf32> to vector<2xf32>
    %68 = vector.shape_cast %67 : vector<2xf32> to vector<2x1xf32>
    %69 = math.log %68 : vector<2x1xf32>
    %70 = arith.addf %69, %63 : vector<2x1xf32>
    %71 = vector.broadcast %70 : vector<2x1xf32> to vector<2x128xf32>
    %72 = arith.subf %61, %71 : vector<2x128xf32>
    %c0_31 = arith.constant 0 : index
    %c0_32 = arith.constant 0 : index
    %73 = vector.load %arg11[%c0_31, %c0_32] : memref<2x128xf32, #tpu.memory_space<vmem>>, vector<2x128xf32>
    tpu.vector_store %arg11[%c0_31, %c0_32], %72 {strides = array<i32>} : memref<2x128xf32, #tpu.memory_space<vmem>>, vector<2x128xf32>,
    return
  }
  func.func @transform_0(%arg0: i32) -> (i32, i32, i32) {
    %c0_i32 = arith.constant 0 : i32
    %c0_i32_0 = arith.constant 0 : i32
    %c0_i32_1 = arith.constant 0 : i32
    %c0_i32_2 = arith.constant 0 : i32
    return %c0_i32, %c0_i32_0, %c0_i32_1 : i32, i32, i32
  }
  func.func @transform_1(%arg0: i32) -> (i32, i32) {
    %c0_i32 = arith.constant 0 : i32
    %c0_i32_0 = arith.constant 0 : i32
    %c0_i32_1 = arith.constant 0 : i32
    return %c0_i32, %c0_i32_0 : i32, i32
  }
  func.func @transform_2(%arg0: i32) -> (i32, i32) {
    %c0_i32 = arith.constant 0 : i32
    %c0_i32_0 = arith.constant 0 : i32
    %c0_i32_1 = arith.constant 0 : i32
    return %c0_i32, %c0_i32_0 : i32, i32
  }
  func.func @transform_3(%arg0: i32) -> (i32, i32) {
    %c0_i32 = arith.constant 0 : i32
    %c0_i32_0 = arith.constant 0 : i32
    %c0_i32_1 = arith.constant 0 : i32
    return %c0_i32, %c0_i32_0 : i32, i32
  }
  func.func @transform_4(%arg0: i32) -> (i32, i32) {
    %c0_i32 = arith.constant 0 : i32
    %c0_i32_0 = arith.constant 0 : i32
    %c0_i32_1 = arith.constant 0 : i32
    return %c0_i32, %c0_i32_0 : i32, i32
  }
  func.func @transform_5(%arg0: i32) -> (i32, i32) {
    %c0_i32 = arith.constant 0 : i32
    %c0_i32_0 = arith.constant 0 : i32
    %c0_i32_1 = arith.constant 0 : i32
    return %c0_i32, %c0_i32_0 : i32, i32
  }
  func.func @transform_6(%arg0: i32) -> (i32, i32) {
    %c0_i32 = arith.constant 0 : i32
    %c0_i32_0 = arith.constant 0 : i32
    %c0_i32_1 = arith.constant 0 : i32
    return %c0_i32, %c0_i32_0 : i32, i32
  }
  func.func @transform_7(%arg0: i32) -> (i32, i32) {
    %c0_i32 = arith.constant 0 : i32
    %c0_i32_0 = arith.constant 0 : i32
    %c0_i32_1 = arith.constant 0 : i32
    return %c0_i32, %c0_i32_0 : i32, i32
  }
  func.func @transform_8(%arg0: i32) -> (i32, i32) {
    %c0_i32 = arith.constant 0 : i32
    %c0_i32_0 = arith.constant 0 : i32
    %c0_i32_1 = arith.constant 0 : i32
    return %c0_i32, %c0_i32_0 : i32, i32
  }
  func.func @transform_9(%arg0: i32) -> (i32, i32) {
    %c0_i32 = arith.constant 0 : i32
    %c0_i32_0 = arith.constant 0 : i32
    %c0_i32_1 = arith.constant 0 : i32
    return %c0_i32, %c0_i32_0 : i32, i32
  }
  func.func @transform_10(%arg0: i32) -> (i32, i32) {
    %c0_i32 = arith.constant 0 : i32
    %c0_i32_0 = arith.constant 0 : i32
    %c0_i32_1 = arith.constant 0 : i32
    return %c0_i32, %c0_i32_0 : i32, i32
  }
}

</mosaic_0001>

<bundles_post_ra>
// kernel: cnn_mnist_forward.1
= control target key start
LH: loop header
LB: loop body
LE: loop exit
PB: predicated region body
PF: predicated region fallthrough
CT: control target
= control target key end

     0   :  { %15 = vsyncpa [#allocation3], 0  ;;  %s13496_s0 = inlined_call_operand.vmem [shape: bf16[2,28,32], index: 0, kind: input, shape index: {}]   ;;  %s13497_s1 = inlined_call_operand.hbm [shape: bf16[160,768], index: 1, kind: input, shape index: {}]   ;;  %s13498_s2 = inlined_call_operand.hbm [shape: f32[1,384], index: 2, kind: input, shape index: {}]   ;;  %s13499_s3 = inlined_call_operand.hbm [shape: bf16[1920,512], index: 3, kind: input, shape index: {}]   ;;  %s13500_s4 = inlined_call_operand.hbm [shape: f32[1,256], index: 4, kind: input, shape index: {}]   ;;  %s13501_s5 = inlined_call_operand.hbm [shape: bf16[1024,512], index: 5, kind: input, shape index: {}]   ;;  %s13502_s6 = inlined_call_operand.hbm [shape: f32[1,512], index: 6, kind: input, shape index: {}]   ;;  %s13503_s7 = inlined_call_operand.hbm [shape: bf16[512,128], index: 7, kind: input, shape index: {}]   ;;  %s13504_s8 = inlined_call_operand.hbm [shape: f32[1,128], index: 8, kind: input, shape index: {}]   ;;  %s13505_s9 = inlined_call_operand.hbm [shape: f32[1,128], index: 9, kind: input, shape index: {}]   ;;  %s13506_s10 = inlined_call_operand.hbm [shape: f32[2,128], index: 10, kind: output, shape index: {}]  }
   0x1   :  { %16 = vsyncpa [#allocation6], 0 }
   0x2   :  { %17 = vsyncpa [#allocation9], 0 }
   0x3   :  { %18 = vsyncpa [#allocation12], 0 }
   0x4   :  { %19 = vsyncpa [#allocation15], 0 }
   0x5   :  { %20 = vsyncpa [#allocation4], 0  ;;  %s11649_s13 = smov [#allocation5]   ;;  %s11650_s15 = smov [#allocation8]  }
   0x6   :  { %s41_s14 = sshll.u32 %s11649_s13, 4  ;;  %s63_s16 = sshll.u32 %s11650_s15, 4  ;;  %s42_s14 = int_to_ptr.vmem [resolvable:$true] %s41_s14  ;;  %s64_s16 = int_to_ptr.vmem [resolvable:$true] %s63_s16 }
   0x7   :  { %s11417_s19 = scalar_lea.hbm %s13498_s2, 48 }
   0x8   :  { %p11418_p0 = scmp.ne.s32.totalorder %s13498_s2, %s11417_s19  ;;  %p11421_p1 = scmp.lt.u32.totalorder %s11417_s19, %s13498_s2 }
   0xa   :  { %p11423_p2 = pnand %p11421_p1, %p11418_p0 }
   0xc   :  { %11426 = shalt.err (!%p11423_p2)
}
   0xd   :  { %s11427_s24 = scalar_lea.vmem %s42_s14, 48  ;;  %s11431_s25 = scalar_lea.vmem %s42_s14, 64 }
   0xe   :  { %p11428_p3 = scmp.ne.s32.totalorder %s42_s14, %s11427_s24  ;;  %p11432_p4 = scmp.lt.s32.totalorder %s42_s14, %s42_s14 }
   0xf   :  { %p11433_p5 = scmp.lt.s32.totalorder %s11431_s25, %s11427_s24 }
  0x11   :  { %p11434_p6 = por %p11433_p5, %p11432_p4 }
  0x13   :  { %p11435_p7 = pnand %p11434_p6, %p11428_p3 }
  0x15   :  { %11438 = shalt.err (!%p11435_p7)
}
  0x16   :  { %44 = dma.hbm_to_vmem [thread:$0]  %s13498_s2, 48, %s42_s14, [#allocation6]  }
  0x17   :  { %s11439_s30 = scalar_lea.hbm %s13500_s4, 32 }
  0x18   :  { %p11440_p8 = scmp.ne.s32.totalorder %s13500_s4, %s11439_s30  ;;  %p11443_p9 = scmp.lt.u32.totalorder %s11439_s30, %s13500_s4 }
  0x1a   :  { %p11445_p10 = pnand %p11443_p9, %p11440_p8 }
  0x1c   :  { %11448 = shalt.err (!%p11445_p10)
}
  0x1d   :  { %s11449_s17 = scalar_lea.vmem %s64_s16, 32  ;;  %p11454_p12 = scmp.lt.s32.totalorder %s64_s16, %s64_s16 }
  0x1e   :  { %p11450_p11 = scmp.ne.s32.totalorder %s64_s16, %s11449_s17  ;;  %p11455_p13 = scmp.lt.s32.totalorder %s11449_s17, %s11449_s17 }
  0x20   :  { %p11456_p0 = por %p11455_p13, %p11454_p12 }
  0x22   :  { %p11457_p1 = pnand %p11456_p0, %p11450_p11 }
  0x24   :  { %11460 = shalt.err (!%p11457_p1)
}
  0x25   :  { %66 = dma.hbm_to_vmem [thread:$0]  %s13500_s4, 32, %s64_s16, [#allocation9]  }
  0x26   :  { %s11651_s18 = smov [#allocation11]   ;;  %s11652_s20 = smov [#allocation14]  }
  0x27   :  { %s85_s19 = sshll.u32 %s11651_s18, 4  ;;  %s107_s21 = sshll.u32 %s11652_s20, 4  ;;  %s86_s19 = int_to_ptr.vmem [resolvable:$true] %s85_s19  ;;  %s108_s21 = int_to_ptr.vmem [resolvable:$true] %s107_s21 }
  0x28   :  { %s11461_s24 = scalar_lea.hbm %s13502_s6, 64 }
  0x29   :  { %p11462_p2 = scmp.ne.s32.totalorder %s13502_s6, %s11461_s24  ;;  %p11465_p3 = scmp.lt.u32.totalorder %s11461_s24, %s13502_s6 }
  0x2b   :  { %p11467_p4 = pnand %p11465_p3, %p11462_p2 }
  0x2d   :  { %11470 = shalt.err (!%p11467_p4)
}
  0x2e   :  { %s11471_s4 = scalar_lea.vmem %s86_s19, 64  ;;  %p11476_p6 = scmp.lt.s32.totalorder %s86_s19, %s86_s19 }
  0x2f   :  { %p11472_p5 = scmp.ne.s32.totalorder %s86_s19, %s11471_s4  ;;  %p11477_p7 = scmp.lt.s32.totalorder %s11471_s4, %s11471_s4 }
  0x31   :  { %p11478_p8 = por %p11477_p7, %p11476_p6 }
  0x33   :  { %p11479_p9 = pnand %p11478_p8, %p11472_p5 }
  0x35   :  { %11482 = shalt.err (!%p11479_p9)
}
  0x36   :  { %88 = dma.hbm_to_vmem [thread:$0]  %s13502_s6, 64, %s86_s19, [#allocation12]  }
  0x37   :  { %s11483_s12 = scalar_lea.hbm %s13504_s8, 16 }
  0x38   :  { %p11484_p10 = scmp.ne.s32.totalorder %s13504_s8, %s11483_s12  ;;  %p11487_p11 = scmp.lt.u32.totalorder %s11483_s12, %s13504_s8 }
  0x3a   :  { %p11489_p12 = pnand %p11487_p11, %p11484_p10 }
  0x3c   :  { %11492 = shalt.err (!%p11489_p12)
}
  0x3d   :  { %s11493_s14 = scalar_lea.vmem %s108_s21, 16  ;;  %s11497_s18 = scalar_lea.vmem %s108_s21, 32 }
  0x3e   :  { %p11494_p13 = scmp.ne.s32.totalorder %s108_s21, %s11493_s14  ;;  %p11498_p0 = scmp.lt.s32.totalorder %s108_s21, %s108_s21 }
  0x3f   :  { %p11499_p1 = scmp.lt.s32.totalorder %s11497_s18, %s11493_s14 }
  0x41   :  { %p11500_p2 = por %p11499_p1, %p11498_p0 }
  0x43   :  { %p11501_p3 = pnand %p11500_p2, %p11494_p13 }
  0x45   :  { %11504 = shalt.err (!%p11501_p3)
}
  0x46   :  { %110 = dma.hbm_to_vmem [thread:$0]  %s13504_s8, 16, %s108_s21, [#allocation15]  }
  0x47   :  { %s11653_s20 = smov [#allocation2]   ;;  %s11505_s25 = scalar_lea.hbm %s13497_s1, 7680 }
  0x48   :  { %s28_s22 = sshll.u32 %s11653_s20, 4  ;;  %p11506_p4 = scmp.ne.s32.totalorder %s13497_s1, %s11505_s25  ;;  %s29_s22 = int_to_ptr.vmem [resolvable:$true] %s28_s22 }
  0x49   :  { %p11509_p5 = scmp.lt.u32.totalorder %s11505_s25, %s13497_s1 }
  0x4b   :  { %p11511_p6 = pnand %p11509_p5, %p11506_p4 }
  0x4d   :  { %11514 = shalt.err (!%p11511_p6)
}
  0x4e   :  { %s11515_s16 = scalar_lea.vmem %s29_s22, 7680  ;;  %p11520_p8 = scmp.lt.s32.totalorder %s29_s22, %s29_s22 }
  0x4f   :  { %p11516_p7 = scmp.ne.s32.totalorder %s29_s22, %s11515_s16  ;;  %p11521_p9 = scmp.lt.s32.totalorder %s11515_s16, %s11515_s16 }
  0x51   :  { %p11522_p10 = por %p11521_p9, %p11520_p8 }
  0x53   :  { %p11523_p11 = pnand %p11522_p10, %p11516_p7 }
  0x55   :  { %11526 = shalt.err (!%p11523_p11)
}
  0x56   :  { %s11654_s8 = smov 384   ;;  %s11655_s21 = smov 24  }
  0x57   :  { %34 = dma.hbm_to_vmem [thread:$0]  %s13497_s1, 7680, %s29_s22, [#allocation3], %s11654_s8, %s11654_s8, %s11655_s21  }
  0x58   :  { %s11656_s11 = smov [#allocation7]   ;;  %s11527_s17 = scalar_lea.hbm %s13499_s3, 61440 }
  0x59   :  { %s50_s12 = sshll.u32 %s11656_s11, 4  ;;  %p11528_p12 = scmp.ne.s32.totalorder %s13499_s3, %s11527_s17  ;;  %s51_s12 = int_to_ptr.vmem [resolvable:$true] %s50_s12 }
  0x5a   :  { %p11531_p13 = scmp.lt.u32.totalorder %s11527_s17, %s13499_s3 }
  0x5c   :  { %p11533_p0 = pnand %p11531_p13, %p11528_p12 }
  0x5e   :  { %11536 = shalt.err (!%p11533_p0)
}
  0x5f   :  { %s11537_s19 = scalar_lea.vmem %s51_s12, 61440  ;;  %p11542_p2 = scmp.lt.s32.totalorder %s51_s12, %s51_s12 }
  0x60   :  { %p11538_p1 = scmp.ne.s32.totalorder %s51_s12, %s11537_s19  ;;  %p11543_p3 = scmp.lt.s32.totalorder %s11537_s19, %s11537_s19 }
  0x62   :  { %p11544_p4 = por %p11543_p3, %p11542_p2 }
  0x64   :  { %p11545_p5 = pnand %p11544_p4, %p11538_p1 }
  0x66   :  { %11548 = shalt.err (!%p11545_p5)
}
  0x67   :  { %s11657_s1 = smov 256   ;;  %s11658_s20 = smov 16  }
  0x68   :  { %56 = dma.hbm_to_vmem [thread:$0]  %s13499_s3, 61440, %s51_s12, [#allocation6], %s11657_s1, %s11657_s1, %s11658_s20  }
  0x69   :  { %s11659_s24 = smov [#allocation10]   ;;  %s11660_s26 = smov [#allocation13]  }
  0x6a   :  { %s72_s25 = sshll.u32 %s11659_s24, 4  ;;  %s94_s27 = sshll.u32 %s11660_s26, 4  ;;  %s73_s25 = int_to_ptr.vmem [resolvable:$true] %s72_s25  ;;  %s11798_s27 = int_to_ptr.vmem [resolvable:$true] %s94_s27 }
  0x6b   :  { %s11549_s16 = scalar_lea.hbm %s13501_s5, 32768 }
  0x6c   :  { %p11550_p6 = scmp.ne.s32.totalorder %s13501_s5, %s11549_s16  ;;  %p11553_p7 = scmp.lt.u32.totalorder %s11549_s16, %s13501_s5 }
  0x6e   :  { %p11555_p8 = pnand %p11553_p7, %p11550_p6 }
  0x70   :  { %11558 = shalt.err (!%p11555_p8)
}
  0x71   :  { %s11559_s3 = scalar_lea.vmem %s73_s25, 32768  ;;  %p11564_p10 = scmp.lt.s32.totalorder %s73_s25, %s73_s25 }
  0x72   :  { %p11560_p9 = scmp.ne.s32.totalorder %s73_s25, %s11559_s3  ;;  %p11565_p11 = scmp.lt.s32.totalorder %s11559_s3, %s11559_s3 }
  0x74   :  { %p11566_p12 = por %p11565_p11, %p11564_p10 }
  0x76   :  { %p11567_p13 = pnand %p11566_p12, %p11560_p9 }
  0x78   :  { %11570 = shalt.err (!%p11567_p13)
}
  0x79   :  { %78 = dma.hbm_to_vmem [thread:$0]  %s13501_s5, 32768, %s73_s25, [#allocation9], %s11657_s1, %s11657_s1, %s11658_s20  }
  0x7a   :  { %s11571_s17 = scalar_lea.hbm %s13503_s7, 4096 }
  0x7b   :  { %p11572_p0 = scmp.ne.s32.totalorder %s13503_s7, %s11571_s17  ;;  %p11575_p1 = scmp.lt.u32.totalorder %s11571_s17, %s13503_s7 }
  0x7d   :  { %p11577_p2 = pnand %p11575_p1, %p11572_p0 }
  0x7f   :  { %11580 = shalt.err (!%p11577_p2)
}
  0x80   :  { %s11581_s19 = scalar_lea.vmem %s11798_s27, 4096  ;;  %p11586_p4 = scmp.lt.s32.totalorder %s11798_s27, %s11798_s27 }
  0x81   :  { %p11582_p3 = scmp.ne.s32.totalorder %s11798_s27, %s11581_s19  ;;  %p11587_p5 = scmp.lt.s32.totalorder %s11581_s19, %s11581_s19 }
  0x83   :  { %p11588_p6 = por %p11587_p5, %p11586_p4 }
  0x85   :  { %p11589_p7 = pnand %p11588_p6, %p11582_p3 }
  0x87   :  { %11592 = shalt.err (!%p11589_p7)
}
  0x88   :  { %s11661_s5 = smov 64   ;;  %s11662_s1 = smov 4  }
  0x89   :  { %100 = dma.hbm_to_vmem [thread:$0]  %s13503_s7, 4096, %s11798_s27, [#allocation12], %s11661_s5, %s11661_s5, %s11662_s1  }
  0x8a   :  { %s11663_s23 = smov [#allocation16]   ;;  %s11593_s28 = scalar_lea.hbm %s13505_s9, 16 }
  0x8b   :  { %s117_s24 = sshll.u32 %s11663_s23, 4  ;;  %p11594_p8 = scmp.ne.s32.totalorder %s13505_s9, %s11593_s28  ;;  %s118_s24 = int_to_ptr.vmem [resolvable:$true] %s117_s24 }
  0x8c   :  { %p11597_p9 = scmp.lt.u32.totalorder %s11593_s28, %s13505_s9 }
  0x8e   :  { %p11599_p10 = pnand %p11597_p9, %p11594_p8 }
  0x90   :  { %11602 = shalt.err (!%p11599_p10)
}
  0x91   :  { %s11603_s29 = scalar_lea.vmem %s118_s24, 16  ;;  %s11607_s7 = scalar_lea.vmem %s118_s24, 32 }
  0x92   :  { %p11604_p11 = scmp.ne.s32.totalorder %s118_s24, %s11603_s29  ;;  %p11608_p12 = scmp.lt.s32.totalorder %s118_s24, %s118_s24 }
  0x93   :  { %p11609_p13 = scmp.lt.s32.totalorder %s11607_s7, %s11603_s29 }
  0x95   :  { %p11610_p0 = por %p11609_p13, %p11608_p12 }
  0x97   :  { %p11611_p1 = pnand %p11610_p0, %p11604_p11 }
  0x99   :  { %11614 = shalt.err (!%p11611_p1)
}
  0x9a   :  { %120 = dma.hbm_to_vmem [thread:$0]  %s13505_s9, 16, %s118_s24, [#allocation15]  }
  0x9b   :  { %11637 = dma.done.wait [#allocation3], 7680  }
  0x9c   :  { %11638 = vsyncadd [#allocation3], 4294959616 }
  0x9d   :  { %11639 = dma.done.wait [#allocation6], 61488  }
  0x9e   :  { %11640 = vsyncadd [#allocation6], 4294905808 }
  0x9f   :  { %11641 = dma.done.wait [#allocation9], 32800  }
  0xa0   :  { %11642 = vsyncadd [#allocation9], 4294934496 }
  0xa1   :  { %11643 = dma.done.wait [#allocation12], 4160  }
  0xa2   :  { %11644 = vsyncadd [#allocation12], 4294963136 }
  0xa3   :  { %11645 = dma.done.wait [#allocation15], 32  }
  0xa4   :  { %11646 = vsyncadd [#allocation15], 4294967264  ;;  %vm179_vm0 = vsmask.f32 7424  ;;  %vm233_vm1 = vsmask.f32 6400 }
  0xa5   :  { %v11846_v0 = vld [vmem:[%s13496_s0 + $0x8] sm:$0xf]  ;;  %v152_v1 = vld [vmem:[%s13496_s0 + $0xc] sm:$0x3]  ;;  %v11854_v2 = vld [vmem:[%s13496_s0] sm:$0xff]   ;;  %vm218_vm2 = vcmask 1046528  }
  0xa6   :  { %v11857_v3 = vcombine.low %v11846_v0, %v152_v1  ;;  %v155_v4 = vld [vmem:[%s13496_s0 + $0x18] sm:$0xf]  ;;  %v181_v5 = vshrl.u32 %v11854_v2, 16  ;;  %v183_v6 = vshll.u32 %v11854_v2, 16  ;;  %v156_v7 = vld [vmem:[%s13496_s0 + $0x1c] sm:$0x3] }
  0xa7   :  { %v11872_v10 = vld [vmem:[%s13496_s0 + $0x10] sm:$0xff]   ;;  %v10184_v11 = vld [vmem:[#allocation2 + $0x4] ss:$24 sps:$4 sm:$0xff]   ;;  %v219_v15 = vrot.slane %v11854_v2, 1  ;;  %v10186_v16 = vld [vmem:[#allocation2] ss:$24 sps:$4 sm:$0xff]   ;;  %v11875_v20 = vcombine.low %v155_v4, %v156_v7 }
  0xa8   :  { %v188_v8 = vshll.u32 %v11857_v3, 16  ;;  %v192_v9 = vshrl.u32 %v11857_v3, 16  ;;  %v185_v12 = vrot.slane %v183_v6, 1  ;;  %v234_v13 = vrot.slane %v181_v5, 1  ;;  %686 = vmatprep.subr.bf16.mxu0 %v10184_v11  ;;  %v10187_v21 = vld [vmem:[#allocation2 + $0xc] ss:$24 sps:$4 sm:$0xff]  }
  0xa9   :  { %v235_v14 = vrot.slane %v183_v6, 2  ;;  %v220_v24 = vrot.slane %v11857_v3, 1  ;;  %v196_v25 = vshrl.u32 %v11872_v10, 16  ;;  %687 = vmatpush1.bf16.msra.mxu0 %v10186_v16  ;;  %v10189_v26 = vld [vmem:[#allocation2 + $0x8] ss:$24 sps:$4 sm:$0xff]   ;;  %vm263_vm3 = vcmask 261120   ;;  %749 = vmatprep.subr.bf16.mxu1 %v10187_v21 }
  0xaa   :  { %v190_v17 = vrot.slane %v188_v8, 1  ;;  %v237_v18 = vrot.slane %v192_v9, 1  ;;  %v238_v19 = vrot.slane %v188_v8, 2  ;;  %v186_v22 = vor.u32 %v185_v12, %v181_v5  ;;  %v10190_v30 = vld [vmem:[#allocation2 + $0x34] ss:$24 sps:$4 sm:$0xff]   ;;  %750 = vmatpush1.bf16.msra.mxu1 %v10189_v26  ;;  %s11664_s1 = smov 32  }
  0xab   :  { %v236_v23 = vor.u32 %v235_v14, %v234_v13  ;;  %v198_v28 = vshll.u32 %v11872_v10, 16  ;;  %v203_v29 = vshll.u32 %v11875_v20, 16  ;;  %v10192_v31 = vld [vmem:[#allocation2 + $0x30] ss:$24 sps:$4 sm:$0xff]   ;;  %v222_v33 = vrot.slane %v11872_v10, 1  ;;  %688 = vmatprep.subr.bf16.mxu0 %v10190_v30  ;;  %s11665_s20 = smov 96  }
  0xac   :  { %v11879_v27 = vor.u32 %v238_v19, %v237_v18  ;;  %v191_v32 = vsel %vm179_vm0, %v186_v22, %v190_v17  ;;  %v10193_v34 = vld [vmem:[#allocation2 + $0x3c] ss:$24 sps:$4 sm:$0xff]   ;;  %vm256_vm4 = vcmask 1045504   ;;  %v223_v36 = vrot.slane %v11875_v20, 1  ;;  %v10195_v39 = vld [vmem:[#allocation2 + $0x38] ss:$24 sps:$4 sm:$0xff]  }
  0xad   :  { %210 = vrot.lane.b32.xlu0 %v191_v32, %s11664_s1  ;;  %v207_v37 = vshrl.u32 %v11875_v20, 16  ;;  %v11890_v38 = vrot.slane %v196_v25, 1  ;;  %v221_v40 = vsel %vm218_vm2, %v219_v15, %v220_v24  ;;  %v194_v41 = vor.u32 %v192_v9, %v190_v17  ;;  %689 = vmatpush1.bf16.msra.mxu0 %v10192_v31  ;;  %v10196_v44 = vld [vmem:[#allocation2 + $0x64] ss:$24 sps:$4 sm:$0xff]   ;;  %v10198_v45 = vld [vmem:[#allocation2 + $0x60] ss:$24 sps:$4 sm:$0xff]  }
  0xae   :  { %v240_v35 = vsel %vm233_vm1, %v236_v23, %v11879_v27  ;;  %v200_v42 = vrot.slane %v198_v28, 1  ;;  %v205_v43 = vrot.slane %v203_v29, 1  ;;  %751 = vmatprep.subr.bf16.mxu1 %v10193_v34  ;;  %v10199_v46 = vld [vmem:[#allocation2 + $0x6c] ss:$24 sps:$4 sm:$0xff]   ;;  %v257_v47 = vrot.slane %v11854_v2, 2  ;;  %690 = vmatprep.subr.bf16.mxu0 %v10196_v44 }
  0xaf   :  { %248 = vrot.lane.b32.xlu1 %v240_v35, %s11665_s20  ;;  %752 = vmatpush1.bf16.msra.mxu1 %v10195_v39  ;;  %v10201_v48 = vld [vmem:[#allocation2 + $0x68] ss:$24 sps:$4 sm:$0xff]   ;;  %v258_v49 = vrot.slane %v11857_v3, 2  ;;  %v260_v50 = vrot.slane %v11872_v10, 2  ;;  %v242_v51 = vrot.slane %v198_v28, 2  ;;  %v244_v52 = vrot.slane %v207_v37, 1 }
  0xb0   :  { %753 = vmatprep.subr.bf16.mxu1 %v10199_v46  ;;  %v10202_v53 = vld [vmem:[#allocation2 + $0x94] ss:$24 sps:$4 sm:$0xff]   ;;  %v261_v54 = vrot.slane %v11875_v20, 2  ;;  %v224_v55 = vsel %vm218_vm2, %v222_v33, %v223_v36  ;;  %v201_v56 = vor.u32 %v200_v42, %v196_v25  ;;  %v245_v57 = vrot.slane %v203_v29, 2  ;;  %v10204_v58 = vld [vmem:[#allocation2 + $0x90] ss:$24 sps:$4 sm:$0xff]  }
  0xb1   :  { %225 = vrot.lane.b32.xlu0 %v221_v40, %s11661_s5  ;;  %691 = vmatpush1.bf16.msra.mxu0 %v10198_v45  ;;  %v10205_v59 = vld [vmem:[#allocation2 + $0x9c] ss:$24 sps:$4 sm:$0xff]   ;;  %v11908_v60 = vsel %vm256_vm4, %v257_v47, %v258_v49  ;;  %v10207_v63 = vld [vmem:[#allocation2 + $0x98] ss:$24 sps:$4 sm:$0xff]   ;;  %v10211_v4 = vld [vmem:[#allocation2 + $0xcc] ss:$24 sps:$4 sm:$0xff]   ;;  %v243_v7 = vor.u32 %v242_v51, %v11890_v38  ;;  %v209_v16 = vor.u32 %v207_v37, %v205_v43 }
  0xb2   :  { %692 = vmatprep.subr.bf16.mxu0 %v10202_v53  ;;  %v10208_v61 = vld [vmem:[#allocation2 + $0xc4] ss:$24 sps:$4 sm:$0xff]   ;;  %v262_v62 = vsel %vm256_vm4, %v260_v50, %v261_v54  ;;  %9227 = vmatprep.mubr.msk.bf16.mxu0 %vm263_vm3, %v11908_v60  ;;  %v206_v6 = vsel %vm179_vm0, %v201_v56, %v205_v43  ;;  %v246_v8 = vor.u32 %v245_v57, %v244_v52  ;;  %v10210_v9 = vld [vmem:[#allocation2 + $0xc0] ss:$24 sps:$4 sm:$0xff]   ;;  %v10214_v11 = vld [vmem:[#allocation2 + $0xf4] ss:$24 sps:$4 sm:$0xff]   ;;  %v307_v12 = vunpack.c.l.b16 %v261_v54 }
  0xb3   :  { %212 = vrot.lane.b32.xlu1 %v194_v41, %s11664_s1  ;;  %754 = vmatpush1.bf16.msra.mxu1 %v10201_v48  ;;  %v11913_v1 = vcombine.low %v258_v49, %v262_v62  ;;  %v305_v5 = vunpack.c.h.b16 %v262_v62  ;;  %v10213_v13 = vld [vmem:[#allocation2 + $0xc8] ss:$24 sps:$4 sm:$0xff]   ;;  %v10217_v14 = vld [vmem:[#allocation2 + $0xfc] ss:$24 sps:$4 sm:$0xff]   ;;  %v10219_v19 = vld [vmem:[#allocation2 + $0xf8] ss:$24 sps:$4 sm:$0xff]   ;;  %v9160_v43 = vcombine.low %v11846_v0, %v11846_v0 }
  0xb4   :  { %9230 = vmatprep.mubr.msk.bf16.mxu1 %vm263_vm3, %v11908_v60  ;;  %755 = vmatprep.subr.bf16.mxu1 %v10205_v59  ;;  %v247_v3 = vsel %vm233_vm1, %v243_v7, %v246_v8  ;;  %v10216_v17 = vld [vmem:[#allocation2 + $0xf0] ss:$24 sps:$4 sm:$0xff]   ;;  %v10220_v18 = vld [vmem:[#allocation2 + $0x124] ss:$24 sps:$4 sm:$0xff]   ;;  %v10222_v22 = vld [vmem:[#allocation2 + $0x120] ss:$24 sps:$4 sm:$0xff]  }
  0xb5   :  { %229 = vrot.lane.b32.xlu0 %v224_v55, %s11661_s5  ;;  %693 = vmatpush1.bf16.msra.mxu0 %v10204_v58  ;;  %v11924_v15 = vpack.c.b16 %v307_v12, %v305_v5  ;;  %v10223_v21 = vld [vmem:[#allocation2 + $0x12c] ss:$24 sps:$4 sm:$0xff]   ;;  %v10229_v25 = vld [vmem:[#allocation2 + $0x15c] ss:$24 sps:$4 sm:$0xff]   ;;  %v10228_v26 = vld [vmem:[#allocation2 + $0x150] ss:$24 sps:$4 sm:$0xff]  }
  0xb6   :  { %694 = vmatprep.subr.bf16.mxu0 %v10208_v61  ;;  %v10226_v23 = vld [vmem:[#allocation2 + $0x154] ss:$24 sps:$4 sm:$0xff]   ;;  %v10231_v28 = vld [vmem:[#allocation2 + $0x158] ss:$24 sps:$4 sm:$0xff]   ;;  %v10237_v32 = vld [vmem:[#allocation2 + $0x188] ss:$24 sps:$4 sm:$0xff]  }
  0xb7   :  { %227 = vrot.lane.b32.xlu1 %v220_v24, %s11661_s5  ;;  %756 = vmatpush1.bf16.msra.mxu1 %v10207_v63  ;;  %v10225_v24 = vld [vmem:[#allocation2 + $0x128] ss:$24 sps:$4 sm:$0xff]   ;;  %v10235_v29 = vld [vmem:[#allocation2 + $0x18c] ss:$24 sps:$4 sm:$0xff]   ;;  %v10241_v20 = vld [vmem:[#allocation2 + $0x1bc] ss:$24 sps:$4 sm:$0xff]  }
  0xb8   :  { %757 = vmatprep.subr.bf16.mxu1 %v10211_v4  ;;  %v10234_v30 = vld [vmem:[#allocation2 + $0x180] ss:$24 sps:$4 sm:$0xff]   ;;  %v10238_v31 = vld [vmem:[#allocation2 + $0x1b4] ss:$24 sps:$4 sm:$0xff]   ;;  %v10240_v33 = vld [vmem:[#allocation2 + $0x1b0] ss:$24 sps:$4 sm:$0xff]  }
  0xb9   :  { %214 = vrot.lane.b32.xlu0 %v206_v6, %s11664_s1  ;;  %695 = vmatpush1.bf16.msra.mxu0 %v10210_v9  ;;  %v10247_v34 = vld [vmem:[#allocation2 + $0x14] ss:$24 sps:$4 sm:$0xff]   ;;  %v10243_v35 = vld [vmem:[#allocation2 + $0x1b8] ss:$24 sps:$4 sm:$0xff]   ;;  %vm274_vm5 = vcmask 523264   ;;  %vm283_vm6 = vcmask 785408  }
  0xba   :  { %696 = vmatprep.subr.bf16.mxu0 %v10214_v11  ;;  %v10245_v38 = vld [vmem:[#allocation2 + $0x10] ss:$24 sps:$4 sm:$0xff]   ;;  %v10250_v39 = vld [vmem:[#allocation2 + $0x44] ss:$24 sps:$4 sm:$0xff]   ;;  %v10248_v46 = vld [vmem:[#allocation2 + $0x40] ss:$24 sps:$4 sm:$0xff]  }
  0xbb   :  { %250 = vrot.lane.b32.xlu1 %v11879_v27, %s11665_s20  ;;  %758 = vmatpush1.bf16.msra.mxu1 %v10213_v13  ;;  %v10232_v27 = vld [vmem:[#allocation2 + $0x184] ss:$24 sps:$4 sm:$0xff]   ;;  %v10253_v47 = vld [vmem:[#allocation2 + $0x74] ss:$24 sps:$4 sm:$0xff]   ;;  %v10251_v0 = vld [vmem:[#allocation2 + $0x70] ss:$24 sps:$4 sm:$0xff]  }
  0xbc   :  { %759 = vmatprep.subr.bf16.mxu1 %v10217_v14  ;;  %v10257_v50 = vld [vmem:[#allocation2 + $0xa4] ss:$24 sps:$4 sm:$0xff]   ;;  %v11416_v56 = vld [vmem:[%s13496_s0 + $0x18] sm:$0xf]  ;;  %v10260_v61 = vld [vmem:[#allocation2 + $0xd4] ss:$24 sps:$4 sm:$0xff]  }
  0xbd   :  { %252 = vrot.lane.b32.xlu0 %v247_v3, %s11665_s20  ;;  %697 = vmatpush1.bf16.msra.mxu0 %v10216_v17  ;;  %v9162_v57 = vcombine.low %v11416_v56, %v11416_v56  ;;  %v10255_v58 = vld [vmem:[#allocation2 + $0xa0] ss:$24 sps:$4 sm:$0xff]   ;;  %v10258_v6 = vld [vmem:[#allocation2 + $0xd0] ss:$24 sps:$4 sm:$0xff]   ;;  %v10263_v7 = vld [vmem:[#allocation2 + $0x104] ss:$24 sps:$4 sm:$0xff]  }
  0xbe   :  { %698 = vmatprep.subr.bf16.mxu0 %v10220_v18  ;;  %v10261_v13 = vld [vmem:[#allocation2 + $0x100] ss:$24 sps:$4 sm:$0xff]   ;;  %v10264_v18 = vld [vmem:[#allocation2 + $0x130] ss:$24 sps:$4 sm:$0xff]   ;;  %vm1577_vm7 = vcmask 1041408   ;;  %vm2412_vm8 = vcmask 1041409  }
  0xbf   :  { %216 = vrot.lane.b32.xlu1 %v209_v16, %s11664_s1  ;;  %760 = vmatpush1.bf16.msra.mxu1 %v10219_v19  ;;  %v10266_v16 = vld [vmem:[#allocation2 + $0x134] ss:$24 sps:$4 sm:$0xff]   ;;  %v10269_v19 = vld [vmem:[#allocation2 + $0x164] ss:$24 sps:$4 sm:$0xff]   ;;  %vm2415_vm9 = vcmask 1042434   ;;  %vm2418_vm10 = vcmask 1043459  }
  0xc0   :  { %761 = vmatprep.subr.bf16.mxu1 %v10223_v21  ;;  %v10267_v21 = vld [vmem:[#allocation2 + $0x160] ss:$24 sps:$4 sm:$0xff]   ;;  %vm2421_vm11 = vcmask 1044484   ;;  %vm2424_vm12 = vcmask 1045509   ;;  %vm2427_vm13 = vcmask 1046534   ;;  %vm2430_vm14 = vcmask 1047559  }
  0xc1   :  { %231 = vrot.lane.b32.xlu0 %v223_v36, %s11661_s5  ;;  %699 = vmatpush1.bf16.msra.mxu0 %v10222_v22  ;;  %v10272_v22 = vld [vmem:[#allocation2 + $0x194] ss:$24 sps:$4 sm:$0xff]   ;;  %s11670_s0 = smov [#allocation17]  }
  0xc2   :  { %700 = vmatprep.subr.bf16.mxu0 %v10226_v23  ;;  %v10270_v23 = vld [vmem:[#allocation2 + $0x190] ss:$24 sps:$4 sm:$0xff]   ;;  %s9146_s23 = sshll.u32 %s11670_s0, 4  ;;  %s9147_s23 = int_to_ptr.vmem [resolvable:$true] %s9146_s23 }
  0xc3   :  { %254 = vrot.lane.b32.xlu1 %v246_v8, %s11665_s20  ;;  %762 = vmatpush1.bf16.msra.mxu1 %v10225_v24  ;;  %v10275_v24 = vld [vmem:[#allocation2 + $0x1c4] ss:$24 sps:$4 sm:$0xff]   ;;  %s11615_s24 = scalar_lea.vmem %s9147_s23, 32  ;;  %p11620_p3 = scmp.lt.s32.totalorder %s9147_s23, %s9147_s23 }
  0xc4   :  { %763 = vmatprep.subr.bf16.mxu1 %v10229_v25  ;;  %v10273_v25 = vld [vmem:[#allocation2 + $0x1c0] ss:$24 sps:$4 sm:$0xff]   ;;  %p11616_p2 = scmp.ne.s32.totalorder %s9147_s23, %s11615_s24  ;;  %p11621_p4 = scmp.lt.s32.totalorder %s11615_s24, %s11615_s24 }
  0xc5   :  { %701 = vmatpush1.bf16.msra.mxu0 %v10228_v26  ;;  %v10278_v26 = vld [vmem:[#allocation7 + $0x4] ss:$16 sps:$4 sm:$0xff]  }
  0xc6   :  { %702 = vmatprep.subr.bf16.mxu0 %v10232_v27  ;;  %v10279_v27 = vld [vmem:[#allocation7 + $0x8] ss:$16 sps:$4 sm:$0xff]   ;;  %p11622_p5 = por %p11621_p4, %p11620_p3 }
  0xc7   :  { %764 = vmatpush1.bf16.msra.mxu1 %v10231_v28  ;;  %v10281_v28 = vld [vmem:[#allocation7 + $0xc] ss:$16 sps:$4 sm:$0xff]  }
  0xc8   :  { %765 = vmatprep.subr.bf16.mxu1 %v10235_v29  ;;  %v10282_v29 = vld [vmem:[#allocation7 + $0x20] ss:$16 sps:$4 sm:$0xff]   ;;  %p11623_p6 = pnand %p11622_p5, %p11616_p2 }
  0xc9   :  { %703 = vmatpush1.bf16.msra.mxu0 %v10234_v30  ;;  %v10284_v30 = vld [vmem:[#allocation7 + $0x24] ss:$16 sps:$4 sm:$0xff]  }
  0xca   :  { %704 = vmatprep.subr.bf16.mxu0 %v10238_v31  ;;  %v10285_v31 = vld [vmem:[#allocation7 + $0x28] ss:$16 sps:$4 sm:$0xff]  }
  0xcb   :  { %766 = vmatpush1.bf16.msra.mxu1 %v10237_v32  ;;  %v10287_v32 = vld [vmem:[#allocation7 + $0x2c] ss:$16 sps:$4 sm:$0xff]  }
  0xcc   :  { %767 = vmatprep.subr.bf16.mxu1 %v10241_v20  ;;  %v10293_v20 = vld [vmem:[#allocation7 + $0x4c] ss:$16 sps:$4 sm:$0xff]  }
  0xcd   :  { %705 = vmatpush1.bf16.msra.mxu0 %v10240_v33  ;;  %v10291_v33 = vld [vmem:[#allocation7 + $0x48] ss:$16 sps:$4 sm:$0xff]  }
  0xce   :  { %812 = vmatprep.subr.bf16.mxu0 %v10247_v34  ;;  %v10296_v34 = vld [vmem:[#allocation7 + $0x64] ss:$16 sps:$4 sm:$0xff]  }
  0xcf   :  { %768 = vmatpush1.bf16.msra.mxu1 %v10243_v35  ;;  %v10299_v35 = vld [vmem:[#allocation7 + $0x6c] ss:$16 sps:$4 sm:$0xff]  }
  0xd0   :  { %5796 = vmatprep.subr.bf16.mxu1 %v10278_v26 }
 0x11f   :  { %v211_v36 = vpop.permute.xlu0 %210 }
 0x120   :  { %v265_v40 = vsel %vm263_vm3, %v11854_v2, %v211_v36  ;;  %v10294_v36 = vld [vmem:[#allocation7 + $0x60] ss:$16 sps:$4 sm:$0xff]  }
 0x121   :  { %v249_v37 = vpop.permute.xlu1 %248 }
 0x123   :  { %v226_v41 = vpop.permute.xlu0 %225 }
 0x124   :  { %v276_v42 = vsel %vm274_vm5, %v265_v40, %v226_v41 }
 0x125   :  { %v213_v44 = vpop.permute.xlu1 %212  ;;  %v11943_v45 = vsel %vm283_vm6, %v276_v42, %v249_v37  ;;  %v10297_v37 = vld [vmem:[#allocation7 + $0x68] ss:$16 sps:$4 sm:$0xff]  }
 0x126   :  { %719 = vmatmul.mubr.bf16.vlgmr.msra.gmra.mrb[0].mxu0 %v11943_v45  ;;  %782 = vmatmul.mubr.bf16.vlgmr.msra.gmra.mrb[0].mxu1 %v11943_v45  ;;  %v268_v2 = vsel %vm263_vm3, %v9160_v43, %v213_v44 }
 0x127   :  { %813 = vmatpush1.bf16.msra.mxu0 %v10245_v38  ;;  %v230_v48 = vpop.permute.xlu0 %229  ;;  %9228 = vmatprep.mubr.msk.bf16.mxu0 %vm263_vm3, %v11913_v1 }
 0x128   :  { %814 = vmatprep.subr.bf16.mxu0 %v10250_v39  ;;  %9231 = vmatprep.mubr.msk.bf16.mxu1 %vm263_vm3, %v11913_v1 }
 0x129   :  { %v228_v49 = vpop.permute.xlu1 %227 }
 0x12a   :  { %v278_v51 = vsel %vm274_vm5, %v268_v2, %v228_v49  ;;  %v10305_v2 = vld [vmem:[#allocation7 + $0x8c] ss:$16 sps:$4 sm:$0xff]   ;;  %v10300_v49 = vld [vmem:[#allocation7 + $0x80] ss:$16 sps:$4 sm:$0xff]  }
 0x12b   :  { %815 = vmatpush1.bf16.msra.mxu0 %v10248_v46  ;;  %v215_v52 = vpop.permute.xlu0 %214 }
 0x12c   :  { %v270_v53 = vsel %vm263_vm3, %v11872_v10, %v215_v52  ;;  %816 = vmatprep.subr.bf16.mxu0 %v10253_v47 }
 0x12d   :  { %v251_v54 = vpop.permute.xlu1 %250  ;;  %v280_v55 = vsel %vm274_vm5, %v270_v53, %v230_v48  ;;  %v10302_v48 = vld [vmem:[#allocation7 + $0x84] ss:$16 sps:$4 sm:$0xff]  }
 0x12e   :  { %v287_v59 = vsel %vm283_vm6, %v278_v51, %v251_v54 }
 0x12f   :  { %817 = vmatpush1.bf16.msra.mxu0 %v10251_v0  ;;  %v253_v62 = vpop.permute.xlu0 %252  ;;  %v10303_v0 = vld [vmem:[#allocation7 + $0x88] ss:$16 sps:$4 sm:$0xff]  }
 0x130   :  { %v289_v63 = vsel %vm283_vm6, %v280_v55, %v253_v62  ;;  %818 = vmatprep.subr.bf16.mxu0 %v10257_v50 }
 0x131   :  { %v217_v4 = vpop.permute.xlu1 %216  ;;  %v9165_v10 = vcombine.low %v287_v59, %v289_v63  ;;  %v304_v14 = vunpack.c.h.b16 %v289_v63 }
 0x132   :  { %v273_v5 = vsel %vm263_vm3, %v9162_v57, %v217_v4 }
 0x133   :  { %819 = vmatpush1.bf16.msra.mxu0 %v10255_v58  ;;  %792 = vmatmul.mubr.bf16.gmra.mrb[4].mxu1 %v9165_v10  ;;  %v232_v8 = vpop.permute.xlu0 %231 }
 0x134   :  { %729 = vmatmul.mubr.bf16.gmra.mrb[4].mxu0 %v9165_v10  ;;  %v282_v9 = vsel %vm274_vm5, %v273_v5, %v232_v8  ;;  %820 = vmatprep.subr.bf16.mxu0 %v10260_v61 }
 0x135   :  { %v255_v11 = vpop.permute.xlu1 %254  ;;  %9229 = vmatprep.mubr.msk.bf16.mxu0 %vm263_vm3, %v11924_v15  ;;  %9232 = vmatprep.mubr.msk.bf16.mxu1 %vm263_vm3, %v11924_v15 }
 0x136   :  { %v291_v12 = vsel %vm283_vm6, %v282_v9, %v255_v11  ;;  %v10308_v11 = vld [vmem:[#allocation7 + $0xa4] ss:$16 sps:$4 sm:$0xff]  }
 0x137   :  { %v306_v3 = vunpack.c.l.b16 %v291_v12  ;;  %821 = vmatpush1.bf16.msra.mxu0 %v10258_v6  ;;  %v10311_v12 = vld [vmem:[#allocation7 + $0xac] ss:$16 sps:$4 sm:$0xff]  }
 0x138   :  { %822 = vmatprep.subr.bf16.mxu0 %v10263_v7 }
 0x139   :  { %v372_v17 = vpack.c.b16 %v306_v3, %v304_v14  ;;  %v10309_v14 = vld [vmem:[#allocation7 + $0xa8] ss:$16 sps:$4 sm:$0xff]   ;;  %v11666_v3 = vmov 1983009808  }
 0x13b   :  { %823 = vmatpush1.bf16.msra.mxu0 %v10261_v13  ;;  %802 = vmatmul.mubr.bf16.gmra.mrb[8].mxu1 %v372_v17  ;;  %v10306_v13 = vld [vmem:[#allocation7 + $0xa0] ss:$16 sps:$4 sm:$0xff]  }
 0x13c   :  { %739 = vmatmul.mubr.bf16.gmra.mrb[8].mxu0 %v372_v17  ;;  %824 = vmatprep.subr.bf16.mxu0 %v10266_v16  ;;  %v915_v16 = vunpack.c.l.s4 %v11666_v3 }
 0x13d   :  { %9233 = vmatprep.mubr.msk.bf16.mxu0 %vm263_vm3, %v11908_v60  ;;  %v10276_v60 = vld [vmem:[#allocation7] ss:$16 sps:$4 sm:$0xff]  }
 0x13e   :  { %5797 = vmatpush1.bf16.msra.mxu1 %v10276_v60 }
 0x13f   :  { %825 = vmatpush1.bf16.msra.mxu0 %v10264_v18  ;;  %5798 = vmatprep.subr.bf16.mxu1 %v10284_v30  ;;  %v916_v18 = vunpack.c.0.s8 %v915_v16 }
 0x140   :  { %826 = vmatprep.subr.bf16.mxu0 %v10269_v19 }
 0x142   :  { %5799 = vmatpush1.bf16.msra.mxu1 %v10282_v29 }
 0x143   :  { %827 = vmatpush1.bf16.msra.mxu0 %v10267_v21 }
 0x144   :  { %828 = vmatprep.subr.bf16.mxu0 %v10272_v22 }
 0x147   :  { %829 = vmatpush1.bf16.msra.mxu0 %v10270_v23 }
 0x148   :  { %830 = vmatprep.subr.bf16.mxu0 %v10275_v24 }
 0x14b   :  { %831 = vmatpush1.bf16.msra.mxu0 %v10273_v25 }
 0x14c   :  { %6140 = vmatprep.subr.bf16.mxu0 %v10281_v28 }
 0x14e   :  { %845 = vmatmul.mubr.bf16.vlgmr.msra.gmra.mrb[12].mxu0 %v11943_v45 }
 0x14f   :  { %9234 = vmatprep.mubr.msk.bf16.mxu0 %vm263_vm3, %v11913_v1  ;;  %6141 = vmatpush1.bf16.msra.mxu0 %v10279_v27  ;;  %v10290_v1 = vld [vmem:[#allocation7 + $0x44] ss:$16 sps:$4 sm:$0xff]  }
 0x150   :  { %6142 = vmatprep.subr.bf16.mxu0 %v10287_v32  ;;  %5800 = vmatprep.subr.bf16.mxu1 %v10290_v1 }
 0x153   :  { %6143 = vmatpush1.bf16.msra.mxu0 %v10285_v31 }
 0x154   :  { %6144 = vmatprep.subr.bf16.mxu0 %v10293_v20 }
 0x156   :  { %855 = vmatmul.mubr.bf16.gmra.mrb[16].mxu0 %v9165_v10 }
 0x157   :  { %9235 = vmatprep.mubr.msk.bf16.mxu0 %vm263_vm3, %v11924_v15  ;;  %v10288_v15 = vld [vmem:[#allocation7 + $0x40] ss:$16 sps:$4 sm:$0xff]   ;;  %6145 = vmatpush1.bf16.msra.mxu0 %v10291_v33 }
 0x158   :  { %5801 = vmatpush1.bf16.msra.mxu1 %v10288_v15  ;;  %6146 = vmatprep.subr.bf16.mxu0 %v10299_v35 }
 0x159   :  { %5802 = vmatprep.subr.bf16.mxu1 %v10296_v34 }
 0x15b   :  { %6147 = vmatpush1.bf16.msra.mxu0 %v10297_v37 }
 0x15c   :  { %5803 = vmatpush1.bf16.msra.mxu1 %v10294_v36  ;;  %6148 = vmatprep.subr.bf16.mxu0 %v10305_v2 }
 0x15d   :  { %5804 = vmatprep.subr.bf16.mxu1 %v10302_v48 }
 0x15e   :  { %865 = vmatmul.mubr.bf16.gmra.mrb[20].mxu0 %v372_v17  ;;  %v917_v17 = vlaneseq }
 0x15f   :  { %6149 = vmatpush1.bf16.msra.mxu0 %v10303_v0 }
 0x160   :  { %5805 = vmatpush1.bf16.msra.mxu1 %v10300_v49  ;;  %6150 = vmatprep.subr.bf16.mxu0 %v10311_v12  ;;  %v12001_v19 = vshrl.u32 %v917_v17, 7 }
 0x161   :  { %5806 = vmatprep.subr.bf16.mxu1 %v10308_v11 }
 0x162   :  { %13611 = vst [vmem:[#allocation27_spill] sm:$0xff] %v12001_v19  ;;  %v12004_v22 = vsub.s32 %v916_v18, %v12001_v19 }
 0x163   :  { %6151 = vmatpush1.bf16.msra.mxu0 %v10309_v14 }
 0x164   :  { %5807 = vmatpush1.bf16.msra.mxu1 %v10306_v13  ;;  %13612 = vst [vmem:[#allocation28_spill] sm:$0xff] %v12004_v22 }
 0x1f9   :  { %v720_v38 = vpop.f32.mrb[0].mxu0  ;;  %v783_v39 = vpop.f32.mrb[0].mxu1 }
 0x1fa   :  { %v722_v40 = vpop.f32.mrb[1].mxu0  ;;  %v785_v41 = vpop.f32.mrb[1].mxu1 }
 0x1fb   :  { %v875_v42 = vmax.f32 %v720_v38, %v785_v41  ;;  %v724_v43 = vpop.f32.mrb[2].mxu0  ;;  %v787_v44 = vpop.f32.mrb[2].mxu1 }
 0x1fc   :  { %v726_v45 = vpop.f32.mrb[3].mxu0  ;;  %v789_v46 = vpop.f32.mrb[3].mxu1 }
 0x1fd   :  { %v11975_v47 = vmax.f32 %v724_v43, %v789_v46 }
 0x206   :  { %v11977_v50 = vpop.f32.mrb[4].mxu1 }
 0x207   :  { %v730_v51 = vpop.f32.mrb[4].mxu0  ;;  %v795_v52 = vpop.f32.mrb[5].mxu1 }
 0x208   :  { %v11979_v53 = vpop.f32.mrb[5].mxu0  ;;  %v11981_v54 = vmax.f32 %v730_v51, %v795_v52  ;;  %v11983_v55 = vpop.f32.mrb[6].mxu1 }
 0x209   :  { %v734_v56 = vpop.f32.mrb[6].mxu0  ;;  %v799_v57 = vpop.f32.mrb[7].mxu1 }
 0x20a   :  { %v11985_v58 = vpop.f32.mrb[7].mxu0  ;;  %v11987_v59 = vmax.f32 %v734_v56, %v799_v57 }
 0x20e   :  { %v11989_v61 = vpop.f32.mrb[8].mxu1 }
 0x20f   :  { %v740_v62 = vpop.f32.mrb[8].mxu0  ;;  %v805_v63 = vpop.f32.mrb[9].mxu1 }
 0x210   :  { %v11991_v4 = vpop.f32.mrb[9].mxu0  ;;  %v11993_v10 = vmax.f32 %v740_v62, %v805_v63  ;;  %v11995_v5 = vpop.f32.mrb[10].mxu1 }
 0x211   :  { %13609 = vst [vmem:[#allocation25_spill] sm:$0xff] %v11995_v5  ;;  %v744_v6 = vpop.f32.mrb[10].mxu0  ;;  %v809_v7 = vpop.f32.mrb[11].mxu1 }
 0x212   :  { %13608 = vst [vmem:[#allocation24_spill] sm:$0xff] %v11993_v10  ;;  %v11997_v8 = vpop.f32.mrb[11].mxu0  ;;  %v11999_v9 = vmax.f32 %v744_v6, %v809_v7 }
 0x214   :  { %13610 = vst [vmem:[#allocation26_spill] sm:$0xff] %v11999_v9 }
 0x221   :  { %v846_v21 = vpop.f32.mrb[12].mxu0 }
 0x222   :  { %v876_v23 = vmax.f32 %v722_v40, %v846_v21  ;;  %v848_v24 = vpop.f32.mrb[13].mxu0 }
 0x223   :  { %v877_v25 = vmax.f32 %v783_v39, %v848_v24  ;;  %v850_v60 = vpop.f32.mrb[14].mxu0 }
 0x224   :  { %v911_v26 = vcombine.low %v875_v42, %v876_v23  ;;  %v912_v27 = vcombine.high %v875_v42, %v876_v23  ;;  %v12006_v28 = vmax.f32 %v726_v45, %v850_v60  ;;  %v852_v29 = vpop.f32.mrb[15].mxu0 }
 0x225   :  { %v913_v30 = vcombine.high %v877_v25, %v877_v25  ;;  %v934_v31 = vrot.slane %v877_v25, %v12004_v22  ;;  %v12009_v32 = vmax.f32 %v787_v44, %v852_v29 }
 0x226   :  { %v920_v1 = vrot.slane %v911_v26, %v12004_v22  ;;  %v927_v20 = vrot.slane %v912_v27, %v12004_v22 }
 0x227   :  { %v941_v34 = vrot.slane %v913_v30, %v12004_v22  ;;  %v9236_v35 = vcombine.low %v934_v31, %v934_v31  ;;  %v9237_v36 = vcombine.high %v934_v31, %v934_v31 }
 0x228   :  { %v942_v37 = vcombine.low %v920_v1, %v934_v31  ;;  %v943_v38 = vcombine.high %v920_v1, %v934_v31 }
 0x229   :  { %v944_v39 = vcombine.low %v927_v20, %v941_v34  ;;  %v945_v40 = vcombine.high %v927_v20, %v941_v34  ;;  %v1135_v41 = vrot.slane %v9236_v35, %v12004_v22  ;;  %v1151_v42 = vrot.slane %v9237_v36, %v12004_v22  ;;  %v12020_v43 = vpop.f32.mrb[16].mxu0 }
 0x22a   :  { %v1128_v44 = vrot.slane %v942_v37, %v12004_v22  ;;  %v1144_v45 = vrot.slane %v943_v38, %v12004_v22  ;;  %v12024_v46 = vpop.f32.mrb[17].mxu0  ;;  %v9238_v21 = vcombine.low %v941_v34, %v941_v34 }
 0x22b   :  { %v1160_v48 = vrot.slane %v944_v39, %v12004_v22  ;;  %v1592_v2 = vsel %vm1577_vm7, %v1135_v41, -inf  ;;  %v12028_v49 = vpop.f32.mrb[18].mxu0  ;;  %v1613_v63 = vsel %vm1577_vm7, %v1151_v42, -inf  ;;  %v1176_v31 = vrot.slane %v945_v40, %v12004_v22 }
 0x22c   :  { %v1136_v0 = vcombine.high %v1128_v44, %v1128_v44  ;;  %v1152_v51 = vcombine.high %v1144_v45, %v1144_v45  ;;  %v12030_v52 = vpop.f32.mrb[19].mxu0  ;;  %v1578_v57 = vsel %vm1577_vm7, %v1128_v44, -inf  ;;  %v1593_v62 = vrot.slane %v1592_v2, 4 }
 0x22d   :  { %v1168_v56 = vcombine.high %v1160_v48, %v1160_v48  ;;  %v1579_v6 = vrot.slane %v1578_v57, 4  ;;  %v1599_v11 = vsel %vm1577_vm7, %v1144_v45, -inf  ;;  %v1614_v16 = vrot.slane %v1613_v63, 4 }
 0x22e   :  { %v1585_v7 = vsel %vm1577_vm7, %v1136_v0, -inf  ;;  %v1606_v12 = vsel %vm1577_vm7, %v1152_v51, -inf  ;;  %v1600_v13 = vrot.slane %v1599_v11, 4  ;;  %v1620_v17 = vsel %vm1577_vm7, %v1160_v48, -inf }
 0x22f   :  { %v1607_v14 = vrot.slane %v1606_v12, 4  ;;  %v1586_v3 = vrot.slane %v1585_v7, 4  ;;  %v1627_v18 = vsel %vm1577_vm7, %v1168_v56, -inf  ;;  %v1594_v23 = vmax.f32 %v1592_v2, %v1593_v62 }
 0x230   :  { %v1580_v25 = vmax.f32 %v1578_v57, %v1579_v6  ;;  %v1601_v60 = vmax.f32 %v1599_v11, %v1600_v13  ;;  %v1621_v26 = vrot.slane %v1620_v17, 4  ;;  %v1628_v27 = vrot.slane %v1627_v18, 4 }
 0x231   :  { %v12039_v24 = vpop.f32.mrb[20].mxu0  ;;  %v1608_v30 = vmax.f32 %v1606_v12, %v1607_v14  ;;  %v1587_v1 = vmax.f32 %v1585_v7, %v1586_v3  ;;  %v1615_v20 = vmax.f32 %v1613_v63, %v1614_v16  ;;  %v1167_v35 = vrot.slane %v9238_v21, %v12004_v22 }
 0x232   :  { %v12041_v29 = vpop.f32.mrb[21].mxu0  ;;  %v1595_v36 = vrot.slane %v1594_v23, 2  ;;  %v1622_v37 = vmax.f32 %v1620_v17, %v1621_v26  ;;  %v1629_v38 = vmax.f32 %v1627_v18, %v1628_v27  ;;  %v9239_v39 = vcombine.high %v941_v34, %v941_v34 }
 0x233   :  { %v1581_v41 = vrot.slane %v1580_v25, 2  ;;  %v1602_v42 = vrot.slane %v1601_v60, 2  ;;  %v1609_v44 = vrot.slane %v1608_v30, 2  ;;  %v1184_v45 = vcombine.high %v1176_v31, %v1176_v31  ;;  %v12048_v34 = vpop.f32.mrb[22].mxu0 }
 0x234   :  { %v1588_v48 = vrot.slane %v1587_v1, 2  ;;  %v1616_v2 = vrot.slane %v1615_v20, 2  ;;  %v1596_v0 = vmax.f32 %v1594_v23, %v1595_v36  ;;  %v1623_v51 = vrot.slane %v1622_v37, 2  ;;  %v2082_v23 = vld [vmem:[#allocation5] sm:$0x7] }
 0x235   :  { %v1630_v56 = vrot.slane %v1629_v38, 2  ;;  %v1634_v57 = vsel %vm1577_vm7, %v1167_v35, -inf  ;;  %v1183_v40 = vrot.slane %v9239_v39, %v12004_v22  ;;  %v1582_v62 = vmax.f32 %v1580_v25, %v1581_v41 }
 0x236   :  { %v1603_v63 = vmax.f32 %v1601_v60, %v1602_v42  ;;  %v1635_v6 = vrot.slane %v1634_v57, 4  ;;  %v1610_v7 = vmax.f32 %v1608_v30, %v1609_v44  ;;  %v13507_v11 = vsub.s32 2, %v12001_v19 }
 0x237   :  { %v1589_v12 = vmax.f32 %v1587_v1, %v1588_v48  ;;  %v1617_v13 = vmax.f32 %v1615_v20, %v1616_v2  ;;  %v1641_v14 = vsel %vm1577_vm7, %v1176_v31, -inf  ;;  %v12052_v3 = vsub.s32 0, %v12001_v19 }
 0x238   :  { %v1597_v16 = vrot.slane %v1596_v0, 1  ;;  %v1624_v17 = vmax.f32 %v1622_v37, %v1623_v51  ;;  %v1631_v18 = vmax.f32 %v1629_v38, %v1630_v56  ;;  %v1648_v21 = vsel %vm1577_vm7, %v1184_v45, -inf }
 0x239   :  { %13613 = vst [vmem:[#allocation29_spill] sm:$0xff] %v12052_v3  ;;  %v1583_v25 = vrot.slane %v1582_v62, 1  ;;  %v1604_v60 = vrot.slane %v1603_v63, 1  ;;  %v1636_v26 = vmax.f32 %v1634_v57, %v1635_v6  ;;  %v1655_v27 = vsel %vm1577_vm7, %v1183_v40, -inf }
 0x23a   :  { %v1611_v30 = vrot.slane %v1610_v7, 1  ;;  %v1642_v35 = vrot.slane %v1641_v14, 4  ;;  %v12057_v1 = vsub.s32 1, %v12001_v19  ;;  %v1590_v31 = vrot.slane %v1589_v12, 1 }
 0x23b   :  { %v1618_v20 = vrot.slane %v1617_v13, 1  ;;  %v1649_v36 = vrot.slane %v1648_v21, 4  ;;  %v12061_v37 = vrot.slane %v2082_v23, %v13507_v11  ;;  %v1625_v38 = vrot.slane %v1624_v17, 1 }
 0x23c   :  { %13614 = vst [vmem:[#allocation30_spill] sm:$0xff] %v12057_v1  ;;  %v1632_v39 = vrot.slane %v1631_v18, 1  ;;  %v1656_v41 = vrot.slane %v1655_v27, 4  ;;  %v12064_v42 = vrot.slane %v2082_v23, %v12052_v3  ;;  %v1584_v44 = vmax.f32 %v1582_v62, %v1583_v25 }
 0x23d   :  { %v1598_v45 = vmax.f32 %v1596_v0, %v1597_v16  ;;  %v1605_v48 = vmax.f32 %v1603_v63, %v1604_v60  ;;  %v1637_v2 = vrot.slane %v1636_v26, 2  ;;  %v1612_v51 = vmax.f32 %v1610_v7, %v1611_v30 }
 0x23e   :  { %v1643_v56 = vmax.f32 %v1641_v14, %v1642_v35  ;;  %v12067_v57 = vrot.slane %v2082_v23, %v12057_v1  ;;  %v1591_v40 = vmax.f32 %v1589_v12, %v1590_v31  ;;  %v1619_v6 = vmax.f32 %v1617_v13, %v1618_v20 }
 0x23f   :  { %v1650_v33 = vmax.f32 %v1648_v21, %v1649_v36  ;;  %v1626_v11 = vmax.f32 %v1624_v17, %v1625_v38  ;;  %v1633_v15 = vmax.f32 %v1631_v18, %v1632_v39  ;;  %v1657_v19 = vmax.f32 %v1655_v27, %v1656_v41 }
 0x240   :  { %v1638_v9 = vmax.f32 %v1636_v26, %v1637_v2  ;;  %v2099_v10 = vadd.f32 %v12064_v42, %v1584_v44  ;;  %v2101_v3 = vadd.f32 %v12061_v37, %v1598_v45  ;;  %v2102_v0 = vadd.f32 %v12064_v42, %v1605_v48 }
 0x241   :  { %v1644_v62 = vrot.slane %v1643_v56, 2  ;;  %v2103_v63 = vadd.f32 %v12067_v57, %v1612_v51  ;;  %v13615_v7 = vcombine.low %v11975_v47, %v12006_v28  ;;  %v948_v13 = vcombine.high %v12009_v32, %v12009_v32  ;;  %v10314_v51 = vld [vmem:[#allocation7 + $0xc4] ss:$16 sps:$4 sm:$0xff]  }
 0x242   :  { %v1651_v14 = vrot.slane %v1650_v33, 2  ;;  %v12080_v16 = vadd.f32 %v12067_v57, %v1591_v40  ;;  %v2104_v17 = vadd.f32 %v12061_v37, %v1619_v6  ;;  %v13617_v18 = vcombine.high %v11975_v47, %v12006_v28  ;;  %5808 = vmatprep.subr.bf16.mxu1 %v10314_v51 }
 0x243   :  { %v955_v12 = vrot.slane %v13615_v7, %v12004_v22  ;;  %v1658_v23 = vrot.slane %v1657_v19, 2  ;;  %v2105_v25 = vadd.f32 %v12064_v42, %v1626_v11  ;;  %v12091_v60 = vadd.f32 %v12067_v57, %v1633_v15 }
 0x244   :  { %13616 = vst [vmem:[#allocation31_spill] sm:$0xff] %v12080_v16  ;;  %v12087_v21 = vrot.slane %v13617_v18, %v12004_v22  ;;  %v969_v26 = vrot.slane %v12009_v32, %v12004_v22  ;;  %v1639_v27 = vrot.slane %v1638_v9, 1  ;;  %v2171_v30 = vmax.f32 %v2099_v10, 0.0 }
 0x245   :  { %13618 = vst [vmem:[#allocation32_spill] sm:$0xff] %v12091_v60  ;;  %v2173_v35 = vmax.f32 %v2101_v3, 0.0  ;;  %v2174_v31 = vmax.f32 %v2102_v0, 0.0  ;;  %v1645_v20 = vmax.f32 %v1643_v56, %v1644_v62  ;;  %v2175_v36 = vmax.f32 %v2103_v63, 0.0  ;;  %v10317_v56 = vld [vmem:[#allocation7 + $0xcc] ss:$16 sps:$4 sm:$0xff]  }
 0x246   :  { %v12096_v38 = vrot.slane %v948_v13, %v12004_v22  ;;  %v977_v47 = vcombine.low %v955_v12, %v969_v26  ;;  %v1652_v28 = vmax.f32 %v1650_v33, %v1651_v14  ;;  %v2176_v39 = vmax.f32 %v2104_v17, 0.0  ;;  %v10312_v0 = vld [vmem:[#allocation7 + $0xc0] ss:$16 sps:$4 sm:$0xff]   ;;  %v10315_v62 = vld [vmem:[#allocation7 + $0xc8] ss:$16 sps:$4 sm:$0xff]   ;;  %6152 = vmatprep.subr.bf16.mxu0 %v10317_v56 }
 0x247   :  { %v978_v41 = vcombine.high %v955_v12, %v969_v26  ;;  %v9240_v11 = vcombine.low %v969_v26, %v969_v26  ;;  %v1659_v44 = vmax.f32 %v1657_v19, %v1658_v23  ;;  %v2177_v15 = vmax.f32 %v2105_v25, 0.0  ;;  %5809 = vmatpush1.bf16.msra.mxu1 %v10312_v0  ;;  %6153 = vmatpush1.bf16.msra.mxu0 %v10315_v62 }
 0x248   :  { %v979_v45 = vcombine.low %v12087_v21, %v12096_v38  ;;  %v980_v10 = vcombine.high %v12087_v21, %v12096_v38  ;;  %v1640_v32 = vmax.f32 %v1638_v9, %v1639_v27  ;;  %v1192_v48 = vrot.slane %v977_v47, %v12004_v22  ;;  %v12113_v21 = vpop.f32.mrb[23].mxu0 }
 0x249   :  { %v9241_v2 = vcombine.high %v969_v26, %v969_v26  ;;  %v1646_v33 = vrot.slane %v1645_v20, 1  ;;  %v1199_v40 = vrot.slane %v9240_v11, %v12004_v22  ;;  %v1208_v19 = vrot.slane %v978_v41, %v12004_v22  ;;  %13621 = vst [vmem:[#allocation35_spill] sm:$0xff] %v12113_v21 }
 0x24a   :  { %v1224_v6 = vrot.slane %v979_v45, %v12004_v22  ;;  %v1653_v63 = vrot.slane %v1652_v28, 1  ;;  %v12107_v7 = vpack.c.bf16 %v2171_v30, %v2171_v30  ;;  %v12109_v9 = vpack.c.bf16 %v2173_v35, %v2173_v35 }
 0x24b   :  { %v1200_v12 = vcombine.high %v1192_v48, %v1192_v48  ;;  %v1660_v13 = vrot.slane %v1659_v44, 1  ;;  %v1215_v14 = vrot.slane %v9241_v2, %v12004_v22  ;;  %v1216_v17 = vcombine.high %v1208_v19, %v1208_v19 }
 0x24c   :  { %13619 = vst [vmem:[#allocation33_spill] sm:$0xff] %v12107_v7  ;;  %13620 = vst [vmem:[#allocation34_spill] sm:$0xff] %v12109_v9  ;;  %v1662_v18 = vsel %vm1577_vm7, %v1192_v48, -inf  ;;  %v12115_v23 = vpack.c.bf16 %v2174_v31, %v2174_v31  ;;  %v12117_v25 = vpack.c.bf16 %v2175_v36, %v2175_v36  ;;  %v1232_v26 = vcombine.high %v1224_v6, %v1224_v6 }
 0x24d   :  { %v1669_v27 = vsel %vm1577_vm7, %v1200_v12, -inf  ;;  %v1663_v30 = vrot.slane %v1662_v18, 4  ;;  %v1676_v35 = vsel %vm1577_vm7, %v1199_v40, -inf  ;;  %v1683_v47 = vsel %vm1577_vm7, %v1208_v19, -inf }
 0x24e   :  { %13622 = vst [vmem:[#allocation36_spill] sm:$0xff] %v12115_v23  ;;  %13623 = vst [vmem:[#allocation37_spill] sm:$0xff] %v12117_v25  ;;  %v1690_v41 = vsel %vm1577_vm7, %v1216_v17, -inf  ;;  %v1647_v11 = vmax.f32 %v1645_v20, %v1646_v33  ;;  %v2107_v45 = vadd.f32 %v12061_v37, %v1640_v32  ;;  %v12124_v48 = vpack.c.bf16 %v2176_v39, %v2176_v39 }
 0x24f   :  { %v1670_v31 = vrot.slane %v1669_v27, 4  ;;  %v1677_v2 = vrot.slane %v1676_v35, 4  ;;  %v1684_v36 = vrot.slane %v1683_v47, 4  ;;  %v1697_v51 = vsel %vm1577_vm7, %v1215_v14, -inf }
 0x250   :  { %13624 = vst [vmem:[#allocation38_spill] sm:$0xff] %v12124_v48  ;;  %v1704_v56 = vsel %vm1577_vm7, %v1224_v6, -inf  ;;  %v12128_v0 = vpack.c.bf16 %v2177_v15, %v2177_v15  ;;  %v9242_v40 = vcombine.low %v12096_v38, %v12096_v38  ;;  %v1691_v19 = vrot.slane %v1690_v41, 4 }
 0x251   :  { %v1711_v62 = vsel %vm1577_vm7, %v1232_v26, -inf  ;;  %v1654_v20 = vmax.f32 %v1652_v28, %v1653_v63  ;;  %v1664_v33 = vmax.f32 %v1662_v18, %v1663_v30  ;;  %v1698_v32 = vrot.slane %v1697_v51, 4 }
 0x252   :  { %v1705_v39 = vrot.slane %v1704_v56, 4  ;;  %v1661_v12 = vmax.f32 %v1659_v44, %v1660_v13  ;;  %v9243_v6 = vcombine.high %v12096_v38, %v12096_v38  ;;  %v1671_v15 = vmax.f32 %v1669_v27, %v1670_v31 }
 0x253   :  { %v1678_v14 = vmax.f32 %v1676_v35, %v1677_v2  ;;  %v1685_v1 = vmax.f32 %v1683_v47, %v1684_v36  ;;  %v1712_v25 = vrot.slane %v1711_v62, 4  ;;  %v12138_v60 = vadd.f32 %v12064_v42, %v1647_v11 }
 0x254   :  { %v1231_v28 = vrot.slane %v9242_v40, %v12004_v22  ;;  %v1240_v63 = vrot.slane %v980_v10, %v12004_v22  ;;  %v1692_v18 = vmax.f32 %v1690_v41, %v1691_v19  ;;  %v2179_v44 = vmax.f32 %v2107_v45, 0.0 }
 0x255   :  { %v1665_v13 = vrot.slane %v1664_v33, 2  ;;  %v1699_v26 = vmax.f32 %v1697_v51, %v1698_v32  ;;  %v1706_v30 = vmax.f32 %v1704_v56, %v1705_v39  ;;  %v12143_v3 = vadd.f32 %v12067_v57, %v1654_v20  ;;  %v10320_v51 = vld [vmem:[#allocation7 + $0xe4] ss:$16 sps:$4 sm:$0xff]   ;;  %v10323_v56 = vld [vmem:[#allocation7 + $0xec] ss:$16 sps:$4 sm:$0xff]  }
 0x256   :  { %v1247_v35 = vrot.slane %v9243_v6, %v12004_v22  ;;  %v1672_v47 = vrot.slane %v1671_v15, 2  ;;  %v1679_v11 = vrot.slane %v1678_v14, 2  ;;  %v1686_v31 = vrot.slane %v1685_v1, 2  ;;  %v10318_v39 = vld [vmem:[#allocation7 + $0xe0] ss:$16 sps:$4 sm:$0xff]   ;;  %5810 = vmatprep.subr.bf16.mxu1 %v10320_v51  ;;  %6154 = vmatprep.subr.bf16.mxu0 %v10323_v56 }
 0x257   :  { %v1713_v2 = vmax.f32 %v1711_v62, %v1712_v25  ;;  %v12149_v10 = vadd.f32 %v12061_v37, %v1661_v12  ;;  %v1248_v41 = vcombine.high %v1240_v63, %v1240_v63  ;;  %v1693_v45 = vrot.slane %v1692_v18, 2  ;;  %v10321_v12 = vld [vmem:[#allocation7 + $0xe8] ss:$16 sps:$4 sm:$0xff]   ;;  %5811 = vmatpush1.bf16.msra.mxu1 %v10318_v39 }
 0x258   :  { %v1718_v36 = vsel %vm1577_vm7, %v1231_v28, -inf  ;;  %v1666_v40 = vmax.f32 %v1664_v33, %v1665_v13  ;;  %v1700_v19 = vrot.slane %v1699_v26, 2  ;;  %v1707_v20 = vrot.slane %v1706_v30, 2  ;;  %6155 = vmatpush1.bf16.msra.mxu0 %v10321_v12  ;;  %v10327_v51 = vld [vmem:[#allocation7 + $0x108] ss:$16 sps:$4 sm:$0xff]  }
 0x259   :  { %v1719_v32 = vrot.slane %v1718_v36, 4  ;;  %v2180_v6 = vmax.f32 %v12138_v60, 0.0  ;;  %v12153_v17 = vpack.c.bf16 %v2179_v44, %v2179_v44  ;;  %v1725_v25 = vsel %vm1577_vm7, %v1240_v63, -inf  ;;  %v10326_v60 = vld [vmem:[#allocation7 + $0x104] ss:$16 sps:$4 sm:$0xff]  }
 0x25a   :  { %v1739_v62 = vsel %vm1577_vm7, %v1247_v35, -inf  ;;  %v1673_v27 = vmax.f32 %v1671_v15, %v1672_v47  ;;  %v1680_v28 = vmax.f32 %v1678_v14, %v1679_v11  ;;  %v1687_v38 = vmax.f32 %v1685_v1, %v1686_v31  ;;  %v10324_v35 = vld [vmem:[#allocation7 + $0x100] ss:$16 sps:$4 sm:$0xff]   ;;  %5812 = vmatprep.subr.bf16.mxu1 %v10326_v60  ;;  %v10329_v11 = vld [vmem:[#allocation7 + $0x10c] ss:$16 sps:$4 sm:$0xff]  }
 0x25b   :  { %v1714_v9 = vrot.slane %v1713_v2, 2  ;;  %v1694_v33 = vmax.f32 %v1692_v18, %v1693_v45  ;;  %v1720_v13 = vmax.f32 %v1718_v36, %v1719_v32  ;;  %v1726_v7 = vrot.slane %v1725_v25, 4  ;;  %5813 = vmatpush1.bf16.msra.mxu1 %v10324_v35  ;;  %6156 = vmatprep.subr.bf16.mxu0 %v10329_v11  ;;  %v10332_v32 = vld [vmem:[#allocation7 + $0x124] ss:$16 sps:$4 sm:$0xff]   ;;  %v10335_v60 = vld [vmem:[#allocation7 + $0x12c] ss:$16 sps:$4 sm:$0xff]  }
 0x25c   :  { %v1740_v16 = vrot.slane %v1739_v62, 4  ;;  %v1667_v44 = vrot.slane %v1666_v40, 1  ;;  %v1701_v5 = vmax.f32 %v1699_v26, %v1700_v19  ;;  %v1708_v21 = vmax.f32 %v1706_v30, %v1707_v20  ;;  %6157 = vmatpush1.bf16.msra.mxu0 %v10327_v51  ;;  %5814 = vmatprep.subr.bf16.mxu1 %v10332_v32  ;;  %v10338_v51 = vld [vmem:[#allocation7 + $0x144] ss:$16 sps:$4 sm:$0xff]  }
 0x25d   :  { %v1732_v63 = vsel %vm1577_vm7, %v1248_v41, -inf  ;;  %v13625_v56 = vunpack.c.l.b16 %v12115_v23  ;;  %v13626_v1 = vunpack.c.l.b16 %v12124_v48  ;;  %v1727_v18 = vmax.f32 %v1725_v25, %v1726_v7  ;;  %6158 = vmatprep.subr.bf16.mxu0 %v10335_v60 }
 0x25e   :  { %v1741_v47 = vmax.f32 %v1739_v62, %v1740_v16  ;;  %v2182_v31 = vmax.f32 %v12149_v10, 0.0  ;;  %v1674_v26 = vrot.slane %v1673_v27, 1  ;;  %v1681_v30 = vrot.slane %v1680_v28, 1  ;;  %v10330_v16 = vld [vmem:[#allocation7 + $0x120] ss:$16 sps:$4 sm:$0xff]  }
 0x25f   :  { %v12160_v15 = vrot.slane %v13625_v56, 7  ;;  %v12164_v14 = vrot.slane %v13626_v1, 7  ;;  %v1715_v45 = vmax.f32 %v1713_v2, %v1714_v9  ;;  %v1688_v41 = vrot.slane %v1687_v38, 1  ;;  %v10333_v2 = vld [vmem:[#allocation7 + $0x128] ss:$16 sps:$4 sm:$0xff]   ;;  %5815 = vmatpush1.bf16.msra.mxu1 %v10330_v16 }
 0x260   :  { %v1695_v36 = vrot.slane %v1694_v33, 1  ;;  %v1721_v19 = vrot.slane %v1720_v13, 2  ;;  %v1733_v20 = vrot.slane %v1732_v63, 4  ;;  %v2181_v39 = vmax.f32 %v12143_v3, 0.0  ;;  %6159 = vmatpush1.bf16.msra.mxu0 %v10333_v2  ;;  %5816 = vmatprep.subr.bf16.mxu1 %v10338_v51 }
 0x261   :  { %13627 = vst [vmem:[#allocation39_spill] sm:$0xff] %v12164_v14  ;;  %v1668_v12 = vmax.f32 %v1666_v40, %v1667_v44  ;;  %v1702_v56 = vrot.slane %v1701_v5, 1  ;;  %v1709_v7 = vrot.slane %v1708_v21, 1  ;;  %v2252_v25 = vpack.c.bf16 %v2180_v6, %v2180_v6 }
 0x262   :  { %v12169_v10 = vunpack.c.l.b16 %v12128_v0  ;;  %v1728_v62 = vrot.slane %v1727_v18, 2  ;;  %v1742_v9 = vrot.slane %v1741_v47, 2  ;;  %v2254_v35 = vpack.c.bf16 %v2182_v31, %v2182_v31  ;;  %v10336_v31 = vld [vmem:[#allocation7 + $0x140] ss:$16 sps:$4 sm:$0xff]  }
 0x263   :  { %v1675_v1 = vmax.f32 %v1673_v27, %v1674_v26  ;;  %v1682_v11 = vmax.f32 %v1680_v28, %v1681_v30  ;;  %v1716_v48 = vrot.slane %v1715_v45, 1  ;;  %v1689_v3 = vmax.f32 %v1687_v38, %v1688_v41  ;;  %v10339_v27 = vld [vmem:[#allocation7 + $0x148] ss:$16 sps:$4 sm:$0xff]   ;;  %v10341_v28 = vld [vmem:[#allocation7 + $0x14c] ss:$16 sps:$4 sm:$0xff]   ;;  %5817 = vmatpush1.bf16.msra.mxu1 %v10336_v31 }
 0x264   :  { %13628 = vst [vmem:[#allocation40_spill] sm:$0xff] %v12169_v10  ;;  %v1696_v40 = vmax.f32 %v1694_v33, %v1695_v36  ;;  %v1722_v44 = vmax.f32 %v1720_v13, %v1721_v19  ;;  %v1734_v14 = vmax.f32 %v1732_v63, %v1733_v20  ;;  %v12172_v6 = vunpack.c.l.b16 %v12153_v17  ;;  %6160 = vmatprep.subr.bf16.mxu0 %v10341_v28  ;;  %v10342_v30 = vld [vmem:[#allocation7 + $0x160] ss:$16 sps:$4 sm:$0xff]   ;;  %v10344_v41 = vld [vmem:[#allocation7 + $0x164] ss:$16 sps:$4 sm:$0xff]  }
 0x265   :  { %v1703_v0 = vmax.f32 %v1701_v5, %v1702_v56  ;;  %v1710_v23 = vmax.f32 %v1708_v21, %v1709_v7  ;;  %v12175_v32 = vadd.f32 %v12064_v42, %v1668_v12  ;;  %v12177_v26 = vpack.c.bf16 %v2181_v39, %v2181_v39  ;;  %6161 = vmatpush1.bf16.msra.mxu0 %v10339_v27  ;;  %v10345_v56 = vld [vmem:[#allocation7 + $0x168] ss:$16 sps:$4 sm:$0xff]   ;;  %v10350_v7 = vld [vmem:[#allocation7 + $0x184] ss:$16 sps:$4 sm:$0xff]  }
 0x266   :  { %13629 = vst [vmem:[#allocation41_spill] sm:$0xff] %v12172_v6  ;;  %v12179_v38 = vunpack.c.l.b16 %v2252_v25  ;;  %v1729_v33 = vmax.f32 %v1727_v18, %v1728_v62  ;;  %v1743_v13 = vmax.f32 %v1741_v47, %v1742_v9  ;;  %v12181_v63 = vunpack.c.l.b16 %v2254_v35  ;;  %5818 = vmatprep.subr.bf16.mxu1 %v10344_v41  ;;  %v10348_v35 = vld [vmem:[#allocation7 + $0x180] ss:$16 sps:$4 sm:$0xff]  }
 0x267   :  { %v12183_v17 = vmax.f32 %v1715_v45, %v1716_v48  ;;  %v12186_v5 = vadd.f32 %v12067_v57, %v1675_v1  ;;  %v12189_v21 = vadd.f32 %v12061_v37, %v1682_v11  ;;  %v1723_v36 = vrot.slane %v1722_v44, 1  ;;  %v10347_v48 = vld [vmem:[#allocation7 + $0x16c] ss:$16 sps:$4 sm:$0xff]   ;;  %5819 = vmatpush1.bf16.msra.mxu1 %v10342_v30 }
 0x268   :  { %13630 = vst [vmem:[#allocation42_spill] sm:$0xff] %v12181_v63  ;;  %v1735_v19 = vrot.slane %v1734_v14, 2  ;;  %v12192_v18 = vadd.f32 %v12064_v42, %v1689_v3  ;;  %v12195_v47 = vadd.f32 %v12067_v57, %v1696_v40  ;;  %v12198_v45 = vadd.f32 %v12061_v37, %v1703_v0  ;;  %6162 = vmatprep.subr.bf16.mxu0 %v10347_v48  ;;  %v10359_v0 = vld [vmem:[#allocation7 + $0x1ac] ss:$16 sps:$4 sm:$0xff]  }
 0x269   :  { %v12201_v20 = vadd.f32 %v12064_v42, %v1710_v23  ;;  %v2183_v39 = vmax.f32 %v12175_v32, 0.0  ;;  %v882_v12 = vmax.f32 %v11979_v53, %v12020_v43  ;;  %v1730_v16 = vrot.slane %v1729_v33, 1  ;;  %v10353_v23 = vld [vmem:[#allocation7 + $0x18c] ss:$16 sps:$4 sm:$0xff]   ;;  %5820 = vmatprep.subr.bf16.mxu1 %v10350_v7  ;;  %6163 = vmatpush1.bf16.msra.mxu0 %v10345_v56 }
 0x26a   :  { %v1744_v25 = vrot.slane %v1743_v13, 1  ;;  %v883_v62 = vmax.f32 %v11977_v50, %v12024_v46  ;;  %v12210_v9 = vmax.f32 %v11985_v58, %v12028_v49  ;;  %v2184_v2 = vmax.f32 %v12186_v5, 0.0  ;;  %v10356_v49 = vld [vmem:[#allocation7 + $0x1a4] ss:$16 sps:$4 sm:$0xff]   ;;  %6164 = vmatprep.subr.bf16.mxu0 %v10353_v23  ;;  %v10354_v5 = vld [vmem:[#allocation7 + $0x1a0] ss:$16 sps:$4 sm:$0xff]  }
 0x26b   :  { %v981_v60 = vcombine.low %v11981_v54, %v882_v12  ;;  %v982_v53 = vcombine.high %v11981_v54, %v882_v12  ;;  %v12217_v43 = vmax.f32 %v11983_v55, %v12030_v52  ;;  %v1724_v1 = vmax.f32 %v1722_v44, %v1723_v36  ;;  %v10351_v52 = vld [vmem:[#allocation7 + $0x188] ss:$16 sps:$4 sm:$0xff]   ;;  %5821 = vmatpush1.bf16.msra.mxu1 %v10348_v35 }
 0x26c   :  { %v1736_v50 = vmax.f32 %v1734_v14, %v1735_v19  ;;  %v983_v46 = vcombine.high %v883_v62, %v883_v62  ;;  %v12220_v58 = vrot.slane %v883_v62, %v12004_v22  ;;  %v1016_v54 = vcombine.low %v11987_v59, %v12210_v9  ;;  %5822 = vmatprep.subr.bf16.mxu1 %v10356_v49  ;;  %v10368_v49 = vld [vmem:[#allocation7 + $0x1e4] ss:$16 sps:$4 sm:$0xff]  }
 0x26d   :  { %v990_v11 = vrot.slane %v981_v60, %v12004_v22  ;;  %v12224_v3 = vrot.slane %v982_v53, %v12004_v22  ;;  %v1017_v55 = vcombine.high %v11987_v59, %v12210_v9  ;;  %v1731_v14 = vmax.f32 %v1729_v33, %v1730_v16  ;;  %6165 = vmatpush1.bf16.msra.mxu0 %v10351_v52  ;;  %v10365_v16 = vld [vmem:[#allocation7 + $0x1cc] ss:$16 sps:$4 sm:$0xff]   ;;  %v10360_v60 = vld [vmem:[#allocation7 + $0x1c0] ss:$16 sps:$4 sm:$0xff]  }
 0x26e   :  { %v1745_v40 = vmax.f32 %v1743_v13, %v1744_v25  ;;  %v12231_v44 = vrot.slane %v983_v46, %v12004_v22  ;;  %v9244_v51 = vcombine.low %v12220_v58, %v12220_v58  ;;  %v2185_v32 = vmax.f32 %v12189_v21, 0.0  ;;  %v10362_v21 = vld [vmem:[#allocation7 + $0x1c4] ss:$16 sps:$4 sm:$0xff]   ;;  %6166 = vmatprep.subr.bf16.mxu0 %v10359_v0 }
 0x26f   :  { %v2186_v31 = vmax.f32 %v12192_v18, 0.0  ;;  %v1012_v27 = vcombine.low %v990_v11, %v12220_v58  ;;  %v1013_v28 = vcombine.high %v990_v11, %v12220_v58  ;;  %v2187_v33 = vmax.f32 %v12195_v47, 0.0  ;;  %v10357_v47 = vld [vmem:[#allocation7 + $0x1a8] ss:$16 sps:$4 sm:$0xff]   ;;  %5823 = vmatpush1.bf16.msra.mxu1 %v10354_v5 }
 0x270   :  { %v2188_v13 = vmax.f32 %v12198_v45, 0.0  ;;  %v1014_v30 = vcombine.low %v12224_v3, %v12231_v44  ;;  %v1015_v41 = vcombine.high %v12224_v3, %v12231_v44  ;;  %v1737_v36 = vrot.slane %v1736_v50, 1  ;;  %5824 = vmatprep.subr.bf16.mxu1 %v10362_v21 }
 0x271   :  { %v12247_v19 = vadd.f32 %v12067_v57, %v12183_v17  ;;  %v2119_v18 = vadd.f32 %v12061_v37, %v1724_v1  ;;  %v1256_v48 = vrot.slane %v1012_v27, %v12004_v22  ;;  %v2120_v45 = vadd.f32 %v12064_v42, %v1731_v14  ;;  %6167 = vmatpush1.bf16.msra.mxu0 %v10357_v47 }
 0x272   :  { %v2122_v12 = vadd.f32 %v12061_v37, %v1745_v40  ;;  %v2189_v56 = vmax.f32 %v12201_v20, 0.0  ;;  %v1263_v7 = vrot.slane %v9244_v51, %v12004_v22  ;;  %v2255_v25 = vpack.c.bf16 %v2183_v39, %v2183_v39  ;;  %6168 = vmatprep.subr.bf16.mxu0 %v10365_v16 }
 0x273   :  { %v2256_v62 = vpack.c.bf16 %v2184_v2, %v2184_v2  ;;  %v2257_v17 = vpack.c.bf16 %v2185_v32, %v2185_v32  ;;  %v1272_v23 = vrot.slane %v1013_v28, %v12004_v22  ;;  %v2258_v53 = vpack.c.bf16 %v2186_v31, %v2186_v31  ;;  %v10363_v2 = vld [vmem:[#allocation7 + $0x1c8] ss:$16 sps:$4 sm:$0xff]   ;;  %v10371_v32 = vld [vmem:[#allocation7 + $0x1ec] ss:$16 sps:$4 sm:$0xff]   ;;  %5825 = vmatpush1.bf16.msra.mxu1 %v10360_v60  ;;  %v10366_v28 = vld [vmem:[#allocation7 + $0x1e0] ss:$16 sps:$4 sm:$0xff]  }
 0x274   :  { %v2259_v35 = vpack.c.bf16 %v2187_v33, %v2187_v33  ;;  %v2260_v1 = vpack.c.bf16 %v2188_v13, %v2188_v13  ;;  %v9245_v46 = vcombine.high %v12220_v58, %v12220_v58  ;;  %v12258_v20 = vmax.f32 %v1736_v50, %v1737_v36  ;;  %5826 = vmatprep.subr.bf16.mxu1 %v10368_v49 }
 0x275   :  { %v2191_v11 = vmax.f32 %v2119_v18, 0.0  ;;  %v1264_v52 = vcombine.high %v1256_v48, %v1256_v48  ;;  %v1746_v39 = vsel %vm1577_vm7, %v1256_v48, -inf  ;;  %v2192_v14 = vmax.f32 %v2120_v45, 0.0  ;;  %6169 = vmatpush1.bf16.msra.mxu0 %v10363_v2  ;;  %v10369_v45 = vld [vmem:[#allocation7 + $0x1e8] ss:$16 sps:$4 sm:$0xff]  }
 0x276   :  { %v2194_v40 = vmax.f32 %v2122_v12, 0.0  ;;  %v2261_v51 = vpack.c.bf16 %v2189_v56, %v2189_v56  ;;  %v1760_v0 = vsel %vm1577_vm7, %v1263_v7, -inf  ;;  %v12262_v31 = vunpack.c.l.b16 %v2255_v25  ;;  %v10374_v12 = vld [vmem:[#allocation7 + $0x204] ss:$16 sps:$4 sm:$0xff]   ;;  %6170 = vmatprep.subr.bf16.mxu0 %v10371_v32 }
 0x277   :  { %v12264_v58 = vunpack.c.l.b16 %v2256_v62  ;;  %v12266_v27 = vunpack.c.l.b16 %v2257_v17  ;;  %v1280_v50 = vcombine.high %v1272_v23, %v1272_v23  ;;  %v12268_v5 = vunpack.c.l.b16 %v2258_v53  ;;  %v10377_v62 = vld [vmem:[#allocation7 + $0x20c] ss:$16 sps:$4 sm:$0xff]   ;;  %5827 = vmatpush1.bf16.msra.mxu1 %v10366_v28 }
 0x278   :  { %13631 = vst [vmem:[#allocation43_spill] sm:$0xff] %v12262_v31  ;;  %v1279_v33 = vrot.slane %v9245_v46, %v12004_v22  ;;  %v1288_v13 = vrot.slane %v1014_v30, %v12004_v22  ;;  %v1747_v21 = vrot.slane %v1746_v39, 4  ;;  %v2263_v36 = vpack.c.bf16 %v2191_v11, %v2191_v11  ;;  %5839 = vmatprep.subr.bf16.mxu1 %v10374_v12 }
 0x279   :  { %13632 = vst [vmem:[#allocation44_spill] sm:$0xff] %v12266_v27  ;;  %13633 = vst [vmem:[#allocation45_spill] sm:$0xff] %v12268_v5  ;;  %v12272_v18 = vunpack.c.l.b16 %v2259_v35  ;;  %v1753_v48 = vsel %vm1577_vm7, %v1264_v52, -inf  ;;  %v1761_v47 = vrot.slane %v1760_v0, 4  ;;  %v2264_v56 = vpack.c.bf16 %v2192_v14, %v2192_v14  ;;  %6171 = vmatpush1.bf16.msra.mxu0 %v10369_v45 }
 0x27a   :  { %v2266_v7 = vpack.c.bf16 %v2194_v40, %v2194_v40  ;;  %v12275_v16 = vunpack.c.l.b16 %v2260_v1  ;;  %v1767_v25 = vsel %vm1577_vm7, %v1272_v23, -inf  ;;  %v9246_v30 = vcombine.low %v12231_v44, %v12231_v44  ;;  %6183 = vmatprep.subr.bf16.mxu0 %v10377_v62 }
 0x27b   :  { %v9247_v17 = vcombine.high %v12231_v44, %v12231_v44  ;;  %v12286_v60 = vrot.slane %v1015_v41, %v12004_v22  ;;  %v1774_v53 = vsel %vm1577_vm7, %v1280_v50, -inf  ;;  %v1296_v35 = vcombine.high %v1288_v13, %v1288_v13 }
 0x27c   :  { %13634 = vst [vmem:[#allocation46_spill] sm:$0xff] %v12275_v16  ;;  %v1748_v1 = vmax.f32 %v1746_v39, %v1747_v21  ;;  %v1754_v23 = vrot.slane %v1753_v48, 4  ;;  %v1781_v46 = vsel %vm1577_vm7, %v1279_v33, -inf  ;;  %v12290_v49 = vunpack.c.l.b16 %v2261_v51 }
 0x27d   :  { %13635 = vst [vmem:[#allocation47_spill] sm:$0xff] %v12286_v60  ;;  %v12292_v11 = vunpack.c.l.b16 %v2263_v36  ;;  %v1762_v52 = vmax.f32 %v1760_v0, %v1761_v47  ;;  %v1768_v2 = vrot.slane %v1767_v25, 4  ;;  %v12294_v14 = vunpack.c.l.b16 %v2264_v56 }
 0x27e   :  { %13636 = vst [vmem:[#allocation48_spill] sm:$0xff] %v12290_v49  ;;  %v12296_v3 = vunpack.c.l.b16 %v2266_v7  ;;  %v1775_v44 = vrot.slane %v1774_v53, 4  ;;  %v1025_v41 = vrot.slane %v1016_v54, %v12004_v22  ;;  %v12303_v39 = vrot.slane %v9246_v30, %v12004_v22  ;;  %v13643_v7 = vld [vmem:[#allocation25_spill] sm:$0xff] }
 0x27f   :  { %13637 = vst [vmem:[#allocation49_spill] sm:$0xff] %v12292_v11  ;;  %13638 = vst [vmem:[#allocation50_spill] sm:$0xff] %v12294_v14  ;;  %v12306_v40 = vrot.slane %v9247_v17, %v12004_v22  ;;  %v1782_v0 = vrot.slane %v1781_v46, 4  ;;  %v1749_v32 = vrot.slane %v1748_v1, 2  ;;  %v12310_v50 = vmax.f32 %v1753_v48, %v1754_v23 }
 0x280   :  { %13639 = vst [vmem:[#allocation51_spill] sm:$0xff] %v12296_v3  ;;  %v12313_v28 = vsel %vm1577_vm7, %v1288_v13, -inf  ;;  %v12316_v33 = vsel %vm1577_vm7, %v1296_v35, -inf  ;;  %v1763_v54 = vrot.slane %v1762_v52, 2  ;;  %v12318_v21 = vmax.f32 %v1767_v25, %v1768_v2 }
 0x281   :  { %13640 = vst [vmem:[#allocation52_spill] sm:$0xff] %v12306_v40  ;;  %v1032_v36 = vrot.slane %v1017_v55, %v12004_v22  ;;  %v1018_v47 = vcombine.high %v12217_v43, %v12217_v43  ;;  %v12326_v45 = vmax.f32 %v1774_v53, %v1775_v44  ;;  %v1039_v13 = vrot.slane %v12217_v43, %v12004_v22  ;;  %v13642_v55 = vld [vmem:[#allocation35_spill] sm:$0xff] }
 0x282   :  { %v12332_v48 = vmax.f32 %v11991_v4, %v12039_v24  ;;  %v12336_v12 = vmax.f32 %v11989_v61, %v12041_v29  ;;  %v12338_v56 = vmax.f32 %v1781_v46, %v1782_v0  ;;  %v12345_v9 = vmax.f32 %v11997_v8, %v12048_v34 }
 0x283   :  { %13641 = vst [vmem:[#allocation53_spill] sm:$0xff] %v12326_v45  ;;  %v12341_v59 = vrot.slane %v1018_v47, %v12004_v22  ;;  %v12349_v43 = vmax.f32 %v13643_v7, %v13642_v55  ;;  %v1789_v4 = vrot.slane %v12313_v28, 4  ;;  %v1047_v24 = vcombine.low %v1025_v41, %v1039_v13 }
 0x284   :  { %v1048_v25 = vcombine.high %v1025_v41, %v1039_v13  ;;  %v9248_v62 = vcombine.low %v1039_v13, %v1039_v13  ;;  %v1796_v61 = vrot.slane %v12316_v33, 4  ;;  %v9249_v17 = vcombine.high %v1039_v13, %v1039_v13 }
 0x285   :  { %v1049_v29 = vcombine.low %v1032_v36, %v12341_v59  ;;  %v1050_v30 = vcombine.high %v1032_v36, %v12341_v59  ;;  %v12355_v53 = vmax.f32 %v1748_v1, %v1749_v32  ;;  %v1320_v8 = vrot.slane %v1047_v24, %v12004_v22 }
 0x286   :  { %v1327_v34 = vrot.slane %v9248_v62, %v12004_v22  ;;  %v1336_v35 = vrot.slane %v1048_v25, %v12004_v22  ;;  %v1756_v23 = vrot.slane %v12310_v50, 2  ;;  %v12361_v46 = vmax.f32 %v1762_v52, %v1763_v54 }
 0x287   :  { %v1770_v2 = vrot.slane %v12318_v21, 2  ;;  %v1352_v44 = vrot.slane %v1049_v29, %v12004_v22  ;;  %v1328_v41 = vcombine.high %v1320_v8, %v1320_v8  ;;  %v1343_v0 = vrot.slane %v9249_v17, %v12004_v22 }
 0x288   :  { %v1344_v36 = vcombine.high %v1336_v35, %v1336_v35  ;;  %v1830_v1 = vsel %vm1577_vm7, %v1320_v8, -inf  ;;  %v1844_v55 = vsel %vm1577_vm7, %v1327_v34, -inf  ;;  %v1851_v54 = vsel %vm1577_vm7, %v1336_v35, -inf }
 0x289   :  { %v1360_v47 = vcombine.high %v1352_v44, %v1352_v44  ;;  %v1831_v13 = vrot.slane %v1830_v1, 4  ;;  %v1837_v7 = vsel %vm1577_vm7, %v1328_v41, -inf  ;;  %v1845_v52 = vrot.slane %v1844_v55, 4 }
 0x28a   :  { %v1858_v24 = vsel %vm1577_vm7, %v1344_v36, -inf  ;;  %v1838_v62 = vrot.slane %v1837_v7, 4  ;;  %v1852_v29 = vrot.slane %v1851_v54, 4  ;;  %v1865_v8 = vsel %vm1577_vm7, %v1343_v0, -inf }
 0x28b   :  { %v1832_v25 = vmax.f32 %v1830_v1, %v1831_v13  ;;  %v1859_v17 = vrot.slane %v1858_v24, 4  ;;  %v1846_v51 = vmax.f32 %v1844_v55, %v1845_v52  ;;  %v1872_v32 = vsel %vm1577_vm7, %v1352_v44, -inf }
 0x28c   :  { %v1879_v40 = vsel %vm1577_vm7, %v1360_v47, -inf  ;;  %v9250_v34 = vcombine.low %v12341_v59, %v12341_v59  ;;  %v1853_v45 = vmax.f32 %v1851_v54, %v1852_v29  ;;  %v1784_v35 = vrot.slane %v12338_v56, 2 }
 0x28d   :  { %v1833_v41 = vrot.slane %v1832_v25, 2  ;;  %v1860_v3 = vmax.f32 %v1858_v24, %v1859_v17  ;;  %v1866_v36 = vrot.slane %v1865_v8, 4  ;;  %v1873_v1 = vrot.slane %v1872_v32, 4 }
 0x28e   :  { %v1880_v13 = vrot.slane %v1879_v40, 4  ;;  %v9251_v55 = vcombine.high %v12341_v59, %v12341_v59  ;;  %v1368_v0 = vrot.slane %v1050_v30, %v12004_v22  ;;  %v1839_v52 = vmax.f32 %v1837_v7, %v1838_v62 }
 0x28f   :  { %v1847_v44 = vrot.slane %v1846_v51, 2  ;;  %v1854_v11 = vrot.slane %v1853_v45, 2  ;;  %v1867_v47 = vmax.f32 %v1865_v8, %v1866_v36  ;;  %v1874_v16 = vmax.f32 %v1872_v32, %v1873_v1 }
 0x290   :  { %v1881_v27 = vmax.f32 %v1879_v40, %v1880_v13  ;;  %v12382_v63 = vmax.f32 %v12313_v28, %v1789_v4  ;;  %v1359_v54 = vrot.slane %v9250_v34, %v12004_v22  ;;  %v1834_v24 = vmax.f32 %v1832_v25, %v1833_v41 }
 0x291   :  { %v1861_v29 = vrot.slane %v1860_v3, 2  ;;  %v12386_v17 = vmax.f32 %v12316_v33, %v1796_v61  ;;  %v1868_v6 = vrot.slane %v1867_v47, 2  ;;  %v1875_v59 = vrot.slane %v1874_v16, 2 }
 0x292   :  { %13644 = vst [vmem:[#allocation35_spill] sm:$0xff] %v12382_v63  ;;  %v1882_v14 = vrot.slane %v1881_v27, 2  ;;  %v1751_v30 = vrot.slane %v12355_v53, 1  ;;  %v1375_v7 = vrot.slane %v9251_v55, %v12004_v22  ;;  %v1376_v62 = vcombine.high %v1368_v0, %v1368_v0 }
 0x293   :  { %13645 = vst [vmem:[#allocation25_spill] sm:$0xff] %v12386_v17  ;;  %v1848_v32 = vmax.f32 %v1846_v51, %v1847_v44  ;;  %v1757_v40 = vmax.f32 %v12310_v50, %v1756_v23  ;;  %v1765_v28 = vrot.slane %v12361_v46, 1  ;;  %v1840_v4 = vrot.slane %v1839_v52, 2 }
 0x294   :  { %v1855_v8 = vmax.f32 %v1853_v45, %v1854_v11  ;;  %v1771_v25 = vmax.f32 %v12318_v21, %v1770_v2  ;;  %v1835_v34 = vrot.slane %v1834_v24, 1  ;;  %v1862_v33 = vmax.f32 %v1860_v3, %v1861_v29 }
 0x295   :  { %v1886_v61 = vsel %vm1577_vm7, %v1359_v54, -inf  ;;  %v1869_v41 = vmax.f32 %v1867_v47, %v1868_v6  ;;  %v1876_v36 = vmax.f32 %v1874_v16, %v1875_v59  ;;  %v1883_v1 = vmax.f32 %v1881_v27, %v1882_v14 }
 0x296   :  { %v1887_v13 = vrot.slane %v1886_v61, 4  ;;  %v1849_v63 = vrot.slane %v1848_v32, 1  ;;  %v1893_v55 = vsel %vm1577_vm7, %v1368_v0, -inf  ;;  %v1900_v51 = vsel %vm1577_vm7, %v1376_v62, -inf }
 0x297   :  { %v1907_v50 = vsel %vm1577_vm7, %v1375_v7, -inf  ;;  %v1785_v23 = vmax.f32 %v12338_v56, %v1784_v35  ;;  %v1841_v11 = vmax.f32 %v1839_v52, %v1840_v4  ;;  %v1856_v45 = vrot.slane %v1855_v8, 1 }
 0x298   :  { %v1888_v21 = vmax.f32 %v1886_v61, %v1887_v13  ;;  %v1863_v2 = vrot.slane %v1862_v33, 1  ;;  %v1894_v3 = vrot.slane %v1893_v55, 4  ;;  %v1901_v44 = vrot.slane %v1900_v51, 4 }
 0x299   :  { %v1908_v54 = vrot.slane %v1907_v50, 4  ;;  %v1870_v6 = vrot.slane %v1869_v41, 1  ;;  %v1877_v16 = vrot.slane %v1876_v36, 1  ;;  %v1884_v27 = vrot.slane %v1883_v1, 1 }
 0x29a   :  { %v1889_v14 = vrot.slane %v1888_v21, 2  ;;  %v1836_v0 = vmax.f32 %v1834_v24, %v1835_v34  ;;  %v1850_v29 = vmax.f32 %v1848_v32, %v1849_v63  ;;  %v1895_v59 = vmax.f32 %v1893_v55, %v1894_v3 }
 0x29b   :  { %v12401_v7 = vsel %vm1577_vm7, %v12303_v39, -inf  ;;  %v12405_v56 = vsel %vm1577_vm7, %v12286_v60, -inf  ;;  %v1842_v35 = vrot.slane %v1841_v11, 1  ;;  %v1902_v52 = vmax.f32 %v1900_v51, %v1901_v44 }
 0x29c   :  { %13646 = vst [vmem:[#allocation54_spill] sm:$0xff] %v12401_v7  ;;  %13647 = vst [vmem:[#allocation55_spill] sm:$0xff] %v12405_v56  ;;  %v1857_v62 = vmax.f32 %v1855_v8, %v1856_v45  ;;  %v1864_v4 = vmax.f32 %v1862_v33, %v1863_v2  ;;  %v1890_v61 = vmax.f32 %v1888_v21, %v1889_v14  ;;  %v1758_v34 = vrot.slane %v1757_v40, 1 }
 0x29d   :  { %v1909_v13 = vmax.f32 %v1907_v50, %v1908_v54  ;;  %v12408_v49 = vmax.f32 %v12355_v53, %v1751_v30  ;;  %v1871_v24 = vmax.f32 %v1869_v41, %v1870_v6  ;;  %v1878_v63 = vmax.f32 %v1876_v36, %v1877_v16 }
 0x29e   :  { %v1885_v32 = vmax.f32 %v1883_v1, %v1884_v27  ;;  %v1896_v55 = vrot.slane %v1895_v59, 2  ;;  %v2135_v39 = vadd.f32 %v12064_v42, %v1836_v0  ;;  %v2137_v3 = vadd.f32 %v12061_v37, %v1850_v29 }
 0x29f   :  { %13648 = vst [vmem:[#allocation56_spill] sm:$0xff] %v12408_v49  ;;  %v1772_v47 = vrot.slane %v1771_v25, 1  ;;  %v1786_v60 = vrot.slane %v1785_v23, 1  ;;  %v1843_v17 = vmax.f32 %v1841_v11, %v1842_v35  ;;  %v1903_v51 = vrot.slane %v1902_v52, 2 }
 0x2a0   :  { %v1891_v8 = vrot.slane %v1890_v61, 1  ;;  %v1910_v33 = vrot.slane %v1909_v13, 2  ;;  %v2138_v50 = vadd.f32 %v12064_v42, %v1857_v62  ;;  %v2139_v53 = vadd.f32 %v12067_v57, %v1864_v4 }
 0x2a1   :  { %v12415_v30 = vmax.f32 %v12361_v46, %v1765_v28  ;;  %v2140_v41 = vadd.f32 %v12061_v37, %v1871_v24  ;;  %v2141_v36 = vadd.f32 %v12064_v42, %v1878_v63  ;;  %v12420_v1 = vadd.f32 %v12067_v57, %v1885_v32 }
 0x2a2   :  { %v12422_v45 = vmax.f32 %v1757_v40, %v1758_v34  ;;  %v1897_v11 = vmax.f32 %v1895_v59, %v1896_v55  ;;  %v2207_v21 = vmax.f32 %v2135_v39, 0.0  ;;  %v2209_v2 = vmax.f32 %v2137_v3, 0.0  ;;  %v13653_v59 = vld [vmem:[#allocation24_spill] sm:$0xff] }
 0x2a3   :  { %13649 = vst [vmem:[#allocation57_spill] sm:$0xff] %v12415_v30  ;;  %v12424_v44 = vmax.f32 %v1771_v25, %v1772_v47  ;;  %v12426_v54 = vmax.f32 %v1785_v23, %v1786_v60  ;;  %v1904_v6 = vmax.f32 %v1902_v52, %v1903_v51  ;;  %v12429_v46 = vadd.f32 %v12067_v57, %v1843_v17 }
 0x2a4   :  { %13650 = vst [vmem:[#allocation58_spill] sm:$0xff] %v12422_v45  ;;  %v1892_v28 = vmax.f32 %v1890_v61, %v1891_v8  ;;  %v1911_v16 = vmax.f32 %v1909_v13, %v1910_v33  ;;  %v2210_v27 = vmax.f32 %v2138_v50, 0.0  ;;  %v2211_v14 = vmax.f32 %v2139_v53, 0.0 }
 0x2a5   :  { %13651 = vst [vmem:[#allocation59_spill] sm:$0xff] %v12424_v44  ;;  %13652 = vst [vmem:[#allocation60_spill] sm:$0xff] %v12426_v54  ;;  %v2212_v0 = vmax.f32 %v2140_v41, 0.0  ;;  %v2213_v29 = vmax.f32 %v2141_v36, 0.0  ;;  %v1051_v35 = vcombine.low %v13653_v59, %v12332_v48  ;;  %v1898_v62 = vrot.slane %v1897_v11, 1 }
 0x2a6   :  { %v12434_v25 = vpack.c.bf16 %v2207_v21, %v2207_v21  ;;  %v12436_v60 = vpack.c.bf16 %v2209_v2, %v2209_v2  ;;  %v1052_v17 = vcombine.high %v13653_v59, %v12332_v48  ;;  %v1905_v23 = vrot.slane %v1904_v6, 1 }
 0x2a7   :  { %v1060_v47 = vrot.slane %v1051_v35, %v12004_v22  ;;  %v1053_v52 = vcombine.high %v12336_v12, %v12336_v12  ;;  %v1074_v4 = vrot.slane %v12336_v12, %v12004_v22  ;;  %v1912_v61 = vrot.slane %v1911_v16, 1  ;;  %v13656_v12 = vld [vmem:[#allocation26_spill] sm:$0xff] }
 0x2a8   :  { %13654 = vst [vmem:[#allocation24_spill] sm:$0xff] %v12436_v60  ;;  %v12446_v13 = vadd.f32 %v12061_v37, %v1892_v28  ;;  %v12448_v24 = vpack.c.bf16 %v2210_v27, %v2210_v27  ;;  %v1067_v63 = vrot.slane %v1052_v17, %v12004_v22  ;;  %v12454_v39 = vpack.c.bf16 %v2211_v14, %v2211_v14 }
 0x2a9   :  { %v12452_v32 = vrot.slane %v1053_v52, %v12004_v22  ;;  %v1082_v48 = vcombine.low %v1060_v47, %v1074_v4  ;;  %v1083_v34 = vcombine.high %v1060_v47, %v1074_v4  ;;  %v9252_v55 = vcombine.low %v1074_v4, %v1074_v4 }
 0x2aa   :  { %13655 = vst [vmem:[#allocation61_spill] sm:$0xff] %v12448_v24  ;;  %v12456_v3 = vpack.c.bf16 %v2212_v0, %v2212_v0  ;;  %v9253_v51 = vcombine.high %v1074_v4, %v1074_v4  ;;  %v1899_v36 = vmax.f32 %v1897_v11, %v1898_v62  ;;  %v1906_v21 = vmax.f32 %v1904_v6, %v1905_v23 }
 0x2ab   :  { %v1084_v33 = vcombine.low %v1067_v63, %v12452_v32  ;;  %v1085_v50 = vcombine.high %v1067_v63, %v12452_v32  ;;  %v1384_v53 = vrot.slane %v1082_v48, %v12004_v22  ;;  %v1391_v41 = vrot.slane %v9252_v55, %v12004_v22 }
 0x2ac   :  { %v2285_v2 = vpack.c.bf16 %v2213_v29, %v2213_v29  ;;  %v1400_v28 = vrot.slane %v1083_v34, %v12004_v22  ;;  %v1407_v14 = vrot.slane %v9253_v51, %v12004_v22  ;;  %v1913_v35 = vmax.f32 %v1911_v16, %v1912_v61 }
 0x2ad   :  { %v1392_v27 = vcombine.high %v1384_v53, %v1384_v53  ;;  %v1416_v0 = vrot.slane %v1084_v33, %v12004_v22  ;;  %v1914_v59 = vsel %vm1577_vm7, %v1384_v53, -inf  ;;  %v2215_v4 = vmax.f32 %v12446_v13, 0.0 }
 0x2ae   :  { %v1408_v47 = vcombine.high %v1400_v28, %v1400_v28  ;;  %v1915_v52 = vrot.slane %v1914_v59, 4  ;;  %v1928_v6 = vsel %vm1577_vm7, %v1391_v41, -inf  ;;  %v1935_v48 = vsel %vm1577_vm7, %v1400_v28, -inf }
 0x2af   :  { %v1424_v63 = vcombine.high %v1416_v0, %v1416_v0  ;;  %v1921_v11 = vsel %vm1577_vm7, %v1392_v27, -inf  ;;  %v1929_v23 = vrot.slane %v1928_v6, 4  ;;  %v1936_v34 = vrot.slane %v1935_v48, 4 }
 0x2b0   :  { %v1916_v29 = vmax.f32 %v1914_v59, %v1915_v52  ;;  %v1922_v62 = vrot.slane %v1921_v11, 4  ;;  %v1942_v55 = vsel %vm1577_vm7, %v1408_v47, -inf  ;;  %v1949_v16 = vsel %vm1577_vm7, %v1407_v14, -inf }
 0x2b1   :  { %v1956_v61 = vsel %vm1577_vm7, %v1416_v0, -inf  ;;  %v9254_v13 = vcombine.low %v12452_v32, %v12452_v32  ;;  %v1930_v33 = vmax.f32 %v1928_v6, %v1929_v23  ;;  %v1943_v53 = vrot.slane %v1942_v55, 4 }
 0x2b2   :  { %v1923_v51 = vmax.f32 %v1921_v11, %v1922_v62  ;;  %v1937_v27 = vmax.f32 %v1935_v48, %v1936_v34  ;;  %v1950_v41 = vrot.slane %v1949_v16, 4  ;;  %v1957_v59 = vrot.slane %v1956_v61, 4 }
 0x2b3   :  { %v1963_v52 = vsel %vm1577_vm7, %v1424_v63, -inf  ;;  %v1432_v17 = vrot.slane %v1085_v50, %v12004_v22  ;;  %v1917_v47 = vrot.slane %v1916_v29, 2  ;;  %v1944_v40 = vmax.f32 %v1942_v55, %v1943_v53 }
 0x2b4   :  { %v1924_v14 = vrot.slane %v1923_v51, 2  ;;  %v1951_v8 = vmax.f32 %v1949_v16, %v1950_v41  ;;  %v1958_v0 = vmax.f32 %v1956_v61, %v1957_v59  ;;  %v1964_v56 = vrot.slane %v1963_v52, 4 }
 0x2b5   :  { %v1423_v6 = vrot.slane %v9254_v13, %v12004_v22  ;;  %v9255_v62 = vcombine.high %v12452_v32, %v12452_v32  ;;  %v1931_v63 = vrot.slane %v1930_v33, 2  ;;  %v1938_v23 = vrot.slane %v1937_v27, 2 }
 0x2b6   :  { %v1945_v48 = vrot.slane %v1944_v40, 2  ;;  %v1965_v34 = vmax.f32 %v1963_v52, %v1964_v56  ;;  %v2144_v50 = vadd.f32 %v12064_v42, %v1899_v36  ;;  %v12488_v55 = vadd.f32 %v12067_v57, %v1906_v21 }
 0x2b7   :  { %v1440_v16 = vcombine.high %v1432_v17, %v1432_v17  ;;  %v1952_v61 = vrot.slane %v1951_v8, 2  ;;  %v2146_v53 = vadd.f32 %v12061_v37, %v1913_v35  ;;  %v1918_v41 = vmax.f32 %v1916_v29, %v1917_v47 }
 0x2b8   :  { %v1925_v59 = vmax.f32 %v1923_v51, %v1924_v14  ;;  %v1959_v28 = vrot.slane %v1958_v0, 2  ;;  %v12491_v13 = vunpack.c.l.b16 %v2285_v2  ;;  %v1439_v32 = vrot.slane %v9255_v62, %v12004_v22 }
 0x2b9   :  { %v1966_v11 = vrot.slane %v1965_v34, 2  ;;  %v1970_v7 = vsel %vm1577_vm7, %v1423_v6, -inf  ;;  %v2287_v56 = vpack.c.bf16 %v2215_v4, %v2215_v4  ;;  %v1932_v52 = vmax.f32 %v1930_v33, %v1931_v63 }
 0x2ba   :  { %13657 = vst [vmem:[#allocation26_spill] sm:$0xff] %v12491_v13  ;;  %v1939_v36 = vmax.f32 %v1937_v27, %v1938_v23  ;;  %v1946_v54 = vmax.f32 %v1944_v40, %v1945_v48  ;;  %v1953_v21 = vmax.f32 %v1951_v8, %v1952_v61  ;;  %v1971_v44 = vrot.slane %v1970_v7, 4 }
 0x2bb   :  { %v1977_v45 = vsel %vm1577_vm7, %v1432_v17, -inf  ;;  %v1984_v35 = vsel %vm1577_vm7, %v1440_v16, -inf  ;;  %v1919_v29 = vrot.slane %v1918_v41, 1  ;;  %v1926_v51 = vrot.slane %v1925_v59, 1 }
 0x2bc   :  { %v1960_v47 = vmax.f32 %v1958_v0, %v1959_v28  ;;  %v1978_v2 = vrot.slane %v1977_v45, 4  ;;  %v1967_v14 = vmax.f32 %v1965_v34, %v1966_v11  ;;  %v1972_v30 = vmax.f32 %v1970_v7, %v1971_v44 }
 0x2bd   :  { %v1985_v62 = vrot.slane %v1984_v35, 4  ;;  %v1991_v60 = vsel %vm1577_vm7, %v1439_v32, -inf  ;;  %v1933_v6 = vrot.slane %v1932_v52, 1  ;;  %v1940_v4 = vrot.slane %v1939_v36, 1 }
 0x2be   :  { %v1979_v33 = vmax.f32 %v1977_v45, %v1978_v2  ;;  %v1992_v27 = vrot.slane %v1991_v60, 4  ;;  %v1947_v40 = vrot.slane %v1946_v54, 1  ;;  %v1954_v8 = vrot.slane %v1953_v21, 1 }
 0x2bf   :  { %v1973_v63 = vrot.slane %v1972_v30, 2  ;;  %v1986_v23 = vmax.f32 %v1984_v35, %v1985_v62  ;;  %v2216_v17 = vmax.f32 %v2144_v50, 0.0  ;;  %v13658_v48 = vunpack.c.l.b16 %v12448_v24 }
 0x2c0   :  { %v1961_v28 = vrot.slane %v1960_v47, 1  ;;  %v1993_v0 = vmax.f32 %v1991_v60, %v1992_v27  ;;  %v2218_v11 = vmax.f32 %v2146_v53, 0.0  ;;  %v1920_v7 = vmax.f32 %v1918_v41, %v1919_v29 }
 0x2c1   :  { %v12500_v16 = vrot.slane %v13658_v48, 7  ;;  %v1968_v44 = vrot.slane %v1967_v14, 1  ;;  %v1980_v34 = vrot.slane %v1979_v33, 2  ;;  %v1927_v61 = vmax.f32 %v1925_v59, %v1926_v51 }
 0x2c2   :  { %v1934_v32 = vmax.f32 %v1932_v52, %v1933_v6  ;;  %v1941_v49 = vmax.f32 %v1939_v36, %v1940_v4  ;;  %v1987_v45 = vrot.slane %v1986_v23, 2  ;;  %v13660_v2 = vunpack.c.l.b16 %v12456_v3 }
 0x2c3   :  { %13659 = vst [vmem:[#allocation62_spill] sm:$0xff] %v12500_v16  ;;  %v1948_v35 = vmax.f32 %v1946_v54, %v1947_v40  ;;  %v1955_v50 = vmax.f32 %v1953_v21, %v1954_v8  ;;  %v1974_v62 = vmax.f32 %v1972_v30, %v1973_v63  ;;  %v2217_v48 = vmax.f32 %v12488_v55, 0.0 }
 0x2c4   :  { %v12504_v13 = vrot.slane %v13660_v2, 7  ;;  %v2288_v24 = vpack.c.bf16 %v2216_v17, %v2216_v17  ;;  %v1962_v16 = vmax.f32 %v1960_v47, %v1961_v28  ;;  %v1994_v60 = vrot.slane %v1993_v0, 2 }
 0x2c5   :  { %v2290_v53 = vpack.c.bf16 %v2218_v11, %v2218_v11  ;;  %v1969_v41 = vmax.f32 %v1967_v14, %v1968_v44  ;;  %v1981_v29 = vmax.f32 %v1979_v33, %v1980_v34  ;;  %v2147_v59 = vadd.f32 %v12064_v42, %v1920_v7 }
 0x2c6   :  { %v1988_v52 = vmax.f32 %v1986_v23, %v1987_v45  ;;  %v2148_v36 = vadd.f32 %v12067_v57, %v1927_v61  ;;  %v2149_v51 = vadd.f32 %v12061_v37, %v1934_v32  ;;  %v2150_v6 = vadd.f32 %v12064_v42, %v1941_v49 }
 0x2c7   :  { %v12511_v54 = vunpack.c.l.b16 %v2287_v56  ;;  %v1975_v30 = vrot.slane %v1974_v62, 1  ;;  %v2151_v55 = vadd.f32 %v12067_v57, %v1948_v35  ;;  %v2152_v21 = vadd.f32 %v12061_v37, %v1955_v50 }
 0x2c8   :  { %v12515_v47 = vpack.c.bf16 %v2217_v48, %v2217_v48  ;;  %v12517_v14 = vunpack.c.l.b16 %v2288_v24  ;;  %v1995_v4 = vmax.f32 %v1993_v0, %v1994_v60  ;;  %v2153_v33 = vadd.f32 %v12064_v42, %v1962_v16 }
 0x2c9   :  { %v12520_v27 = vunpack.c.l.b16 %v2290_v53  ;;  %v1982_v40 = vrot.slane %v1981_v29, 1  ;;  %v12523_v8 = vadd.f32 %v12067_v57, %v1969_v41  ;;  %v2219_v49 = vmax.f32 %v2147_v59, 0.0 }
 0x2ca   :  { %13661 = vst [vmem:[#allocation63_spill] sm:$0xff] %v12517_v14  ;;  %v1989_v56 = vrot.slane %v1988_v52, 1  ;;  %v2220_v63 = vmax.f32 %v2148_v36, 0.0  ;;  %v2221_v23 = vmax.f32 %v2149_v51, 0.0  ;;  %v2222_v17 = vmax.f32 %v2150_v6, 0.0 }
 0x2cb   :  { %v1976_v28 = vmax.f32 %v1974_v62, %v1975_v30  ;;  %v2223_v11 = vmax.f32 %v2151_v55, 0.0  ;;  %v2224_v7 = vmax.f32 %v2152_v21, 0.0  ;;  %v1087_v24 = vcombine.high %v13656_v12, %v12345_v9 }
 0x2cc   :  { %v1996_v0 = vrot.slane %v1995_v4, 1  ;;  %v2225_v44 = vmax.f32 %v2153_v33, 0.0  ;;  %v13662_v16 = vcombine.low %v13656_v12, %v12345_v9  ;;  %v1088_v61 = vcombine.high %v12349_v43, %v12349_v43 }
 0x2cd   :  { %v1983_v32 = vmax.f32 %v1981_v29, %v1982_v40  ;;  %v2291_v45 = vpack.c.bf16 %v2219_v49, %v2219_v49  ;;  %v12534_v2 = vrot.slane %v1087_v24, %v12004_v22  ;;  %v1109_v35 = vrot.slane %v12349_v43, %v12004_v22 }
 0x2ce   :  { %v1095_v34 = vrot.slane %v13662_v16, %v12004_v22  ;;  %v12538_v50 = vmax.f32 %v1988_v52, %v1989_v56  ;;  %v2292_v62 = vpack.c.bf16 %v2220_v63, %v2220_v63  ;;  %v2293_v48 = vpack.c.bf16 %v2221_v23, %v2221_v23 }
 0x2cf   :  { %13663 = vst [vmem:[#allocation64_spill] sm:$0xff] %v12534_v2  ;;  %v12541_v60 = vrot.slane %v1088_v61, %v12004_v22  ;;  %v9256_v53 = vcombine.low %v1109_v35, %v1109_v35  ;;  %v9257_v41 = vcombine.high %v1109_v35, %v1109_v35  ;;  %v1997_v59 = vmax.f32 %v1995_v4, %v1996_v0 }
 0x2d0   :  { %v1117_v9 = vcombine.low %v1095_v34, %v1109_v35  ;;  %v1118_v12 = vcombine.high %v1095_v34, %v1109_v35  ;;  %v2155_v29 = vadd.f32 %v12061_v37, %v1976_v28  ;;  %v2294_v52 = vpack.c.bf16 %v2222_v17, %v2222_v17 }
 0x2d1   :  { %13664 = vst [vmem:[#allocation65_spill] sm:$0xff] %v12541_v60  ;;  %v1119_v36 = vcombine.low %v12534_v2, %v12541_v60  ;;  %v1455_v6 = vrot.slane %v9256_v53, %v12004_v22  ;;  %v2156_v55 = vadd.f32 %v12064_v42, %v1983_v32  ;;  %v2295_v21 = vpack.c.bf16 %v2223_v11, %v2223_v11 }
 0x2d2   :  { %v1448_v51 = vrot.slane %v1117_v9, %v12004_v22  ;;  %v1464_v30 = vrot.slane %v1118_v12, %v12004_v22  ;;  %v2296_v33 = vpack.c.bf16 %v2224_v7, %v2224_v7  ;;  %v1471_v4 = vrot.slane %v9257_v41, %v12004_v22 }
 0x2d3   :  { %v2012_v63 = vsel %vm1577_vm7, %v1455_v6, -inf  ;;  %v2158_v23 = vadd.f32 %v12061_v37, %v1997_v59  ;;  %v2227_v17 = vmax.f32 %v2155_v29, 0.0  ;;  %v2297_v28 = vpack.c.bf16 %v2225_v44, %v2225_v44 }
 0x2d4   :  { %v1456_v40 = vcombine.high %v1448_v51, %v1448_v51  ;;  %v1472_v49 = vcombine.high %v1464_v30, %v1464_v30  ;;  %v1998_v56 = vsel %vm1577_vm7, %v1448_v51, -inf  ;;  %v12556_v0 = vunpack.c.l.b16 %v2291_v45 }
 0x2d5   :  { %v1999_v24 = vrot.slane %v1998_v56, 4  ;;  %v2013_v34 = vrot.slane %v2012_v63, 4  ;;  %v2019_v11 = vsel %vm1577_vm7, %v1464_v30, -inf  ;;  %v2228_v9 = vmax.f32 %v2156_v55, 0.0 }
 0x2d6   :  { %13665 = vst [vmem:[#allocation66_spill] sm:$0xff] %v12556_v0  ;;  %v2005_v16 = vsel %vm1577_vm7, %v1456_v40, -inf  ;;  %v2020_v32 = vrot.slane %v2019_v11, 4  ;;  %v2026_v35 = vsel %vm1577_vm7, %v1472_v49, -inf  ;;  %v12561_v12 = vunpack.c.l.b16 %v2292_v62 }
 0x2d7   :  { %v2000_v7 = vmax.f32 %v1998_v56, %v1999_v24  ;;  %v2006_v61 = vrot.slane %v2005_v16, 4  ;;  %v2014_v53 = vmax.f32 %v2012_v63, %v2013_v34  ;;  %v2033_v41 = vsel %vm1577_vm7, %v1471_v4, -inf }
 0x2d8   :  { %13666 = vst [vmem:[#allocation67_spill] sm:$0xff] %v12561_v12  ;;  %v2230_v44 = vmax.f32 %v2158_v23, 0.0  ;;  %v2021_v29 = vmax.f32 %v2019_v11, %v2020_v32  ;;  %v12564_v51 = vunpack.c.l.b16 %v2293_v48  ;;  %v2027_v40 = vrot.slane %v2026_v35, 4 }
 0x2d9   :  { %v2001_v59 = vrot.slane %v2000_v7, 2  ;;  %v2007_v45 = vmax.f32 %v2005_v16, %v2006_v61  ;;  %v2015_v6 = vrot.slane %v2014_v53, 2  ;;  %v2034_v30 = vrot.slane %v2033_v41, 4 }
 0x2da   :  { %13667 = vst [vmem:[#allocation68_spill] sm:$0xff] %v12564_v51  ;;  %v2299_v56 = vpack.c.bf16 %v2227_v17, %v2227_v17  ;;  %v2022_v2 = vrot.slane %v2021_v29, 2  ;;  %v2300_v49 = vpack.c.bf16 %v2228_v9, %v2228_v9  ;;  %v12566_v55 = vunpack.c.l.b16 %v2294_v52 }
 0x2db   :  { %v2002_v24 = vmax.f32 %v2000_v7, %v2001_v59  ;;  %v2008_v43 = vrot.slane %v2007_v45, 2  ;;  %v2016_v62 = vmax.f32 %v2014_v53, %v2015_v6  ;;  %v2035_v63 = vmax.f32 %v2033_v41, %v2034_v30 }
 0x2dc   :  { %13668 = vst [vmem:[#allocation69_spill] sm:$0xff] %v12566_v55  ;;  %v2302_v34 = vpack.c.bf16 %v2230_v44, %v2230_v44  ;;  %v12568_v4 = vunpack.c.l.b16 %v2295_v21  ;;  %v12571_v23 = vrot.slane %v1119_v36, %v12004_v22  ;;  %v12573_v16 = vunpack.c.l.b16 %v2296_v33 }
 0x2dd   :  { %v2009_v48 = vmax.f32 %v2007_v45, %v2008_v43  ;;  %v2003_v11 = vrot.slane %v2002_v24, 1  ;;  %v2023_v61 = vmax.f32 %v2021_v29, %v2022_v2  ;;  %v12575_v17 = vmax.f32 %v2026_v35, %v2027_v40  ;;  %v13676_v35 = vld [vmem:[#allocation31_spill] sm:$0xff] }
 0x2de   :  { %13669 = vst [vmem:[#allocation70_spill] sm:$0xff] %v12568_v4  ;;  %13670 = vst [vmem:[#allocation71_spill] sm:$0xff] %v12571_v23  ;;  %v12577_v7 = vunpack.c.l.b16 %v2297_v28  ;;  %v12579_v32 = vunpack.c.l.b16 %v2299_v56  ;;  %v2121_v52 = vadd.f32 %v12067_v57, %v12258_v20  ;;  %v2157_v21 = vadd.f32 %v12067_v57, %v12538_v50 }
 0x2df   :  { %13671 = vst [vmem:[#allocation72_spill] sm:$0xff] %v12573_v16  ;;  %v12585_v9 = vunpack.c.l.b16 %v2300_v49  ;;  %v2010_v36 = vrot.slane %v2009_v48, 1  ;;  %v2017_v43 = vrot.slane %v2016_v62, 1  ;;  %v2036_v33 = vrot.slane %v2035_v63, 2 }
 0x2e0   :  { %13672 = vst [vmem:[#allocation73_spill] sm:$0xff] %v12577_v7  ;;  %13673 = vst [vmem:[#allocation74_spill] sm:$0xff] %v12579_v32  ;;  %v12587_v53 = vunpack.c.l.b16 %v2302_v34  ;;  %v12593_v28 = vsel %vm1577_vm7, %v12571_v23, -inf  ;;  %v2172_v41 = vmax.f32 %v13676_v35, 0.0  ;;  %v12596_v20 = vmax.f32 %v2002_v24, %v2003_v11  ;;  %v13678_v24 = vld [vmem:[#allocation32_spill] sm:$0xff] }
 0x2e1   :  { %13674 = vst [vmem:[#allocation75_spill] sm:$0xff] %v12585_v9  ;;  %v2024_v44 = vrot.slane %v2023_v61, 1  ;;  %v2190_v59 = vmax.f32 %v12247_v19, 0.0  ;;  %v2193_v45 = vmax.f32 %v2121_v52, 0.0  ;;  %v2208_v29 = vmax.f32 %v12429_v46, 0.0 }
 0x2e2   :  { %13675 = vst [vmem:[#allocation76_spill] sm:$0xff] %v12587_v53  ;;  %v2226_v6 = vmax.f32 %v12523_v8, 0.0  ;;  %v2229_v40 = vmax.f32 %v2157_v21, 0.0  ;;  %v12602_v30 = vmax.f32 %v2009_v48, %v2010_v36  ;;  %v12604_v56 = vmax.f32 %v2016_v62, %v2017_v43  ;;  %v13682_v36 = vld [vmem:[#allocation37_spill] sm:$0xff] }
 0x2e3   :  { %v12606_v49 = vmax.f32 %v2035_v63, %v2036_v33  ;;  %v2244_v34 = vpack.c.bf16 %v2172_v41, %v2172_v41  ;;  %v13679_v11 = vmax.f32 %v13678_v24, 0.0  ;;  %v2262_v2 = vpack.c.bf16 %v2190_v59, %v2190_v59 }
 0x2e4   :  { %v2265_v50 = vpack.c.bf16 %v2193_v45, %v2193_v45  ;;  %v2280_v19 = vpack.c.bf16 %v2208_v29, %v2208_v29  ;;  %v12611_v52 = vmax.f32 %v2023_v61, %v2024_v44  ;;  %v13681_v46 = vmax.f32 %v12420_v1, 0.0 }
 0x2e5   :  { %13677 = vst [vmem:[#allocation31_spill] sm:$0xff] %v12606_v49  ;;  %v2250_v35 = vpack.c.bf16 %v13679_v11, %v13679_v11  ;;  %v2298_v48 = vpack.c.bf16 %v2226_v6, %v2226_v6  ;;  %v2301_v21 = vpack.c.bf16 %v2229_v40, %v2229_v40  ;;  %v2364_v62 = vunpack.c.l.b16 %v2244_v34 }
 0x2e6   :  { %13680 = vst [vmem:[#allocation32_spill] sm:$0xff] %v12611_v52  ;;  %v2286_v8 = vpack.c.bf16 %v13681_v46, %v13681_v46  ;;  %v13543_v63 = vunpack.c.l.b16 %v13682_v36  ;;  %v12620_v33 = vunpack.c.l.b16 %v12177_v26  ;;  %v12622_v41 = vunpack.c.l.b16 %v2262_v2 }
 0x2e7   :  { %v12617_v43 = vunpack.c.l.b16 %v2250_v35  ;;  %v12624_v59 = vunpack.c.l.b16 %v2265_v50  ;;  %v2388_v61 = vunpack.c.l.b16 %v2280_v19  ;;  %v13546_v44 = vunpack.c.l.b16 %v12454_v39 }
 0x2e8   :  { %v12627_v1 = vunpack.c.l.b16 %v2286_v8  ;;  %v12630_v45 = vunpack.c.l.b16 %v12515_v47  ;;  %v12632_v29 = vunpack.c.l.b16 %v2298_v48  ;;  %v12634_v6 = vunpack.c.l.b16 %v2301_v21 }
 0x2e9   :  { %13683 = vst [vmem:[#allocation37_spill] sm:$0xff] %v12624_v59  ;;  %v2432_v26 = vrot.slane %v13543_v63, 7  ;;  %v2434_v2 = vrot.slane %v12617_v43, 6  ;;  %v2436_v50 = vrot.slane %v12620_v33, 5  ;;  %v2438_v47 = vrot.slane %v12264_v58, 4 }
 0x2ea   :  { %13684 = vst [vmem:[#allocation77_spill] sm:$0xff] %v12630_v45  ;;  %13685 = vst [vmem:[#allocation78_spill] sm:$0xff] %v12632_v29  ;;  %v2440_v40 = vrot.slane %v12272_v18, 3  ;;  %v2442_v24 = vrot.slane %v12622_v41, 2  ;;  %v2444_v11 = vrot.slane %v12624_v59, 1  ;;  %v2474_v35 = vrot.slane %v13546_v44, 7 }
 0x2eb   :  { %13686 = vst [vmem:[#allocation79_spill] sm:$0xff] %v12634_v6  ;;  %v2433_v34 = vsel %vm2412_vm8, %v2432_v26, %v2364_v62  ;;  %v2476_v46 = vrot.slane %v12627_v1, 6  ;;  %v2478_v8 = vrot.slane %v12630_v45, 5  ;;  %v2480_v48 = vrot.slane %v12561_v12, 4 }
 0x2ec   :  { %v2435_v19 = vsel %vm2415_vm9, %v2434_v2, %v2433_v34  ;;  %v2475_v63 = vsel %vm2412_vm8, %v2474_v35, %v2388_v61  ;;  %v2482_v62 = vrot.slane %v12568_v4, 3  ;;  %v2484_v26 = vrot.slane %v12632_v29, 2  ;;  %v13687_v34 = vld [vmem:[#allocation33_spill] sm:$0xff] }
 0x2ed   :  { %v2437_v21 = vsel %vm2418_vm10, %v2436_v50, %v2435_v19  ;;  %v2477_v44 = vsel %vm2415_vm9, %v2476_v46, %v2475_v63  ;;  %v2486_v2 = vrot.slane %v12634_v6, 1  ;;  %v13688_v49 = vunpack.c.l.b16 %v13687_v34  ;;  %v13690_v34 = vld [vmem:[#allocation50_spill] sm:$0xff] }
 0x2ee   :  { %v2439_v23 = vsel %vm2421_vm11, %v2438_v47, %v2437_v21  ;;  %v2479_v50 = vsel %vm2418_vm10, %v2478_v8, %v2477_v44  ;;  %v2414_v61 = vrot.slane %v12169_v10, 6  ;;  %v2417_v35 = vrot.slane %v12179_v38, 5 }
 0x2ef   :  { %v2413_v60 = vsel %vm2412_vm8, %v12160_v15, %v13688_v49  ;;  %v2441_v22 = vsel %vm2424_vm12, %v2440_v40, %v2439_v23  ;;  %v2481_v47 = vsel %vm2421_vm11, %v2480_v48, %v2479_v50  ;;  %v2420_v63 = vrot.slane %v12262_v31, 4  ;;  %v13689_v49 = vld [vmem:[#allocation48_spill] sm:$0xff]  ;;  %v13692_v48 = vld [vmem:[#allocation62_spill] sm:$0xff] }
 0x2f0   :  { %v2443_v19 = vsel %vm2427_vm13, %v2442_v24, %v2441_v22  ;;  %v2423_v46 = vrot.slane %v12268_v5, 3  ;;  %v2483_v15 = vsel %vm2424_vm12, %v2482_v62, %v2481_v47  ;;  %v2416_v23 = vsel %vm2415_vm9, %v2414_v61, %v2413_v60  ;;  %v13693_v62 = vld [vmem:[#allocation26_spill] sm:$0xff] }
 0x2f1   :  { %v2445_v21 = vsel %vm2430_vm14, %v2444_v11, %v2443_v19  ;;  %v2426_v44 = vrot.slane %v13689_v49, 2  ;;  %v2485_v40 = vsel %vm2427_vm13, %v2484_v26, %v2483_v15  ;;  %v2419_v8 = vsel %vm2418_vm10, %v2417_v35, %v2416_v23 }
 0x2f2   :  { %v2429_v22 = vrot.slane %v13690_v34, 1  ;;  %v13691_v24 = vunpack.c.l.b16 %v12434_v25  ;;  %v2487_v52 = vsel %vm2430_vm14, %v2486_v2, %v2485_v40  ;;  %v2422_v11 = vsel %vm2421_vm11, %v2420_v63, %v2419_v8 }
 0x2f3   :  { %v2462_v19 = vrot.slane %v13693_v62, 6  ;;  %v2464_v60 = vrot.slane %v12517_v14, 5  ;;  %v3367_v61 = vpack.c.b16 %v2487_v52, %v2445_v21  ;;  %v2425_v26 = vsel %vm2424_vm12, %v2423_v46, %v2422_v11  ;;  %v13694_v21 = vld [vmem:[#allocation56_spill] sm:$0xff] }
 0x2f4   :  { %v2461_v50 = vsel %vm2412_vm8, %v13692_v48, %v13691_v24  ;;  %v2466_v35 = vrot.slane %v12556_v0, 4  ;;  %v2468_v47 = vrot.slane %v12566_v55, 3  ;;  %v2428_v25 = vsel %vm2427_vm13, %v2426_v44, %v2425_v26 }
 0x2f5   :  { %v2463_v15 = vsel %vm2415_vm9, %v2462_v19, %v2461_v50  ;;  %v2470_v23 = vrot.slane %v12577_v7, 2  ;;  %v2472_v2 = vrot.slane %v12585_v9, 1  ;;  %5828 = vmatprep.mubr.bf16.mxu1 %v3367_v61  ;;  %6172 = vmatprep.mubr.bf16.mxu0 %v3367_v61  ;;  %v2431_v63 = vsel %vm2430_vm14, %v2429_v22, %v2428_v25  ;;  %v13695_v22 = vld [vmem:[#allocation36_spill] sm:$0xff] }
 0x2f6   :  { %v2465_v52 = vsel %vm2418_vm10, %v2464_v60, %v2463_v15  ;;  %v2123_v46 = vadd.f32 %v12064_v42, %v13694_v21  ;;  %v2514_v40 = vrot.slane %v12169_v10, 7  ;;  %v2159_v44 = vadd.f32 %v12064_v42, %v12596_v20  ;;  %v10372_v15 = vld [vmem:[#allocation7 + $0x200] ss:$16 sps:$4 sm:$0xff]  }
 0x2f7   :  { %v2467_v8 = vsel %vm2421_vm11, %v2466_v35, %v2465_v52  ;;  %v2516_v24 = vrot.slane %v12179_v38, 6  ;;  %v2518_v48 = vrot.slane %v12262_v31, 5  ;;  %v13696_v19 = vunpack.c.l.b16 %v13695_v22  ;;  %v10375_v52 = vld [vmem:[#allocation7 + $0x208] ss:$16 sps:$4 sm:$0xff]  }
 0x2f8   :  { %v2469_v50 = vsel %vm2424_vm12, %v2468_v47, %v2467_v8  ;;  %v2195_v11 = vmax.f32 %v2123_v46, 0.0  ;;  %v2520_v61 = vrot.slane %v12268_v5, 4  ;;  %v2231_v25 = vmax.f32 %v2159_v44, 0.0  ;;  %v10380_v44 = vld [vmem:[#allocation7 + $0x224] ss:$16 sps:$4 sm:$0xff]  }
 0x2f9   :  { %v2515_v60 = vsel %vm2412_vm8, %v2514_v40, %v13696_v19  ;;  %v2471_v26 = vsel %vm2427_vm13, %v2470_v23, %v2469_v50  ;;  %v2522_v20 = vrot.slane %v13689_v49, 3  ;;  %v2524_v46 = vrot.slane %v13690_v34, 2  ;;  %v10383_v50 = vld [vmem:[#allocation7 + $0x22c] ss:$16 sps:$4 sm:$0xff]  }
 0x2fa   :  { %v2517_v35 = vsel %vm2415_vm9, %v2516_v24, %v2515_v60  ;;  %v2473_v21 = vsel %vm2430_vm14, %v2472_v2, %v2471_v26  ;;  %v2267_v10 = vpack.c.bf16 %v2195_v11, %v2195_v11  ;;  %v2303_v40 = vpack.c.bf16 %v2231_v25, %v2231_v25  ;;  %v13698_v11 = vld [vmem:[#allocation61_spill] sm:$0xff] }
 0x2fb   :  { %v2519_v47 = vsel %vm2418_vm10, %v2518_v48, %v2517_v35  ;;  %v3366_v8 = vpack.c.b16 %v2473_v21, %v2431_v63  ;;  %v2556_v23 = vrot.slane %v13693_v62, 7  ;;  %v2558_v60 = vrot.slane %v12517_v14, 6  ;;  %v13704_v62 = vld [vmem:[#allocation42_spill] sm:$0xff] }
 0x2fc   :  { %v2521_v22 = vsel %vm2421_vm11, %v2520_v61, %v2519_v47  ;;  %v12715_v24 = vunpack.c.l.b16 %v2267_v10  ;;  %v2560_v2 = vrot.slane %v12556_v0, 5  ;;  %v12720_v48 = vunpack.c.l.b16 %v2303_v40  ;;  %v10378_v10 = vld [vmem:[#allocation7 + $0x220] ss:$16 sps:$4 sm:$0xff]  }
 0x2fd   :  { %v2523_v19 = vsel %vm2424_vm12, %v2522_v20, %v2521_v22  ;;  %5829 = vmatmul.mubr.bf16.vlgmr.msra.gmra.mrb[12].mxu1 %v3366_v8  ;;  %6173 = vmatmul.mubr.bf16.vlgmr.msra.gmra.mrb[24].mxu0 %v3366_v8  ;;  %v13699_v61 = vunpack.c.l.b16 %v13698_v11  ;;  %v2562_v25 = vrot.slane %v12566_v55, 4  ;;  %v2564_v21 = vrot.slane %v12577_v7, 3  ;;  %v10381_v8 = vld [vmem:[#allocation7 + $0x228] ss:$16 sps:$4 sm:$0xff]   ;;  %v10386_v22 = vld [vmem:[#allocation7 + $0x244] ss:$16 sps:$4 sm:$0xff]  }
 0x2fe   :  { %13697 = vst [vmem:[#allocation33_spill] sm:$0xff] %v12720_v48  ;;  %v2525_v63 = vsel %vm2427_vm13, %v2524_v46, %v2523_v19  ;;  %5840 = vmatpush1.bf16.msra.mxu1 %v10372_v15  ;;  %6184 = vmatpush1.bf16.msra.mxu0 %v10375_v52  ;;  %v2526_v35 = vrot.slane %v12715_v24, 1  ;;  %v2566_v47 = vrot.slane %v12585_v9, 2  ;;  %v2568_v40 = vrot.slane %v12720_v48, 1  ;;  %v13700_v19 = vld [vmem:[#allocation34_spill] sm:$0xff]  ;;  %v13702_v52 = vld [vmem:[#allocation39_spill] sm:$0xff] }
 0x2ff   :  { %v2557_v26 = vsel %vm2412_vm8, %v2556_v23, %v13699_v61  ;;  %5841 = vmatprep.subr.bf16.mxu1 %v10380_v44  ;;  %6185 = vmatprep.subr.bf16.mxu0 %v10383_v50  ;;  %v10389_v23 = vld [vmem:[#allocation7 + $0x24c] ss:$16 sps:$4 sm:$0xff]   ;;  %v13701_v15 = vunpack.c.l.b16 %v13700_v19  ;;  %v13703_v61 = vld [vmem:[#allocation41_spill] sm:$0xff]  ;;  %v2450_v7 = vrot.slane %v13704_v62, 5 }
 0x300   :  { %v2559_v20 = vsel %vm2415_vm9, %v2558_v60, %v2557_v26  ;;  %v2448_v60 = vrot.slane %v13703_v61, 6  ;;  %v2527_v26 = vsel %vm2430_vm14, %v2526_v35, %v2525_v63  ;;  %v13706_v48 = vld [vmem:[#allocation46_spill] sm:$0xff]  ;;  %v13707_v19 = vld [vmem:[#allocation49_spill] sm:$0xff]  ;;  %v13708_v35 = vld [vmem:[#allocation51_spill] sm:$0xff] }
 0x301   :  { %v2561_v46 = vsel %vm2418_vm10, %v2560_v2, %v2559_v20  ;;  %v2447_v11 = vsel %vm2412_vm8, %v13702_v52, %v13701_v15  ;;  %v13705_v2 = vld [vmem:[#allocation44_spill] sm:$0xff]  ;;  %v2454_v55 = vrot.slane %v13706_v48, 3  ;;  %v2456_v0 = vrot.slane %v13707_v19, 2 }
 0x302   :  { %v2563_v9 = vsel %vm2421_vm11, %v2562_v25, %v2561_v46  ;;  %v2452_v20 = vrot.slane %v13705_v2, 4  ;;  %v2449_v50 = vsel %vm2415_vm9, %v2448_v60, %v2447_v11  ;;  %5842 = vmatpush1.bf16.msra.mxu1 %v10378_v10  ;;  %6186 = vmatpush1.bf16.msra.mxu0 %v10381_v8  ;;  %v2458_v25 = vrot.slane %v13708_v35, 1  ;;  %v13709_v46 = vld [vmem:[#allocation24_spill] sm:$0xff]  ;;  %v10387_v11 = vld [vmem:[#allocation7 + $0x248] ss:$16 sps:$4 sm:$0xff]  }
 0x303   :  { %v2565_v44 = vsel %vm2424_vm12, %v2564_v21, %v2563_v9  ;;  %v2451_v63 = vsel %vm2418_vm10, %v2450_v7, %v2449_v50  ;;  %v13710_v52 = vunpack.c.l.b16 %v13709_v46  ;;  %v10384_v21 = vld [vmem:[#allocation7 + $0x240] ss:$16 sps:$4 sm:$0xff]   ;;  %5843 = vmatprep.subr.bf16.mxu1 %v10386_v22  ;;  %6187 = vmatprep.subr.bf16.mxu0 %v10389_v23  ;;  %v2490_v10 = vrot.slane %v12511_v54, 6  ;;  %v10392_v8 = vld [vmem:[#allocation7 + $0x264] ss:$16 sps:$4 sm:$0xff]  }
 0x304   :  { %v2567_v15 = vsel %vm2427_vm13, %v2566_v47, %v2565_v44  ;;  %v2453_v60 = vsel %vm2421_vm11, %v2452_v20, %v2451_v63  ;;  %v2492_v47 = vrot.slane %v12520_v27, 5  ;;  %v10395_v44 = vld [vmem:[#allocation7 + $0x26c] ss:$16 sps:$4 sm:$0xff]   ;;  %v2494_v46 = vrot.slane %v12564_v51, 4  ;;  %v13711_v63 = vld [vmem:[#allocation57_spill] sm:$0xff] }
 0x305   :  { %v2489_v14 = vsel %vm2412_vm8, %v12504_v13, %v13710_v52  ;;  %v2569_v9 = vsel %vm2430_vm14, %v2568_v40, %v2567_v15  ;;  %v2455_v50 = vsel %vm2424_vm12, %v2454_v55, %v2453_v60  ;;  %v2496_v13 = vrot.slane %v12573_v16, 3 }
 0x306   :  { %v3369_v7 = vpack.c.b16 %v2569_v9, %v2527_v26  ;;  %v2457_v40 = vsel %vm2427_vm13, %v2456_v0, %v2455_v50  ;;  %v2491_v22 = vsel %vm2415_vm9, %v2490_v10, %v2489_v14  ;;  %v2498_v23 = vrot.slane %v12579_v32, 2  ;;  %5844 = vmatpush1.bf16.msra.mxu1 %v10384_v21  ;;  %6188 = vmatpush1.bf16.msra.mxu0 %v10387_v11  ;;  %v10390_v0 = vld [vmem:[#allocation7 + $0x260] ss:$16 sps:$4 sm:$0xff]   ;;  %v10393_v9 = vld [vmem:[#allocation7 + $0x268] ss:$16 sps:$4 sm:$0xff]  }
 0x307   :  { %v2500_v20 = vrot.slane %v12587_v53, 1  ;;  %v2459_v26 = vsel %vm2430_vm14, %v2458_v25, %v2457_v40  ;;  %v2493_v15 = vsel %vm2418_vm10, %v2492_v47, %v2491_v22  ;;  %v2125_v55 = vadd.f32 %v12061_v37, %v13711_v63  ;;  %5845 = vmatprep.subr.bf16.mxu1 %v10392_v8  ;;  %6189 = vmatprep.subr.bf16.mxu0 %v10395_v44  ;;  %v10398_v47 = vld [vmem:[#allocation7 + $0x284] ss:$16 sps:$4 sm:$0xff]   ;;  %v13712_v21 = vld [vmem:[#allocation38_spill] sm:$0xff] }
 0x308   :  { %5871 = vmatprep.mubr.bf16.mxu1 %v3369_v7  ;;  %6215 = vmatprep.mubr.bf16.mxu0 %v3369_v7  ;;  %v2542_v52 = vrot.slane %v13703_v61, 7  ;;  %v2495_v14 = vsel %vm2421_vm11, %v2494_v46, %v2493_v15  ;;  %v2161_v60 = vadd.f32 %v12061_v37, %v12604_v56  ;;  %v2544_v10 = vrot.slane %v13704_v62, 6  ;;  %v10401_v7 = vld [vmem:[#allocation7 + $0x28c] ss:$16 sps:$4 sm:$0xff]  }
 0x309   :  { %v2546_v25 = vrot.slane %v13705_v2, 5  ;;  %v2497_v50 = vsel %vm2424_vm12, %v2496_v13, %v2495_v14  ;;  %v2197_v40 = vmax.f32 %v2125_v55, 0.0  ;;  %v13713_v11 = vunpack.c.l.b16 %v13712_v21  ;;  %v10396_v55 = vld [vmem:[#allocation7 + $0x280] ss:$16 sps:$4 sm:$0xff]  }
 0x30a   :  { %v2548_v46 = vrot.slane %v13706_v48, 4  ;;  %v2499_v15 = vsel %vm2427_vm13, %v2498_v23, %v2497_v50  ;;  %v2233_v56 = vmax.f32 %v2161_v60, 0.0  ;;  %v2550_v61 = vrot.slane %v13707_v19, 3  ;;  %5846 = vmatpush1.bf16.msra.mxu1 %v10390_v0  ;;  %6190 = vmatpush1.bf16.msra.mxu0 %v10393_v9 }
 0x30b   :  { %v2543_v22 = vsel %vm2412_vm8, %v2542_v52, %v13713_v11  ;;  %v2501_v8 = vsel %vm2430_vm14, %v2500_v20, %v2499_v15  ;;  %v2269_v44 = vpack.c.bf16 %v2197_v40, %v2197_v40  ;;  %v2552_v13 = vrot.slane %v13708_v35, 2  ;;  %v10399_v52 = vld [vmem:[#allocation7 + $0x288] ss:$16 sps:$4 sm:$0xff]   ;;  %5847 = vmatprep.subr.bf16.mxu1 %v10398_v47  ;;  %6191 = vmatprep.subr.bf16.mxu0 %v10401_v7  ;;  %v10407_v20 = vld [vmem:[#allocation7 + $0x2ac] ss:$16 sps:$4 sm:$0xff]  }
 0x30c   :  { %v2545_v63 = vsel %vm2415_vm9, %v2544_v10, %v2543_v22  ;;  %v12785_v14 = vpack.c.b16 %v2501_v8, %v2459_v26  ;;  %v2305_v21 = vpack.c.bf16 %v2233_v56, %v2233_v56  ;;  %v2584_v60 = vrot.slane %v12511_v54, 7  ;;  %v10404_v10 = vld [vmem:[#allocation7 + $0x2a4] ss:$16 sps:$4 sm:$0xff]   ;;  %v10402_v15 = vld [vmem:[#allocation7 + $0x2a0] ss:$16 sps:$4 sm:$0xff]  }
 0x30d   :  { %v2547_v2 = vsel %vm2418_vm10, %v2546_v25, %v2545_v63  ;;  %v12789_v50 = vunpack.c.l.b16 %v2269_v44  ;;  %v2586_v0 = vrot.slane %v12520_v27, 6  ;;  %v2588_v9 = vrot.slane %v12564_v51, 5  ;;  %v10405_v56 = vld [vmem:[#allocation7 + $0x2a8] ss:$16 sps:$4 sm:$0xff]   ;;  %v13716_v8 = vld [vmem:[#allocation58_spill] sm:$0xff] }
 0x30e   :  { %v2549_v23 = vsel %vm2421_vm11, %v2548_v46, %v2547_v2  ;;  %v12794_v40 = vunpack.c.l.b16 %v2305_v21  ;;  %v13715_v2 = vunpack.c.l.b16 %v12456_v3  ;;  %v2590_v47 = vrot.slane %v12573_v16, 4  ;;  %5848 = vmatpush1.bf16.msra.mxu1 %v10396_v55  ;;  %6192 = vmatpush1.bf16.msra.mxu0 %v10399_v52  ;;  %v10410_v21 = vld [vmem:[#allocation7 + $0x2c4] ss:$16 sps:$4 sm:$0xff]  }
 0x30f   :  { %v2551_v25 = vsel %vm2424_vm12, %v2550_v61, %v2549_v23  ;;  %v2554_v7 = vrot.slane %v12789_v50, 1  ;;  %v2592_v61 = vrot.slane %v12579_v32, 3  ;;  %v2594_v46 = vrot.slane %v12587_v53, 2  ;;  %5849 = vmatprep.subr.bf16.mxu1 %v10404_v10  ;;  %6193 = vmatprep.subr.bf16.mxu0 %v10407_v20  ;;  %v10413_v23 = vld [vmem:[#allocation7 + $0x2cc] ss:$16 sps:$4 sm:$0xff]  }
 0x310   :  { %13714 = vst [vmem:[#allocation50_spill] sm:$0xff] %v12794_v40  ;;  %v2553_v26 = vsel %vm2427_vm13, %v2552_v13, %v2551_v25  ;;  %v2585_v11 = vsel %vm2412_vm8, %v2584_v60, %v13715_v2  ;;  %v2596_v3 = vrot.slane %v12794_v40, 1  ;;  %v2124_v44 = vadd.f32 %v12067_v57, %v13716_v8 }
 0x311   :  { %v2587_v22 = vsel %vm2415_vm9, %v2586_v0, %v2585_v11  ;;  %v2160_v13 = vadd.f32 %v12067_v57, %v12602_v30  ;;  %v2555_v60 = vsel %vm2430_vm14, %v2554_v7, %v2553_v26  ;;  %v2528_v52 = vrot.slane %v12617_v43, 7  ;;  %v10408_v7 = vld [vmem:[#allocation7 + $0x2c0] ss:$16 sps:$4 sm:$0xff]  }
 0x312   :  { %v2589_v63 = vsel %vm2418_vm10, %v2588_v9, %v2587_v22  ;;  %v2530_v25 = vrot.slane %v12620_v33, 6  ;;  %v2196_v9 = vmax.f32 %v2124_v44, 0.0  ;;  %v2532_v11 = vrot.slane %v12264_v58, 5  ;;  %5850 = vmatpush1.bf16.msra.mxu1 %v10402_v15  ;;  %6194 = vmatpush1.bf16.msra.mxu0 %v10405_v56  ;;  %v10411_v22 = vld [vmem:[#allocation7 + $0x2c8] ss:$16 sps:$4 sm:$0xff]  }
 0x313   :  { %v2591_v55 = vsel %vm2421_vm11, %v2590_v47, %v2589_v63  ;;  %v2232_v2 = vmax.f32 %v2160_v13, 0.0  ;;  %v13717_v10 = vunpack.c.l.b16 %v13682_v36  ;;  %v2534_v26 = vrot.slane %v12272_v18, 4  ;;  %5851 = vmatprep.subr.bf16.mxu1 %v10410_v21  ;;  %6195 = vmatprep.subr.bf16.mxu0 %v10413_v23  ;;  %v10419_v36 = vld [vmem:[#allocation7 + $0x2ec] ss:$16 sps:$4 sm:$0xff]  }
 0x314   :  { %v2593_v0 = vsel %vm2424_vm12, %v2592_v61, %v2591_v55  ;;  %v2536_v47 = vrot.slane %v12622_v41, 3  ;;  %v2268_v63 = vpack.c.bf16 %v2196_v9, %v2196_v9  ;;  %v2538_v44 = vrot.slane %v12624_v59, 2 }
 0x315   :  { %v2595_v30 = vsel %vm2427_vm13, %v2594_v46, %v2593_v0  ;;  %v2529_v20 = vsel %vm2412_vm8, %v2528_v52, %v13717_v10  ;;  %v2304_v8 = vpack.c.bf16 %v2232_v2, %v2232_v2  ;;  %v10416_v46 = vld [vmem:[#allocation7 + $0x2e4] ss:$16 sps:$4 sm:$0xff]   ;;  %v2570_v52 = vrot.slane %v12627_v1, 7  ;;  %v10417_v10 = vld [vmem:[#allocation7 + $0x2e8] ss:$16 sps:$4 sm:$0xff]  }
 0x316   :  { %v2597_v61 = vsel %vm2430_vm14, %v2596_v3, %v2595_v30  ;;  %v2531_v55 = vsel %vm2415_vm9, %v2530_v25, %v2529_v20  ;;  %v2572_v15 = vrot.slane %v12630_v45, 6  ;;  %v12830_v56 = vunpack.c.l.b16 %v2268_v63  ;;  %5852 = vmatpush1.bf16.msra.mxu1 %v10408_v7  ;;  %6196 = vmatpush1.bf16.msra.mxu0 %v10411_v22  ;;  %v10414_v30 = vld [vmem:[#allocation7 + $0x2e0] ss:$16 sps:$4 sm:$0xff]   ;;  %v10425_v63 = vld [vmem:[#allocation7 + $0x30c] ss:$16 sps:$4 sm:$0xff]   ;;  %v13721_v22 = vld [vmem:[#allocation53_spill] sm:$0xff] }
 0x317   :  { %v12825_v13 = vpack.c.b16 %v2597_v61, %v2555_v60  ;;  %v12832_v0 = vunpack.c.l.b16 %v2304_v8  ;;  %v2533_v3 = vsel %vm2418_vm10, %v2532_v11, %v2531_v55  ;;  %v2574_v9 = vrot.slane %v12561_v12, 5  ;;  %5853 = vmatprep.subr.bf16.mxu1 %v10416_v46  ;;  %6197 = vmatprep.subr.bf16.mxu0 %v10419_v36 }
 0x318   :  { %13718 = vst [vmem:[#allocation62_spill] sm:$0xff] %v12830_v56  ;;  %v2535_v21 = vsel %vm2421_vm11, %v2534_v26, %v2533_v3  ;;  %v13720_v23 = vunpack.c.l.b16 %v12454_v39  ;;  %v2576_v25 = vrot.slane %v12568_v4, 4  ;;  %v2578_v2 = vrot.slane %v12632_v29, 3  ;;  %v10422_v39 = vld [vmem:[#allocation7 + $0x304] ss:$16 sps:$4 sm:$0xff]  }
 0x319   :  { %13719 = vst [vmem:[#allocation56_spill] sm:$0xff] %v12832_v0  ;;  %v2537_v20 = vsel %vm2424_vm12, %v2536_v47, %v2535_v21  ;;  %v2540_v11 = vrot.slane %v12830_v56, 1  ;;  %v2580_v26 = vrot.slane %v12634_v6, 2  ;;  %v2582_v7 = vrot.slane %v12832_v0, 1 }
 0x31a   :  { %v2571_v60 = vsel %vm2412_vm8, %v2570_v52, %v13720_v23  ;;  %v2539_v8 = vsel %vm2427_vm13, %v2538_v44, %v2537_v20  ;;  %v13722_v52 = vrot.slane %v13721_v22, 2  ;;  %v13723_v21 = vrot.slane %v12575_v17, 2  ;;  %5854 = vmatpush1.bf16.msra.mxu1 %v10414_v30  ;;  %6198 = vmatpush1.bf16.msra.mxu0 %v10417_v10  ;;  %v10420_v20 = vld [vmem:[#allocation7 + $0x300] ss:$16 sps:$4 sm:$0xff]  }
 0x31b   :  { %v2573_v61 = vsel %vm2415_vm9, %v2572_v15, %v2571_v60  ;;  %v2541_v3 = vsel %vm2430_vm14, %v2540_v11, %v2539_v8  ;;  %v2624_v36 = vrot.slane %v12620_v33, 7  ;;  %v2628_v60 = vrot.slane %v12272_v18, 5  ;;  %5855 = vmatprep.subr.bf16.mxu1 %v10422_v39  ;;  %6199 = vmatprep.subr.bf16.mxu0 %v10425_v63 }
 0x31c   :  { %v2575_v55 = vsel %vm2418_vm10, %v2574_v9, %v2573_v61  ;;  %v1778_v47 = vmax.f32 %v13721_v22, %v13722_v52  ;;  %v2030_v46 = vmax.f32 %v12575_v17, %v13723_v21  ;;  %v2626_v9 = vrot.slane %v12264_v58, 6  ;;  %v10423_v61 = vld [vmem:[#allocation7 + $0x308] ss:$16 sps:$4 sm:$0xff]   ;;  %v10431_v22 = vld [vmem:[#allocation7 + $0x32c] ss:$16 sps:$4 sm:$0xff]  }
 0x31d   :  { %v2577_v15 = vsel %vm2421_vm11, %v2576_v25, %v2575_v55  ;;  %v2625_v8 = vsel %vm2412_vm8, %v2624_v36, %v12617_v43  ;;  %v2630_v17 = vrot.slane %v12622_v41, 4  ;;  %v2632_v43 = vrot.slane %v12624_v59, 3  ;;  %v10426_v36 = vld [vmem:[#allocation7 + $0x320] ss:$16 sps:$4 sm:$0xff]  }
 0x31e   :  { %v2579_v44 = vsel %vm2424_vm12, %v2578_v2, %v2577_v15  ;;  %v1779_v23 = vrot.slane %v1778_v47, 1  ;;  %v2031_v25 = vrot.slane %v2030_v46, 1  ;;  %v10428_v2 = vld [vmem:[#allocation7 + $0x324] ss:$16 sps:$4 sm:$0xff]   ;;  %v2627_v10 = vsel %vm2415_vm9, %v2626_v9, %v2625_v8  ;;  %5856 = vmatpush1.bf16.msra.mxu1 %v10420_v20  ;;  %6200 = vmatpush1.bf16.msra.mxu0 %v10423_v61 }
 0x31f   :  { %v2581_v11 = vsel %vm2427_vm13, %v2580_v26, %v2579_v44  ;;  %v2629_v21 = vsel %vm2418_vm10, %v2628_v60, %v2627_v10  ;;  %v2666_v63 = vrot.slane %v12630_v45, 7  ;;  %v2668_v55 = vrot.slane %v12561_v12, 6  ;;  %5857 = vmatprep.subr.bf16.mxu1 %v10428_v2  ;;  %6201 = vmatprep.subr.bf16.mxu0 %v10431_v22  ;;  %v10434_v9 = vld [vmem:[#allocation7 + $0x344] ss:$16 sps:$4 sm:$0xff]   ;;  %v10437_v60 = vld [vmem:[#allocation7 + $0x34c] ss:$16 sps:$4 sm:$0xff]  }
 0x320   :  { %v2583_v52 = vsel %vm2430_vm14, %v2582_v7, %v2581_v11  ;;  %v1780_v30 = vmax.f32 %v1778_v47, %v1779_v23  ;;  %v2032_v26 = vmax.f32 %v2030_v46, %v2031_v25  ;;  %v2631_v39 = vsel %vm2421_vm11, %v2630_v17, %v2629_v21  ;;  %v10429_v7 = vld [vmem:[#allocation7 + $0x328] ss:$16 sps:$4 sm:$0xff]  }
 0x321   :  { %v12868_v15 = vpack.c.b16 %v2583_v52, %v2541_v3  ;;  %v2634_v3 = vrot.slane %v12830_v56, 2  ;;  %v2670_v46 = vrot.slane %v12568_v4, 5  ;;  %v2672_v23 = vrot.slane %v12632_v29, 4  ;;  %v13740_v29 = vld [vmem:[#allocation71_spill] sm:$0xff] }
 0x322   :  { %v2127_v44 = vadd.f32 %v12067_v57, %v1780_v30  ;;  %v2163_v47 = vadd.f32 %v12067_v57, %v2032_v26  ;;  %v2633_v25 = vsel %vm2424_vm12, %v2632_v43, %v2631_v39  ;;  %v2667_v20 = vsel %vm2412_vm8, %v2666_v63, %v12627_v1  ;;  %v13725_v30 = vld [vmem:[#allocation59_spill] sm:$0xff]  ;;  %v13726_v26 = vld [vmem:[#allocation32_spill] sm:$0xff]  ;;  %5858 = vmatpush1.bf16.msra.mxu1 %v10426_v36 }
 0x323   :  { %13724 = vst [vmem:[#allocation36_spill] sm:$0xff] %v12868_v15  ;;  %v2674_v61 = vrot.slane %v12634_v6, 3  ;;  %v2669_v17 = vsel %vm2415_vm9, %v2668_v55, %v2667_v20  ;;  %v2676_v52 = vrot.slane %v12832_v0, 2  ;;  %v2126_v10 = vadd.f32 %v12064_v42, %v13725_v30  ;;  %6202 = vmatpush1.bf16.msra.mxu0 %v10429_v7  ;;  %v10432_v1 = vld [vmem:[#allocation7 + $0x340] ss:$16 sps:$4 sm:$0xff]   ;;  %5859 = vmatprep.subr.bf16.mxu1 %v10434_v9  ;;  %v13742_v4 = vld [vmem:[#allocation75_spill] sm:$0xff] }
 0x324   :  { %v2199_v11 = vmax.f32 %v2127_v44, 0.0  ;;  %v2235_v8 = vmax.f32 %v2163_v47, 0.0  ;;  %v2671_v22 = vsel %vm2418_vm10, %v2670_v46, %v2669_v17  ;;  %v2162_v21 = vadd.f32 %v12064_v42, %v13726_v26  ;;  %v10435_v44 = vld [vmem:[#allocation7 + $0x348] ss:$16 sps:$4 sm:$0xff]   ;;  %6203 = vmatprep.subr.bf16.mxu0 %v10437_v60  ;;  %v10443_v20 = vld [vmem:[#allocation7 + $0x36c] ss:$16 sps:$4 sm:$0xff]  }
 0x325   :  { %v2610_v43 = vrot.slane %v12179_v38, 7  ;;  %v2673_v55 = vsel %vm2421_vm11, %v2672_v23, %v2671_v22  ;;  %v2198_v63 = vmax.f32 %v2126_v10, 0.0  ;;  %v2612_v47 = vrot.slane %v12262_v31, 6  ;;  %v13728_v36 = vld [vmem:[#allocation40_spill] sm:$0xff] }
 0x326   :  { %v2271_v2 = vpack.c.bf16 %v2199_v11, %v2199_v11  ;;  %v2307_v39 = vpack.c.bf16 %v2235_v8, %v2235_v8  ;;  %v10440_v11 = vld [vmem:[#allocation7 + $0x364] ss:$16 sps:$4 sm:$0xff]   ;;  %v2635_v17 = vsel %vm2427_vm13, %v2634_v3, %v2633_v25  ;;  %v2675_v30 = vsel %vm2424_vm12, %v2674_v61, %v2673_v55  ;;  %v13730_v3 = vld [vmem:[#allocation28_spill] sm:$0xff]  ;;  %5860 = vmatpush1.bf16.msra.mxu1 %v10432_v1 }
 0x327   :  { %v2611_v7 = vsel %vm2412_vm8, %v2610_v43, %v13728_v36  ;;  %v2677_v23 = vsel %vm2427_vm13, %v2676_v52, %v2675_v30  ;;  %v2234_v8 = vmax.f32 %v2162_v21, 0.0  ;;  %v2270_v10 = vpack.c.bf16 %v2198_v63, %v2198_v63  ;;  %v13731_v25 = vld [vmem:[#allocation65_spill] sm:$0xff]  ;;  %v13733_v43 = vld [vmem:[#allocation31_spill] sm:$0xff]  ;;  %6204 = vmatpush1.bf16.msra.mxu0 %v10435_v44  ;;  %v10438_v52 = vld [vmem:[#allocation7 + $0x360] ss:$16 sps:$4 sm:$0xff]   ;;  %5861 = vmatprep.subr.bf16.mxu1 %v10440_v11 }
 0x328   :  { %v12894_v46 = vunpack.c.l.b16 %v2271_v2  ;;  %v12900_v26 = vunpack.c.l.b16 %v2307_v39  ;;  %v2613_v60 = vsel %vm2415_vm9, %v2612_v47, %v2611_v7  ;;  %v2614_v2 = vrot.slane %v12268_v5, 5  ;;  %v10441_v21 = vld [vmem:[#allocation7 + $0x368] ss:$16 sps:$4 sm:$0xff]   ;;  %6205 = vmatprep.subr.bf16.mxu0 %v10443_v20  ;;  %v10446_v47 = vld [vmem:[#allocation7 + $0x384] ss:$16 sps:$4 sm:$0xff]  }
 0x329   :  { %v2616_v22 = vrot.slane %v13689_v49, 4  ;;  %v13732_v61 = vcombine.low %v13731_v25, %v13731_v25  ;;  %v2038_v39 = vrot.slane %v13733_v43, 1  ;;  %v12915_v30 = vunpack.c.l.b16 %v2270_v10  ;;  %v10449_v36 = vld [vmem:[#allocation7 + $0x38c] ss:$16 sps:$4 sm:$0xff]   ;;  %v10444_v20 = vld [vmem:[#allocation7 + $0x380] ss:$16 sps:$4 sm:$0xff]  }
 0x32a   :  { %13727 = vst [vmem:[#allocation61_spill] sm:$0xff] %v12894_v46  ;;  %13729 = vst [vmem:[#allocation34_spill] sm:$0xff] %v12900_v26  ;;  %v2636_v9 = vrot.slane %v12894_v46, 1  ;;  %v2678_v63 = vrot.slane %v12900_v26, 1  ;;  %v2306_v15 = vpack.c.bf16 %v2234_v8, %v2234_v8  ;;  %v2618_v0 = vrot.slane %v13690_v34, 3  ;;  %5862 = vmatpush1.bf16.msra.mxu1 %v10438_v52  ;;  %v13743_v46 = vld [vmem:[#allocation60_spill] sm:$0xff] }
 0x32b   :  { %v12911_v55 = vrot.slane %v13732_v61, %v13730_v3  ;;  %v2615_v61 = vsel %vm2418_vm10, %v2614_v2, %v2613_v60  ;;  %v13734_v1 = vrot.slane %v12593_v28, 4  ;;  %v2620_v11 = vrot.slane %v12715_v24, 2  ;;  %6206 = vmatpush1.bf16.msra.mxu0 %v10441_v21  ;;  %v10447_v2 = vld [vmem:[#allocation7 + $0x388] ss:$16 sps:$4 sm:$0xff]   ;;  %5863 = vmatprep.subr.bf16.mxu1 %v10446_v47  ;;  %v13741_v21 = vld [vmem:[#allocation26_spill] sm:$0xff] }
 0x32c   :  { %v2637_v7 = vsel %vm2430_vm14, %v2636_v9, %v2635_v17  ;;  %v2679_v6 = vsel %vm2430_vm14, %v2678_v63, %v2677_v23  ;;  %v2617_v10 = vsel %vm2421_vm11, %v2616_v22, %v2615_v61  ;;  %v2622_v8 = vrot.slane %v12915_v30, 1  ;;  %v13736_v9 = vld [vmem:[#allocation63_spill] sm:$0xff]  ;;  %v13738_v63 = vld [vmem:[#allocation69_spill] sm:$0xff]  ;;  %6207 = vmatprep.subr.bf16.mxu0 %v10449_v36 }
 0x32d   :  { %v2042_v44 = vmax.f32 %v12593_v28, %v13734_v1  ;;  %v12926_v26 = vpack.c.b16 %v2679_v6, %v2637_v7  ;;  %v2619_v17 = vsel %vm2424_vm12, %v2618_v0, %v2617_v10  ;;  %v2652_v60 = vrot.slane %v13736_v9, 7  ;;  %v13737_v1 = vld [vmem:[#allocation66_spill] sm:$0xff]  ;;  %v13739_v61 = vld [vmem:[#allocation73_spill] sm:$0xff]  ;;  %v13744_v47 = vld [vmem:[#allocation35_spill] sm:$0xff] }
 0x32e   :  { %v2621_v28 = vsel %vm2427_vm13, %v2620_v11, %v2619_v17  ;;  %v2654_v23 = vrot.slane %v13737_v1, 6  ;;  %v2656_v22 = vrot.slane %v13738_v63, 5  ;;  %v2658_v45 = vrot.slane %v13739_v61, 4  ;;  %v10452_v7 = vld [vmem:[#allocation7 + $0x3a4] ss:$16 sps:$4 sm:$0xff]   ;;  %5864 = vmatpush1.bf16.msra.mxu1 %v10444_v20 }
 0x32f   :  { %13735 = vst [vmem:[#allocation39_spill] sm:$0xff] %v12926_v26  ;;  %v2039_v0 = vmax.f32 %v13733_v43, %v2038_v39  ;;  %v10455_v10 = vld [vmem:[#allocation7 + $0x3ac] ss:$16 sps:$4 sm:$0xff]   ;;  %v12938_v52 = vunpack.c.l.b16 %v2306_v15  ;;  %v2653_v11 = vsel %vm2412_vm8, %v2652_v60, %v13741_v21  ;;  %v2623_v17 = vsel %vm2430_vm14, %v2622_v8, %v2621_v28  ;;  %v10450_v43 = vld [vmem:[#allocation7 + $0x3a0] ss:$16 sps:$4 sm:$0xff]   ;;  %6208 = vmatpush1.bf16.msra.mxu0 %v10447_v2  ;;  %v13745_v28 = vld [vmem:[#allocation33_spill] sm:$0xff] }
 0x330   :  { %v2655_v26 = vsel %vm2415_vm9, %v2654_v23, %v2653_v11  ;;  %v2660_v12 = vrot.slane %v13742_v4, 3  ;;  %v12947_v6 = vadd.f32 %v12061_v37, %v13743_v46  ;;  %v1791_v36 = vrot.slane %v13744_v47, 2  ;;  %v10453_v60 = vld [vmem:[#allocation7 + $0x3a8] ss:$16 sps:$4 sm:$0xff]   ;;  %5865 = vmatprep.subr.bf16.mxu1 %v10452_v7  ;;  %6209 = vmatprep.subr.bf16.mxu0 %v10455_v10  ;;  %v10458_v11 = vld [vmem:[#allocation7 + $0x3c4] ss:$16 sps:$4 sm:$0xff]  }
 0x331   :  { %v2657_v39 = vsel %vm2418_vm10, %v2656_v22, %v2655_v26  ;;  %v2043_v15 = vrot.slane %v2042_v44, 2  ;;  %v2706_v56 = vrot.slane %v12262_v31, 7  ;;  %v2662_v23 = vrot.slane %v13745_v28, 2  ;;  %v10461_v26 = vld [vmem:[#allocation7 + $0x3cc] ss:$16 sps:$4 sm:$0xff]  }
 0x332   :  { %v2659_v8 = vsel %vm2421_vm11, %v2658_v45, %v2657_v39  ;;  %v2708_v21 = vrot.slane %v12268_v5, 6  ;;  %v2710_v46 = vrot.slane %v13689_v49, 5  ;;  %v2664_v59 = vrot.slane %v12938_v52, 1  ;;  %5866 = vmatpush1.bf16.msra.mxu1 %v10450_v43 }
 0x333   :  { %v2661_v22 = vsel %vm2424_vm12, %v2660_v12, %v2659_v8  ;;  %v1792_v20 = vmax.f32 %v13744_v47, %v1791_v36  ;;  %v2044_v2 = vmax.f32 %v2042_v44, %v2043_v15  ;;  %v2707_v45 = vsel %vm2412_vm8, %v2706_v56, %v12179_v38  ;;  %6210 = vmatpush1.bf16.msra.mxu0 %v10453_v60  ;;  %v10456_v8 = vld [vmem:[#allocation7 + $0x3c0] ss:$16 sps:$4 sm:$0xff]   ;;  %v10459_v47 = vld [vmem:[#allocation7 + $0x3c8] ss:$16 sps:$4 sm:$0xff]  }
 0x334   :  { %v2663_v31 = vsel %vm2427_vm13, %v2662_v23, %v2661_v22  ;;  %v2712_v39 = vrot.slane %v13690_v34, 4  ;;  %v2714_v49 = vrot.slane %v12715_v24, 3  ;;  %v2709_v12 = vsel %vm2415_vm9, %v2708_v21, %v2707_v45  ;;  %v13747_v15 = vld [vmem:[#allocation54_spill] sm:$0xff]  ;;  %5867 = vmatprep.subr.bf16.mxu1 %v10458_v11  ;;  %6211 = vmatprep.subr.bf16.mxu0 %v10461_v26 }
 0x335   :  { %v2665_v7 = vsel %vm2430_vm14, %v2664_v59, %v2663_v31  ;;  %v1793_v10 = vrot.slane %v1792_v20, 1  ;;  %v2045_v5 = vrot.slane %v2044_v2, 1  ;;  %v2711_v36 = vsel %vm2418_vm10, %v2710_v46, %v2709_v12  ;;  %v10464_v31 = vld [vmem:[#allocation7 + $0x3e4] ss:$16 sps:$4 sm:$0xff]   ;;  %v10467_v59 = vld [vmem:[#allocation7 + $0x3ec] ss:$16 sps:$4 sm:$0xff]  }
 0x336   :  { %v12966_v44 = vpack.c.b16 %v2665_v7, %v2623_v17  ;;  %v2748_v38 = vrot.slane %v13737_v1, 7  ;;  %v2750_v56 = vrot.slane %v13738_v63, 6  ;;  %v1803_v23 = vrot.slane %v13747_v15, 4  ;;  %v10462_v7 = vld [vmem:[#allocation7 + $0x3e0] ss:$16 sps:$4 sm:$0xff]   ;;  %5868 = vmatpush1.bf16.msra.mxu1 %v10456_v8 }
 0x337   :  { %v1794_v22 = vmax.f32 %v1792_v20, %v1793_v10  ;;  %v2046_v21 = vmax.f32 %v2044_v2, %v2045_v5  ;;  %v2164_v43 = vadd.f32 %v12061_v37, %v2039_v0  ;;  %v2713_v60 = vsel %vm2421_vm11, %v2712_v39, %v2711_v36  ;;  %6212 = vmatpush1.bf16.msra.mxu0 %v10459_v47  ;;  %v10465_v0 = vld [vmem:[#allocation7 + $0x3e8] ss:$16 sps:$4 sm:$0xff]   ;;  %v10470_v20 = vld [vmem:[#allocation7 + $0x404] ss:$16 sps:$4 sm:$0xff]   ;;  %v10473_v47 = vld [vmem:[#allocation7 + $0x40c] ss:$16 sps:$4 sm:$0xff]  }
 0x338   :  { %13746 = vst [vmem:[#allocation42_spill] sm:$0xff] %v12966_v44  ;;  %v2716_v17 = vrot.slane %v12915_v30, 2  ;;  %v2749_v46 = vsel %vm2412_vm8, %v2748_v38, %v13736_v9  ;;  %v2752_v45 = vrot.slane %v13739_v61, 5  ;;  %v2754_v5 = vrot.slane %v13742_v4, 4  ;;  %5869 = vmatprep.subr.bf16.mxu1 %v10464_v31  ;;  %6213 = vmatprep.subr.bf16.mxu0 %v10467_v59  ;;  %v10468_v31 = vld [vmem:[#allocation7 + $0x400] ss:$16 sps:$4 sm:$0xff]  }
 0x339   :  { %v2129_v12 = vadd.f32 %v12064_v42, %v1794_v22  ;;  %v2165_v11 = vadd.f32 %v12064_v42, %v2046_v21  ;;  %v2751_v26 = vsel %vm2415_vm9, %v2750_v56, %v2749_v46  ;;  %v2715_v2 = vsel %vm2424_vm12, %v2714_v49, %v2713_v60 }
 0x33a   :  { %v2753_v39 = vsel %vm2418_vm10, %v2752_v45, %v2751_v26  ;;  %v2756_v9 = vrot.slane %v13745_v28, 3  ;;  %v2200_v10 = vmax.f32 %v12947_v6, 0.0  ;;  %v13748_v36 = vcombine.high %v13740_v29, %v13740_v29  ;;  %v13749_v26 = vld [vmem:[#allocation44_spill] sm:$0xff]  ;;  %5870 = vmatpush1.bf16.msra.mxu1 %v10462_v7 }
 0x33b   :  { %v2054_v8 = vsel %vm1577_vm7, %v12911_v55, -inf  ;;  %v2755_v49 = vsel %vm2421_vm11, %v2754_v5, %v2753_v39  ;;  %v2758_v56 = vrot.slane %v12938_v52, 2  ;;  %v2201_v22 = vmax.f32 %v2129_v12, 0.0  ;;  %6214 = vmatpush1.bf16.msra.mxu0 %v10465_v0  ;;  %5882 = vmatprep.subr.bf16.mxu1 %v10470_v20  ;;  %v10476_v0 = vld [vmem:[#allocation7 + $0x424] ss:$16 sps:$4 sm:$0xff]  }
 0x33c   :  { %v12990_v38 = vsel %vm1577_vm7, %v13748_v36, -inf  ;;  %v2237_v21 = vmax.f32 %v2165_v11, 0.0  ;;  %v2757_v6 = vsel %vm2424_vm12, %v2756_v9, %v2755_v49  ;;  %v2236_v60 = vmax.f32 %v2164_v43, 0.0  ;;  %v10471_v11 = vld [vmem:[#allocation7 + $0x408] ss:$16 sps:$4 sm:$0xff]   ;;  %6226 = vmatprep.subr.bf16.mxu0 %v10473_v47 }
 0x33d   :  { %v2717_v29 = vsel %vm2427_vm13, %v2716_v17, %v2715_v2  ;;  %v2272_v46 = vpack.c.bf16 %v2200_v10, %v2200_v10  ;;  %v2638_v45 = vrot.slane %v13704_v62, 7  ;;  %v2640_v36 = vrot.slane %v13749_v26, 6  ;;  %v13750_v17 = vld [vmem:[#allocation41_spill] sm:$0xff]  ;;  %v10479_v9 = vld [vmem:[#allocation7 + $0x42c] ss:$16 sps:$4 sm:$0xff]   ;;  %5872 = vmatmul.mubr.bf16.vlgmr.msra.gmra.mrb[12].mxu1 %v12785_v14 }
 0x33e   :  { %v2055_v55 = vrot.slane %v2054_v8, 4  ;;  %v13000_v59 = vpack.c.bf16 %v2201_v22, %v2201_v22  ;;  %v13002_v5 = vpack.c.bf16 %v2237_v21, %v2237_v21  ;;  %v2759_v12 = vsel %vm2427_vm13, %v2758_v56, %v2757_v6  ;;  %6216 = vmatmul.mubr.bf16.vlgmr.msra.gmra.mrb[24].mxu0 %v12785_v14  ;;  %5883 = vmatpush1.bf16.msra.mxu1 %v10468_v31 }
 0x33f   :  { %v13005_v43 = vunpack.c.l.b16 %v2272_v46  ;;  %v2639_v2 = vsel %vm2412_vm8, %v2638_v45, %v13750_v17  ;;  %v2642_v39 = vrot.slane %v13706_v48, 5  ;;  %v2644_v7 = vrot.slane %v13707_v19, 4  ;;  %5914 = vmatprep.mubr.bf16.mxu1 %v12825_v13  ;;  %6227 = vmatpush1.bf16.msra.mxu0 %v10471_v11 }
 0x340   :  { %v13593_v10 = vunpack.c.l.b16 %v13000_v59  ;;  %v13594_v49 = vunpack.c.l.b16 %v13002_v5  ;;  %v2308_v22 = vpack.c.bf16 %v2236_v60, %v2236_v60  ;;  %v2641_v20 = vsel %vm2415_vm9, %v2640_v36, %v2639_v2  ;;  %v10474_v60 = vld [vmem:[#allocation7 + $0x420] ss:$16 sps:$4 sm:$0xff]   ;;  %6258 = vmatprep.mubr.bf16.mxu0 %v12825_v13  ;;  %5884 = vmatprep.subr.bf16.mxu1 %v10476_v0 }
 0x341   :  { %v2643_v47 = vsel %vm2418_vm10, %v2642_v39, %v2641_v20  ;;  %v2646_v56 = vrot.slane %v13708_v35, 3  ;;  %v2648_v21 = vrot.slane %v12789_v50, 2  ;;  %v2650_v6 = vrot.slane %v13005_v43, 1  ;;  %v10477_v39 = vld [vmem:[#allocation7 + $0x428] ss:$16 sps:$4 sm:$0xff]   ;;  %6228 = vmatprep.subr.bf16.mxu0 %v10479_v9 }
 0x342   :  { %v1804_v46 = vmax.f32 %v13747_v15, %v1803_v23  ;;  %v2718_v45 = vrot.slane %v13593_v10, 1  ;;  %v2760_v14 = vrot.slane %v13594_v49, 1  ;;  %v2645_v36 = vsel %vm2421_vm11, %v2644_v7, %v2643_v47  ;;  %v10482_v15 = vld [vmem:[#allocation7 + $0x444] ss:$16 sps:$4 sm:$0xff]   ;;  %v10485_v10 = vld [vmem:[#allocation7 + $0x44c] ss:$16 sps:$4 sm:$0xff]   ;;  %5885 = vmatpush1.bf16.msra.mxu1 %v10474_v60 }
 0x343   :  { %v2048_v17 = vrot.slane %v12990_v38, 4  ;;  %v2056_v2 = vmax.f32 %v2054_v8, %v2055_v55  ;;  %v2647_v23 = vsel %vm2424_vm12, %v2646_v56, %v2645_v36  ;;  %v2680_v31 = vrot.slane %v12520_v27, 7  ;;  %v13751_v20 = vld [vmem:[#allocation55_spill] sm:$0xff]  ;;  %v10480_v56 = vld [vmem:[#allocation7 + $0x440] ss:$16 sps:$4 sm:$0xff]   ;;  %6229 = vmatpush1.bf16.msra.mxu0 %v10477_v39  ;;  %5886 = vmatprep.subr.bf16.mxu1 %v10482_v15 }
 0x344   :  { %v2719_v49 = vsel %vm2430_vm14, %v2718_v45, %v2717_v29  ;;  %v2761_v7 = vsel %vm2430_vm14, %v2760_v14, %v2759_v12  ;;  %v2649_v8 = vsel %vm2427_vm13, %v2648_v21, %v2647_v23  ;;  %v13039_v13 = vunpack.c.l.b16 %v2308_v22  ;;  %v13754_v21 = vld [vmem:[#allocation52_spill] sm:$0xff]  ;;  %v10483_v60 = vld [vmem:[#allocation7 + $0x448] ss:$16 sps:$4 sm:$0xff]   ;;  %6230 = vmatprep.subr.bf16.mxu0 %v10485_v10 }
 0x345   :  { %v13037_v55 = vpack.c.b16 %v2761_v7, %v2719_v49  ;;  %v2651_v11 = vsel %vm2430_vm14, %v2650_v6, %v2649_v8  ;;  %v2682_v47 = vrot.slane %v12564_v51, 6  ;;  %v2681_v0 = vsel %vm2412_vm8, %v2680_v31, %v12511_v54  ;;  %v10488_v54 = vld [vmem:[#allocation7 + $0x464] ss:$16 sps:$4 sm:$0xff]   ;;  %v10491_v14 = vld [vmem:[#allocation7 + $0x46c] ss:$16 sps:$4 sm:$0xff]  }
 0x346   :  { %13753 = vst [vmem:[#allocation49_spill] sm:$0xff] %v13039_v13  ;;  %v2684_v9 = vrot.slane %v12573_v16, 5  ;;  %v2686_v29 = vrot.slane %v12579_v32, 4  ;;  %v2688_v12 = vrot.slane %v12587_v53, 3  ;;  %v13050_v49 = vsel %vm1577_vm7, %v13754_v21, -inf  ;;  %5887 = vmatpush1.bf16.msra.mxu1 %v10480_v56 }
 0x347   :  { %13752 = vst [vmem:[#allocation46_spill] sm:$0xff] %v13037_v55  ;;  %v9259_v22 = vcombine.high %v13731_v25, %v13731_v25  ;;  %v13055_v6 = vmax.f32 %v12990_v38, %v2048_v17  ;;  %v2683_v45 = vsel %vm2415_vm9, %v2682_v47, %v2681_v0  ;;  %v2690_v23 = vrot.slane %v12794_v40, 2  ;;  %v10486_v39 = vld [vmem:[#allocation7 + $0x460] ss:$16 sps:$4 sm:$0xff]   ;;  %6231 = vmatpush1.bf16.msra.mxu0 %v10483_v60 }
 0x348   :  { %v2685_v36 = vsel %vm2418_vm10, %v2684_v9, %v2683_v45  ;;  %v1805_v31 = vrot.slane %v1804_v46, 2  ;;  %v2057_v7 = vrot.slane %v2056_v2, 2  ;;  %v2734_v21 = vrot.slane %v13749_v26, 7  ;;  %v13755_v9 = vld [vmem:[#allocation64_spill] sm:$0xff]  ;;  %5888 = vmatprep.subr.bf16.mxu1 %v10488_v54  ;;  %6232 = vmatprep.subr.bf16.mxu0 %v10491_v14 }
 0x349   :  { %v2687_v8 = vsel %vm2421_vm11, %v2686_v29, %v2685_v36  ;;  %v2736_v38 = vrot.slane %v13706_v48, 6  ;;  %v2738_v17 = vrot.slane %v13707_v19, 5  ;;  %v2692_v10 = vrot.slane %v13039_v13, 1  ;;  %v10489_v29 = vld [vmem:[#allocation7 + $0x468] ss:$16 sps:$4 sm:$0xff]  }
 0x34a   :  { %v2689_v15 = vsel %vm2424_vm12, %v2688_v12, %v2687_v8  ;;  %v1806_v47 = vmax.f32 %v1804_v46, %v1805_v31  ;;  %v2058_v0 = vmax.f32 %v2056_v2, %v2057_v7  ;;  %v13756_v45 = vcombine.high %v13755_v9, %v13731_v25  ;;  %v10494_v36 = vld [vmem:[#allocation7 + $0x484] ss:$16 sps:$4 sm:$0xff]   ;;  %v10497_v46 = vld [vmem:[#allocation7 + $0x48c] ss:$16 sps:$4 sm:$0xff]   ;;  %5889 = vmatpush1.bf16.msra.mxu1 %v10486_v39 }
 0x34b   :  { %v2691_v55 = vsel %vm2427_vm13, %v2690_v23, %v2689_v15  ;;  %v2735_v56 = vsel %vm2412_vm8, %v2734_v21, %v13704_v62  ;;  %v2740_v12 = vrot.slane %v13708_v35, 4  ;;  %v2050_v60 = vrot.slane %v13055_v6, 2  ;;  %v10492_v62 = vld [vmem:[#allocation7 + $0x480] ss:$16 sps:$4 sm:$0xff]   ;;  %v13758_v9 = vld [vmem:[#allocation25_spill] sm:$0xff]  ;;  %6233 = vmatpush1.bf16.msra.mxu0 %v10489_v29  ;;  %5890 = vmatprep.subr.bf16.mxu1 %v10494_v36 }
 0x34c   :  { %v13070_v44 = vrot.slane %v13756_v45, %v13730_v3  ;;  %v2693_v2 = vsel %vm2430_vm14, %v2692_v10, %v2691_v55  ;;  %v1807_v31 = vrot.slane %v1806_v47, 1  ;;  %v2059_v7 = vrot.slane %v2058_v0, 1  ;;  %v10500_v39 = vld [vmem:[#allocation7 + $0x4a4] ss:$16 sps:$4 sm:$0xff]   ;;  %6234 = vmatprep.subr.bf16.mxu0 %v10497_v46 }
 0x34d   :  { %v2737_v25 = vsel %vm2415_vm9, %v2736_v38, %v2735_v56  ;;  %v13079_v54 = vpack.c.b16 %v2693_v2, %v2651_v11  ;;  %v2742_v23 = vrot.slane %v12789_v50, 3  ;;  %v2776_v14 = vrot.slane %v12564_v51, 7  ;;  %v10503_v56 = vld [vmem:[#allocation7 + $0x4ac] ss:$16 sps:$4 sm:$0xff]  }
 0x34e   :  { %v2739_v8 = vsel %vm2418_vm10, %v2738_v17, %v2737_v25  ;;  %v1808_v21 = vmax.f32 %v1806_v47, %v1807_v31  ;;  %v2060_v15 = vmax.f32 %v2058_v0, %v2059_v7  ;;  %v13759_v55 = vrot.slane %v13758_v9, 2  ;;  %v10495_v17 = vld [vmem:[#allocation7 + $0x488] ss:$16 sps:$4 sm:$0xff]   ;;  %5891 = vmatpush1.bf16.msra.mxu1 %v10492_v62  ;;  %v10498_v25 = vld [vmem:[#allocation7 + $0x4a0] ss:$16 sps:$4 sm:$0xff]  }
 0x34f   :  { %13757 = vst [vmem:[#allocation51_spill] sm:$0xff] %v13079_v54  ;;  %v13760_v38 = vrot.slane %v13751_v20, 4  ;;  %v13093_v11 = vrot.slane %v9259_v22, %v13730_v3  ;;  %v2741_v47 = vsel %vm2421_vm11, %v2740_v12, %v2739_v8  ;;  %v2744_v0 = vrot.slane %v13005_v43, 2  ;;  %6235 = vmatpush1.bf16.msra.mxu0 %v10495_v17  ;;  %5892 = vmatprep.subr.bf16.mxu1 %v10500_v39  ;;  %v13766_v54 = vld [vmem:[#allocation67_spill] sm:$0xff] }
 0x350   :  { %v1799_v10 = vmax.f32 %v13758_v9, %v13759_v55  ;;  %v2131_v2 = vadd.f32 %v12061_v37, %v1808_v21  ;;  %v2167_v31 = vadd.f32 %v12061_v37, %v2060_v15  ;;  %v2777_v22 = vsel %vm2412_vm8, %v2776_v14, %v12520_v27  ;;  %v10501_v27 = vld [vmem:[#allocation7 + $0x4a8] ss:$16 sps:$4 sm:$0xff]   ;;  %v10506_v15 = vld [vmem:[#allocation7 + $0x4c4] ss:$16 sps:$4 sm:$0xff]   ;;  %6236 = vmatprep.subr.bf16.mxu0 %v10503_v56 }
 0x351   :  { %v13090_v45 = vmax.f32 %v13751_v20, %v13760_v38  ;;  %v2743_v20 = vsel %vm2424_vm12, %v2742_v23, %v2741_v47  ;;  %v2778_v29 = vrot.slane %v12573_v16, 6  ;;  %v2780_v36 = vrot.slane %v12579_v32, 5 }
 0x352   :  { %v2782_v7 = vrot.slane %v12587_v53, 4  ;;  %v2051_v12 = vmax.f32 %v13055_v6, %v2050_v60  ;;  %v13108_v46 = vsel %vm1577_vm7, %v13070_v44, -inf  ;;  %v2203_v8 = vmax.f32 %v2131_v2, 0.0  ;;  %v10509_v60 = vld [vmem:[#allocation7 + $0x4cc] ss:$16 sps:$4 sm:$0xff]   ;;  %5893 = vmatpush1.bf16.msra.mxu1 %v10498_v25 }
 0x353   :  { %v2239_v21 = vmax.f32 %v2167_v31, 0.0  ;;  %v1800_v23 = vrot.slane %v1799_v10, 1  ;;  %v2745_v14 = vsel %vm2427_vm13, %v2744_v0, %v2743_v20  ;;  %v2779_v9 = vsel %vm2415_vm9, %v2778_v29, %v2777_v22  ;;  %v10504_v20 = vld [vmem:[#allocation7 + $0x4c0] ss:$16 sps:$4 sm:$0xff]   ;;  %6237 = vmatpush1.bf16.msra.mxu0 %v10501_v27  ;;  %5894 = vmatprep.subr.bf16.mxu1 %v10506_v15 }
 0x354   :  { %v2784_v55 = vrot.slane %v12794_v40, 3  ;;  %v2786_v6 = vrot.slane %v13039_v13, 2  ;;  %v13114_v38 = vpack.c.bf16 %v2203_v8, %v2203_v8  ;;  %v2781_v47 = vsel %vm2418_vm10, %v2780_v36, %v2779_v9  ;;  %6238 = vmatprep.subr.bf16.mxu0 %v10509_v60  ;;  %v13773_v40 = vld [vmem:[#allocation34_spill] sm:$0xff] }
 0x355   :  { %v13116_v62 = vpack.c.bf16 %v2239_v21, %v2239_v21  ;;  %v1801_v17 = vmax.f32 %v1799_v10, %v1800_v23  ;;  %v2783_v39 = vsel %vm2421_vm11, %v2782_v7, %v2781_v47  ;;  %v2052_v2 = vrot.slane %v2051_v12, 1  ;;  %v10507_v10 = vld [vmem:[#allocation7 + $0x4c8] ss:$16 sps:$4 sm:$0xff]   ;;  %v10512_v7 = vld [vmem:[#allocation7 + $0x4e4] ss:$16 sps:$4 sm:$0xff]  }
 0x356   :  { %v2720_v0 = vrot.slane %v12264_v58, 7  ;;  %v2722_v31 = vrot.slane %v12272_v18, 6  ;;  %v13596_v22 = vunpack.c.l.b16 %v13114_v38  ;;  %v2785_v29 = vsel %vm2424_vm12, %v2784_v55, %v2783_v39  ;;  %v10515_v55 = vld [vmem:[#allocation7 + $0x4ec] ss:$16 sps:$4 sm:$0xff]   ;;  %5895 = vmatpush1.bf16.msra.mxu1 %v10504_v20  ;;  %v10510_v39 = vld [vmem:[#allocation7 + $0x4e0] ss:$16 sps:$4 sm:$0xff]  }
 0x357   :  { %13761 = vst [vmem:[#allocation24_spill] sm:$0xff] %v13116_v62  ;;  %v13597_v56 = vunpack.c.l.b16 %v13116_v62  ;;  %v2130_v8 = vadd.f32 %v12067_v57, %v1801_v17  ;;  %v1824_v36 = vrot.slane %v13050_v49, 4  ;;  %v2787_v21 = vsel %vm2427_vm13, %v2786_v6, %v2785_v29  ;;  %v13763_v29 = vld [vmem:[#allocation62_spill] sm:$0xff]  ;;  %6239 = vmatpush1.bf16.msra.mxu0 %v10507_v10  ;;  %5896 = vmatprep.subr.bf16.mxu1 %v10512_v7 }
 0x358   :  { %v2053_v23 = vmax.f32 %v2051_v12, %v2052_v2  ;;  %v2721_v25 = vsel %vm2412_vm8, %v2720_v0, %v12620_v33  ;;  %v1504_v9 = vcombine.high %v13070_v44, %v13070_v44  ;;  %v2062_v47 = vrot.slane %v13108_v46, 4  ;;  %v13762_v2 = vld [vmem:[#allocation37_spill] sm:$0xff]  ;;  %6240 = vmatprep.subr.bf16.mxu0 %v10515_v55  ;;  %v13767_v7 = vld [vmem:[#allocation70_spill] sm:$0xff] }
 0x359   :  { %v2746_v17 = vrot.slane %v13596_v22, 1  ;;  %v2788_v27 = vrot.slane %v13597_v56, 1  ;;  %v2202_v6 = vmax.f32 %v2130_v8, 0.0  ;;  %v2723_v12 = vsel %vm2415_vm9, %v2722_v31, %v2721_v25  ;;  %v10513_v8 = vld [vmem:[#allocation7 + $0x4e8] ss:$16 sps:$4 sm:$0xff]  }
 0x35a   :  { %v2166_v15 = vadd.f32 %v12067_v57, %v2053_v23  ;;  %v2724_v33 = vrot.slane %v12622_v41, 5  ;;  %v2726_v0 = vrot.slane %v13762_v2, 4  ;;  %v2728_v22 = vrot.slane %v13763_v29, 3  ;;  %v10518_v23 = vld [vmem:[#allocation7 + $0x504] ss:$16 sps:$4 sm:$0xff]   ;;  %5897 = vmatpush1.bf16.msra.mxu1 %v10510_v39 }
 0x35b   :  { %v2747_v44 = vsel %vm2430_vm14, %v2746_v17, %v2745_v14  ;;  %v2789_v60 = vsel %vm2430_vm14, %v2788_v27, %v2787_v21  ;;  %v2075_v56 = vsel %vm1577_vm7, %v13093_v11, -inf  ;;  %v13148_v25 = vpack.c.bf16 %v2202_v6, %v2202_v6  ;;  %v10521_v14 = vld [vmem:[#allocation7 + $0x50c] ss:$16 sps:$4 sm:$0xff]   ;;  %v13765_v27 = vld [vmem:[#allocation61_spill] sm:$0xff]  ;;  %6241 = vmatpush1.bf16.msra.mxu0 %v10513_v8  ;;  %5898 = vmatprep.subr.bf16.mxu1 %v10518_v23 }
 0x35c   :  { %v13146_v31 = vpack.c.b16 %v2789_v60, %v2747_v44  ;;  %v2725_v20 = vsel %vm2418_vm10, %v2724_v33, %v2723_v12  ;;  %v2238_v21 = vmax.f32 %v2166_v15, 0.0  ;;  %v2730_v3 = vrot.slane %v13765_v27, 2  ;;  %v13768_v60 = vld [vmem:[#allocation78_spill] sm:$0xff]  ;;  %v13769_v33 = vld [vmem:[#allocation77_spill] sm:$0xff]  ;;  %6242 = vmatprep.subr.bf16.mxu0 %v10521_v14 }
 0x35d   :  { %v2727_v17 = vsel %vm2421_vm11, %v2726_v0, %v2725_v20  ;;  %v2762_v62 = vrot.slane %v13766_v54, 7  ;;  %v2764_v44 = vrot.slane %v13767_v7, 6  ;;  %v2766_v6 = vrot.slane %v13768_v60, 5  ;;  %v10516_v15 = vld [vmem:[#allocation7 + $0x500] ss:$16 sps:$4 sm:$0xff]  }
 0x35e   :  { %13764 = vst [vmem:[#allocation57_spill] sm:$0xff] %v13146_v31  ;;  %v2729_v10 = vsel %vm2424_vm12, %v2728_v22, %v2727_v17  ;;  %v13159_v31 = vmax.f32 %v13050_v49, %v1824_v36  ;;  %v2063_v55 = vmax.f32 %v13108_v46, %v2062_v47  ;;  %v13162_v12 = vpack.c.bf16 %v2238_v21, %v2238_v21  ;;  %v10519_v22 = vld [vmem:[#allocation7 + $0x508] ss:$16 sps:$4 sm:$0xff]   ;;  %v10524_v17 = vld [vmem:[#allocation7 + $0x524] ss:$16 sps:$4 sm:$0xff]  }
 0x35f   :  { %v2763_v0 = vsel %vm2412_vm8, %v2762_v62, %v13769_v33  ;;  %v2076_v20 = vrot.slane %v2075_v56, 4  ;;  %v2731_v11 = vsel %vm2427_vm13, %v2730_v3, %v2729_v10  ;;  %v13770_v49 = vld [vmem:[#allocation79_spill] sm:$0xff]  ;;  %v10527_v46 = vld [vmem:[#allocation7 + $0x52c] ss:$16 sps:$4 sm:$0xff]   ;;  %v13771_v39 = vunpack.c.l.b16 %v13148_v25  ;;  %5899 = vmatpush1.bf16.msra.mxu1 %v10516_v15  ;;  %6243 = vmatpush1.bf16.msra.mxu0 %v10519_v22  ;;  %v10528_v22 = vld [vmem:[#allocation7 + $0x540] ss:$16 sps:$4 sm:$0xff]  }
 0x360   :  { %v2765_v13 = vsel %vm2415_vm9, %v2764_v44, %v2763_v0  ;;  %v2768_v36 = vrot.slane %v13770_v49, 4  ;;  %v13772_v33 = vld [vmem:[#allocation56_spill] sm:$0xff]  ;;  %v2772_v51 = vrot.slane %v13773_v40, 2  ;;  %v13774_v3 = vld [vmem:[#allocation47_spill] sm:$0xff]  ;;  %v2068_v14 = vsel %vm1577_vm7, %v1504_v9, -inf  ;;  %5900 = vmatprep.subr.bf16.mxu1 %v10524_v17  ;;  %6244 = vmatprep.subr.bf16.mxu0 %v10527_v46 }
 0x361   :  { %v2732_v21 = vrot.slane %v13771_v39, 1  ;;  %v2767_v62 = vsel %vm2418_vm10, %v2766_v6, %v2765_v13  ;;  %v2770_v8 = vrot.slane %v13772_v33, 3  ;;  %v13775_v10 = vcombine.high %v13774_v3, %v13774_v3  ;;  %v10522_v0 = vld [vmem:[#allocation7 + $0x520] ss:$16 sps:$4 sm:$0xff]   ;;  %v10525_v3 = vld [vmem:[#allocation7 + $0x528] ss:$16 sps:$4 sm:$0xff]  }
 0x362   :  { %v2769_v23 = vsel %vm2421_vm11, %v2768_v36, %v2767_v62  ;;  %v13776_v13 = vunpack.c.l.b16 %v13162_v12  ;;  %v1812_v36 = vrot.slane %v13090_v45, 2  ;;  %v2064_v62 = vrot.slane %v2063_v55, 2  ;;  %v10533_v15 = vld [vmem:[#allocation7 + $0x54c] ss:$16 sps:$4 sm:$0xff]  }
 0x363   :  { %v1816_v44 = vsel %vm1577_vm7, %v13775_v10, -inf  ;;  %v2733_v47 = vsel %vm2430_vm14, %v2732_v21, %v2731_v11  ;;  %v2771_v39 = vsel %vm2424_vm12, %v2770_v8, %v2769_v23  ;;  %v13186_v32 = vmax.f32 %v2075_v56, %v2076_v20  ;;  %v10530_v10 = vld [vmem:[#allocation7 + $0x544] ss:$16 sps:$4 sm:$0xff]   ;;  %5901 = vmatpush1.bf16.msra.mxu1 %v10522_v0  ;;  %6245 = vmatpush1.bf16.msra.mxu0 %v10525_v3 }
 0x364   :  { %v2774_v6 = vrot.slane %v13776_v13, 1  ;;  %v1817_v53 = vrot.slane %v1816_v44, 4  ;;  %v2773_v9 = vsel %vm2427_vm13, %v2772_v51, %v2771_v39  ;;  %v2069_v8 = vrot.slane %v2068_v14, 4  ;;  %5902 = vmatprep.subr.bf16.mxu1 %v10530_v10  ;;  %6246 = vmatprep.subr.bf16.mxu0 %v10533_v15  ;;  %v10542_v15 = vld [vmem:[#allocation7 + $0x584] ss:$16 sps:$4 sm:$0xff]  }
 0x365   :  { %v2816_v23 = vrot.slane %v12272_v18, 7  ;;  %v2818_v16 = vrot.slane %v12622_v41, 6  ;;  %v2820_v56 = vrot.slane %v13762_v2, 5  ;;  %v2822_v20 = vrot.slane %v13763_v29, 4  ;;  %v10531_v18 = vld [vmem:[#allocation7 + $0x548] ss:$16 sps:$4 sm:$0xff]  }
 0x366   :  { %v2775_v11 = vsel %vm2430_vm14, %v2774_v6, %v2773_v9  ;;  %v1818_v21 = vmax.f32 %v1816_v44, %v1817_v53  ;;  %v2070_v51 = vmax.f32 %v2068_v14, %v2069_v8  ;;  %v2824_v53 = vrot.slane %v13765_v27, 3  ;;  %v10539_v29 = vld [vmem:[#allocation7 + $0x56c] ss:$16 sps:$4 sm:$0xff]  }
 0x367   :  { %v13191_v13 = vpack.c.b16 %v2775_v11, %v2733_v47  ;;  %v2817_v46 = vsel %vm2412_vm8, %v2816_v23, %v12264_v58  ;;  %v10536_v47 = vld [vmem:[#allocation7 + $0x564] ss:$16 sps:$4 sm:$0xff]   ;;  %v1813_v41 = vmax.f32 %v13090_v45, %v1812_v36  ;;  %v2065_v2 = vmax.f32 %v2063_v55, %v2064_v62  ;;  %5903 = vmatpush1.bf16.msra.mxu1 %v10528_v22  ;;  %v10534_v55 = vld [vmem:[#allocation7 + $0x560] ss:$16 sps:$4 sm:$0xff]  }
 0x368   :  { %v1819_v17 = vrot.slane %v1818_v21, 2  ;;  %v2819_v44 = vsel %vm2415_vm9, %v2818_v16, %v2817_v46  ;;  %v2071_v39 = vrot.slane %v2070_v51, 2  ;;  %v13777_v6 = vunpack.c.l.b16 %v13148_v25  ;;  %6247 = vmatpush1.bf16.msra.mxu0 %v10531_v18  ;;  %5904 = vmatprep.subr.bf16.mxu1 %v10536_v47  ;;  %v10537_v25 = vld [vmem:[#allocation7 + $0x568] ss:$16 sps:$4 sm:$0xff]  }
 0x369   :  { %v2821_v14 = vsel %vm2418_vm10, %v2820_v56, %v2819_v44  ;;  %v2858_v3 = vrot.slane %v13767_v7, 7  ;;  %v2860_v10 = vrot.slane %v13768_v60, 6  ;;  %v2862_v16 = vrot.slane %v13770_v49, 5  ;;  %6248 = vmatprep.subr.bf16.mxu0 %v10539_v29  ;;  %v10545_v60 = vld [vmem:[#allocation7 + $0x58c] ss:$16 sps:$4 sm:$0xff]  }
 0x36a   :  { %v1820_v0 = vmax.f32 %v1818_v21, %v1819_v17  ;;  %v2826_v58 = vrot.slane %v13777_v6, 2  ;;  %v2823_v27 = vsel %vm2421_vm11, %v2822_v20, %v2821_v14  ;;  %v1826_v45 = vrot.slane %v13159_v31, 2  ;;  %v10543_v44 = vld [vmem:[#allocation7 + $0x588] ss:$16 sps:$4 sm:$0xff]  }
 0x36b   :  { %v2072_v62 = vmax.f32 %v2070_v51, %v2071_v39  ;;  %v2825_v9 = vsel %vm2424_vm12, %v2824_v53, %v2823_v27  ;;  %v2859_v7 = vsel %vm2412_vm8, %v2858_v3, %v13766_v54  ;;  %v2864_v23 = vrot.slane %v13772_v33, 4  ;;  %5905 = vmatpush1.bf16.msra.mxu1 %v10534_v55  ;;  %v10540_v51 = vld [vmem:[#allocation7 + $0x580] ss:$16 sps:$4 sm:$0xff]   ;;  %v13778_v54 = vld [vmem:[#allocation45_spill] sm:$0xff] }
 0x36c   :  { %v1821_v36 = vrot.slane %v1820_v0, 1  ;;  %v13211_v11 = vsel %vm2427_vm13, %v2826_v58, %v2825_v9  ;;  %v2861_v8 = vsel %vm2415_vm9, %v2860_v10, %v2859_v7  ;;  %v2078_v56 = vrot.slane %v13186_v32, 2  ;;  %6249 = vmatpush1.bf16.msra.mxu0 %v10537_v25  ;;  %5906 = vmatprep.subr.bf16.mxu1 %v10542_v15  ;;  %v10548_v33 = vld [vmem:[#allocation7 + $0x5a4] ss:$16 sps:$4 sm:$0xff]   ;;  %v10551_v58 = vld [vmem:[#allocation7 + $0x5ac] ss:$16 sps:$4 sm:$0xff]  }
 0x36d   :  { %v2073_v21 = vrot.slane %v2072_v62, 1  ;;  %v2863_v20 = vsel %vm2418_vm10, %v2862_v16, %v2861_v8  ;;  %v1814_v22 = vrot.slane %v1813_v41, 1  ;;  %v2066_v17 = vrot.slane %v2065_v2, 1  ;;  %6250 = vmatprep.subr.bf16.mxu0 %v10545_v60  ;;  %v13780_v10 = vld [vmem:[#allocation43_spill] sm:$0xff]  ;;  %v13781_v55 = vld [vmem:[#allocation48_spill] sm:$0xff] }
 0x36e   :  { %v1822_v49 = vmax.f32 %v1820_v0, %v1821_v36  ;;  %v2802_v18 = vrot.slane %v13778_v54, 7  ;;  %v13222_v47 = vmax.f32 %v13159_v31, %v1826_v45  ;;  %v13779_v29 = vunpack.c.l.b16 %v13000_v59  ;;  %v10549_v15 = vld [vmem:[#allocation7 + $0x5a8] ss:$16 sps:$4 sm:$0xff]   ;;  %v10554_v7 = vld [vmem:[#allocation7 + $0x5c4] ss:$16 sps:$4 sm:$0xff]  }
 0x36f   :  { %v2074_v46 = vmax.f32 %v2072_v62, %v2073_v21  ;;  %v2866_v39 = vrot.slane %v13773_v40, 3  ;;  %v1815_v14 = vmax.f32 %v1813_v41, %v1814_v22  ;;  %v2067_v6 = vmax.f32 %v2065_v2, %v2066_v17  ;;  %5907 = vmatpush1.bf16.msra.mxu1 %v10540_v51  ;;  %v10546_v41 = vld [vmem:[#allocation7 + $0x5a0] ss:$16 sps:$4 sm:$0xff]   ;;  %v10557_v21 = vld [vmem:[#allocation7 + $0x5cc] ss:$16 sps:$4 sm:$0xff]  }
 0x370   :  { %v2133_v53 = vadd.f32 %v12067_v57, %v1822_v49  ;;  %v13226_v0 = vrot.slane %v13779_v29, 2  ;;  %v2865_v31 = vsel %vm2421_vm11, %v2864_v23, %v2863_v20  ;;  %v2803_v16 = vsel %vm2412_vm8, %v2802_v18, %v13780_v10  ;;  %6251 = vmatpush1.bf16.msra.mxu0 %v10543_v44  ;;  %5908 = vmatprep.subr.bf16.mxu1 %v10548_v33  ;;  %v10552_v51 = vld [vmem:[#allocation7 + $0x5c0] ss:$16 sps:$4 sm:$0xff]   ;;  %v10555_v54 = vld [vmem:[#allocation7 + $0x5c8] ss:$16 sps:$4 sm:$0xff]  }
 0x371   :  { %v2169_v27 = vadd.f32 %v12067_v57, %v2074_v46  ;;  %v2132_v45 = vadd.f32 %v12064_v42, %v1815_v14  ;;  %v2168_v59 = vadd.f32 %v12064_v42, %v2067_v6  ;;  %v2804_v36 = vrot.slane %v13781_v55, 6  ;;  %6252 = vmatprep.subr.bf16.mxu0 %v10551_v58  ;;  %v10560_v18 = vld [vmem:[#allocation7 + $0x5e4] ss:$16 sps:$4 sm:$0xff]  }
 0x372   :  { %v2205_v3 = vmax.f32 %v2133_v53, 0.0  ;;  %v2806_v40 = vrot.slane %v13690_v34, 5  ;;  %v13782_v57 = vunpack.c.l.b16 %v13162_v12  ;;  %v13240_v25 = vmax.f32 %v13186_v32, %v2078_v56 }
 0x373   :  { %v2241_v2 = vmax.f32 %v2169_v27, 0.0  ;;  %v2867_v42 = vsel %vm2424_vm12, %v2866_v39, %v2865_v31  ;;  %v2805_v60 = vsel %vm2415_vm9, %v2804_v36, %v2803_v16  ;;  %v2808_v34 = vrot.slane %v12715_v24, 4  ;;  %5909 = vmatpush1.bf16.msra.mxu1 %v10546_v41  ;;  %v10558_v31 = vld [vmem:[#allocation7 + $0x5e0] ss:$16 sps:$4 sm:$0xff]  }
 0x374   :  { %v2277_v62 = vpack.c.bf16 %v2205_v3, %v2205_v3  ;;  %v2868_v9 = vrot.slane %v13782_v57, 2  ;;  %v2810_v49 = vrot.slane %v12915_v30, 3  ;;  %v2204_v23 = vmax.f32 %v2132_v45, 0.0  ;;  %6253 = vmatpush1.bf16.msra.mxu0 %v10549_v15  ;;  %5910 = vmatprep.subr.bf16.mxu1 %v10554_v7  ;;  %v10561_v45 = vld [vmem:[#allocation7 + $0x5e8] ss:$16 sps:$4 sm:$0xff]  }
 0x375   :  { %v2313_v8 = vpack.c.bf16 %v2241_v2, %v2241_v2  ;;  %v2240_v20 = vmax.f32 %v2168_v59, 0.0  ;;  %v2807_v32 = vsel %vm2418_vm10, %v2806_v40, %v2805_v60  ;;  %v2844_v56 = vrot.slane %v13738_v63, 7  ;;  %6254 = vmatprep.subr.bf16.mxu0 %v10557_v21  ;;  %v10566_v59 = vld [vmem:[#allocation7 + $0x604] ss:$16 sps:$4 sm:$0xff]   ;;  %v10569_v2 = vld [vmem:[#allocation7 + $0x60c] ss:$16 sps:$4 sm:$0xff]  }
 0x376   :  { %v2797_v12 = vunpack.c.l.b16 %v2277_v62  ;;  %v2846_v22 = vrot.slane %v13739_v61, 6  ;;  %v2848_v17 = vrot.slane %v13742_v4, 5  ;;  %v2276_v53 = vpack.c.bf16 %v2204_v23, %v2204_v23  ;;  %v10563_v61 = vld [vmem:[#allocation7 + $0x5ec] ss:$16 sps:$4 sm:$0xff]  }
 0x377   :  { %v2800_v46 = vunpack.c.l.b16 %v2313_v8  ;;  %v2312_v30 = vpack.c.bf16 %v2240_v20, %v2240_v20  ;;  %v2869_v44 = vsel %vm2427_vm13, %v2868_v9, %v2867_v42  ;;  %v2809_v33 = vsel %vm2421_vm11, %v2808_v34, %v2807_v32  ;;  %5911 = vmatpush1.bf16.msra.mxu1 %v10552_v51  ;;  %v10564_v42 = vld [vmem:[#allocation7 + $0x600] ss:$16 sps:$4 sm:$0xff]   ;;  %v10567_v8 = vld [vmem:[#allocation7 + $0x608] ss:$16 sps:$4 sm:$0xff]   ;;  %v10572_v20 = vld [vmem:[#allocation7 + $0x624] ss:$16 sps:$4 sm:$0xff]  }
 0x378   :  { %v2828_v24 = vrot.slane %v2797_v12, 1  ;;  %v2845_v63 = vsel %vm2412_vm8, %v2844_v56, %v13737_v1  ;;  %v2796_v39 = vunpack.c.l.b16 %v2276_v53  ;;  %v2811_v6 = vsel %vm2424_vm12, %v2810_v49, %v2809_v33  ;;  %6255 = vmatpush1.bf16.msra.mxu0 %v10555_v54  ;;  %5912 = vmatprep.subr.bf16.mxu1 %v10560_v18  ;;  %v13785_v32 = vld [vmem:[#allocation72_spill] sm:$0xff]  ;;  %v13786_v56 = vld [vmem:[#allocation74_spill] sm:$0xff]  ;;  %v10573_v33 = vld [vmem:[#allocation7 + $0x628] ss:$16 sps:$4 sm:$0xff]  }
 0x379   :  { %v2870_v29 = vrot.slane %v2800_v46, 1  ;;  %v2799_v14 = vunpack.c.l.b16 %v2312_v30  ;;  %v2847_v58 = vsel %vm2415_vm9, %v2846_v22, %v2845_v63  ;;  %v2850_v27 = vrot.slane %v13745_v28, 4  ;;  %6256 = vmatprep.subr.bf16.mxu0 %v10563_v61  ;;  %v10575_v51 = vld [vmem:[#allocation7 + $0x62c] ss:$16 sps:$4 sm:$0xff]   ;;  %v10578_v63 = vld [vmem:[#allocation7 + $0x644] ss:$16 sps:$4 sm:$0xff]  }
 0x37a   :  { %v2829_v4 = vsel %vm2430_vm14, %v2828_v24, %v13211_v11  ;;  %v2852_v3 = vrot.slane %v12938_v52, 3  ;;  %v2813_v10 = vsel %vm2427_vm13, %v13226_v0, %v2811_v6  ;;  %v2814_v16 = vrot.slane %v2796_v39, 1  ;;  %v13789_v54 = vld [vmem:[#allocation68_spill] sm:$0xff] }
 0x37b   :  { %v2871_v1 = vsel %vm2430_vm14, %v2870_v29, %v2869_v44  ;;  %v2849_v11 = vsel %vm2418_vm10, %v2848_v17, %v2847_v58  ;;  %v13783_v55 = vunpack.c.l.b16 %v13002_v5  ;;  %v13784_v28 = vunpack.c.l.b16 %v13114_v38  ;;  %5913 = vmatpush1.bf16.msra.mxu1 %v10558_v31  ;;  %v13787_v17 = vld [vmem:[#allocation36_spill] sm:$0xff]  ;;  %v13790_v44 = vld [vmem:[#allocation39_spill] sm:$0xff]  ;;  %v13791_v29 = vld [vmem:[#allocation50_spill] sm:$0xff] }
 0x37c   :  { %v13268_v40 = vpack.c.b16 %v2871_v1, %v2829_v4  ;;  %v2851_v41 = vsel %vm2421_vm11, %v2850_v27, %v2849_v11  ;;  %v2815_v0 = vsel %vm2430_vm14, %v2814_v16, %v2813_v10  ;;  %v2856_v57 = vrot.slane %v2799_v14, 1  ;;  %6257 = vmatpush1.bf16.msra.mxu0 %v10561_v45  ;;  %5925 = vmatprep.subr.bf16.mxu1 %v10566_v59  ;;  %v10581_v14 = vld [vmem:[#allocation7 + $0x64c] ss:$16 sps:$4 sm:$0xff]   ;;  %v10576_v59 = vld [vmem:[#allocation7 + $0x640] ss:$16 sps:$4 sm:$0xff]  }
 0x37d   :  { %v2854_v36 = vrot.slane %v13783_v55, 2  ;;  %v2840_v52 = vrot.slane %v13784_v28, 2  ;;  %v2853_v62 = vsel %vm2424_vm12, %v2852_v3, %v2851_v41  ;;  %v1828_v9 = vrot.slane %v13222_v47, 1  ;;  %6269 = vmatprep.subr.bf16.mxu0 %v10569_v2  ;;  %v13792_v3 = vld [vmem:[#allocation49_spill] sm:$0xff]  ;;  %v13793_v1 = vld [vmem:[#allocation24_spill] sm:$0xff] }
 0x37e   :  { %v2080_v5 = vrot.slane %v13240_v25, 1  ;;  %v2830_v38 = vrot.slane %v13706_v48, 7  ;;  %v2832_v7 = vrot.slane %v13707_v19, 6  ;;  %v2834_v49 = vrot.slane %v13708_v35, 5  ;;  %5915 = vmatmul.mubr.bf16.vlgmr.msra.gmra.mrb[12].mxu1 %v13787_v17  ;;  %v10579_v28 = vld [vmem:[#allocation7 + $0x648] ss:$16 sps:$4 sm:$0xff]  }
 0x37f   :  { %v2855_v15 = vsel %vm2427_vm13, %v2854_v36, %v2853_v62  ;;  %v1829_v34 = vmax.f32 %v13222_v47, %v1828_v9  ;;  %v2836_v21 = vrot.slane %v12789_v50, 4  ;;  %v2838_v19 = vrot.slane %v13005_v43, 3  ;;  %6259 = vmatmul.mubr.bf16.vlgmr.msra.gmra.mrb[24].mxu0 %v13787_v17  ;;  %5926 = vmatpush1.bf16.msra.mxu1 %v10564_v42  ;;  %v10570_v43 = vld [vmem:[#allocation7 + $0x620] ss:$16 sps:$4 sm:$0xff]   ;;  %v10593_v42 = vld [vmem:[#allocation7 + $0x68c] ss:$16 sps:$4 sm:$0xff]  }
 0x380   :  { %v2857_v60 = vsel %vm2430_vm14, %v2856_v57, %v2855_v15  ;;  %v2081_v23 = vmax.f32 %v13240_v25, %v2080_v5  ;;  %v2831_v48 = vsel %vm2412_vm8, %v2830_v38, %v13749_v26  ;;  %v2872_v50 = vrot.slane %v13785_v32, 7  ;;  %v13788_v26 = vld [vmem:[#allocation76_spill] sm:$0xff]  ;;  %5957 = vmatprep.mubr.bf16.mxu1 %v13790_v44  ;;  %6270 = vmatpush1.bf16.msra.mxu0 %v10567_v8  ;;  %v10585_v5 = vld [vmem:[#allocation7 + $0x668] ss:$16 sps:$4 sm:$0xff]   ;;  %v10590_v38 = vld [vmem:[#allocation7 + $0x684] ss:$16 sps:$4 sm:$0xff]  }
 0x381   :  { %v13282_v12 = vpack.c.b16 %v2857_v60, %v2815_v0  ;;  %v2134_v47 = vadd.f32 %v12061_v37, %v1829_v34  ;;  %v2833_v35 = vsel %vm2415_vm9, %v2832_v7, %v2831_v48  ;;  %v2874_v22 = vrot.slane %v13786_v56, 6  ;;  %6301 = vmatprep.mubr.bf16.mxu0 %v13790_v44  ;;  %5927 = vmatprep.subr.bf16.mxu1 %v10572_v20  ;;  %v10587_v0 = vld [vmem:[#allocation7 + $0x66c] ss:$16 sps:$4 sm:$0xff]   ;;  %v10582_v9 = vld [vmem:[#allocation7 + $0x660] ss:$16 sps:$4 sm:$0xff]  }
 0x382   :  { %v2170_v25 = vadd.f32 %v12061_v37, %v2081_v23  ;;  %v2835_v46 = vsel %vm2418_vm10, %v2834_v49, %v2833_v35  ;;  %v2876_v24 = vrot.slane %v13788_v26, 5  ;;  %v2873_v18 = vsel %vm2412_vm8, %v2872_v50, %v13789_v54  ;;  %6271 = vmatprep.subr.bf16.mxu0 %v10575_v51  ;;  %v10588_v34 = vld [vmem:[#allocation7 + $0x680] ss:$16 sps:$4 sm:$0xff]   ;;  %v10591_v49 = vld [vmem:[#allocation7 + $0x688] ss:$16 sps:$4 sm:$0xff]  }
 0x383   :  { %v2206_v53 = vmax.f32 %v2134_v47, 0.0  ;;  %v2837_v30 = vsel %vm2421_vm11, %v2836_v21, %v2835_v46  ;;  %v2875_v4 = vsel %vm2415_vm9, %v2874_v22, %v2873_v18  ;;  %v2878_v39 = vrot.slane %v13791_v29, 4  ;;  %5928 = vmatpush1.bf16.msra.mxu1 %v10570_v43  ;;  %v10596_v21 = vld [vmem:[#allocation7 + $0x6a4] ss:$16 sps:$4 sm:$0xff]   ;;  %v10599_v8 = vld [vmem:[#allocation7 + $0x6ac] ss:$16 sps:$4 sm:$0xff]  }
 0x384   :  { %v2242_v37 = vmax.f32 %v2170_v25, 0.0  ;;  %v2839_v61 = vsel %vm2424_vm12, %v2838_v19, %v2837_v30  ;;  %v2877_v27 = vsel %vm2418_vm10, %v2876_v24, %v2875_v4  ;;  %v2880_v31 = vrot.slane %v13792_v3, 3  ;;  %6272 = vmatpush1.bf16.msra.mxu0 %v10573_v33  ;;  %5929 = vmatprep.subr.bf16.mxu1 %v10578_v63  ;;  %v10594_v23 = vld [vmem:[#allocation7 + $0x6a0] ss:$16 sps:$4 sm:$0xff]   ;;  %v10597_v48 = vld [vmem:[#allocation7 + $0x6a8] ss:$16 sps:$4 sm:$0xff]  }
 0x385   :  { %v2278_v6 = vpack.c.bf16 %v2206_v53, %v2206_v53  ;;  %v2841_v58 = vsel %vm2427_vm13, %v2840_v52, %v2839_v61  ;;  %v13794_v10 = vunpack.c.l.b16 %v13793_v1  ;;  %v2879_v45 = vsel %vm2421_vm11, %v2878_v39, %v2877_v27  ;;  %v10584_v52 = vld [vmem:[#allocation7 + $0x664] ss:$16 sps:$4 sm:$0xff]   ;;  %6273 = vmatprep.subr.bf16.mxu0 %v10581_v14  ;;  %v10605_v20 = vld [vmem:[#allocation7 + $0x6cc] ss:$16 sps:$4 sm:$0xff]   ;;  %v10600_v47 = vld [vmem:[#allocation7 + $0x6c0] ss:$16 sps:$4 sm:$0xff]  }
 0x386   :  { %v2314_v11 = vpack.c.bf16 %v2242_v37, %v2242_v37  ;;  %v2881_v36 = vsel %vm2424_vm12, %v2880_v31, %v2879_v45  ;;  %v10602_v19 = vld [vmem:[#allocation7 + $0x6c4] ss:$16 sps:$4 sm:$0xff]   ;;  %v10603_v35 = vld [vmem:[#allocation7 + $0x6c8] ss:$16 sps:$4 sm:$0xff]   ;;  %v10611_v50 = vld [vmem:[#allocation7 + $0x6ec] ss:$16 sps:$4 sm:$0xff]  }
 0x387   :  { %v2882_v16 = vrot.slane %v13794_v10, 2  ;;  %v2798_v55 = vunpack.c.l.b16 %v2278_v6  ;;  %5930 = vmatpush1.bf16.msra.mxu1 %v10576_v59  ;;  %v10608_v32 = vld [vmem:[#allocation7 + $0x6e4] ss:$16 sps:$4 sm:$0xff]   ;;  %v10606_v56 = vld [vmem:[#allocation7 + $0x6e0] ss:$16 sps:$4 sm:$0xff]  }
 0x388   :  { %v2801_v41 = vunpack.c.l.b16 %v2314_v11  ;;  %6274 = vmatpush1.bf16.msra.mxu0 %v10579_v28  ;;  %5931 = vmatprep.subr.bf16.mxu1 %v10584_v52  ;;  %v10609_v22 = vld [vmem:[#allocation7 + $0x6e8] ss:$16 sps:$4 sm:$0xff]   ;;  %v10614_v17 = vld [vmem:[#allocation7 + $0x704] ss:$16 sps:$4 sm:$0xff]   ;;  %v10617_v51 = vld [vmem:[#allocation7 + $0x70c] ss:$16 sps:$4 sm:$0xff]  }
 0x389   :  { %v2883_v2 = vsel %vm2427_vm13, %v2882_v16, %v2881_v36  ;;  %v2842_v62 = vrot.slane %v2798_v55, 1  ;;  %6275 = vmatprep.subr.bf16.mxu0 %v10587_v0  ;;  %v10612_v25 = vld [vmem:[#allocation7 + $0x700] ss:$16 sps:$4 sm:$0xff]   ;;  %v10615_v46 = vld [vmem:[#allocation7 + $0x708] ss:$16 sps:$4 sm:$0xff]  }
 0x38a   :  { %v2884_v57 = vrot.slane %v2801_v41, 1  ;;  %v10620_v26 = vld [vmem:[#allocation7 + $0x724] ss:$16 sps:$4 sm:$0xff]   ;;  %v10623_v24 = vld [vmem:[#allocation7 + $0x72c] ss:$16 sps:$4 sm:$0xff]  }
 0x38b   :  { %v2843_v15 = vsel %vm2430_vm14, %v2842_v62, %v2841_v58  ;;  %5932 = vmatpush1.bf16.msra.mxu1 %v10582_v9  ;;  %v10618_v43 = vld [vmem:[#allocation7 + $0x720] ss:$16 sps:$4 sm:$0xff]   ;;  %v10621_v53 = vld [vmem:[#allocation7 + $0x728] ss:$16 sps:$4 sm:$0xff]   ;;  %v10626_v30 = vld [vmem:[#allocation7 + $0x744] ss:$16 sps:$4 sm:$0xff]  }
 0x38c   :  { %v2885_v7 = vsel %vm2430_vm14, %v2884_v57, %v2883_v2  ;;  %6276 = vmatpush1.bf16.msra.mxu0 %v10585_v5  ;;  %5933 = vmatprep.subr.bf16.mxu1 %v10590_v38  ;;  %v10629_v54 = vld [vmem:[#allocation7 + $0x74c] ss:$16 sps:$4 sm:$0xff]   ;;  %v10624_v18 = vld [vmem:[#allocation7 + $0x740] ss:$16 sps:$4 sm:$0xff]   ;;  %v10627_v44 = vld [vmem:[#allocation7 + $0x748] ss:$16 sps:$4 sm:$0xff]  }
 0x38d   :  { %v13315_v60 = vpack.c.b16 %v2885_v7, %v2843_v15  ;;  %6277 = vmatprep.subr.bf16.mxu0 %v10593_v42  ;;  %v10632_v33 = vld [vmem:[#allocation7 + $0x764] ss:$16 sps:$4 sm:$0xff]   ;;  %v10635_v63 = vld [vmem:[#allocation7 + $0x76c] ss:$16 sps:$4 sm:$0xff]   ;;  %v10630_v37 = vld [vmem:[#allocation7 + $0x760] ss:$16 sps:$4 sm:$0xff]  }
 0x38e   :  { %v10633_v61 = vld [vmem:[#allocation7 + $0x768] ss:$16 sps:$4 sm:$0xff]   ;;  %v10638_v4 = vld [vmem:[#allocation7 + $0x784] ss:$16 sps:$4 sm:$0xff]   ;;  %v10641_v29 = vld [vmem:[#allocation7 + $0x78c] ss:$16 sps:$4 sm:$0xff]  }
 0x38f   :  { %5934 = vmatpush1.bf16.msra.mxu1 %v10588_v34  ;;  %v10636_v39 = vld [vmem:[#allocation7 + $0x780] ss:$16 sps:$4 sm:$0xff]   ;;  %v10639_v14 = vld [vmem:[#allocation7 + $0x788] ss:$16 sps:$4 sm:$0xff]   ;;  %v10644_v6 = vld [vmem:[#allocation7 + $0x7a4] ss:$16 sps:$4 sm:$0xff]  }
 0x390   :  { %6278 = vmatpush1.bf16.msra.mxu0 %v10591_v49  ;;  %5935 = vmatprep.subr.bf16.mxu1 %v10596_v21  ;;  %v10647_v58 = vld [vmem:[#allocation7 + $0x7ac] ss:$16 sps:$4 sm:$0xff]   ;;  %v10642_v27 = vld [vmem:[#allocation7 + $0x7a0] ss:$16 sps:$4 sm:$0xff]   ;;  %v10645_v3 = vld [vmem:[#allocation7 + $0x7a8] ss:$16 sps:$4 sm:$0xff]  }
 0x391   :  { %6279 = vmatprep.subr.bf16.mxu0 %v10599_v8  ;;  %v10650_v31 = vld [vmem:[#allocation7 + $0x7c4] ss:$16 sps:$4 sm:$0xff]   ;;  %v10653_v1 = vld [vmem:[#allocation7 + $0x7cc] ss:$16 sps:$4 sm:$0xff]   ;;  %v10648_v10 = vld [vmem:[#allocation7 + $0x7c0] ss:$16 sps:$4 sm:$0xff]  }
 0x392   :  { %v10651_v16 = vld [vmem:[#allocation7 + $0x7c8] ss:$16 sps:$4 sm:$0xff]   ;;  %v10656_v11 = vld [vmem:[#allocation7 + $0x7e4] ss:$16 sps:$4 sm:$0xff]   ;;  %v10659_v45 = vld [vmem:[#allocation7 + $0x7ec] ss:$16 sps:$4 sm:$0xff]  }
 0x393   :  { %5936 = vmatpush1.bf16.msra.mxu1 %v10594_v23  ;;  %v10654_v59 = vld [vmem:[#allocation7 + $0x7e0] ss:$16 sps:$4 sm:$0xff]   ;;  %v10657_v55 = vld [vmem:[#allocation7 + $0x7e8] ss:$16 sps:$4 sm:$0xff]   ;;  %v10662_v36 = vld [vmem:[#allocation7 + $0x804] ss:$16 sps:$4 sm:$0xff]  }
 0x394   :  { %6280 = vmatpush1.bf16.msra.mxu0 %v10597_v48  ;;  %5937 = vmatprep.subr.bf16.mxu1 %v10602_v19  ;;  %v10665_v28 = vld [vmem:[#allocation7 + $0x80c] ss:$16 sps:$4 sm:$0xff]   ;;  %v10660_v52 = vld [vmem:[#allocation7 + $0x800] ss:$16 sps:$4 sm:$0xff]   ;;  %v10663_v41 = vld [vmem:[#allocation7 + $0x808] ss:$16 sps:$4 sm:$0xff]  }
 0x395   :  { %6281 = vmatprep.subr.bf16.mxu0 %v10605_v20  ;;  %v10668_v2 = vld [vmem:[#allocation7 + $0x824] ss:$16 sps:$4 sm:$0xff]   ;;  %v13795_v0 = vld [vmem:[#allocation42_spill] sm:$0xff]  ;;  %v10669_v15 = vld [vmem:[#allocation7 + $0x828] ss:$16 sps:$4 sm:$0xff]  }
 0x396   :  { %v10671_v62 = vld [vmem:[#allocation7 + $0x82c] ss:$16 sps:$4 sm:$0xff]   ;;  %v10666_v57 = vld [vmem:[#allocation7 + $0x820] ss:$16 sps:$4 sm:$0xff]   ;;  %v10674_v5 = vld [vmem:[#allocation7 + $0x844] ss:$16 sps:$4 sm:$0xff]  }
 0x397   :  { %5938 = vmatpush1.bf16.msra.mxu1 %v10600_v47  ;;  %v13796_v9 = vld [vmem:[#allocation46_spill] sm:$0xff]  ;;  %v10675_v42 = vld [vmem:[#allocation7 + $0x848] ss:$16 sps:$4 sm:$0xff]   ;;  %v10680_v34 = vld [vmem:[#allocation7 + $0x864] ss:$16 sps:$4 sm:$0xff]  }
 0x398   :  { %6282 = vmatpush1.bf16.msra.mxu0 %v10603_v35  ;;  %5939 = vmatprep.subr.bf16.mxu1 %v10608_v32  ;;  %v10677_v38 = vld [vmem:[#allocation7 + $0x84c] ss:$16 sps:$4 sm:$0xff]   ;;  %v10672_v7 = vld [vmem:[#allocation7 + $0x840] ss:$16 sps:$4 sm:$0xff]   ;;  %v10681_v8 = vld [vmem:[#allocation7 + $0x868] ss:$16 sps:$4 sm:$0xff]  }
 0x399   :  { %6283 = vmatprep.subr.bf16.mxu0 %v10611_v50  ;;  %v10683_v49 = vld [vmem:[#allocation7 + $0x86c] ss:$16 sps:$4 sm:$0xff]   ;;  %v10678_v21 = vld [vmem:[#allocation7 + $0x860] ss:$16 sps:$4 sm:$0xff]   ;;  %v10686_v23 = vld [vmem:[#allocation7 + $0x884] ss:$16 sps:$4 sm:$0xff]  }
 0x39a   :  { %v10689_v48 = vld [vmem:[#allocation7 + $0x88c] ss:$16 sps:$4 sm:$0xff]   ;;  %v10684_v19 = vld [vmem:[#allocation7 + $0x880] ss:$16 sps:$4 sm:$0xff]   ;;  %v10687_v20 = vld [vmem:[#allocation7 + $0x888] ss:$16 sps:$4 sm:$0xff]  }
 0x39b   :  { %5940 = vmatpush1.bf16.msra.mxu1 %v10606_v56  ;;  %v10692_v47 = vld [vmem:[#allocation7 + $0x8a4] ss:$16 sps:$4 sm:$0xff]   ;;  %v10695_v35 = vld [vmem:[#allocation7 + $0x8ac] ss:$16 sps:$4 sm:$0xff]   ;;  %v10690_v32 = vld [vmem:[#allocation7 + $0x8a0] ss:$16 sps:$4 sm:$0xff]  }
 0x39c   :  { %6284 = vmatpush1.bf16.msra.mxu0 %v10609_v22  ;;  %5941 = vmatprep.subr.bf16.mxu1 %v10614_v17  ;;  %v10693_v50 = vld [vmem:[#allocation7 + $0x8a8] ss:$16 sps:$4 sm:$0xff]   ;;  %v10698_v56 = vld [vmem:[#allocation7 + $0x8c4] ss:$16 sps:$4 sm:$0xff]   ;;  %v10701_v22 = vld [vmem:[#allocation7 + $0x8cc] ss:$16 sps:$4 sm:$0xff]  }
 0x39d   :  { %6285 = vmatprep.subr.bf16.mxu0 %v10617_v51  ;;  %v10696_v17 = vld [vmem:[#allocation7 + $0x8c0] ss:$16 sps:$4 sm:$0xff]   ;;  %v10699_v51 = vld [vmem:[#allocation7 + $0x8c8] ss:$16 sps:$4 sm:$0xff]  }
 0x39f   :  { %5942 = vmatpush1.bf16.msra.mxu1 %v10612_v25  ;;  %v10704_v25 = vld [vmem:[#allocation7 + $0x8e4] ss:$16 sps:$4 sm:$0xff]  }
 0x3a0   :  { %6286 = vmatpush1.bf16.msra.mxu0 %v10615_v46  ;;  %5943 = vmatprep.subr.bf16.mxu1 %v10620_v26  ;;  %v10707_v46 = vld [vmem:[#allocation7 + $0x8ec] ss:$16 sps:$4 sm:$0xff]   ;;  %v10702_v26 = vld [vmem:[#allocation7 + $0x8e0] ss:$16 sps:$4 sm:$0xff]  }
 0x3a1   :  { %6287 = vmatprep.subr.bf16.mxu0 %v10623_v24  ;;  %v10705_v24 = vld [vmem:[#allocation7 + $0x8e8] ss:$16 sps:$4 sm:$0xff]  }
 0x3a3   :  { %5944 = vmatpush1.bf16.msra.mxu1 %v10618_v43  ;;  %v10710_v43 = vld [vmem:[#allocation7 + $0x904] ss:$16 sps:$4 sm:$0xff]  }
 0x3a4   :  { %6288 = vmatpush1.bf16.msra.mxu0 %v10621_v53  ;;  %5945 = vmatprep.subr.bf16.mxu1 %v10626_v30  ;;  %v10713_v53 = vld [vmem:[#allocation7 + $0x90c] ss:$16 sps:$4 sm:$0xff]   ;;  %v10708_v30 = vld [vmem:[#allocation7 + $0x900] ss:$16 sps:$4 sm:$0xff]  }
 0x3a5   :  { %6289 = vmatprep.subr.bf16.mxu0 %v10629_v54  ;;  %v10711_v54 = vld [vmem:[#allocation7 + $0x908] ss:$16 sps:$4 sm:$0xff]  }
 0x3a7   :  { %5946 = vmatpush1.bf16.msra.mxu1 %v10624_v18  ;;  %v10716_v18 = vld [vmem:[#allocation7 + $0x924] ss:$16 sps:$4 sm:$0xff]  }
 0x3a8   :  { %6290 = vmatpush1.bf16.msra.mxu0 %v10627_v44  ;;  %5947 = vmatprep.subr.bf16.mxu1 %v10632_v33  ;;  %v10719_v44 = vld [vmem:[#allocation7 + $0x92c] ss:$16 sps:$4 sm:$0xff]   ;;  %v10714_v33 = vld [vmem:[#allocation7 + $0x920] ss:$16 sps:$4 sm:$0xff]  }
 0x3a9   :  { %6291 = vmatprep.subr.bf16.mxu0 %v10635_v63  ;;  %v10717_v63 = vld [vmem:[#allocation7 + $0x928] ss:$16 sps:$4 sm:$0xff]  }
 0x3ab   :  { %5948 = vmatpush1.bf16.msra.mxu1 %v10630_v37  ;;  %v10722_v37 = vld [vmem:[#allocation7 + $0x944] ss:$16 sps:$4 sm:$0xff]  }
 0x3ac   :  { %6292 = vmatpush1.bf16.msra.mxu0 %v10633_v61  ;;  %5949 = vmatprep.subr.bf16.mxu1 %v10638_v4  ;;  %v10725_v61 = vld [vmem:[#allocation7 + $0x94c] ss:$16 sps:$4 sm:$0xff]   ;;  %v10720_v4 = vld [vmem:[#allocation7 + $0x940] ss:$16 sps:$4 sm:$0xff]  }
 0x3ad   :  { %6293 = vmatprep.subr.bf16.mxu0 %v10641_v29  ;;  %v10723_v29 = vld [vmem:[#allocation7 + $0x948] ss:$16 sps:$4 sm:$0xff]  }
 0x3af   :  { %5950 = vmatpush1.bf16.msra.mxu1 %v10636_v39  ;;  %v10728_v39 = vld [vmem:[#allocation7 + $0x964] ss:$16 sps:$4 sm:$0xff]  }
 0x3b0   :  { %6294 = vmatpush1.bf16.msra.mxu0 %v10639_v14  ;;  %5951 = vmatprep.subr.bf16.mxu1 %v10644_v6  ;;  %v10731_v14 = vld [vmem:[#allocation7 + $0x96c] ss:$16 sps:$4 sm:$0xff]   ;;  %v10726_v6 = vld [vmem:[#allocation7 + $0x960] ss:$16 sps:$4 sm:$0xff]  }
 0x3b1   :  { %6295 = vmatprep.subr.bf16.mxu0 %v10647_v58  ;;  %v10729_v58 = vld [vmem:[#allocation7 + $0x968] ss:$16 sps:$4 sm:$0xff]  }
 0x3b3   :  { %5952 = vmatpush1.bf16.msra.mxu1 %v10642_v27  ;;  %v10734_v27 = vld [vmem:[#allocation7 + $0x984] ss:$16 sps:$4 sm:$0xff]  }
 0x3b4   :  { %6296 = vmatpush1.bf16.msra.mxu0 %v10645_v3  ;;  %5953 = vmatprep.subr.bf16.mxu1 %v10650_v31  ;;  %v10737_v3 = vld [vmem:[#allocation7 + $0x98c] ss:$16 sps:$4 sm:$0xff]   ;;  %v10732_v31 = vld [vmem:[#allocation7 + $0x980] ss:$16 sps:$4 sm:$0xff]  }
 0x3b5   :  { %6297 = vmatprep.subr.bf16.mxu0 %v10653_v1  ;;  %v10735_v1 = vld [vmem:[#allocation7 + $0x988] ss:$16 sps:$4 sm:$0xff]  }
 0x3b7   :  { %5954 = vmatpush1.bf16.msra.mxu1 %v10648_v10  ;;  %v10740_v10 = vld [vmem:[#allocation7 + $0x9a4] ss:$16 sps:$4 sm:$0xff]  }
 0x3b8   :  { %6298 = vmatpush1.bf16.msra.mxu0 %v10651_v16  ;;  %5955 = vmatprep.subr.bf16.mxu1 %v10656_v11  ;;  %v10743_v16 = vld [vmem:[#allocation7 + $0x9ac] ss:$16 sps:$4 sm:$0xff]   ;;  %v10738_v11 = vld [vmem:[#allocation7 + $0x9a0] ss:$16 sps:$4 sm:$0xff]  }
 0x3b9   :  { %6299 = vmatprep.subr.bf16.mxu0 %v10659_v45  ;;  %v10741_v45 = vld [vmem:[#allocation7 + $0x9a8] ss:$16 sps:$4 sm:$0xff]  }
 0x3bb   :  { %5956 = vmatpush1.bf16.msra.mxu1 %v10654_v59  ;;  %v10746_v59 = vld [vmem:[#allocation7 + $0x9c4] ss:$16 sps:$4 sm:$0xff]  }
 0x3bc   :  { %6300 = vmatpush1.bf16.msra.mxu0 %v10657_v55  ;;  %5968 = vmatprep.subr.bf16.mxu1 %v10662_v36  ;;  %v10749_v55 = vld [vmem:[#allocation7 + $0x9cc] ss:$16 sps:$4 sm:$0xff]   ;;  %v10744_v36 = vld [vmem:[#allocation7 + $0x9c0] ss:$16 sps:$4 sm:$0xff]  }
 0x3bd   :  { %6312 = vmatprep.subr.bf16.mxu0 %v10665_v28  ;;  %v10747_v28 = vld [vmem:[#allocation7 + $0x9c8] ss:$16 sps:$4 sm:$0xff]  }
 0x3be   :  { %5958 = vmatmul.mubr.bf16.vlgmr.msra.gmra.mrb[12].mxu1 %v13795_v0 }
 0x3bf   :  { %6302 = vmatmul.mubr.bf16.vlgmr.msra.gmra.mrb[24].mxu0 %v13795_v0  ;;  %5969 = vmatpush1.bf16.msra.mxu1 %v10660_v52  ;;  %v10752_v52 = vld [vmem:[#allocation7 + $0x9e4] ss:$16 sps:$4 sm:$0xff]   ;;  %v10753_v0 = vld [vmem:[#allocation7 + $0x9e8] ss:$16 sps:$4 sm:$0xff]  }
 0x3c0   :  { %6000 = vmatprep.mubr.bf16.mxu1 %v13796_v9  ;;  %6313 = vmatpush1.bf16.msra.mxu0 %v10663_v41  ;;  %v10755_v41 = vld [vmem:[#allocation7 + $0x9ec] ss:$16 sps:$4 sm:$0xff]  }
 0x3c1   :  { %6344 = vmatprep.mubr.bf16.mxu0 %v13796_v9  ;;  %5970 = vmatprep.subr.bf16.mxu1 %v10668_v2  ;;  %v10750_v2 = vld [vmem:[#allocation7 + $0x9e0] ss:$16 sps:$4 sm:$0xff]  }
 0x3c2   :  { %6314 = vmatprep.subr.bf16.mxu0 %v10671_v62  ;;  %v10758_v62 = vld [vmem:[#allocation7 + $0xa04] ss:$16 sps:$4 sm:$0xff]   ;;  %v10756_v9 = vld [vmem:[#allocation7 + $0xa00] ss:$16 sps:$4 sm:$0xff]  }
 0x3c3   :  { %5971 = vmatpush1.bf16.msra.mxu1 %v10666_v57  ;;  %v10761_v57 = vld [vmem:[#allocation7 + $0xa0c] ss:$16 sps:$4 sm:$0xff]  }
 0x3c4   :  { %6315 = vmatpush1.bf16.msra.mxu0 %v10669_v15  ;;  %5972 = vmatprep.subr.bf16.mxu1 %v10674_v5  ;;  %v10759_v15 = vld [vmem:[#allocation7 + $0xa08] ss:$16 sps:$4 sm:$0xff]   ;;  %v10764_v5 = vld [vmem:[#allocation7 + $0xa24] ss:$16 sps:$4 sm:$0xff]  }
 0x3c5   :  { %6316 = vmatprep.subr.bf16.mxu0 %v10677_v38  ;;  %v13797_v38 = vld [vmem:[#allocation51_spill] sm:$0xff] }
 0x3c7   :  { %5973 = vmatpush1.bf16.msra.mxu1 %v10672_v7  ;;  %v10767_v7 = vld [vmem:[#allocation7 + $0xa2c] ss:$16 sps:$4 sm:$0xff]  }
 0x3c8   :  { %6317 = vmatpush1.bf16.msra.mxu0 %v10675_v42  ;;  %5974 = vmatprep.subr.bf16.mxu1 %v10680_v34  ;;  %v10762_v42 = vld [vmem:[#allocation7 + $0xa20] ss:$16 sps:$4 sm:$0xff]   ;;  %v13798_v34 = vld [vmem:[#allocation57_spill] sm:$0xff] }
 0x3c9   :  { %6318 = vmatprep.subr.bf16.mxu0 %v10683_v49  ;;  %v10765_v49 = vld [vmem:[#allocation7 + $0xa28] ss:$16 sps:$4 sm:$0xff]  }
 0x3cb   :  { %5975 = vmatpush1.bf16.msra.mxu1 %v10678_v21  ;;  %v10770_v21 = vld [vmem:[#allocation7 + $0xa44] ss:$16 sps:$4 sm:$0xff]  }
 0x3cc   :  { %6319 = vmatpush1.bf16.msra.mxu0 %v10681_v8  ;;  %5976 = vmatprep.subr.bf16.mxu1 %v10686_v23  ;;  %v10773_v8 = vld [vmem:[#allocation7 + $0xa4c] ss:$16 sps:$4 sm:$0xff]   ;;  %v10768_v23 = vld [vmem:[#allocation7 + $0xa40] ss:$16 sps:$4 sm:$0xff]  }
 0x3cd   :  { %6320 = vmatprep.subr.bf16.mxu0 %v10689_v48  ;;  %v10771_v48 = vld [vmem:[#allocation7 + $0xa48] ss:$16 sps:$4 sm:$0xff]  }
 0x3cf   :  { %5977 = vmatpush1.bf16.msra.mxu1 %v10684_v19  ;;  %v10776_v19 = vld [vmem:[#allocation7 + $0xa64] ss:$16 sps:$4 sm:$0xff]  }
 0x3d0   :  { %6321 = vmatpush1.bf16.msra.mxu0 %v10687_v20  ;;  %5978 = vmatprep.subr.bf16.mxu1 %v10692_v47  ;;  %v10779_v20 = vld [vmem:[#allocation7 + $0xa6c] ss:$16 sps:$4 sm:$0xff]   ;;  %v10774_v47 = vld [vmem:[#allocation7 + $0xa60] ss:$16 sps:$4 sm:$0xff]  }
 0x3d1   :  { %6322 = vmatprep.subr.bf16.mxu0 %v10695_v35  ;;  %v10777_v35 = vld [vmem:[#allocation7 + $0xa68] ss:$16 sps:$4 sm:$0xff]  }
 0x3d3   :  { %5979 = vmatpush1.bf16.msra.mxu1 %v10690_v32  ;;  %v10782_v32 = vld [vmem:[#allocation7 + $0xa84] ss:$16 sps:$4 sm:$0xff]  }
 0x3d4   :  { %6323 = vmatpush1.bf16.msra.mxu0 %v10693_v50  ;;  %5980 = vmatprep.subr.bf16.mxu1 %v10698_v56  ;;  %v10785_v50 = vld [vmem:[#allocation7 + $0xa8c] ss:$16 sps:$4 sm:$0xff]   ;;  %v10780_v56 = vld [vmem:[#allocation7 + $0xa80] ss:$16 sps:$4 sm:$0xff]  }
 0x3d5   :  { %6324 = vmatprep.subr.bf16.mxu0 %v10701_v22  ;;  %v10783_v22 = vld [vmem:[#allocation7 + $0xa88] ss:$16 sps:$4 sm:$0xff]  }
 0x3d7   :  { %5981 = vmatpush1.bf16.msra.mxu1 %v10696_v17  ;;  %v10788_v17 = vld [vmem:[#allocation7 + $0xaa4] ss:$16 sps:$4 sm:$0xff]  }
 0x3d8   :  { %6325 = vmatpush1.bf16.msra.mxu0 %v10699_v51  ;;  %5982 = vmatprep.subr.bf16.mxu1 %v10704_v25  ;;  %v10791_v51 = vld [vmem:[#allocation7 + $0xaac] ss:$16 sps:$4 sm:$0xff]   ;;  %v10786_v25 = vld [vmem:[#allocation7 + $0xaa0] ss:$16 sps:$4 sm:$0xff]  }
 0x3d9   :  { %6326 = vmatprep.subr.bf16.mxu0 %v10707_v46  ;;  %v10789_v46 = vld [vmem:[#allocation7 + $0xaa8] ss:$16 sps:$4 sm:$0xff]  }
 0x3db   :  { %5983 = vmatpush1.bf16.msra.mxu1 %v10702_v26  ;;  %v10794_v26 = vld [vmem:[#allocation7 + $0xac4] ss:$16 sps:$4 sm:$0xff]  }
 0x3dc   :  { %6327 = vmatpush1.bf16.msra.mxu0 %v10705_v24  ;;  %5984 = vmatprep.subr.bf16.mxu1 %v10710_v43  ;;  %v10797_v24 = vld [vmem:[#allocation7 + $0xacc] ss:$16 sps:$4 sm:$0xff]   ;;  %v10792_v43 = vld [vmem:[#allocation7 + $0xac0] ss:$16 sps:$4 sm:$0xff]  }
 0x3dd   :  { %6328 = vmatprep.subr.bf16.mxu0 %v10713_v53  ;;  %v10795_v53 = vld [vmem:[#allocation7 + $0xac8] ss:$16 sps:$4 sm:$0xff]  }
 0x3df   :  { %5985 = vmatpush1.bf16.msra.mxu1 %v10708_v30  ;;  %v10800_v30 = vld [vmem:[#allocation7 + $0xae4] ss:$16 sps:$4 sm:$0xff]  }
 0x3e0   :  { %6329 = vmatpush1.bf16.msra.mxu0 %v10711_v54  ;;  %5986 = vmatprep.subr.bf16.mxu1 %v10716_v18  ;;  %v10803_v54 = vld [vmem:[#allocation7 + $0xaec] ss:$16 sps:$4 sm:$0xff]   ;;  %v10798_v18 = vld [vmem:[#allocation7 + $0xae0] ss:$16 sps:$4 sm:$0xff]  }
 0x3e1   :  { %6330 = vmatprep.subr.bf16.mxu0 %v10719_v44  ;;  %v10801_v44 = vld [vmem:[#allocation7 + $0xae8] ss:$16 sps:$4 sm:$0xff]  }
 0x3e3   :  { %5987 = vmatpush1.bf16.msra.mxu1 %v10714_v33  ;;  %v10806_v33 = vld [vmem:[#allocation7 + $0xb04] ss:$16 sps:$4 sm:$0xff]  }
 0x3e4   :  { %6331 = vmatpush1.bf16.msra.mxu0 %v10717_v63  ;;  %5988 = vmatprep.subr.bf16.mxu1 %v10722_v37  ;;  %v10809_v63 = vld [vmem:[#allocation7 + $0xb0c] ss:$16 sps:$4 sm:$0xff]   ;;  %v10804_v37 = vld [vmem:[#allocation7 + $0xb00] ss:$16 sps:$4 sm:$0xff]  }
 0x3e5   :  { %6332 = vmatprep.subr.bf16.mxu0 %v10725_v61  ;;  %v10807_v61 = vld [vmem:[#allocation7 + $0xb08] ss:$16 sps:$4 sm:$0xff]  }
 0x3e7   :  { %5989 = vmatpush1.bf16.msra.mxu1 %v10720_v4  ;;  %v10812_v4 = vld [vmem:[#allocation7 + $0xb24] ss:$16 sps:$4 sm:$0xff]  }
 0x3e8   :  { %6333 = vmatpush1.bf16.msra.mxu0 %v10723_v29  ;;  %5990 = vmatprep.subr.bf16.mxu1 %v10728_v39  ;;  %v10815_v29 = vld [vmem:[#allocation7 + $0xb2c] ss:$16 sps:$4 sm:$0xff]   ;;  %v10810_v39 = vld [vmem:[#allocation7 + $0xb20] ss:$16 sps:$4 sm:$0xff]  }
 0x3e9   :  { %6334 = vmatprep.subr.bf16.mxu0 %v10731_v14  ;;  %v10813_v14 = vld [vmem:[#allocation7 + $0xb28] ss:$16 sps:$4 sm:$0xff]  }
 0x3eb   :  { %5991 = vmatpush1.bf16.msra.mxu1 %v10726_v6  ;;  %v10818_v6 = vld [vmem:[#allocation7 + $0xb44] ss:$16 sps:$4 sm:$0xff]  }
 0x3ec   :  { %6335 = vmatpush1.bf16.msra.mxu0 %v10729_v58  ;;  %5992 = vmatprep.subr.bf16.mxu1 %v10734_v27  ;;  %v10821_v58 = vld [vmem:[#allocation7 + $0xb4c] ss:$16 sps:$4 sm:$0xff]   ;;  %v10816_v27 = vld [vmem:[#allocation7 + $0xb40] ss:$16 sps:$4 sm:$0xff]  }
 0x3ed   :  { %6336 = vmatprep.subr.bf16.mxu0 %v10737_v3  ;;  %v10819_v3 = vld [vmem:[#allocation7 + $0xb48] ss:$16 sps:$4 sm:$0xff]  }
 0x3ef   :  { %5993 = vmatpush1.bf16.msra.mxu1 %v10732_v31  ;;  %v10824_v31 = vld [vmem:[#allocation7 + $0xb64] ss:$16 sps:$4 sm:$0xff]  }
 0x3f0   :  { %6337 = vmatpush1.bf16.msra.mxu0 %v10735_v1  ;;  %5994 = vmatprep.subr.bf16.mxu1 %v10740_v10  ;;  %v10827_v1 = vld [vmem:[#allocation7 + $0xb6c] ss:$16 sps:$4 sm:$0xff]   ;;  %v10822_v10 = vld [vmem:[#allocation7 + $0xb60] ss:$16 sps:$4 sm:$0xff]  }
 0x3f1   :  { %6338 = vmatprep.subr.bf16.mxu0 %v10743_v16  ;;  %v10825_v16 = vld [vmem:[#allocation7 + $0xb68] ss:$16 sps:$4 sm:$0xff]  }
 0x3f3   :  { %5995 = vmatpush1.bf16.msra.mxu1 %v10738_v11  ;;  %v10830_v11 = vld [vmem:[#allocation7 + $0xb84] ss:$16 sps:$4 sm:$0xff]  }
 0x3f4   :  { %6339 = vmatpush1.bf16.msra.mxu0 %v10741_v45  ;;  %5996 = vmatprep.subr.bf16.mxu1 %v10746_v59  ;;  %v10833_v45 = vld [vmem:[#allocation7 + $0xb8c] ss:$16 sps:$4 sm:$0xff]   ;;  %v10828_v59 = vld [vmem:[#allocation7 + $0xb80] ss:$16 sps:$4 sm:$0xff]  }
 0x3f5   :  { %6340 = vmatprep.subr.bf16.mxu0 %v10749_v55  ;;  %v10831_v55 = vld [vmem:[#allocation7 + $0xb88] ss:$16 sps:$4 sm:$0xff]  }
 0x3f7   :  { %5997 = vmatpush1.bf16.msra.mxu1 %v10744_v36  ;;  %v10836_v36 = vld [vmem:[#allocation7 + $0xba4] ss:$16 sps:$4 sm:$0xff]  }
 0x3f8   :  { %6341 = vmatpush1.bf16.msra.mxu0 %v10747_v28  ;;  %5998 = vmatprep.subr.bf16.mxu1 %v10752_v52  ;;  %v10839_v28 = vld [vmem:[#allocation7 + $0xbac] ss:$16 sps:$4 sm:$0xff]   ;;  %v10834_v52 = vld [vmem:[#allocation7 + $0xba0] ss:$16 sps:$4 sm:$0xff]  }
 0x3f9   :  { %6342 = vmatprep.subr.bf16.mxu0 %v10755_v41  ;;  %v10837_v41 = vld [vmem:[#allocation7 + $0xba8] ss:$16 sps:$4 sm:$0xff]  }
 0x3fb   :  { %5999 = vmatpush1.bf16.msra.mxu1 %v10750_v2  ;;  %v10842_v2 = vld [vmem:[#allocation7 + $0xbc4] ss:$16 sps:$4 sm:$0xff]  }
 0x3fc   :  { %6343 = vmatpush1.bf16.msra.mxu0 %v10753_v0  ;;  %6011 = vmatprep.subr.bf16.mxu1 %v10758_v62  ;;  %v10845_v0 = vld [vmem:[#allocation7 + $0xbcc] ss:$16 sps:$4 sm:$0xff]   ;;  %v10840_v62 = vld [vmem:[#allocation7 + $0xbc0] ss:$16 sps:$4 sm:$0xff]  }
 0x3fd   :  { %6355 = vmatprep.subr.bf16.mxu0 %v10761_v57  ;;  %v10843_v57 = vld [vmem:[#allocation7 + $0xbc8] ss:$16 sps:$4 sm:$0xff]  }
 0x3fe   :  { %6001 = vmatmul.mubr.bf16.vlgmr.msra.gmra.mrb[12].mxu1 %v13797_v38 }
 0x3ff   :  { %6345 = vmatmul.mubr.bf16.vlgmr.msra.gmra.mrb[24].mxu0 %v13797_v38  ;;  %6012 = vmatpush1.bf16.msra.mxu1 %v10756_v9  ;;  %v10848_v9 = vld [vmem:[#allocation7 + $0xbe4] ss:$16 sps:$4 sm:$0xff]   ;;  %v10849_v38 = vld [vmem:[#allocation7 + $0xbe8] ss:$16 sps:$4 sm:$0xff]  }
 0x400   :  { %6043 = vmatprep.mubr.bf16.mxu1 %v13798_v34  ;;  %6356 = vmatpush1.bf16.msra.mxu0 %v10759_v15  ;;  %v10851_v15 = vld [vmem:[#allocation7 + $0xbec] ss:$16 sps:$4 sm:$0xff]  }
 0x401   :  { %6387 = vmatprep.mubr.bf16.mxu0 %v13798_v34  ;;  %6013 = vmatprep.subr.bf16.mxu1 %v10764_v5  ;;  %v10846_v5 = vld [vmem:[#allocation7 + $0xbe0] ss:$16 sps:$4 sm:$0xff]  }
 0x402   :  { %6357 = vmatprep.subr.bf16.mxu0 %v10767_v7  ;;  %v10854_v7 = vld [vmem:[#allocation7 + $0xc04] ss:$16 sps:$4 sm:$0xff]   ;;  %v10852_v34 = vld [vmem:[#allocation7 + $0xc00] ss:$16 sps:$4 sm:$0xff]  }
 0x403   :  { %6014 = vmatpush1.bf16.msra.mxu1 %v10762_v42  ;;  %v10857_v42 = vld [vmem:[#allocation7 + $0xc0c] ss:$16 sps:$4 sm:$0xff]  }
 0x404   :  { %6358 = vmatpush1.bf16.msra.mxu0 %v10765_v49  ;;  %6015 = vmatprep.subr.bf16.mxu1 %v10770_v21  ;;  %v10855_v49 = vld [vmem:[#allocation7 + $0xc08] ss:$16 sps:$4 sm:$0xff]   ;;  %v10860_v21 = vld [vmem:[#allocation7 + $0xc24] ss:$16 sps:$4 sm:$0xff]  }
 0x405   :  { %6359 = vmatprep.subr.bf16.mxu0 %v10773_v8  ;;  %v10863_v8 = vld [vmem:[#allocation7 + $0xc2c] ss:$16 sps:$4 sm:$0xff]  }
 0x407   :  { %6016 = vmatpush1.bf16.msra.mxu1 %v10768_v23  ;;  %v10858_v23 = vld [vmem:[#allocation7 + $0xc20] ss:$16 sps:$4 sm:$0xff]  }
 0x408   :  { %6360 = vmatpush1.bf16.msra.mxu0 %v10771_v48  ;;  %6017 = vmatprep.subr.bf16.mxu1 %v10776_v19  ;;  %v10861_v48 = vld [vmem:[#allocation7 + $0xc28] ss:$16 sps:$4 sm:$0xff]   ;;  %v10866_v19 = vld [vmem:[#allocation7 + $0xc44] ss:$16 sps:$4 sm:$0xff]  }
 0x409   :  { %6361 = vmatprep.subr.bf16.mxu0 %v10779_v20  ;;  %v10869_v20 = vld [vmem:[#allocation7 + $0xc4c] ss:$16 sps:$4 sm:$0xff]  }
 0x40b   :  { %6018 = vmatpush1.bf16.msra.mxu1 %v10774_v47  ;;  %v10864_v47 = vld [vmem:[#allocation7 + $0xc40] ss:$16 sps:$4 sm:$0xff]  }
 0x40c   :  { %6362 = vmatpush1.bf16.msra.mxu0 %v10777_v35  ;;  %6019 = vmatprep.subr.bf16.mxu1 %v10782_v32  ;;  %v10867_v35 = vld [vmem:[#allocation7 + $0xc48] ss:$16 sps:$4 sm:$0xff]   ;;  %v10872_v32 = vld [vmem:[#allocation7 + $0xc64] ss:$16 sps:$4 sm:$0xff]  }
 0x40d   :  { %6363 = vmatprep.subr.bf16.mxu0 %v10785_v50  ;;  %v10870_v50 = vld [vmem:[#allocation7 + $0xc60] ss:$16 sps:$4 sm:$0xff]  }
 0x40f   :  { %6020 = vmatpush1.bf16.msra.mxu1 %v10780_v56  ;;  %v10873_v56 = vld [vmem:[#allocation7 + $0xc68] ss:$16 sps:$4 sm:$0xff]  }
 0x410   :  { %6364 = vmatpush1.bf16.msra.mxu0 %v10783_v22  ;;  %6021 = vmatprep.subr.bf16.mxu1 %v10788_v17  ;;  %v10878_v22 = vld [vmem:[#allocation7 + $0xc84] ss:$16 sps:$4 sm:$0xff]   ;;  %v10881_v17 = vld [vmem:[#allocation7 + $0xc8c] ss:$16 sps:$4 sm:$0xff]  }
 0x411   :  { %6365 = vmatprep.subr.bf16.mxu0 %v10791_v51  ;;  %v10879_v51 = vld [vmem:[#allocation7 + $0xc88] ss:$16 sps:$4 sm:$0xff]  }
 0x413   :  { %6022 = vmatpush1.bf16.msra.mxu1 %v10786_v25  ;;  %v10884_v25 = vld [vmem:[#allocation7 + $0xca4] ss:$16 sps:$4 sm:$0xff]  }
 0x414   :  { %6366 = vmatpush1.bf16.msra.mxu0 %v10789_v46  ;;  %6023 = vmatprep.subr.bf16.mxu1 %v10794_v26  ;;  %v10887_v46 = vld [vmem:[#allocation7 + $0xcac] ss:$16 sps:$4 sm:$0xff]   ;;  %v10882_v26 = vld [vmem:[#allocation7 + $0xca0] ss:$16 sps:$4 sm:$0xff]  }
 0x415   :  { %6367 = vmatprep.subr.bf16.mxu0 %v10797_v24  ;;  %v10885_v24 = vld [vmem:[#allocation7 + $0xca8] ss:$16 sps:$4 sm:$0xff]  }
 0x417   :  { %6024 = vmatpush1.bf16.msra.mxu1 %v10792_v43  ;;  %v10890_v43 = vld [vmem:[#allocation7 + $0xcc4] ss:$16 sps:$4 sm:$0xff]  }
 0x418   :  { %6368 = vmatpush1.bf16.msra.mxu0 %v10795_v53  ;;  %6025 = vmatprep.subr.bf16.mxu1 %v10800_v30  ;;  %v10893_v53 = vld [vmem:[#allocation7 + $0xccc] ss:$16 sps:$4 sm:$0xff]   ;;  %v10888_v30 = vld [vmem:[#allocation7 + $0xcc0] ss:$16 sps:$4 sm:$0xff]  }
 0x419   :  { %6369 = vmatprep.subr.bf16.mxu0 %v10803_v54  ;;  %v10891_v54 = vld [vmem:[#allocation7 + $0xcc8] ss:$16 sps:$4 sm:$0xff]  }
 0x41b   :  { %6026 = vmatpush1.bf16.msra.mxu1 %v10798_v18  ;;  %v10896_v18 = vld [vmem:[#allocation7 + $0xce4] ss:$16 sps:$4 sm:$0xff]  }
 0x41c   :  { %6370 = vmatpush1.bf16.msra.mxu0 %v10801_v44  ;;  %6027 = vmatprep.subr.bf16.mxu1 %v10806_v33  ;;  %v10899_v44 = vld [vmem:[#allocation7 + $0xcec] ss:$16 sps:$4 sm:$0xff]   ;;  %v10894_v33 = vld [vmem:[#allocation7 + $0xce0] ss:$16 sps:$4 sm:$0xff]  }
 0x41d   :  { %6371 = vmatprep.subr.bf16.mxu0 %v10809_v63  ;;  %v10897_v63 = vld [vmem:[#allocation7 + $0xce8] ss:$16 sps:$4 sm:$0xff]  }
 0x41f   :  { %6028 = vmatpush1.bf16.msra.mxu1 %v10804_v37  ;;  %v10902_v37 = vld [vmem:[#allocation7 + $0xd04] ss:$16 sps:$4 sm:$0xff]  }
 0x420   :  { %6372 = vmatpush1.bf16.msra.mxu0 %v10807_v61  ;;  %6029 = vmatprep.subr.bf16.mxu1 %v10812_v4  ;;  %v10905_v61 = vld [vmem:[#allocation7 + $0xd0c] ss:$16 sps:$4 sm:$0xff]   ;;  %v10900_v4 = vld [vmem:[#allocation7 + $0xd00] ss:$16 sps:$4 sm:$0xff]  }
 0x421   :  { %6373 = vmatprep.subr.bf16.mxu0 %v10815_v29  ;;  %v10903_v29 = vld [vmem:[#allocation7 + $0xd08] ss:$16 sps:$4 sm:$0xff]  }
 0x423   :  { %6030 = vmatpush1.bf16.msra.mxu1 %v10810_v39  ;;  %v10908_v39 = vld [vmem:[#allocation7 + $0xd24] ss:$16 sps:$4 sm:$0xff]  }
 0x424   :  { %6374 = vmatpush1.bf16.msra.mxu0 %v10813_v14  ;;  %6031 = vmatprep.subr.bf16.mxu1 %v10818_v6  ;;  %v10911_v14 = vld [vmem:[#allocation7 + $0xd2c] ss:$16 sps:$4 sm:$0xff]   ;;  %v10906_v6 = vld [vmem:[#allocation7 + $0xd20] ss:$16 sps:$4 sm:$0xff]  }
 0x425   :  { %6375 = vmatprep.subr.bf16.mxu0 %v10821_v58  ;;  %v10909_v58 = vld [vmem:[#allocation7 + $0xd28] ss:$16 sps:$4 sm:$0xff]  }
 0x427   :  { %6032 = vmatpush1.bf16.msra.mxu1 %v10816_v27  ;;  %v10914_v27 = vld [vmem:[#allocation7 + $0xd44] ss:$16 sps:$4 sm:$0xff]  }
 0x428   :  { %6376 = vmatpush1.bf16.msra.mxu0 %v10819_v3  ;;  %6033 = vmatprep.subr.bf16.mxu1 %v10824_v31  ;;  %v10917_v3 = vld [vmem:[#allocation7 + $0xd4c] ss:$16 sps:$4 sm:$0xff]   ;;  %v10912_v31 = vld [vmem:[#allocation7 + $0xd40] ss:$16 sps:$4 sm:$0xff]  }
 0x429   :  { %6377 = vmatprep.subr.bf16.mxu0 %v10827_v1  ;;  %v10915_v1 = vld [vmem:[#allocation7 + $0xd48] ss:$16 sps:$4 sm:$0xff]  }
 0x42b   :  { %6034 = vmatpush1.bf16.msra.mxu1 %v10822_v10  ;;  %v10920_v10 = vld [vmem:[#allocation7 + $0xd64] ss:$16 sps:$4 sm:$0xff]  }
 0x42c   :  { %6378 = vmatpush1.bf16.msra.mxu0 %v10825_v16  ;;  %6035 = vmatprep.subr.bf16.mxu1 %v10830_v11  ;;  %v10923_v16 = vld [vmem:[#allocation7 + $0xd6c] ss:$16 sps:$4 sm:$0xff]   ;;  %v10918_v11 = vld [vmem:[#allocation7 + $0xd60] ss:$16 sps:$4 sm:$0xff]  }
 0x42d   :  { %6379 = vmatprep.subr.bf16.mxu0 %v10833_v45  ;;  %v10921_v45 = vld [vmem:[#allocation7 + $0xd68] ss:$16 sps:$4 sm:$0xff]  }
 0x42f   :  { %6036 = vmatpush1.bf16.msra.mxu1 %v10828_v59  ;;  %v10926_v59 = vld [vmem:[#allocation7 + $0xd84] ss:$16 sps:$4 sm:$0xff]  }
 0x430   :  { %6380 = vmatpush1.bf16.msra.mxu0 %v10831_v55  ;;  %6037 = vmatprep.subr.bf16.mxu1 %v10836_v36  ;;  %v10929_v55 = vld [vmem:[#allocation7 + $0xd8c] ss:$16 sps:$4 sm:$0xff]   ;;  %v10924_v36 = vld [vmem:[#allocation7 + $0xd80] ss:$16 sps:$4 sm:$0xff]  }
 0x431   :  { %6381 = vmatprep.subr.bf16.mxu0 %v10839_v28  ;;  %v10927_v28 = vld [vmem:[#allocation7 + $0xd88] ss:$16 sps:$4 sm:$0xff]  }
 0x433   :  { %6038 = vmatpush1.bf16.msra.mxu1 %v10834_v52  ;;  %v10932_v52 = vld [vmem:[#allocation7 + $0xda4] ss:$16 sps:$4 sm:$0xff]  }
 0x434   :  { %6382 = vmatpush1.bf16.msra.mxu0 %v10837_v41  ;;  %6039 = vmatprep.subr.bf16.mxu1 %v10842_v2  ;;  %v10935_v41 = vld [vmem:[#allocation7 + $0xdac] ss:$16 sps:$4 sm:$0xff]   ;;  %v10930_v2 = vld [vmem:[#allocation7 + $0xda0] ss:$16 sps:$4 sm:$0xff]  }
 0x435   :  { %6383 = vmatprep.subr.bf16.mxu0 %v10845_v0  ;;  %v10933_v0 = vld [vmem:[#allocation7 + $0xda8] ss:$16 sps:$4 sm:$0xff]  }
 0x437   :  { %6040 = vmatpush1.bf16.msra.mxu1 %v10840_v62  ;;  %v10938_v62 = vld [vmem:[#allocation7 + $0xdc4] ss:$16 sps:$4 sm:$0xff]  }
 0x438   :  { %6384 = vmatpush1.bf16.msra.mxu0 %v10843_v57  ;;  %6041 = vmatprep.subr.bf16.mxu1 %v10848_v9  ;;  %v10941_v57 = vld [vmem:[#allocation7 + $0xdcc] ss:$16 sps:$4 sm:$0xff]   ;;  %v10936_v9 = vld [vmem:[#allocation7 + $0xdc0] ss:$16 sps:$4 sm:$0xff]  }
 0x439   :  { %6385 = vmatprep.subr.bf16.mxu0 %v10851_v15  ;;  %v10939_v15 = vld [vmem:[#allocation7 + $0xdc8] ss:$16 sps:$4 sm:$0xff]  }
 0x43b   :  { %6042 = vmatpush1.bf16.msra.mxu1 %v10846_v5  ;;  %v10944_v5 = vld [vmem:[#allocation7 + $0xde4] ss:$16 sps:$4 sm:$0xff]  }
 0x43c   :  { %6386 = vmatpush1.bf16.msra.mxu0 %v10849_v38  ;;  %6054 = vmatprep.subr.bf16.mxu1 %v10854_v7  ;;  %v10947_v38 = vld [vmem:[#allocation7 + $0xdec] ss:$16 sps:$4 sm:$0xff]   ;;  %v10942_v7 = vld [vmem:[#allocation7 + $0xde0] ss:$16 sps:$4 sm:$0xff]  }
 0x43d   :  { %6398 = vmatprep.subr.bf16.mxu0 %v10857_v42  ;;  %v10945_v42 = vld [vmem:[#allocation7 + $0xde8] ss:$16 sps:$4 sm:$0xff]  }
 0x43e   :  { %6044 = vmatmul.mubr.bf16.vlgmr.msra.gmra.mrb[12].mxu1 %v13191_v13 }
 0x43f   :  { %6388 = vmatmul.mubr.bf16.vlgmr.msra.gmra.mrb[24].mxu0 %v13191_v13  ;;  %6055 = vmatpush1.bf16.msra.mxu1 %v10852_v34  ;;  %v10875_v13 = vld [vmem:[#allocation7 + $0xc6c] ss:$16 sps:$4 sm:$0xff]   ;;  %v10950_v34 = vld [vmem:[#allocation7 + $0xe04] ss:$16 sps:$4 sm:$0xff]  }
 0x440   :  { %6086 = vmatprep.mubr.bf16.mxu1 %v13268_v40  ;;  %6399 = vmatpush1.bf16.msra.mxu0 %v10855_v49  ;;  %v10953_v49 = vld [vmem:[#allocation7 + $0xe0c] ss:$16 sps:$4 sm:$0xff]  }
 0x441   :  { %6430 = vmatprep.mubr.bf16.mxu0 %v13268_v40  ;;  %6056 = vmatprep.subr.bf16.mxu1 %v10860_v21  ;;  %v10876_v40 = vld [vmem:[#allocation7 + $0xc80] ss:$16 sps:$4 sm:$0xff]  }
 0x442   :  { %6400 = vmatprep.subr.bf16.mxu0 %v10863_v8  ;;  %v10948_v21 = vld [vmem:[#allocation7 + $0xe00] ss:$16 sps:$4 sm:$0xff]   ;;  %v10951_v8 = vld [vmem:[#allocation7 + $0xe08] ss:$16 sps:$4 sm:$0xff]  }
 0x443   :  { %6057 = vmatpush1.bf16.msra.mxu1 %v10858_v23  ;;  %v10956_v23 = vld [vmem:[#allocation7 + $0xe24] ss:$16 sps:$4 sm:$0xff]  }
 0x444   :  { %6401 = vmatpush1.bf16.msra.mxu0 %v10861_v48  ;;  %6058 = vmatprep.subr.bf16.mxu1 %v10866_v19  ;;  %v10959_v48 = vld [vmem:[#allocation7 + $0xe2c] ss:$16 sps:$4 sm:$0xff]   ;;  %v10954_v19 = vld [vmem:[#allocation7 + $0xe20] ss:$16 sps:$4 sm:$0xff]  }
 0x445   :  { %6402 = vmatprep.subr.bf16.mxu0 %v10869_v20  ;;  %v10957_v20 = vld [vmem:[#allocation7 + $0xe28] ss:$16 sps:$4 sm:$0xff]  }
 0x447   :  { %6059 = vmatpush1.bf16.msra.mxu1 %v10864_v47  ;;  %v10962_v47 = vld [vmem:[#allocation7 + $0xe44] ss:$16 sps:$4 sm:$0xff]  }
 0x448   :  { %6403 = vmatpush1.bf16.msra.mxu0 %v10867_v35  ;;  %6060 = vmatprep.subr.bf16.mxu1 %v10872_v32  ;;  %v10965_v35 = vld [vmem:[#allocation7 + $0xe4c] ss:$16 sps:$4 sm:$0xff]   ;;  %v11667_v32 = vmov 0  }
 0x449   :  { %6404 = vmatprep.subr.bf16.mxu0 %v10875_v13  ;;  %v10960_v13 = vld [vmem:[#allocation7 + $0xe40] ss:$16 sps:$4 sm:$0xff]  }
 0x44b   :  { %6061 = vmatpush1.bf16.msra.mxu1 %v10870_v50  ;;  %v10963_v50 = vld [vmem:[#allocation7 + $0xe48] ss:$16 sps:$4 sm:$0xff]  }
 0x44c   :  { %6405 = vmatpush1.bf16.msra.mxu0 %v10873_v56  ;;  %6062 = vmatprep.subr.bf16.mxu1 %v10878_v22  ;;  %v10968_v56 = vld [vmem:[#allocation7 + $0xe64] ss:$16 sps:$4 sm:$0xff]   ;;  %v10971_v22 = vld [vmem:[#allocation7 + $0xe6c] ss:$16 sps:$4 sm:$0xff]  }
 0x44d   :  { %6406 = vmatprep.subr.bf16.mxu0 %v10881_v17  ;;  %v10969_v17 = vld [vmem:[#allocation7 + $0xe68] ss:$16 sps:$4 sm:$0xff]  }
 0x44f   :  { %6063 = vmatpush1.bf16.msra.mxu1 %v10876_v40  ;;  %v10974_v40 = vld [vmem:[#allocation7 + $0xe84] ss:$16 sps:$4 sm:$0xff]  }
 0x450   :  { %6407 = vmatpush1.bf16.msra.mxu0 %v10879_v51  ;;  %6064 = vmatprep.subr.bf16.mxu1 %v10884_v25  ;;  %v10977_v51 = vld [vmem:[#allocation7 + $0xe8c] ss:$16 sps:$4 sm:$0xff]   ;;  %v10972_v25 = vld [vmem:[#allocation7 + $0xe80] ss:$16 sps:$4 sm:$0xff]  }
 0x451   :  { %6408 = vmatprep.subr.bf16.mxu0 %v10887_v46  ;;  %v10975_v46 = vld [vmem:[#allocation7 + $0xe88] ss:$16 sps:$4 sm:$0xff]  }
 0x453   :  { %6065 = vmatpush1.bf16.msra.mxu1 %v10882_v26  ;;  %v10980_v26 = vld [vmem:[#allocation7 + $0xea4] ss:$16 sps:$4 sm:$0xff]  }
 0x454   :  { %6409 = vmatpush1.bf16.msra.mxu0 %v10885_v24  ;;  %6066 = vmatprep.subr.bf16.mxu1 %v10890_v43  ;;  %v10983_v24 = vld [vmem:[#allocation7 + $0xeac] ss:$16 sps:$4 sm:$0xff]   ;;  %v10978_v43 = vld [vmem:[#allocation7 + $0xea0] ss:$16 sps:$4 sm:$0xff]  }
 0x455   :  { %6410 = vmatprep.subr.bf16.mxu0 %v10893_v53  ;;  %v10981_v53 = vld [vmem:[#allocation7 + $0xea8] ss:$16 sps:$4 sm:$0xff]  }
 0x457   :  { %6067 = vmatpush1.bf16.msra.mxu1 %v10888_v30  ;;  %v10986_v30 = vld [vmem:[#allocation7 + $0xec4] ss:$16 sps:$4 sm:$0xff]  }
 0x458   :  { %6411 = vmatpush1.bf16.msra.mxu0 %v10891_v54  ;;  %6068 = vmatprep.subr.bf16.mxu1 %v10896_v18  ;;  %v10989_v54 = vld [vmem:[#allocation7 + $0xecc] ss:$16 sps:$4 sm:$0xff]   ;;  %v10984_v18 = vld [vmem:[#allocation7 + $0xec0] ss:$16 sps:$4 sm:$0xff]  }
 0x459   :  { %6412 = vmatprep.subr.bf16.mxu0 %v10899_v44  ;;  %v10987_v44 = vld [vmem:[#allocation7 + $0xec8] ss:$16 sps:$4 sm:$0xff]  }
 0x45b   :  { %6069 = vmatpush1.bf16.msra.mxu1 %v10894_v33  ;;  %v10992_v33 = vld [vmem:[#allocation7 + $0xee4] ss:$16 sps:$4 sm:$0xff]  }
 0x45c   :  { %6413 = vmatpush1.bf16.msra.mxu0 %v10897_v63  ;;  %6070 = vmatprep.subr.bf16.mxu1 %v10902_v37  ;;  %v10995_v63 = vld [vmem:[#allocation7 + $0xeec] ss:$16 sps:$4 sm:$0xff]   ;;  %v10990_v37 = vld [vmem:[#allocation7 + $0xee0] ss:$16 sps:$4 sm:$0xff]  }
 0x45d   :  { %6414 = vmatprep.subr.bf16.mxu0 %v10905_v61  ;;  %v10993_v61 = vld [vmem:[#allocation7 + $0xee8] ss:$16 sps:$4 sm:$0xff]  }
 0x45f   :  { %6071 = vmatpush1.bf16.msra.mxu1 %v10900_v4  ;;  %v10998_v4 = vld [vmem:[#allocation10 + $0x4] ss:$16 sps:$4 sm:$0xff]  }
 0x460   :  { %6415 = vmatpush1.bf16.msra.mxu0 %v10903_v29  ;;  %6072 = vmatprep.subr.bf16.mxu1 %v10908_v39  ;;  %v11001_v29 = vld [vmem:[#allocation10 + $0xc] ss:$16 sps:$4 sm:$0xff]   ;;  %v10996_v39 = vld [vmem:[#allocation10] ss:$16 sps:$4 sm:$0xff]  }
 0x461   :  { %6416 = vmatprep.subr.bf16.mxu0 %v10911_v14  ;;  %v10999_v14 = vld [vmem:[#allocation10 + $0x8] ss:$16 sps:$4 sm:$0xff]  }
 0x463   :  { %6073 = vmatpush1.bf16.msra.mxu1 %v10906_v6  ;;  %v11004_v6 = vld [vmem:[#allocation10 + $0x24] ss:$16 sps:$4 sm:$0xff]  }
 0x464   :  { %6417 = vmatpush1.bf16.msra.mxu0 %v10909_v58  ;;  %6074 = vmatprep.subr.bf16.mxu1 %v10914_v27  ;;  %v11007_v58 = vld [vmem:[#allocation10 + $0x2c] ss:$16 sps:$4 sm:$0xff]   ;;  %v11002_v27 = vld [vmem:[#allocation10 + $0x20] ss:$16 sps:$4 sm:$0xff]  }
 0x465   :  { %6418 = vmatprep.subr.bf16.mxu0 %v10917_v3  ;;  %v11005_v3 = vld [vmem:[#allocation10 + $0x28] ss:$16 sps:$4 sm:$0xff]  }
 0x467   :  { %6075 = vmatpush1.bf16.msra.mxu1 %v10912_v31  ;;  %v11010_v31 = vld [vmem:[#allocation10 + $0x44] ss:$16 sps:$4 sm:$0xff]  }
 0x468   :  { %6419 = vmatpush1.bf16.msra.mxu0 %v10915_v1  ;;  %6076 = vmatprep.subr.bf16.mxu1 %v10920_v10  ;;  %v11013_v1 = vld [vmem:[#allocation10 + $0x4c] ss:$16 sps:$4 sm:$0xff]   ;;  %v11008_v10 = vld [vmem:[#allocation10 + $0x40] ss:$16 sps:$4 sm:$0xff]  }
 0x469   :  { %6420 = vmatprep.subr.bf16.mxu0 %v10923_v16  ;;  %v11011_v16 = vld [vmem:[#allocation10 + $0x48] ss:$16 sps:$4 sm:$0xff]  }
 0x46b   :  { %6077 = vmatpush1.bf16.msra.mxu1 %v10918_v11  ;;  %v11016_v11 = vld [vmem:[#allocation10 + $0x64] ss:$16 sps:$4 sm:$0xff]  }
 0x46c   :  { %6421 = vmatpush1.bf16.msra.mxu0 %v10921_v45  ;;  %6078 = vmatprep.subr.bf16.mxu1 %v10926_v59  ;;  %v11019_v45 = vld [vmem:[#allocation10 + $0x6c] ss:$16 sps:$4 sm:$0xff]   ;;  %v11014_v59 = vld [vmem:[#allocation10 + $0x60] ss:$16 sps:$4 sm:$0xff]  }
 0x46d   :  { %6422 = vmatprep.subr.bf16.mxu0 %v10929_v55  ;;  %v11022_v55 = vld [vmem:[#allocation10 + $0x84] ss:$16 sps:$4 sm:$0xff]  }
 0x46f   :  { %6079 = vmatpush1.bf16.msra.mxu1 %v10924_v36  ;;  %v11025_v36 = vld [vmem:[#allocation10 + $0x8c] ss:$16 sps:$4 sm:$0xff]  }
 0x470   :  { %6423 = vmatpush1.bf16.msra.mxu0 %v10927_v28  ;;  %6080 = vmatprep.subr.bf16.mxu1 %v10932_v52  ;;  %v11020_v28 = vld [vmem:[#allocation10 + $0x80] ss:$16 sps:$4 sm:$0xff]   ;;  %v11023_v52 = vld [vmem:[#allocation10 + $0x88] ss:$16 sps:$4 sm:$0xff]  }
 0x471   :  { %6424 = vmatprep.subr.bf16.mxu0 %v10935_v41  ;;  %v11026_v41 = vld [vmem:[#allocation10 + $0xa0] ss:$16 sps:$4 sm:$0xff]  }
 0x473   :  { %6081 = vmatpush1.bf16.msra.mxu1 %v10930_v2  ;;  %v11028_v2 = vld [vmem:[#allocation10 + $0xa4] ss:$16 sps:$4 sm:$0xff]  }
 0x474   :  { %6425 = vmatpush1.bf16.msra.mxu0 %v10933_v0  ;;  %6082 = vmatprep.subr.bf16.mxu1 %v10938_v62  ;;  %v11029_v0 = vld [vmem:[#allocation10 + $0xa8] ss:$16 sps:$4 sm:$0xff]   ;;  %v11031_v62 = vld [vmem:[#allocation10 + $0xac] ss:$16 sps:$4 sm:$0xff]  }
 0x475   :  { %6426 = vmatprep.subr.bf16.mxu0 %v10941_v57  ;;  %v11032_v57 = vld [vmem:[#allocation10 + $0xc0] ss:$16 sps:$4 sm:$0xff]  }
 0x477   :  { %6083 = vmatpush1.bf16.msra.mxu1 %v10936_v9  ;;  %v11034_v9 = vld [vmem:[#allocation10 + $0xc4] ss:$16 sps:$4 sm:$0xff]  }
 0x478   :  { %6427 = vmatpush1.bf16.msra.mxu0 %v10939_v15  ;;  %6084 = vmatprep.subr.bf16.mxu1 %v10944_v5  ;;  %v11035_v15 = vld [vmem:[#allocation10 + $0xc8] ss:$16 sps:$4 sm:$0xff]   ;;  %v11037_v5 = vld [vmem:[#allocation10 + $0xcc] ss:$16 sps:$4 sm:$0xff]  }
 0x479   :  { %6428 = vmatprep.subr.bf16.mxu0 %v10947_v38  ;;  %v11040_v38 = vld [vmem:[#allocation10 + $0xe4] ss:$16 sps:$4 sm:$0xff]  }
 0x47b   :  { %6085 = vmatpush1.bf16.msra.mxu1 %v10942_v7  ;;  %v11043_v7 = vld [vmem:[#allocation10 + $0xec] ss:$16 sps:$4 sm:$0xff]  }
 0x47c   :  { %6429 = vmatpush1.bf16.msra.mxu0 %v10945_v42  ;;  %6097 = vmatprep.subr.bf16.mxu1 %v10950_v34  ;;  %v11038_v42 = vld [vmem:[#allocation10 + $0xe0] ss:$16 sps:$4 sm:$0xff]   ;;  %v11041_v34 = vld [vmem:[#allocation10 + $0xe8] ss:$16 sps:$4 sm:$0xff]  }
 0x47d   :  { %6441 = vmatprep.subr.bf16.mxu0 %v10953_v49  ;;  %v11046_v49 = vld [vmem:[#allocation10 + $0x104] ss:$16 sps:$4 sm:$0xff]  }
 0x47e   :  { %6087 = vmatmul.mubr.bf16.vlgmr.msra.gmra.mrb[12].mxu1 %v13282_v12 }
 0x47f   :  { %6431 = vmatmul.mubr.bf16.vlgmr.msra.gmra.mrb[24].mxu0 %v13282_v12  ;;  %6098 = vmatpush1.bf16.msra.mxu1 %v10948_v21  ;;  %v10966_v12 = vld [vmem:[#allocation7 + $0xe60] ss:$16 sps:$4 sm:$0xff]  }
 0x480   :  { %6442 = vmatpush1.bf16.msra.mxu0 %v10951_v8  ;;  %6099 = vmatprep.subr.bf16.mxu1 %v10956_v23  ;;  %v11049_v21 = vld [vmem:[#allocation10 + $0x10c] ss:$16 sps:$4 sm:$0xff]   ;;  %v11044_v8 = vld [vmem:[#allocation10 + $0x100] ss:$16 sps:$4 sm:$0xff]   ;;  %v11047_v23 = vld [vmem:[#allocation10 + $0x108] ss:$16 sps:$4 sm:$0xff]  }
 0x481   :  { %6443 = vmatprep.subr.bf16.mxu0 %v10959_v48  ;;  %6129 = vmatprep.mubr.bf16.mxu1 %v11667_v32  ;;  %v11052_v48 = vld [vmem:[#allocation10 + $0x124] ss:$16 sps:$4 sm:$0xff]  }
 0x482   :  { %6473 = vmatprep.mubr.bf16.mxu0 %v11667_v32  ;;  %v11061_v32 = vld [vmem:[#allocation10 + $0x14c] ss:$16 sps:$4 sm:$0xff]  }
 0x483   :  { %6100 = vmatpush1.bf16.msra.mxu1 %v10954_v19  ;;  %v11055_v19 = vld [vmem:[#allocation10 + $0x12c] ss:$16 sps:$4 sm:$0xff]  }
 0x484   :  { %6444 = vmatpush1.bf16.msra.mxu0 %v10957_v20  ;;  %6101 = vmatprep.subr.bf16.mxu1 %v10962_v47  ;;  %v11050_v20 = vld [vmem:[#allocation10 + $0x120] ss:$16 sps:$4 sm:$0xff]   ;;  %v11053_v47 = vld [vmem:[#allocation10 + $0x128] ss:$16 sps:$4 sm:$0xff]  }
 0x485   :  { %6445 = vmatprep.subr.bf16.mxu0 %v10965_v35  ;;  %v11058_v35 = vld [vmem:[#allocation10 + $0x144] ss:$16 sps:$4 sm:$0xff]  }
 0x487   :  { %6102 = vmatpush1.bf16.msra.mxu1 %v10960_v13  ;;  %v11056_v13 = vld [vmem:[#allocation10 + $0x140] ss:$16 sps:$4 sm:$0xff]  }
 0x488   :  { %6446 = vmatpush1.bf16.msra.mxu0 %v10963_v50  ;;  %6103 = vmatprep.subr.bf16.mxu1 %v10968_v56  ;;  %v11059_v50 = vld [vmem:[#allocation10 + $0x148] ss:$16 sps:$4 sm:$0xff]   ;;  %v11064_v56 = vld [vmem:[#allocation10 + $0x164] ss:$16 sps:$4 sm:$0xff]  }
 0x489   :  { %6447 = vmatprep.subr.bf16.mxu0 %v10971_v22  ;;  %v11067_v22 = vld [vmem:[#allocation10 + $0x16c] ss:$16 sps:$4 sm:$0xff]  }
 0x48b   :  { %6104 = vmatpush1.bf16.msra.mxu1 %v10966_v12  ;;  %v11062_v12 = vld [vmem:[#allocation10 + $0x160] ss:$16 sps:$4 sm:$0xff]  }
 0x48c   :  { %6448 = vmatpush1.bf16.msra.mxu0 %v10969_v17  ;;  %6105 = vmatprep.subr.bf16.mxu1 %v10974_v40  ;;  %v11065_v17 = vld [vmem:[#allocation10 + $0x168] ss:$16 sps:$4 sm:$0xff]   ;;  %v11070_v40 = vld [vmem:[#allocation10 + $0x184] ss:$16 sps:$4 sm:$0xff]  }
 0x48d   :  { %6449 = vmatprep.subr.bf16.mxu0 %v10977_v51  ;;  %v11073_v51 = vld [vmem:[#allocation10 + $0x18c] ss:$16 sps:$4 sm:$0xff]  }
 0x48f   :  { %6106 = vmatpush1.bf16.msra.mxu1 %v10972_v25  ;;  %v11068_v25 = vld [vmem:[#allocation10 + $0x180] ss:$16 sps:$4 sm:$0xff]  }
 0x490   :  { %6450 = vmatpush1.bf16.msra.mxu0 %v10975_v46  ;;  %6107 = vmatprep.subr.bf16.mxu1 %v10980_v26  ;;  %v11071_v46 = vld [vmem:[#allocation10 + $0x188] ss:$16 sps:$4 sm:$0xff]   ;;  %v11076_v26 = vld [vmem:[#allocation10 + $0x1a4] ss:$16 sps:$4 sm:$0xff]  }
 0x491   :  { %6451 = vmatprep.subr.bf16.mxu0 %v10983_v24  ;;  %v11079_v24 = vld [vmem:[#allocation10 + $0x1ac] ss:$16 sps:$4 sm:$0xff]  }
 0x493   :  { %6108 = vmatpush1.bf16.msra.mxu1 %v10978_v43  ;;  %v11074_v43 = vld [vmem:[#allocation10 + $0x1a0] ss:$16 sps:$4 sm:$0xff]  }
 0x494   :  { %6452 = vmatpush1.bf16.msra.mxu0 %v10981_v53  ;;  %6109 = vmatprep.subr.bf16.mxu1 %v10986_v30  ;;  %v11077_v53 = vld [vmem:[#allocation10 + $0x1a8] ss:$16 sps:$4 sm:$0xff]   ;;  %v11082_v30 = vld [vmem:[#allocation10 + $0x1c4] ss:$16 sps:$4 sm:$0xff]  }
 0x495   :  { %6453 = vmatprep.subr.bf16.mxu0 %v10989_v54  ;;  %v11085_v54 = vld [vmem:[#allocation10 + $0x1cc] ss:$16 sps:$4 sm:$0xff]  }
 0x497   :  { %6110 = vmatpush1.bf16.msra.mxu1 %v10984_v18  ;;  %v11080_v18 = vld [vmem:[#allocation10 + $0x1c0] ss:$16 sps:$4 sm:$0xff]  }
 0x498   :  { %6454 = vmatpush1.bf16.msra.mxu0 %v10987_v44  ;;  %6111 = vmatprep.subr.bf16.mxu1 %v10992_v33  ;;  %v11083_v44 = vld [vmem:[#allocation10 + $0x1c8] ss:$16 sps:$4 sm:$0xff]   ;;  %v11088_v33 = vld [vmem:[#allocation10 + $0x1e4] ss:$16 sps:$4 sm:$0xff]  }
 0x499   :  { %6455 = vmatprep.subr.bf16.mxu0 %v10995_v63  ;;  %v11091_v63 = vld [vmem:[#allocation10 + $0x1ec] ss:$16 sps:$4 sm:$0xff]  }
 0x49b   :  { %6112 = vmatpush1.bf16.msra.mxu1 %v10990_v37  ;;  %v11086_v37 = vld [vmem:[#allocation10 + $0x1e0] ss:$16 sps:$4 sm:$0xff]  }
 0x49c   :  { %6456 = vmatpush1.bf16.msra.mxu0 %v10993_v61  ;;  %8438 = vmatprep.subr.bf16.mxu1 %v10998_v4  ;;  %v11089_v61 = vld [vmem:[#allocation10 + $0x1e8] ss:$16 sps:$4 sm:$0xff]   ;;  %v11094_v4 = vld [vmem:[#allocation10 + $0x204] ss:$16 sps:$4 sm:$0xff]  }
 0x49d   :  { %8602 = vmatprep.subr.bf16.mxu0 %v11001_v29  ;;  %v11097_v29 = vld [vmem:[#allocation10 + $0x20c] ss:$16 sps:$4 sm:$0xff]  }
 0x49e   :  { %6130 = vmatmul.mubr.bf16.vlgmr.msra.gmra.mrb[12].mxu1 %v13315_v60 }
 0x49f   :  { %6474 = vmatmul.mubr.bf16.vlgmr.msra.gmra.mrb[24].mxu0 %v13315_v60  ;;  %8439 = vmatpush1.bf16.msra.mxu1 %v10996_v39  ;;  %v11017_v60 = vld [vmem:[#allocation10 + $0x68] ss:$16 sps:$4 sm:$0xff]  }
 0x4a0   :  { %8603 = vmatpush1.bf16.msra.mxu0 %v10999_v14  ;;  %8440 = vmatprep.subr.bf16.mxu1 %v11004_v6 }
 0x4a1   :  { %8604 = vmatprep.subr.bf16.mxu0 %v11007_v58 }
 0x4a3   :  { %8441 = vmatpush1.bf16.msra.mxu1 %v11002_v27 }
 0x4a4   :  { %8605 = vmatpush1.bf16.msra.mxu0 %v11005_v3  ;;  %8442 = vmatprep.subr.bf16.mxu1 %v11010_v31 }
 0x4a5   :  { %8606 = vmatprep.subr.bf16.mxu0 %v11013_v1 }
 0x4a7   :  { %8443 = vmatpush1.bf16.msra.mxu1 %v11008_v10 }
 0x4a8   :  { %8607 = vmatpush1.bf16.msra.mxu0 %v11011_v16  ;;  %8444 = vmatprep.subr.bf16.mxu1 %v11016_v11 }
 0x4a9   :  { %8608 = vmatprep.subr.bf16.mxu0 %v11019_v45 }
 0x4ab   :  { %8445 = vmatpush1.bf16.msra.mxu1 %v11014_v59 }
 0x4ac   :  { %8609 = vmatpush1.bf16.msra.mxu0 %v11017_v60  ;;  %8446 = vmatprep.subr.bf16.mxu1 %v11022_v55  ;;  %v11668_v55 = vmov 1934713408  }
 0x4ad   :  { %8610 = vmatprep.subr.bf16.mxu0 %v11025_v36  ;;  %v13333_v36 = vunpack.c.l.s4 %v11668_v55 }
 0x4af   :  { %8447 = vmatpush1.bf16.msra.mxu1 %v11020_v28  ;;  %v13799_v28 = vld [vmem:[#allocation28_spill] sm:$0xff] }
 0x4b0   :  { %8611 = vmatpush1.bf16.msra.mxu0 %v11023_v52  ;;  %8448 = vmatprep.subr.bf16.mxu1 %v11028_v2  ;;  %v6720_v2 = vld [vmem:[#allocation8] sm:$0x3] }
 0x4b1   :  { %8612 = vmatprep.subr.bf16.mxu0 %v11031_v62 }
 0x4b3   :  { %8449 = vmatpush1.bf16.msra.mxu1 %v11026_v41 }
 0x4b4   :  { %8613 = vmatpush1.bf16.msra.mxu0 %v11029_v0  ;;  %8450 = vmatprep.subr.bf16.mxu1 %v11034_v9 }
 0x4b5   :  { %8614 = vmatprep.subr.bf16.mxu0 %v11037_v5 }
 0x4b7   :  { %8451 = vmatpush1.bf16.msra.mxu1 %v11032_v57 }
 0x4b8   :  { %8615 = vmatpush1.bf16.msra.mxu0 %v11035_v15  ;;  %8452 = vmatprep.subr.bf16.mxu1 %v11040_v38  ;;  %v13800_v38 = vld [vmem:[#allocation29_spill] sm:$0xff] }
 0x4b9   :  { %8616 = vmatprep.subr.bf16.mxu0 %v11043_v7  ;;  %v13340_v7 = vrot.slane %v6720_v2, %v13800_v38 }
 0x4bb   :  { %8453 = vmatpush1.bf16.msra.mxu1 %v11038_v42  ;;  %v13801_v42 = vld [vmem:[#allocation30_spill] sm:$0xff] }
 0x4bc   :  { %8617 = vmatpush1.bf16.msra.mxu0 %v11041_v34  ;;  %8454 = vmatprep.subr.bf16.mxu1 %v11046_v49  ;;  %v13343_v34 = vrot.slane %v6720_v2, %v13801_v42 }
 0x4bd   :  { %8618 = vmatprep.subr.bf16.mxu0 %v11049_v21  ;;  %v6824_v21 = vunpack.c.0.s8 %v13333_v36 }
 0x4bf   :  { %8455 = vmatpush1.bf16.msra.mxu1 %v11044_v8 }
 0x4c0   :  { %8619 = vmatpush1.bf16.msra.mxu0 %v11047_v23  ;;  %8456 = vmatprep.subr.bf16.mxu1 %v11052_v48 }
 0x4c1   :  { %8620 = vmatprep.subr.bf16.mxu0 %v11055_v19 }
 0x4c3   :  { %8457 = vmatpush1.bf16.msra.mxu1 %v11050_v20 }
 0x4c4   :  { %8621 = vmatpush1.bf16.msra.mxu0 %v11053_v47  ;;  %8458 = vmatprep.subr.bf16.mxu1 %v11058_v35 }
 0x4c5   :  { %8622 = vmatprep.subr.bf16.mxu0 %v11061_v32 }
 0x4c7   :  { %8459 = vmatpush1.bf16.msra.mxu1 %v11056_v13 }
 0x4c8   :  { %8623 = vmatpush1.bf16.msra.mxu0 %v11059_v50  ;;  %8460 = vmatprep.subr.bf16.mxu1 %v11064_v56 }
 0x4c9   :  { %8624 = vmatprep.subr.bf16.mxu0 %v11067_v22 }
 0x4cb   :  { %8461 = vmatpush1.bf16.msra.mxu1 %v11062_v12 }
 0x4cc   :  { %8625 = vmatpush1.bf16.msra.mxu0 %v11065_v17  ;;  %8462 = vmatprep.subr.bf16.mxu1 %v11070_v40 }
 0x4cd   :  { %8626 = vmatprep.subr.bf16.mxu0 %v11073_v51 }
 0x4cf   :  { %8463 = vmatpush1.bf16.msra.mxu1 %v11068_v25 }
 0x4d0   :  { %8627 = vmatpush1.bf16.msra.mxu0 %v11071_v46  ;;  %8464 = vmatprep.subr.bf16.mxu1 %v11076_v26 }
 0x4d1   :  { %8628 = vmatprep.subr.bf16.mxu0 %v11079_v24 }
 0x4d3   :  { %8465 = vmatpush1.bf16.msra.mxu1 %v11074_v43 }
 0x4d4   :  { %8629 = vmatpush1.bf16.msra.mxu0 %v11077_v53  ;;  %8466 = vmatprep.subr.bf16.mxu1 %v11082_v30 }
 0x4d5   :  { %8630 = vmatprep.subr.bf16.mxu0 %v11085_v54 }
 0x4d7   :  { %8467 = vmatpush1.bf16.msra.mxu1 %v11080_v18 }
 0x4d8   :  { %8631 = vmatpush1.bf16.msra.mxu0 %v11083_v44  ;;  %8468 = vmatprep.subr.bf16.mxu1 %v11088_v33 }
 0x4d9   :  { %8632 = vmatprep.subr.bf16.mxu0 %v11091_v63 }
 0x4db   :  { %8469 = vmatpush1.bf16.msra.mxu1 %v11086_v37 }
 0x4dc   :  { %8633 = vmatpush1.bf16.msra.mxu0 %v11089_v61  ;;  %8479 = vmatprep.subr.bf16.mxu1 %v11094_v4 }
 0x4dd   :  { %8643 = vmatprep.subr.bf16.mxu0 %v11097_v29 }
 0x571   :  { %v6131_v39 = vpop.f32.mrb[12].mxu1 }
 0x572   :  { %v6475_v14 = vpop.f32.mrb[24].mxu0  ;;  %v6133_v6 = vpop.f32.mrb[13].mxu1 }
 0x573   :  { %v6484_v58 = vmax.f32 %v6131_v39, %v6475_v14  ;;  %v6477_v27 = vpop.f32.mrb[25].mxu0  ;;  %v6135_v3 = vpop.f32.mrb[14].mxu1 }
 0x574   :  { %v6485_v31 = vmax.f32 %v6133_v6, %v6477_v27  ;;  %v6479_v1 = vpop.f32.mrb[26].mxu0  ;;  %v6137_v10 = vpop.f32.mrb[15].mxu1 }
 0x575   :  { %v6486_v16 = vmax.f32 %v6135_v3, %v6479_v1  ;;  %v6481_v11 = vpop.f32.mrb[27].mxu0 }
 0x576   :  { %v6492_v45 = vcombine.low %v6484_v58, %v6485_v31  ;;  %v6493_v59 = vcombine.high %v6484_v58, %v6485_v31  ;;  %v6487_v60 = vmax.f32 %v6137_v10, %v6481_v11 }
 0x578   :  { %v6500_v52 = vrot.slane %v6492_v45, %v13799_v28  ;;  %v6507_v41 = vrot.slane %v6493_v59, %v13799_v28  ;;  %v6510_v0 = vcombine.low %v6486_v16, %v6487_v60  ;;  %v6511_v62 = vcombine.high %v6486_v16, %v6487_v60 }
 0x57a   :  { %v6508_v57 = vcombine.high %v6500_v52, %v6500_v52  ;;  %v6509_v9 = vcombine.high %v6507_v41, %v6507_v41  ;;  %v6534_v15 = vrot.slane %v6500_v52, %v13799_v28  ;;  %v6550_v5 = vrot.slane %v6507_v41, %v13799_v28 }
 0x57b   :  { %v13346_v49 = vrot.slane %v6510_v0, %v13799_v28  ;;  %v13354_v35 = vrot.slane %v6511_v62, %v13799_v28 }
 0x57c   :  { %v6535_v8 = vcombine.high %v6534_v15, %v6534_v15  ;;  %v6542_v23 = vrot.slane %v6508_v57, %v13799_v28  ;;  %v6551_v48 = vcombine.high %v6550_v5, %v6550_v5  ;;  %v6558_v19 = vrot.slane %v6509_v9, %v13799_v28 }
 0x57d   :  { %v6608_v20 = vsel %vm1577_vm7, %v6534_v15, -inf  ;;  %v6636_v47 = vsel %vm1577_vm7, %v6550_v5, -inf  ;;  %v6526_v32 = vcombine.high %v13346_v49, %v13346_v49 }
 0x57e   :  { %v6543_v13 = vcombine.high %v6542_v23, %v6542_v23  ;;  %v6559_v50 = vcombine.high %v6558_v19, %v6558_v19  ;;  %v6609_v56 = vrot.slane %v6608_v20, 4  ;;  %v6615_v22 = vsel %vm1577_vm7, %v6535_v8, -inf }
 0x57f   :  { %v6616_v12 = vrot.slane %v6615_v22, 4  ;;  %v6622_v17 = vsel %vm1577_vm7, %v6542_v23, -inf  ;;  %v6637_v40 = vrot.slane %v6636_v47, 4  ;;  %v6643_v51 = vsel %vm1577_vm7, %v6551_v48, -inf }
 0x580   :  { %v6610_v25 = vmax.f32 %v6608_v20, %v6609_v56  ;;  %v6623_v46 = vrot.slane %v6622_v17, 4  ;;  %v6629_v26 = vsel %vm1577_vm7, %v6543_v13, -inf  ;;  %v6644_v24 = vrot.slane %v6643_v51, 4 }
 0x581   :  { %v6617_v43 = vmax.f32 %v6615_v22, %v6616_v12  ;;  %v6630_v53 = vrot.slane %v6629_v26, 4  ;;  %v6638_v30 = vmax.f32 %v6636_v47, %v6637_v40  ;;  %v6650_v54 = vsel %vm1577_vm7, %v6558_v19, -inf }
 0x582   :  { %v6611_v18 = vrot.slane %v6610_v25, 2  ;;  %v6624_v44 = vmax.f32 %v6622_v17, %v6623_v46  ;;  %v6645_v33 = vmax.f32 %v6643_v51, %v6644_v24  ;;  %v6651_v63 = vrot.slane %v6650_v54, 4 }
 0x583   :  { %v6618_v37 = vrot.slane %v6617_v43, 2  ;;  %v6631_v61 = vmax.f32 %v6629_v26, %v6630_v53  ;;  %v6639_v4 = vrot.slane %v6638_v30, 2  ;;  %v6657_v29 = vsel %vm1577_vm7, %v6559_v50, -inf }
 0x584   :  { %v6612_v39 = vmax.f32 %v6610_v25, %v6611_v18  ;;  %v6625_v14 = vrot.slane %v6624_v44, 2  ;;  %v6646_v6 = vrot.slane %v6645_v33, 2  ;;  %v6652_v58 = vmax.f32 %v6650_v54, %v6651_v63 }
 0x585   :  { %v6619_v27 = vmax.f32 %v6617_v43, %v6618_v37  ;;  %v6632_v3 = vrot.slane %v6631_v61, 2  ;;  %v6640_v31 = vmax.f32 %v6638_v30, %v6639_v4  ;;  %v6658_v1 = vrot.slane %v6657_v29, 4 }
 0x586   :  { %v6613_v10 = vrot.slane %v6612_v39, 1  ;;  %v6626_v16 = vmax.f32 %v6624_v44, %v6625_v14  ;;  %v6647_v11 = vmax.f32 %v6645_v33, %v6646_v6  ;;  %v6653_v45 = vrot.slane %v6652_v58, 2 }
 0x587   :  { %v6620_v59 = vrot.slane %v6619_v27, 1  ;;  %v6633_v60 = vmax.f32 %v6631_v61, %v6632_v3  ;;  %v6641_v55 = vrot.slane %v6640_v31, 1  ;;  %v6659_v52 = vmax.f32 %v6657_v29, %v6658_v1 }
 0x588   :  { %v6614_v41 = vmax.f32 %v6612_v39, %v6613_v10  ;;  %v6627_v2 = vrot.slane %v6626_v16, 1  ;;  %v6648_v0 = vrot.slane %v6647_v11, 1  ;;  %v6654_v62 = vmax.f32 %v6652_v58, %v6653_v45 }
 0x589   :  { %v6621_v57 = vmax.f32 %v6619_v27, %v6620_v59  ;;  %v6634_v9 = vrot.slane %v6633_v60, 1  ;;  %v6642_v15 = vmax.f32 %v6640_v31, %v6641_v55  ;;  %v6660_v5 = vrot.slane %v6659_v52, 2 }
 0x58a   :  { %v6628_v8 = vmax.f32 %v6626_v16, %v6627_v2  ;;  %v6649_v23 = vmax.f32 %v6647_v11, %v6648_v0  ;;  %v6655_v48 = vrot.slane %v6654_v62, 1  ;;  %v13365_v19 = vadd.f32 %v13340_v7, %v6614_v41 }
 0x58b   :  { %v6635_v20 = vmax.f32 %v6633_v60, %v6634_v9  ;;  %v6661_v47 = vmax.f32 %v6659_v52, %v6660_v5  ;;  %v13368_v13 = vadd.f32 %v13343_v34, %v6621_v57  ;;  %v6736_v50 = vadd.f32 %v13340_v7, %v6642_v15 }
 0x58c   :  { %v6656_v56 = vmax.f32 %v6654_v62, %v6655_v48  ;;  %v6734_v22 = vadd.f32 %v13340_v7, %v6628_v8  ;;  %v13373_v12 = vadd.f32 %v13343_v34, %v6649_v23  ;;  %v6527_v17 = vcombine.high %v13354_v35, %v13354_v35 }
 0x58d   :  { %v6662_v40 = vrot.slane %v6661_v47, 1  ;;  %v13378_v51 = vadd.f32 %v13343_v34, %v6635_v20  ;;  %v6748_v25 = vmax.f32 %v13365_v19, 0.0  ;;  %v6752_v46 = vmax.f32 %v6736_v50, 0.0 }
 0x58e   :  { %v13382_v26 = vadd.f32 %v13340_v7, %v6656_v56  ;;  %v6749_v24 = vmax.f32 %v13368_v13, 0.0  ;;  %v6750_v43 = vmax.f32 %v6734_v22, 0.0  ;;  %v6566_v53 = vrot.slane %v13346_v49, %v13799_v28 }
 0x58f   :  { %v13387_v30 = vmax.f32 %v6661_v47, %v6662_v40  ;;  %v6751_v54 = vmax.f32 %v13378_v51, 0.0  ;;  %v6753_v18 = vmax.f32 %v13373_v12, 0.0  ;;  %v6574_v44 = vrot.slane %v6526_v32, %v13799_v28 }
 0x590   :  { %v6754_v33 = vmax.f32 %v13382_v26, 0.0  ;;  %v13396_v63 = vrot.slane %v6752_v46, 6  ;;  %v6567_v37 = vcombine.high %v6566_v53, %v6566_v53  ;;  %v6582_v61 = vrot.slane %v13354_v35, %v13799_v28 }
 0x591   :  { %v6575_v4 = vcombine.high %v6574_v44, %v6574_v44  ;;  %v6590_v29 = vrot.slane %v6527_v17, %v13799_v28  ;;  %v6664_v39 = vsel %vm1577_vm7, %v6566_v53, -inf  ;;  %v6678_v14 = vsel %vm1577_vm7, %v6574_v44, -inf }
 0x592   :  { %v13403_v6 = vrot.slane %v6750_v43, 7  ;;  %v6583_v58 = vcombine.high %v6582_v61, %v6582_v61  ;;  %v6665_v49 = vrot.slane %v6664_v39, 4  ;;  %v6671_v32 = vsel %vm1577_vm7, %v6567_v37, -inf }
 0x593   :  { %v6591_v27 = vcombine.high %v6590_v29, %v6590_v29  ;;  %v6672_v3 = vrot.slane %v6671_v32, 4  ;;  %v6679_v31 = vrot.slane %v6678_v14, 4  ;;  %v6685_v1 = vsel %vm1577_vm7, %v6575_v4, -inf }
 0x594   :  { %v6666_v10 = vmax.f32 %v6664_v39, %v6665_v49  ;;  %v6686_v35 = vrot.slane %v6685_v1, 4  ;;  %v6692_v16 = vsel %vm1577_vm7, %v6582_v61, -inf  ;;  %v6699_v11 = vsel %vm1577_vm7, %v6583_v58, -inf }
 0x595   :  { %v6673_v45 = vmax.f32 %v6671_v32, %v6672_v3  ;;  %v6680_v59 = vmax.f32 %v6678_v14, %v6679_v31  ;;  %v6693_v60 = vrot.slane %v6692_v16, 4  ;;  %v6700_v55 = vrot.slane %v6699_v11, 4 }
 0x596   :  { %v6667_v52 = vrot.slane %v6666_v10, 2  ;;  %v6687_v41 = vmax.f32 %v6685_v1, %v6686_v35  ;;  %v6706_v2 = vsel %vm1577_vm7, %v6590_v29, -inf  ;;  %v6713_v0 = vsel %vm1577_vm7, %v6591_v27, -inf }
 0x597   :  { %v6674_v62 = vrot.slane %v6673_v45, 2  ;;  %v6681_v57 = vrot.slane %v6680_v59, 2  ;;  %v6694_v9 = vmax.f32 %v6692_v16, %v6693_v60  ;;  %v6701_v15 = vmax.f32 %v6699_v11, %v6700_v55 }
 0x598   :  { %v6668_v5 = vmax.f32 %v6666_v10, %v6667_v52  ;;  %v6688_v8 = vrot.slane %v6687_v41, 2  ;;  %v6707_v23 = vrot.slane %v6706_v2, 4  ;;  %v6714_v48 = vrot.slane %v6713_v0, 4 }
 0x599   :  { %v6675_v20 = vmax.f32 %v6673_v45, %v6674_v62  ;;  %v6682_v47 = vmax.f32 %v6680_v59, %v6681_v57  ;;  %v6695_v50 = vrot.slane %v6694_v9, 2  ;;  %v6702_v56 = vrot.slane %v6701_v15, 2 }
 0x59a   :  { %v6669_v22 = vrot.slane %v6668_v5, 1  ;;  %v6689_v17 = vmax.f32 %v6687_v41, %v6688_v8  ;;  %v6708_v40 = vmax.f32 %v6706_v2, %v6707_v23  ;;  %v6715_v46 = vmax.f32 %v6713_v0, %v6714_v48 }
 0x59b   :  { %v6676_v26 = vrot.slane %v6675_v20, 1  ;;  %v6683_v43 = vrot.slane %v6682_v47, 1  ;;  %v6696_v53 = vmax.f32 %v6694_v9, %v6695_v50  ;;  %v6703_v44 = vmax.f32 %v6701_v15, %v6702_v56 }
 0x59c   :  { %v6670_v37 = vmax.f32 %v6668_v5, %v6669_v22  ;;  %v6690_v61 = vrot.slane %v6689_v17, 1  ;;  %v6709_v4 = vrot.slane %v6708_v40, 2  ;;  %v6716_v29 = vrot.slane %v6715_v46, 2 }
 0x59d   :  { %v6677_v39 = vmax.f32 %v6675_v20, %v6676_v26  ;;  %v6684_v14 = vmax.f32 %v6682_v47, %v6683_v43  ;;  %v6697_v58 = vrot.slane %v6696_v53, 1  ;;  %v6704_v49 = vrot.slane %v6703_v44, 1 }
 0x59e   :  { %v6691_v32 = vmax.f32 %v6689_v17, %v6690_v61  ;;  %v6710_v27 = vmax.f32 %v6708_v40, %v6709_v4  ;;  %v6717_v3 = vmax.f32 %v6715_v46, %v6716_v29  ;;  %v6740_v31 = vadd.f32 %v13340_v7, %v6670_v37  ;;  %v13802_v37 = vld [vmem:[#allocation27_spill] sm:$0xff] }
 0x59f   :  { %v6784_v1 = vrot.slane %v6754_v33, 5  ;;  %v6698_v10 = vmax.f32 %v6696_v53, %v6697_v58  ;;  %v6705_v35 = vmax.f32 %v6703_v44, %v6704_v49  ;;  %v6742_v16 = vadd.f32 %v13340_v7, %v6684_v14 }
 0x5a0   :  { %v6711_v11 = vrot.slane %v6710_v27, 1  ;;  %v6718_v45 = vrot.slane %v6717_v3, 1  ;;  %v6741_v59 = vadd.f32 %v13343_v34, %v6677_v39  ;;  %v6743_v60 = vadd.f32 %v13343_v34, %v6691_v32 }
 0x5a1   :  { %v6744_v55 = vadd.f32 %v13340_v7, %v6698_v10  ;;  %v6745_v52 = vadd.f32 %v13343_v34, %v6705_v35  ;;  %v6756_v41 = vmax.f32 %v6740_v31, 0.0  ;;  %v6758_v2 = vmax.f32 %v6742_v16, 0.0  ;;  %v11095_v31 = vld [vmem:[#allocation10 + $0x208] ss:$16 sps:$4 sm:$0xff]  }
 0x5a2   :  { %v6712_v0 = vmax.f32 %v6710_v27, %v6711_v11  ;;  %v6719_v62 = vmax.f32 %v6717_v3, %v6718_v45  ;;  %v6759_v57 = vmax.f32 %v6743_v60, 0.0  ;;  %v6739_v33 = vadd.f32 %v13343_v34, %v13387_v30  ;;  %v11092_v3 = vld [vmem:[#allocation10 + $0x200] ss:$16 sps:$4 sm:$0xff]   ;;  %v11100_v11 = vld [vmem:[#allocation10 + $0x224] ss:$16 sps:$4 sm:$0xff]  }
 0x5a3   :  { %v6760_v9 = vmax.f32 %v6744_v55, 0.0  ;;  %v6761_v15 = vmax.f32 %v6745_v52, 0.0  ;;  %v6792_v5 = vrot.slane %v6758_v2, 7  ;;  %v6786_v8 = vrot.slane %v6751_v54, 7  ;;  %v11103_v45 = vld [vmem:[#allocation10 + $0x22c] ss:$16 sps:$4 sm:$0xff]  }
 0x5a4   :  { %v6746_v23 = vadd.f32 %v13340_v7, %v6712_v0  ;;  %v6747_v48 = vadd.f32 %v13343_v34, %v6719_v62  ;;  %v6755_v20 = vmax.f32 %v6739_v33, 0.0  ;;  %v6788_v47 = vrot.slane %v6753_v18, 6  ;;  %v11098_v60 = vld [vmem:[#allocation10 + $0x220] ss:$16 sps:$4 sm:$0xff]   ;;  %v11101_v55 = vld [vmem:[#allocation10 + $0x228] ss:$16 sps:$4 sm:$0xff]  }
 0x5a5   :  { %v6757_v50 = vmax.f32 %v6741_v59, 0.0  ;;  %v6787_v56 = vsel %vm2412_vm8, %v6786_v8, %v6749_v24  ;;  %v6798_v30 = vrot.slane %v6759_v57, 7  ;;  %v6800_v22 = vrot.slane %v6761_v15, 6  ;;  %v11109_v2 = vld [vmem:[#allocation10 + $0x24c] ss:$16 sps:$4 sm:$0xff]  }
 0x5a6   :  { %v6762_v17 = vmax.f32 %v6746_v23, 0.0  ;;  %v6763_v40 = vmax.f32 %v6747_v48, 0.0  ;;  %v6789_v51 = vsel %vm2415_vm9, %v6788_v47, %v6787_v56  ;;  %v6790_v54 = vrot.slane %v6755_v20, 5  ;;  %v11104_v0 = vld [vmem:[#allocation10 + $0x240] ss:$16 sps:$4 sm:$0xff]  }
 0x5a7   :  { %v6794_v46 = vrot.slane %v6760_v9, 6  ;;  %v6799_v7 = vsel %vm2412_vm8, %v6798_v30, %v6757_v50  ;;  %v6781_v34 = vsel %vm2412_vm8, %v13403_v6, %v6748_v25  ;;  %v6793_v12 = vsel %vm2412_vm8, %v6792_v5, %v6756_v41  ;;  %v11106_v41 = vld [vmem:[#allocation10 + $0x244] ss:$16 sps:$4 sm:$0xff]   ;;  %v11107_v62 = vld [vmem:[#allocation10 + $0x248] ss:$16 sps:$4 sm:$0xff]  }
 0x5a8   :  { %v6796_v13 = vrot.slane %v6762_v17, 5  ;;  %v6791_v24 = vsel %vm2418_vm10, %v6790_v54, %v6789_v51  ;;  %v6801_v18 = vsel %vm2415_vm9, %v6800_v22, %v6799_v7  ;;  %v6802_v26 = vrot.slane %v6763_v40, 5  ;;  %v11112_v57 = vld [vmem:[#allocation10 + $0x264] ss:$16 sps:$4 sm:$0xff]   ;;  %v11115_v33 = vld [vmem:[#allocation10 + $0x26c] ss:$16 sps:$4 sm:$0xff]  }
 0x5a9   :  { %v6783_v43 = vsel %vm2415_vm9, %v13396_v63, %v6781_v34  ;;  %v6795_v53 = vsel %vm2415_vm9, %v6794_v46, %v6793_v12  ;;  %v6827_v19 = vsub.s32 %v6824_v21, %v13802_v37  ;;  %v6845_v61 = vrot.slane %v6791_v24, %v13799_v28  ;;  %v11110_v9 = vld [vmem:[#allocation10 + $0x260] ss:$16 sps:$4 sm:$0xff]   ;;  %v11113_v15 = vld [vmem:[#allocation10 + $0x268] ss:$16 sps:$4 sm:$0xff]   ;;  %v11118_v5 = vld [vmem:[#allocation10 + $0x284] ss:$16 sps:$4 sm:$0xff]  }
 0x5aa   :  { %v6803_v44 = vsel %vm2418_vm10, %v6802_v26, %v6801_v18  ;;  %v6785_v25 = vsel %vm2418_vm10, %v6784_v1, %v6783_v43  ;;  %v6797_v6 = vsel %vm2418_vm10, %v6796_v13, %v6795_v53  ;;  %v11669_v1 = vmov 0.0   ;;  %v11121_v8 = vld [vmem:[#allocation10 + $0x28c] ss:$16 sps:$4 sm:$0xff]   ;;  %v11116_v23 = vld [vmem:[#allocation10 + $0x280] ss:$16 sps:$4 sm:$0xff]  }
 0x5ab   :  { %v6853_v4 = vrot.slane %v6803_v44, %v13799_v28  ;;  %v6811_v29 = vrot.slane %v6785_v25, %v13799_v28  ;;  %v6819_v63 = vrot.slane %v6797_v6, %v13799_v28  ;;  %v11119_v48 = vld [vmem:[#allocation10 + $0x288] ss:$16 sps:$4 sm:$0xff]   ;;  %v11124_v20 = vld [vmem:[#allocation10 + $0x2a4] ss:$16 sps:$4 sm:$0xff]   ;;  %v11127_v47 = vld [vmem:[#allocation10 + $0x2ac] ss:$16 sps:$4 sm:$0xff]  }
 0x5ac   :  { %v11122_v50 = vld [vmem:[#allocation10 + $0x2a0] ss:$16 sps:$4 sm:$0xff]   ;;  %v11125_v56 = vld [vmem:[#allocation10 + $0x2a8] ss:$16 sps:$4 sm:$0xff]   ;;  %v11130_v30 = vld [vmem:[#allocation10 + $0x2c4] ss:$16 sps:$4 sm:$0xff]  }
 0x5ad   :  { %v6854_v39 = vcombine.low %v6845_v61, %v6853_v4  ;;  %v6820_v14 = vcombine.low %v6811_v29, %v6819_v63  ;;  %v6855_v58 = vcombine.high %v6845_v61, %v6853_v4  ;;  %v6821_v21 = vcombine.high %v6811_v29, %v6819_v63  ;;  %v11133_v22 = vld [vmem:[#allocation10 + $0x2cc] ss:$16 sps:$4 sm:$0xff]   ;;  %v11128_v17 = vld [vmem:[#allocation10 + $0x2c0] ss:$16 sps:$4 sm:$0xff]   ;;  %v11131_v40 = vld [vmem:[#allocation10 + $0x2c8] ss:$16 sps:$4 sm:$0xff]  }
 0x5ae   :  { %v11136_v51 = vld [vmem:[#allocation10 + $0x2e4] ss:$16 sps:$4 sm:$0xff]   ;;  %v11139_v54 = vld [vmem:[#allocation10 + $0x2ec] ss:$16 sps:$4 sm:$0xff]   ;;  %v11134_v46 = vld [vmem:[#allocation10 + $0x2e0] ss:$16 sps:$4 sm:$0xff]  }
 0x5af   :  { %v6862_v49 = vrot.slane %v6854_v39, %v6827_v19  ;;  %v13450_v32 = vrot.slane %v6820_v14, %v6827_v19  ;;  %v13452_v36 = vrot.slane %v6855_v58, %v6827_v19  ;;  %v13457_v16 = vrot.slane %v6821_v21, %v6827_v19  ;;  %v11137_v7 = vld [vmem:[#allocation10 + $0x2e8] ss:$16 sps:$4 sm:$0xff]   ;;  %v11142_v34 = vld [vmem:[#allocation10 + $0x304] ss:$16 sps:$4 sm:$0xff]   ;;  %v11145_v12 = vld [vmem:[#allocation10 + $0x30c] ss:$16 sps:$4 sm:$0xff]  }
 0x5b0   :  { %v11140_v13 = vld [vmem:[#allocation10 + $0x300] ss:$16 sps:$4 sm:$0xff]   ;;  %v11143_v24 = vld [vmem:[#allocation10 + $0x308] ss:$16 sps:$4 sm:$0xff]   ;;  %v11148_v18 = vld [vmem:[#allocation10 + $0x324] ss:$16 sps:$4 sm:$0xff]  }
 0x5b1   :  { %v6873_v27 = vpack.c.bf16 %v6862_v49, %v6862_v49  ;;  %v6870_v10 = vcombine.high %v6862_v49, %v11669_v1  ;;  %v6872_v35 = vpack.c.bf16 %v13450_v32, %v13450_v32  ;;  %v13461_v59 = vcombine.high %v13457_v16, %v11669_v1  ;;  %v11151_v26 = vld [vmem:[#allocation10 + $0x32c] ss:$16 sps:$4 sm:$0xff]   ;;  %v11146_v43 = vld [vmem:[#allocation10 + $0x320] ss:$16 sps:$4 sm:$0xff]   ;;  %v11149_v53 = vld [vmem:[#allocation10 + $0x328] ss:$16 sps:$4 sm:$0xff]  }
 0x5b2   :  { %v13465_v52 = vcombine.high %v13452_v36, %v11669_v1  ;;  %v11154_v44 = vld [vmem:[#allocation10 + $0x344] ss:$16 sps:$4 sm:$0xff]   ;;  %v11157_v19 = vld [vmem:[#allocation10 + $0x34c] ss:$16 sps:$4 sm:$0xff]   ;;  %v11152_v25 = vld [vmem:[#allocation10 + $0x340] ss:$16 sps:$4 sm:$0xff]  }
 0x5b3   :  { %8470 = vmatprep.mubr.bf16.mxu1 %v6873_v27  ;;  %8634 = vmatprep.mubr.bf16.mxu0 %v6873_v27  ;;  %v6875_v28 = vpack.c.bf16 %v6870_v10, %v6870_v10  ;;  %v11155_v6 = vld [vmem:[#allocation10 + $0x348] ss:$16 sps:$4 sm:$0xff]   ;;  %v11160_v61 = vld [vmem:[#allocation10 + $0x364] ss:$16 sps:$4 sm:$0xff]   ;;  %v11163_v4 = vld [vmem:[#allocation10 + $0x36c] ss:$16 sps:$4 sm:$0xff]  }
 0x5b4   :  { %8471 = vmatmul.mubr.bf16.vlgmr.msra.gmra.mrb[16].mxu1 %v6872_v35  ;;  %8635 = vmatmul.mubr.bf16.vlgmr.msra.gmra.mrb[28].mxu0 %v6872_v35  ;;  %v11158_v29 = vld [vmem:[#allocation10 + $0x360] ss:$16 sps:$4 sm:$0xff]   ;;  %v11161_v63 = vld [vmem:[#allocation10 + $0x368] ss:$16 sps:$4 sm:$0xff]   ;;  %v11166_v39 = vld [vmem:[#allocation10 + $0x384] ss:$16 sps:$4 sm:$0xff]  }
 0x5b5   :  { %8480 = vmatpush1.bf16.msra.mxu1 %v11092_v3  ;;  %8644 = vmatpush1.bf16.msra.mxu0 %v11095_v31  ;;  %v11169_v14 = vld [vmem:[#allocation10 + $0x38c] ss:$16 sps:$4 sm:$0xff]   ;;  %v11164_v58 = vld [vmem:[#allocation10 + $0x380] ss:$16 sps:$4 sm:$0xff]   ;;  %v11167_v49 = vld [vmem:[#allocation10 + $0x388] ss:$16 sps:$4 sm:$0xff]  }
 0x5b6   :  { %8511 = vmatprep.mubr.bf16.mxu1 %v6875_v28  ;;  %8675 = vmatprep.mubr.bf16.mxu0 %v6875_v28  ;;  %v11172_v21 = vld [vmem:[#allocation10 + $0x3a4] ss:$16 sps:$4 sm:$0xff]   ;;  %v11175_v27 = vld [vmem:[#allocation10 + $0x3ac] ss:$16 sps:$4 sm:$0xff]   ;;  %v11170_v3 = vld [vmem:[#allocation10 + $0x3a0] ss:$16 sps:$4 sm:$0xff]  }
 0x5b7   :  { %8481 = vmatprep.subr.bf16.mxu1 %v11100_v11  ;;  %8645 = vmatprep.subr.bf16.mxu0 %v11103_v45  ;;  %v11173_v31 = vld [vmem:[#allocation10 + $0x3a8] ss:$16 sps:$4 sm:$0xff]   ;;  %v11178_v10 = vld [vmem:[#allocation10 + $0x3c4] ss:$16 sps:$4 sm:$0xff]   ;;  %v11181_v35 = vld [vmem:[#allocation10 + $0x3cc] ss:$16 sps:$4 sm:$0xff]  }
 0x5b8   :  { %v11176_v28 = vld [vmem:[#allocation10 + $0x3c0] ss:$16 sps:$4 sm:$0xff]   ;;  %v11179_v11 = vld [vmem:[#allocation10 + $0x3c8] ss:$16 sps:$4 sm:$0xff]   ;;  %v11184_v45 = vld [vmem:[#allocation10 + $0x3e4] ss:$16 sps:$4 sm:$0xff]  }
 0x5b9   :  { %8482 = vmatpush1.bf16.msra.mxu1 %v11098_v60  ;;  %8646 = vmatpush1.bf16.msra.mxu0 %v11101_v55  ;;  %v11187_v60 = vld [vmem:[#allocation10 + $0x3ec] ss:$16 sps:$4 sm:$0xff]   ;;  %v11182_v55 = vld [vmem:[#allocation10 + $0x3e0] ss:$16 sps:$4 sm:$0xff]  }
 0x5ba   :  { %8483 = vmatprep.subr.bf16.mxu1 %v11106_v41  ;;  %8647 = vmatprep.subr.bf16.mxu0 %v11109_v2  ;;  %v11185_v41 = vld [vmem:[#allocation10 + $0x3e8] ss:$16 sps:$4 sm:$0xff]   ;;  %v6836_v2 = vcombine.high %v13450_v32, %v11669_v1  ;;  %v11202_v1 = vld [vmem:[#allocation10 + $0x444] ss:$16 sps:$4 sm:$0xff]  }
 0x5bb   :  { %v11197_v32 = vld [vmem:[#allocation10 + $0x428] ss:$16 sps:$4 sm:$0xff]  }
 0x5bd   :  { %8484 = vmatpush1.bf16.msra.mxu1 %v11104_v0  ;;  %8648 = vmatpush1.bf16.msra.mxu0 %v11107_v62  ;;  %v11190_v0 = vld [vmem:[#allocation10 + $0x404] ss:$16 sps:$4 sm:$0xff]   ;;  %v11193_v62 = vld [vmem:[#allocation10 + $0x40c] ss:$16 sps:$4 sm:$0xff]  }
 0x5be   :  { %8485 = vmatprep.subr.bf16.mxu1 %v11112_v57  ;;  %8649 = vmatprep.subr.bf16.mxu0 %v11115_v33  ;;  %v11188_v57 = vld [vmem:[#allocation10 + $0x400] ss:$16 sps:$4 sm:$0xff]   ;;  %v6874_v33 = vpack.c.bf16 %v6836_v2, %v6836_v2  ;;  %v11269_v2 = vld [vmem:[#allocation10 + $0x5a8] ss:$16 sps:$4 sm:$0xff]  }
 0x5c1   :  { %8486 = vmatpush1.bf16.msra.mxu1 %v11110_v9  ;;  %8650 = vmatpush1.bf16.msra.mxu0 %v11113_v15  ;;  %v11191_v9 = vld [vmem:[#allocation10 + $0x408] ss:$16 sps:$4 sm:$0xff]   ;;  %v6877_v15 = vpack.c.bf16 %v13452_v36, %v13452_v36  ;;  %v11208_v36 = vld [vmem:[#allocation10 + $0x464] ss:$16 sps:$4 sm:$0xff]  }
 0x5c2   :  { %8487 = vmatprep.subr.bf16.mxu1 %v11118_v5  ;;  %8651 = vmatprep.subr.bf16.mxu0 %v11121_v8  ;;  %v11196_v5 = vld [vmem:[#allocation10 + $0x424] ss:$16 sps:$4 sm:$0xff]   ;;  %v11199_v8 = vld [vmem:[#allocation10 + $0x42c] ss:$16 sps:$4 sm:$0xff]  }
 0x5c5   :  { %8488 = vmatpush1.bf16.msra.mxu1 %v11116_v23  ;;  %8652 = vmatpush1.bf16.msra.mxu0 %v11119_v48  ;;  %v11194_v23 = vld [vmem:[#allocation10 + $0x420] ss:$16 sps:$4 sm:$0xff]   ;;  %v11205_v48 = vld [vmem:[#allocation10 + $0x44c] ss:$16 sps:$4 sm:$0xff]  }
 0x5c6   :  { %8489 = vmatprep.subr.bf16.mxu1 %v11124_v20  ;;  %8653 = vmatprep.subr.bf16.mxu0 %v11127_v47  ;;  %v11200_v20 = vld [vmem:[#allocation10 + $0x440] ss:$16 sps:$4 sm:$0xff]   ;;  %v11203_v47 = vld [vmem:[#allocation10 + $0x448] ss:$16 sps:$4 sm:$0xff]  }
 0x5c9   :  { %8490 = vmatpush1.bf16.msra.mxu1 %v11122_v50  ;;  %8654 = vmatpush1.bf16.msra.mxu0 %v11125_v56  ;;  %v11211_v50 = vld [vmem:[#allocation10 + $0x46c] ss:$16 sps:$4 sm:$0xff]   ;;  %v11206_v56 = vld [vmem:[#allocation10 + $0x460] ss:$16 sps:$4 sm:$0xff]  }
 0x5ca   :  { %8491 = vmatprep.subr.bf16.mxu1 %v11130_v30  ;;  %8655 = vmatprep.subr.bf16.mxu0 %v11133_v22  ;;  %v11209_v30 = vld [vmem:[#allocation10 + $0x468] ss:$16 sps:$4 sm:$0xff]   ;;  %v11214_v22 = vld [vmem:[#allocation10 + $0x484] ss:$16 sps:$4 sm:$0xff]  }
 0x5cd   :  { %8492 = vmatpush1.bf16.msra.mxu1 %v11128_v17  ;;  %8656 = vmatpush1.bf16.msra.mxu0 %v11131_v40  ;;  %v11217_v17 = vld [vmem:[#allocation10 + $0x48c] ss:$16 sps:$4 sm:$0xff]   ;;  %v11212_v40 = vld [vmem:[#allocation10 + $0x480] ss:$16 sps:$4 sm:$0xff]  }
 0x5ce   :  { %8493 = vmatprep.subr.bf16.mxu1 %v11136_v51  ;;  %8657 = vmatprep.subr.bf16.mxu0 %v11139_v54  ;;  %v11215_v51 = vld [vmem:[#allocation10 + $0x488] ss:$16 sps:$4 sm:$0xff]   ;;  %v11220_v54 = vld [vmem:[#allocation10 + $0x4a4] ss:$16 sps:$4 sm:$0xff]  }
 0x5d1   :  { %8494 = vmatpush1.bf16.msra.mxu1 %v11134_v46  ;;  %8658 = vmatpush1.bf16.msra.mxu0 %v11137_v7  ;;  %v11223_v46 = vld [vmem:[#allocation10 + $0x4ac] ss:$16 sps:$4 sm:$0xff]   ;;  %v11218_v7 = vld [vmem:[#allocation10 + $0x4a0] ss:$16 sps:$4 sm:$0xff]  }
 0x5d2   :  { %8495 = vmatprep.subr.bf16.mxu1 %v11142_v34  ;;  %8659 = vmatprep.subr.bf16.mxu0 %v11145_v12  ;;  %v11221_v34 = vld [vmem:[#allocation10 + $0x4a8] ss:$16 sps:$4 sm:$0xff]   ;;  %v11226_v12 = vld [vmem:[#allocation10 + $0x4c4] ss:$16 sps:$4 sm:$0xff]  }
 0x5d5   :  { %8496 = vmatpush1.bf16.msra.mxu1 %v11140_v13  ;;  %8660 = vmatpush1.bf16.msra.mxu0 %v11143_v24  ;;  %v11229_v13 = vld [vmem:[#allocation10 + $0x4cc] ss:$16 sps:$4 sm:$0xff]   ;;  %v11224_v24 = vld [vmem:[#allocation10 + $0x4c0] ss:$16 sps:$4 sm:$0xff]  }
 0x5d6   :  { %8497 = vmatprep.subr.bf16.mxu1 %v11148_v18  ;;  %8661 = vmatprep.subr.bf16.mxu0 %v11151_v26  ;;  %v11227_v18 = vld [vmem:[#allocation10 + $0x4c8] ss:$16 sps:$4 sm:$0xff]   ;;  %v11232_v26 = vld [vmem:[#allocation10 + $0x4e4] ss:$16 sps:$4 sm:$0xff]  }
 0x5d9   :  { %8498 = vmatpush1.bf16.msra.mxu1 %v11146_v43  ;;  %8662 = vmatpush1.bf16.msra.mxu0 %v11149_v53  ;;  %v11235_v43 = vld [vmem:[#allocation10 + $0x4ec] ss:$16 sps:$4 sm:$0xff]   ;;  %v11230_v53 = vld [vmem:[#allocation10 + $0x4e0] ss:$16 sps:$4 sm:$0xff]  }
 0x5da   :  { %8499 = vmatprep.subr.bf16.mxu1 %v11154_v44  ;;  %8663 = vmatprep.subr.bf16.mxu0 %v11157_v19  ;;  %v11233_v44 = vld [vmem:[#allocation10 + $0x4e8] ss:$16 sps:$4 sm:$0xff]   ;;  %v11238_v19 = vld [vmem:[#allocation10 + $0x504] ss:$16 sps:$4 sm:$0xff]  }
 0x5dd   :  { %8500 = vmatpush1.bf16.msra.mxu1 %v11152_v25  ;;  %8664 = vmatpush1.bf16.msra.mxu0 %v11155_v6  ;;  %v11241_v25 = vld [vmem:[#allocation10 + $0x50c] ss:$16 sps:$4 sm:$0xff]   ;;  %v11236_v6 = vld [vmem:[#allocation10 + $0x500] ss:$16 sps:$4 sm:$0xff]  }
 0x5de   :  { %8501 = vmatprep.subr.bf16.mxu1 %v11160_v61  ;;  %8665 = vmatprep.subr.bf16.mxu0 %v11163_v4  ;;  %v11239_v61 = vld [vmem:[#allocation10 + $0x508] ss:$16 sps:$4 sm:$0xff]   ;;  %v11244_v4 = vld [vmem:[#allocation10 + $0x524] ss:$16 sps:$4 sm:$0xff]  }
 0x5e1   :  { %8502 = vmatpush1.bf16.msra.mxu1 %v11158_v29  ;;  %8666 = vmatpush1.bf16.msra.mxu0 %v11161_v63  ;;  %v11247_v29 = vld [vmem:[#allocation10 + $0x52c] ss:$16 sps:$4 sm:$0xff]   ;;  %v11242_v63 = vld [vmem:[#allocation10 + $0x520] ss:$16 sps:$4 sm:$0xff]  }
 0x5e2   :  { %8503 = vmatprep.subr.bf16.mxu1 %v11166_v39  ;;  %8667 = vmatprep.subr.bf16.mxu0 %v11169_v14  ;;  %v11245_v39 = vld [vmem:[#allocation10 + $0x528] ss:$16 sps:$4 sm:$0xff]   ;;  %v11250_v14 = vld [vmem:[#allocation10 + $0x544] ss:$16 sps:$4 sm:$0xff]  }
 0x5e5   :  { %8504 = vmatpush1.bf16.msra.mxu1 %v11164_v58  ;;  %8668 = vmatpush1.bf16.msra.mxu0 %v11167_v49  ;;  %v11253_v58 = vld [vmem:[#allocation10 + $0x54c] ss:$16 sps:$4 sm:$0xff]   ;;  %v11248_v49 = vld [vmem:[#allocation10 + $0x540] ss:$16 sps:$4 sm:$0xff]  }
 0x5e6   :  { %8505 = vmatprep.subr.bf16.mxu1 %v11172_v21  ;;  %8669 = vmatprep.subr.bf16.mxu0 %v11175_v27  ;;  %v11251_v21 = vld [vmem:[#allocation10 + $0x548] ss:$16 sps:$4 sm:$0xff]   ;;  %v11256_v27 = vld [vmem:[#allocation10 + $0x564] ss:$16 sps:$4 sm:$0xff]  }
 0x5e9   :  { %8506 = vmatpush1.bf16.msra.mxu1 %v11170_v3  ;;  %8670 = vmatpush1.bf16.msra.mxu0 %v11173_v31  ;;  %v11259_v3 = vld [vmem:[#allocation10 + $0x56c] ss:$16 sps:$4 sm:$0xff]   ;;  %v11254_v31 = vld [vmem:[#allocation10 + $0x560] ss:$16 sps:$4 sm:$0xff]  }
 0x5ea   :  { %8507 = vmatprep.subr.bf16.mxu1 %v11178_v10  ;;  %8671 = vmatprep.subr.bf16.mxu0 %v11181_v35  ;;  %v11257_v10 = vld [vmem:[#allocation10 + $0x568] ss:$16 sps:$4 sm:$0xff]   ;;  %v11262_v35 = vld [vmem:[#allocation10 + $0x584] ss:$16 sps:$4 sm:$0xff]  }
 0x5ed   :  { %8508 = vmatpush1.bf16.msra.mxu1 %v11176_v28  ;;  %8672 = vmatpush1.bf16.msra.mxu0 %v11179_v11  ;;  %v11265_v28 = vld [vmem:[#allocation10 + $0x58c] ss:$16 sps:$4 sm:$0xff]   ;;  %v11260_v11 = vld [vmem:[#allocation10 + $0x580] ss:$16 sps:$4 sm:$0xff]  }
 0x5ee   :  { %8509 = vmatprep.subr.bf16.mxu1 %v11184_v45  ;;  %8673 = vmatprep.subr.bf16.mxu0 %v11187_v60  ;;  %v11263_v45 = vld [vmem:[#allocation10 + $0x588] ss:$16 sps:$4 sm:$0xff]   ;;  %v11268_v60 = vld [vmem:[#allocation10 + $0x5a4] ss:$16 sps:$4 sm:$0xff]  }
 0x5f1   :  { %8510 = vmatpush1.bf16.msra.mxu1 %v11182_v55  ;;  %8674 = vmatpush1.bf16.msra.mxu0 %v11185_v41  ;;  %v11271_v55 = vld [vmem:[#allocation10 + $0x5ac] ss:$16 sps:$4 sm:$0xff]   ;;  %v11266_v41 = vld [vmem:[#allocation10 + $0x5a0] ss:$16 sps:$4 sm:$0xff]  }
 0x5f2   :  { %8520 = vmatprep.subr.bf16.mxu1 %v11190_v0  ;;  %8684 = vmatprep.subr.bf16.mxu0 %v11193_v62  ;;  %v11274_v0 = vld [vmem:[#allocation10 + $0x5c4] ss:$16 sps:$4 sm:$0xff]   ;;  %v11277_v62 = vld [vmem:[#allocation10 + $0x5cc] ss:$16 sps:$4 sm:$0xff]  }
 0x5f4   :  { %8512 = vmatmul.mubr.bf16.vlgmr.msra.gmra.mrb[16].mxu1 %v6874_v33  ;;  %8676 = vmatmul.mubr.bf16.vlgmr.msra.gmra.mrb[28].mxu0 %v6874_v33  ;;  %v11275_v33 = vld [vmem:[#allocation10 + $0x5c8] ss:$16 sps:$4 sm:$0xff]  }
 0x5f5   :  { %8521 = vmatpush1.bf16.msra.mxu1 %v11188_v57  ;;  %8552 = vmatprep.mubr.bf16.mxu1 %v6877_v15  ;;  %v11272_v57 = vld [vmem:[#allocation10 + $0x5c0] ss:$16 sps:$4 sm:$0xff]  }
 0x5f6   :  { %8685 = vmatpush1.bf16.msra.mxu0 %v11191_v9  ;;  %8716 = vmatprep.mubr.bf16.mxu0 %v6877_v15  ;;  %v11280_v9 = vld [vmem:[#allocation10 + $0x5e4] ss:$16 sps:$4 sm:$0xff]   ;;  %v11283_v15 = vld [vmem:[#allocation10 + $0x5ec] ss:$16 sps:$4 sm:$0xff]  }
 0x5f7   :  { %8522 = vmatprep.subr.bf16.mxu1 %v11196_v5  ;;  %8686 = vmatprep.subr.bf16.mxu0 %v11199_v8  ;;  %v11278_v5 = vld [vmem:[#allocation10 + $0x5e0] ss:$16 sps:$4 sm:$0xff]   ;;  %v11281_v8 = vld [vmem:[#allocation10 + $0x5e8] ss:$16 sps:$4 sm:$0xff]  }
 0x5f9   :  { %8523 = vmatpush1.bf16.msra.mxu1 %v11194_v23  ;;  %v11286_v23 = vld [vmem:[#allocation10 + $0x604] ss:$16 sps:$4 sm:$0xff]  }
 0x5fa   :  { %8687 = vmatpush1.bf16.msra.mxu0 %v11197_v32  ;;  %8524 = vmatprep.subr.bf16.mxu1 %v11202_v1  ;;  %v11289_v32 = vld [vmem:[#allocation10 + $0x60c] ss:$16 sps:$4 sm:$0xff]   ;;  %v11284_v1 = vld [vmem:[#allocation10 + $0x600] ss:$16 sps:$4 sm:$0xff]  }
 0x5fb   :  { %8688 = vmatprep.subr.bf16.mxu0 %v11205_v48  ;;  %v6876_v48 = vpack.c.bf16 %v13457_v16, %v13457_v16  ;;  %v11296_v16 = vld [vmem:[#allocation10 + $0x640] ss:$16 sps:$4 sm:$0xff]  }
 0x5fd   :  { %8525 = vmatpush1.bf16.msra.mxu1 %v11200_v20  ;;  %v11287_v20 = vld [vmem:[#allocation10 + $0x608] ss:$16 sps:$4 sm:$0xff]  }
 0x5fe   :  { %8689 = vmatpush1.bf16.msra.mxu0 %v11203_v47  ;;  %8526 = vmatprep.subr.bf16.mxu1 %v11208_v36  ;;  %v11292_v47 = vld [vmem:[#allocation10 + $0x624] ss:$16 sps:$4 sm:$0xff]   ;;  %v6879_v36 = vpack.c.bf16 %v13465_v52, %v13465_v52  ;;  %v11307_v52 = vld [vmem:[#allocation10 + $0x66c] ss:$16 sps:$4 sm:$0xff]  }
 0x5ff   :  { %8690 = vmatprep.subr.bf16.mxu0 %v11211_v50  ;;  %v11295_v50 = vld [vmem:[#allocation10 + $0x62c] ss:$16 sps:$4 sm:$0xff]  }
 0x601   :  { %8527 = vmatpush1.bf16.msra.mxu1 %v11206_v56  ;;  %v11290_v56 = vld [vmem:[#allocation10 + $0x620] ss:$16 sps:$4 sm:$0xff]  }
 0x602   :  { %8691 = vmatpush1.bf16.msra.mxu0 %v11209_v30  ;;  %8528 = vmatprep.subr.bf16.mxu1 %v11214_v22  ;;  %v11293_v30 = vld [vmem:[#allocation10 + $0x628] ss:$16 sps:$4 sm:$0xff]   ;;  %v11298_v22 = vld [vmem:[#allocation10 + $0x644] ss:$16 sps:$4 sm:$0xff]  }
 0x603   :  { %8692 = vmatprep.subr.bf16.mxu0 %v11217_v17  ;;  %v11301_v17 = vld [vmem:[#allocation10 + $0x64c] ss:$16 sps:$4 sm:$0xff]  }
 0x605   :  { %8529 = vmatpush1.bf16.msra.mxu1 %v11212_v40  ;;  %v11299_v40 = vld [vmem:[#allocation10 + $0x648] ss:$16 sps:$4 sm:$0xff]  }
 0x606   :  { %8693 = vmatpush1.bf16.msra.mxu0 %v11215_v51  ;;  %8530 = vmatprep.subr.bf16.mxu1 %v11220_v54  ;;  %v11304_v51 = vld [vmem:[#allocation10 + $0x664] ss:$16 sps:$4 sm:$0xff]   ;;  %v11302_v54 = vld [vmem:[#allocation10 + $0x660] ss:$16 sps:$4 sm:$0xff]  }
 0x607   :  { %8694 = vmatprep.subr.bf16.mxu0 %v11223_v46  ;;  %v11305_v46 = vld [vmem:[#allocation10 + $0x668] ss:$16 sps:$4 sm:$0xff]  }
 0x609   :  { %8531 = vmatpush1.bf16.msra.mxu1 %v11218_v7  ;;  %v11310_v7 = vld [vmem:[#allocation10 + $0x684] ss:$16 sps:$4 sm:$0xff]  }
 0x60a   :  { %8695 = vmatpush1.bf16.msra.mxu0 %v11221_v34  ;;  %8532 = vmatprep.subr.bf16.mxu1 %v11226_v12  ;;  %v11313_v34 = vld [vmem:[#allocation10 + $0x68c] ss:$16 sps:$4 sm:$0xff]   ;;  %v11308_v12 = vld [vmem:[#allocation10 + $0x680] ss:$16 sps:$4 sm:$0xff]  }
 0x60b   :  { %8696 = vmatprep.subr.bf16.mxu0 %v11229_v13  ;;  %v11311_v13 = vld [vmem:[#allocation10 + $0x688] ss:$16 sps:$4 sm:$0xff]  }
 0x60d   :  { %8533 = vmatpush1.bf16.msra.mxu1 %v11224_v24  ;;  %v11316_v24 = vld [vmem:[#allocation10 + $0x6a4] ss:$16 sps:$4 sm:$0xff]  }
 0x60e   :  { %8697 = vmatpush1.bf16.msra.mxu0 %v11227_v18  ;;  %8534 = vmatprep.subr.bf16.mxu1 %v11232_v26  ;;  %v11319_v18 = vld [vmem:[#allocation10 + $0x6ac] ss:$16 sps:$4 sm:$0xff]   ;;  %v11314_v26 = vld [vmem:[#allocation10 + $0x6a0] ss:$16 sps:$4 sm:$0xff]  }
 0x60f   :  { %8698 = vmatprep.subr.bf16.mxu0 %v11235_v43  ;;  %v11317_v43 = vld [vmem:[#allocation10 + $0x6a8] ss:$16 sps:$4 sm:$0xff]  }
 0x611   :  { %8535 = vmatpush1.bf16.msra.mxu1 %v11230_v53  ;;  %v11322_v53 = vld [vmem:[#allocation10 + $0x6c4] ss:$16 sps:$4 sm:$0xff]  }
 0x612   :  { %8699 = vmatpush1.bf16.msra.mxu0 %v11233_v44  ;;  %8536 = vmatprep.subr.bf16.mxu1 %v11238_v19  ;;  %v11325_v44 = vld [vmem:[#allocation10 + $0x6cc] ss:$16 sps:$4 sm:$0xff]   ;;  %v11320_v19 = vld [vmem:[#allocation10 + $0x6c0] ss:$16 sps:$4 sm:$0xff]  }
 0x613   :  { %8700 = vmatprep.subr.bf16.mxu0 %v11241_v25  ;;  %v11323_v25 = vld [vmem:[#allocation10 + $0x6c8] ss:$16 sps:$4 sm:$0xff]  }
 0x615   :  { %8537 = vmatpush1.bf16.msra.mxu1 %v11236_v6  ;;  %v11328_v6 = vld [vmem:[#allocation10 + $0x6e4] ss:$16 sps:$4 sm:$0xff]  }
 0x616   :  { %8701 = vmatpush1.bf16.msra.mxu0 %v11239_v61  ;;  %8538 = vmatprep.subr.bf16.mxu1 %v11244_v4  ;;  %v11331_v61 = vld [vmem:[#allocation10 + $0x6ec] ss:$16 sps:$4 sm:$0xff]   ;;  %v11326_v4 = vld [vmem:[#allocation10 + $0x6e0] ss:$16 sps:$4 sm:$0xff]  }
 0x617   :  { %8702 = vmatprep.subr.bf16.mxu0 %v11247_v29  ;;  %v11329_v29 = vld [vmem:[#allocation10 + $0x6e8] ss:$16 sps:$4 sm:$0xff]  }
 0x619   :  { %8539 = vmatpush1.bf16.msra.mxu1 %v11242_v63  ;;  %v11334_v63 = vld [vmem:[#allocation10 + $0x704] ss:$16 sps:$4 sm:$0xff]  }
 0x61a   :  { %8703 = vmatpush1.bf16.msra.mxu0 %v11245_v39  ;;  %8540 = vmatprep.subr.bf16.mxu1 %v11250_v14  ;;  %v11337_v39 = vld [vmem:[#allocation10 + $0x70c] ss:$16 sps:$4 sm:$0xff]   ;;  %v11332_v14 = vld [vmem:[#allocation10 + $0x700] ss:$16 sps:$4 sm:$0xff]  }
 0x61b   :  { %8704 = vmatprep.subr.bf16.mxu0 %v11253_v58  ;;  %v11335_v58 = vld [vmem:[#allocation10 + $0x708] ss:$16 sps:$4 sm:$0xff]  }
 0x61d   :  { %8541 = vmatpush1.bf16.msra.mxu1 %v11248_v49  ;;  %v11340_v49 = vld [vmem:[#allocation10 + $0x724] ss:$16 sps:$4 sm:$0xff]  }
 0x61e   :  { %8705 = vmatpush1.bf16.msra.mxu0 %v11251_v21  ;;  %8542 = vmatprep.subr.bf16.mxu1 %v11256_v27  ;;  %v11343_v21 = vld [vmem:[#allocation10 + $0x72c] ss:$16 sps:$4 sm:$0xff]   ;;  %v11338_v27 = vld [vmem:[#allocation10 + $0x720] ss:$16 sps:$4 sm:$0xff]  }
 0x61f   :  { %8706 = vmatprep.subr.bf16.mxu0 %v11259_v3  ;;  %v11341_v3 = vld [vmem:[#allocation10 + $0x728] ss:$16 sps:$4 sm:$0xff]  }
 0x621   :  { %8543 = vmatpush1.bf16.msra.mxu1 %v11254_v31  ;;  %v11346_v31 = vld [vmem:[#allocation10 + $0x744] ss:$16 sps:$4 sm:$0xff]  }
 0x622   :  { %8707 = vmatpush1.bf16.msra.mxu0 %v11257_v10  ;;  %8544 = vmatprep.subr.bf16.mxu1 %v11262_v35  ;;  %v11349_v10 = vld [vmem:[#allocation10 + $0x74c] ss:$16 sps:$4 sm:$0xff]   ;;  %v11344_v35 = vld [vmem:[#allocation10 + $0x740] ss:$16 sps:$4 sm:$0xff]  }
 0x623   :  { %8708 = vmatprep.subr.bf16.mxu0 %v11265_v28  ;;  %v11347_v28 = vld [vmem:[#allocation10 + $0x748] ss:$16 sps:$4 sm:$0xff]  }
 0x625   :  { %8545 = vmatpush1.bf16.msra.mxu1 %v11260_v11  ;;  %v11352_v11 = vld [vmem:[#allocation10 + $0x764] ss:$16 sps:$4 sm:$0xff]  }
 0x626   :  { %8709 = vmatpush1.bf16.msra.mxu0 %v11263_v45  ;;  %8546 = vmatprep.subr.bf16.mxu1 %v11268_v60  ;;  %v11355_v45 = vld [vmem:[#allocation10 + $0x76c] ss:$16 sps:$4 sm:$0xff]   ;;  %v11350_v60 = vld [vmem:[#allocation10 + $0x760] ss:$16 sps:$4 sm:$0xff]  }
 0x627   :  { %8710 = vmatprep.subr.bf16.mxu0 %v11271_v55  ;;  %v11353_v55 = vld [vmem:[#allocation10 + $0x768] ss:$16 sps:$4 sm:$0xff]  }
 0x629   :  { %8547 = vmatpush1.bf16.msra.mxu1 %v11266_v41  ;;  %v11358_v41 = vld [vmem:[#allocation10 + $0x784] ss:$16 sps:$4 sm:$0xff]  }
 0x62a   :  { %8711 = vmatpush1.bf16.msra.mxu0 %v11269_v2  ;;  %8548 = vmatprep.subr.bf16.mxu1 %v11274_v0  ;;  %v11361_v2 = vld [vmem:[#allocation10 + $0x78c] ss:$16 sps:$4 sm:$0xff]   ;;  %v11356_v0 = vld [vmem:[#allocation10 + $0x780] ss:$16 sps:$4 sm:$0xff]  }
 0x62b   :  { %8712 = vmatprep.subr.bf16.mxu0 %v11277_v62  ;;  %v11359_v62 = vld [vmem:[#allocation10 + $0x788] ss:$16 sps:$4 sm:$0xff]  }
 0x62d   :  { %8549 = vmatpush1.bf16.msra.mxu1 %v11272_v57  ;;  %v11364_v57 = vld [vmem:[#allocation10 + $0x7a4] ss:$16 sps:$4 sm:$0xff]  }
 0x62e   :  { %8713 = vmatpush1.bf16.msra.mxu0 %v11275_v33  ;;  %8550 = vmatprep.subr.bf16.mxu1 %v11280_v9  ;;  %v11367_v33 = vld [vmem:[#allocation10 + $0x7ac] ss:$16 sps:$4 sm:$0xff]   ;;  %v11362_v9 = vld [vmem:[#allocation10 + $0x7a0] ss:$16 sps:$4 sm:$0xff]  }
 0x62f   :  { %8714 = vmatprep.subr.bf16.mxu0 %v11283_v15  ;;  %v11365_v15 = vld [vmem:[#allocation10 + $0x7a8] ss:$16 sps:$4 sm:$0xff]  }
 0x631   :  { %8551 = vmatpush1.bf16.msra.mxu1 %v11278_v5  ;;  %v11370_v5 = vld [vmem:[#allocation10 + $0x7c4] ss:$16 sps:$4 sm:$0xff]  }
 0x632   :  { %8715 = vmatpush1.bf16.msra.mxu0 %v11281_v8  ;;  %8561 = vmatprep.subr.bf16.mxu1 %v11286_v23  ;;  %v11373_v8 = vld [vmem:[#allocation10 + $0x7cc] ss:$16 sps:$4 sm:$0xff]   ;;  %v11368_v23 = vld [vmem:[#allocation10 + $0x7c0] ss:$16 sps:$4 sm:$0xff]  }
 0x633   :  { %8725 = vmatprep.subr.bf16.mxu0 %v11289_v32  ;;  %v11371_v32 = vld [vmem:[#allocation10 + $0x7c8] ss:$16 sps:$4 sm:$0xff]  }
 0x634   :  { %8553 = vmatmul.mubr.bf16.vlgmr.msra.gmra.mrb[16].mxu1 %v6876_v48 }
 0x635   :  { %8717 = vmatmul.mubr.bf16.vlgmr.msra.gmra.mrb[28].mxu0 %v6876_v48  ;;  %8562 = vmatpush1.bf16.msra.mxu1 %v11284_v1  ;;  %v11376_v1 = vld [vmem:[#allocation10 + $0x7e4] ss:$16 sps:$4 sm:$0xff]   ;;  %v11379_v48 = vld [vmem:[#allocation10 + $0x7ec] ss:$16 sps:$4 sm:$0xff]  }
 0x636   :  { %8593 = vmatprep.mubr.bf16.mxu1 %v6879_v36  ;;  %8726 = vmatpush1.bf16.msra.mxu0 %v11287_v20  ;;  %v11374_v20 = vld [vmem:[#allocation10 + $0x7e0] ss:$16 sps:$4 sm:$0xff]  }
 0x637   :  { %8757 = vmatprep.mubr.bf16.mxu0 %v6879_v36  ;;  %8563 = vmatprep.subr.bf16.mxu1 %v11292_v47  ;;  %v11377_v47 = vld [vmem:[#allocation10 + $0x7e8] ss:$16 sps:$4 sm:$0xff]  }
 0x638   :  { %8727 = vmatprep.subr.bf16.mxu0 %v11295_v50  ;;  %v11380_v36 = vld [vmem:[#allocation13 + $0x40] sm:$0xff]  }
 0x639   :  { %8564 = vmatpush1.bf16.msra.mxu1 %v11290_v56  ;;  %v11381_v50 = vld [vmem:[#allocation13] sm:$0xff]   ;;  %v6878_v56 = vpack.c.bf16 %v13461_v59, %v13461_v59  ;;  %v11390_v59 = vld [vmem:[#allocation13 + $0x68] sm:$0xff]  }
 0x63a   :  { %8728 = vmatpush1.bf16.msra.mxu0 %v11293_v30  ;;  %8565 = vmatprep.subr.bf16.mxu1 %v11298_v22  ;;  %v11382_v30 = vld [vmem:[#allocation13 + $0x48] sm:$0xff]  }
 0x63b   :  { %8729 = vmatprep.subr.bf16.mxu0 %v11301_v17  ;;  %v11383_v22 = vld [vmem:[#allocation13 + $0x8] sm:$0xff]   ;;  %v11384_v17 = vld [vmem:[#allocation13 + $0x50] sm:$0xff]  }
 0x63d   :  { %8566 = vmatpush1.bf16.msra.mxu1 %v11296_v16  ;;  %v11385_v16 = vld [vmem:[#allocation13 + $0x10] sm:$0xff]  }
 0x63e   :  { %8730 = vmatpush1.bf16.msra.mxu0 %v11299_v40  ;;  %8567 = vmatprep.subr.bf16.mxu1 %v11304_v51  ;;  %v11386_v40 = vld [vmem:[#allocation13 + $0x58] sm:$0xff]  }
 0x63f   :  { %8731 = vmatprep.subr.bf16.mxu0 %v11307_v52  ;;  %v11387_v51 = vld [vmem:[#allocation13 + $0x18] sm:$0xff]   ;;  %v11388_v52 = vld [vmem:[#allocation13 + $0x60] sm:$0xff]  }
 0x641   :  { %8568 = vmatpush1.bf16.msra.mxu1 %v11302_v54  ;;  %v11389_v54 = vld [vmem:[#allocation13 + $0x20] sm:$0xff]  }
 0x642   :  { %8732 = vmatpush1.bf16.msra.mxu0 %v11305_v46  ;;  %8569 = vmatprep.subr.bf16.mxu1 %v11310_v7  ;;  %v11391_v46 = vld [vmem:[#allocation13 + $0x28] sm:$0xff]   ;;  %v11392_v7 = vld [vmem:[#allocation13 + $0x70] sm:$0xff]  }
 0x643   :  { %8733 = vmatprep.subr.bf16.mxu0 %v11313_v34  ;;  %v11393_v34 = vld [vmem:[#allocation13 + $0x30] sm:$0xff]  }
 0x645   :  { %8570 = vmatpush1.bf16.msra.mxu1 %v11308_v12  ;;  %v11394_v12 = vld [vmem:[#allocation13 + $0x78] sm:$0xff]  }
 0x646   :  { %8734 = vmatpush1.bf16.msra.mxu0 %v11311_v13  ;;  %8571 = vmatprep.subr.bf16.mxu1 %v11316_v24  ;;  %v11395_v13 = vld [vmem:[#allocation13 + $0x38] sm:$0xff]   ;;  %v11396_v24 = vld [vmem:[#allocation13 + $0xc0] sm:$0xff]  }
 0x647   :  { %8735 = vmatprep.subr.bf16.mxu0 %v11319_v18  ;;  %v7136_v18 = vld [vmem:[#allocation11] sm:$0xf] }
 0x649   :  { %8572 = vmatpush1.bf16.msra.mxu1 %v11314_v26  ;;  %v7152_v26 = vsub.s32 3, %v13802_v37 }
 0x64a   :  { %8736 = vmatpush1.bf16.msra.mxu0 %v11317_v43  ;;  %8573 = vmatprep.subr.bf16.mxu1 %v11322_v53  ;;  %v7141_v43 = vrot.slane %v7136_v18, %v13800_v38  ;;  %v7145_v53 = vrot.slane %v7136_v18, %v13801_v42 }
 0x64b   :  { %8737 = vmatprep.subr.bf16.mxu0 %v11325_v44  ;;  %v7153_v44 = vrot.slane %v7136_v18, %v7152_v26 }
 0x64d   :  { %8574 = vmatpush1.bf16.msra.mxu1 %v11320_v19 }
 0x64e   :  { %8738 = vmatpush1.bf16.msra.mxu0 %v11323_v25  ;;  %8575 = vmatprep.subr.bf16.mxu1 %v11328_v6 }
 0x64f   :  { %8739 = vmatprep.subr.bf16.mxu0 %v11331_v61 }
 0x651   :  { %8576 = vmatpush1.bf16.msra.mxu1 %v11326_v4 }
 0x652   :  { %8740 = vmatpush1.bf16.msra.mxu0 %v11329_v29  ;;  %8577 = vmatprep.subr.bf16.mxu1 %v11334_v63 }
 0x653   :  { %8741 = vmatprep.subr.bf16.mxu0 %v11337_v39 }
 0x655   :  { %8578 = vmatpush1.bf16.msra.mxu1 %v11332_v14 }
 0x656   :  { %8742 = vmatpush1.bf16.msra.mxu0 %v11335_v58  ;;  %8579 = vmatprep.subr.bf16.mxu1 %v11340_v49 }
 0x657   :  { %8743 = vmatprep.subr.bf16.mxu0 %v11343_v21 }
 0x659   :  { %8580 = vmatpush1.bf16.msra.mxu1 %v11338_v27 }
 0x65a   :  { %8744 = vmatpush1.bf16.msra.mxu0 %v11341_v3  ;;  %8581 = vmatprep.subr.bf16.mxu1 %v11346_v31 }
 0x65b   :  { %8745 = vmatprep.subr.bf16.mxu0 %v11349_v10  ;;  %v11397_v10 = vld [vmem:[#allocation13 + $0x80] sm:$0xff]  }
 0x65d   :  { %8582 = vmatpush1.bf16.msra.mxu1 %v11344_v35  ;;  %v11398_v35 = vld [vmem:[#allocation13 + $0xc8] sm:$0xff]  }
 0x65e   :  { %8746 = vmatpush1.bf16.msra.mxu0 %v11347_v28  ;;  %8583 = vmatprep.subr.bf16.mxu1 %v11352_v11  ;;  %v11399_v28 = vld [vmem:[#allocation13 + $0x88] sm:$0xff]   ;;  %v11400_v11 = vld [vmem:[#allocation13 + $0xd0] sm:$0xff]  }
 0x65f   :  { %8747 = vmatprep.subr.bf16.mxu0 %v11355_v45  ;;  %v11401_v45 = vld [vmem:[#allocation13 + $0x90] sm:$0xff]  }
 0x661   :  { %8584 = vmatpush1.bf16.msra.mxu1 %v11350_v60  ;;  %v11402_v60 = vld [vmem:[#allocation13 + $0xd8] sm:$0xff]  }
 0x662   :  { %8748 = vmatpush1.bf16.msra.mxu0 %v11353_v55  ;;  %8585 = vmatprep.subr.bf16.mxu1 %v11358_v41  ;;  %v11403_v55 = vld [vmem:[#allocation13 + $0x98] sm:$0xff]   ;;  %v11404_v41 = vld [vmem:[#allocation13 + $0xe0] sm:$0xff]  }
 0x663   :  { %8749 = vmatprep.subr.bf16.mxu0 %v11361_v2  ;;  %v11405_v2 = vld [vmem:[#allocation13 + $0xa0] sm:$0xff]  }
 0x665   :  { %8586 = vmatpush1.bf16.msra.mxu1 %v11356_v0  ;;  %v11406_v0 = vld [vmem:[#allocation13 + $0xe8] sm:$0xff]  }
 0x666   :  { %8750 = vmatpush1.bf16.msra.mxu0 %v11359_v62  ;;  %8587 = vmatprep.subr.bf16.mxu1 %v11364_v57  ;;  %v11407_v62 = vld [vmem:[#allocation13 + $0xa8] sm:$0xff]   ;;  %v13803_v57 = vsub.s32 2, %v13802_v37 }
 0x667   :  { %8751 = vmatprep.subr.bf16.mxu0 %v11367_v33 }
 0x668   :  { %v7149_v33 = vrot.slane %v7136_v18, %v13803_v57 }
 0x669   :  { %8588 = vmatpush1.bf16.msra.mxu1 %v11362_v9  ;;  %v11408_v9 = vld [vmem:[#allocation13 + $0xf0] sm:$0xff]  }
 0x66a   :  { %8752 = vmatpush1.bf16.msra.mxu0 %v11365_v15  ;;  %8589 = vmatprep.subr.bf16.mxu1 %v11370_v5  ;;  %v11409_v15 = vld [vmem:[#allocation13 + $0xb0] sm:$0xff]  }
 0x66b   :  { %8753 = vmatprep.subr.bf16.mxu0 %v11373_v8  ;;  %v11410_v8 = vld [vmem:[#allocation13 + $0xf8] sm:$0xff]  }
 0x66d   :  { %8590 = vmatpush1.bf16.msra.mxu1 %v11368_v23  ;;  %v11411_v23 = vld [vmem:[#allocation13 + $0xb8] sm:$0xff]  }
 0x66e   :  { %8754 = vmatpush1.bf16.msra.mxu0 %v11371_v32  ;;  %8591 = vmatprep.subr.bf16.mxu1 %v11376_v1 }
 0x66f   :  { %8755 = vmatprep.subr.bf16.mxu0 %v11379_v48 }
 0x671   :  { %8592 = vmatpush1.bf16.msra.mxu1 %v11374_v20 }
 0x672   :  { %8756 = vmatpush1.bf16.msra.mxu0 %v11377_v47  ;;  %10030 = vmatprep.subr.bf16.mxu1 %v11380_v36 }
 0x674   :  { %8594 = vmatmul.mubr.bf16.vlgmr.msra.gmra.mrb[16].mxu1 %v6878_v56 }
 0x675   :  { %8758 = vmatmul.mubr.bf16.vlgmr.msra.gmra.mrb[28].mxu0 %v6878_v56  ;;  %10031 = vmatpush3.bf16.msra.mxu1 %v11381_v50  ;;  %v9996_v50 = vld [vmem:[#allocation14] ss:$0 sm:$0xff] }
 0x676   :  { %10032 = vmatprep.subr.bf16.mxu1 %v11382_v30 }
 0x679   :  { %10033 = vmatpush3.bf16.msra.mxu1 %v11383_v22 }
 0x67a   :  { %10034 = vmatprep.subr.bf16.mxu1 %v11384_v17 }
 0x67d   :  { %10035 = vmatpush3.bf16.msra.mxu1 %v11385_v16 }
 0x67e   :  { %10036 = vmatprep.subr.bf16.mxu1 %v11386_v40 }
 0x681   :  { %10037 = vmatpush3.bf16.msra.mxu1 %v11387_v51 }
 0x682   :  { %10038 = vmatprep.subr.bf16.mxu1 %v11388_v52  ;;  %v10029_v52 = vld [vmem:[#allocation16] ss:$0 sm:$0xff] }
 0x685   :  { %10039 = vmatpush3.bf16.msra.mxu1 %v11389_v54 }
 0x686   :  { %10040 = vmatprep.subr.bf16.mxu1 %v11390_v59 }
 0x689   :  { %10041 = vmatpush3.bf16.msra.mxu1 %v11391_v46 }
 0x68a   :  { %10042 = vmatprep.subr.bf16.mxu1 %v11392_v7 }
 0x68d   :  { %10043 = vmatpush3.bf16.msra.mxu1 %v11393_v34 }
 0x68e   :  { %10044 = vmatprep.subr.bf16.mxu1 %v11394_v12 }
 0x691   :  { %10045 = vmatpush3.bf16.msra.mxu1 %v11395_v13 }
 0x692   :  { %10052 = vmatprep.subr.bf16.mxu1 %v11396_v24 }
 0x747   :  { %v8595_v19 = vpop.f32.mrb[16].mxu1 }
 0x748   :  { %v10074_v25 = vadd.f32 %v8595_v19, %v7141_v43  ;;  %v8759_v6 = vpop.f32.mrb[28].mxu0  ;;  %v8597_v61 = vpop.f32.mrb[17].mxu1 }
 0x749   :  { %v10075_v4 = vadd.f32 %v8597_v61, %v7145_v53  ;;  %v8761_v29 = vpop.f32.mrb[29].mxu0  ;;  %v8599_v63 = vpop.f32.mrb[18].mxu1  ;;  %v10076_v5 = vadd.f32 %v8759_v6, %v7149_v33 }
 0x74a   :  { %v8766_v39 = vmax.f32 %v10074_v25, 0.0  ;;  %v10077_v14 = vadd.f32 %v8761_v29, %v7153_v44  ;;  %v8763_v58 = vpop.f32.mrb[30].mxu0  ;;  %v8600_v49 = vpop.f32.mrb[19].mxu1 }
 0x74b   :  { %v8767_v21 = vmax.f32 %v10075_v4, 0.0  ;;  %v8764_v27 = vpop.f32.mrb[31].mxu0  ;;  %v8768_v32 = vmax.f32 %v10076_v5, 0.0 }
 0x74c   :  { %v8769_v3 = vmax.f32 %v10077_v14, 0.0  ;;  %v8770_v38 = vpack.c.bf16 %v8766_v39, %v8766_v39 }
 0x74d   :  { %v8771_v31 = vpack.c.bf16 %v8767_v21, %v8767_v21  ;;  %v8772_v1 = vpack.c.bf16 %v8768_v32, %v8768_v32 }
 0x74e   :  { %v8773_v42 = vpack.c.bf16 %v8769_v3, %v8769_v3 }
 0x74f   :  { %9069 = vmatprep.mubr.bf16.mxu1 %v8771_v31 }
 0x750   :  { %9070 = vmatmul.mubr.bf16.vlgmr.msra.gmra.mrb[20].mxu1 %v8770_v38 }
 0x751   :  { %10053 = vmatpush3.bf16.msra.mxu1 %v11397_v10  ;;  %9109 = vmatprep.mubr.bf16.mxu1 %v8773_v42 }
 0x752   :  { %10054 = vmatprep.subr.bf16.mxu1 %v11398_v35 }
 0x755   :  { %10055 = vmatpush3.bf16.msra.mxu1 %v11399_v28 }
 0x756   :  { %10056 = vmatprep.subr.bf16.mxu1 %v11400_v11 }
 0x759   :  { %10057 = vmatpush3.bf16.msra.mxu1 %v11401_v45 }
 0x75a   :  { %10058 = vmatprep.subr.bf16.mxu1 %v11402_v60 }
 0x75d   :  { %10059 = vmatpush3.bf16.msra.mxu1 %v11403_v55 }
 0x75e   :  { %10060 = vmatprep.subr.bf16.mxu1 %v11404_v41 }
 0x761   :  { %10061 = vmatpush3.bf16.msra.mxu1 %v11405_v2 }
 0x762   :  { %10062 = vmatprep.subr.bf16.mxu1 %v11406_v0 }
 0x765   :  { %10063 = vmatpush3.bf16.msra.mxu1 %v11407_v62 }
 0x766   :  { %10064 = vmatprep.subr.bf16.mxu1 %v11408_v9 }
 0x769   :  { %10065 = vmatpush3.bf16.msra.mxu1 %v11409_v15 }
 0x76a   :  { %10066 = vmatprep.subr.bf16.mxu1 %v11410_v8 }
 0x76d   :  { %10067 = vmatpush3.bf16.msra.mxu1 %v11411_v23 }
 0x770   :  { %9110 = vmatmul.mubr.bf16.vlgmr.msra.gmra.mrb[24].mxu1 %v8772_v1 }
 0x823   :  { %v10046_v48 = vpop.f32.mrb[20].mxu1 }
 0x824   :  { %v10047_v20 = vpop.f32.mrb[21].mxu1 }
 0x825   :  { %v10048_v47 = vadd.f32 %v10047_v20, %v10046_v48  ;;  %v10049_v36 = vpop.f32.mrb[22].mxu1 }
 0x826   :  { %v10050_v37 = vpop.f32.mrb[23].mxu1 }
 0x827   :  { %v9072_v22 = vadd.f32 %v10048_v47, %v9996_v50 }
 0x843   :  { %v10068_v56 = vpop.f32.mrb[24].mxu1 }
 0x844   :  { %v10069_v30 = vpop.f32.mrb[25].mxu1 }
 0x845   :  { %v10070_v17 = vadd.f32 %v10069_v30, %v10068_v56  ;;  %v10071_v16 = vpop.f32.mrb[26].mxu1 }
 0x846   :  { %v10072_v40 = vpop.f32.mrb[27].mxu1 }
 0x847   :  { %v9112_v51 = vadd.f32 %v10070_v17, %v9072_v22 }
 0x849   :  { %v9117_v54 = vmax.f32 %v9112_v51, 0.0 }
 0x84b   :  { %v9125_v59 = vadd.f32 %v10029_v52, %v9117_v54 }
 0x84d   :  { %v9126_v46 = vsel %vm1577_vm7, %v9125_v59, -inf }
 0x84e   :  { %9127 = vmax.xlane.f32.xlu0 %v9126_v46 }
 0x8db   :  { %v9128_v7 = vpop.xlane.xlu0 %9127 }
 0x8dc   :  { %v9129_v34 = vsub.f32 %v9125_v59, %v9128_v7 }
 0x8de   :  { %v9130_v12 = vmul.f32 1.442695, %v9129_v34 }
 0x8e0   :  { %11412 = vpow2.f32 %v9130_v12 }
 0x8ea   :  { %v11413_v13 = vpop.eup %11412 }
 0x8eb   :  { %v9132_v24 = vsel %vm1577_vm7, %v11413_v13, 0.0 }
 0x8ec   :  { %9133 = vadd.xlane.f32.xlu1 %v9132_v24 }
 0x979   :  { %v9134_v18 = vpop.xlane.xlu1 %9133 }
 0x97a   :  { %11414 = vlog2.f32 %v9134_v18 }
 0x984   :  { %v11415_v26 = vpop.eup %11414 }
 0x985   :  { %v9136_v43 = vmul.f32 0.6931472, %v11415_v26 }
 0x987   :  { %v9137_v53 = vadd.f32 %v9136_v43, %v9128_v7 }
 0x989   :  { %v9138_v44 = vsub.f32 %v9125_v59, %v9137_v53 }
 0x98b   :  { %9139 = vst [vmem:[#allocation17] sm:$0x3] %v9138_v44 }
 0x98c   :  { %11626 = shalt.err (!%p11623_p6)
}
 0x98d   :  { %s11627_s28 = scalar_lea.hbm %s13506_s10, 32 }
 0x98e   :  { %p11628_p7 = scmp.ne.s32.totalorder %s13506_s10, %s11627_s28  ;;  %p11631_p8 = scmp.lt.u32.totalorder %s11627_s28, %s13506_s10 }
 0x990   :  { %p11633_p9 = pnand %p11631_p8, %p11628_p7 }
 0x992   :  { %11636 = shalt.err (!%p11633_p9)
}
 0x993   :  { %9149 = dma.vmem_to_hbm [thread:$0]  %s9147_s23, 32, %s13506_s10, [#allocation4]  }
 0x994   :  { %11647 = dma.done.wait [#allocation4], 32  }
 0x995   :  { %11648 = vsyncadd [#allocation4], 4294967264 }
 0x996   :  { %9153 = vsyncpa [#allocation3], 1 }
 0x997   :  { %9154 = vsyncpa [#allocation6], 1 }
 0x998   :  { %9155 = vsyncpa [#allocation9], 1 }
 0x999   :  { %9156 = vsyncpa [#allocation12], 1 }
 0x99a   :  { %9157 = vsyncpa [#allocation15], 1 }
 0x99b   :  { %9158 = vsyncpa [#allocation4], 1 }

</bundles_post_ra>
